<compile_context>
chip_gen: v5e
topology: v5e:2x2
jax: 0.10.0
libtpu: 0.0.40
codegen_flags: <defaults>
</compile_context>

<pallas_src>
import math

import jax
import jax.numpy as jnp
from jax import lax
from jax.experimental import pallas as pl
from jax.experimental.pallas import tpu as pltpu

CTX_DIM = 12  # x[..., :12] -> context, x[..., 12:] -> movement


def make_forward_kernel(TB, T, F, HP, OP, L):
    """TB batch rows per grid step; time-major x; gates padded to HP lanes."""

    def kernel(*refs):
        it = iter(refs)
        x_ref = next(it)                            # (T, TB, F)   time-major
        wemb_ref, bemb_ref = next(it), next(it)     # (F, F) block-diag, (1, F)
        wcomb_ref, bcomb_ref = next(it), next(it)   # (F, F) row-reordered, (1, F)
        w_ih0_ref = next(it)                        # (F, 4*HP)   gate-padded
        w_hh0_ref = next(it)                        # (HP, 4*HP)
        b0_ref = next(it)                           # (1, 4*HP)   b_ih + b_hh
        w_fused = [next(it) for _ in range(L - 1)]  # (2*HP, 4*HP) = [w_ih; w_hh]
        b_fused = [next(it) for _ in range(L - 1)]  # (1, 4*HP)
        wfc_ref, bfc_ref = next(it), next(it)       # (HP, OP), (1, OP)
        h0_ref, c0_ref = next(it), next(it)         # (L, TB, HP)
        out_ref = next(it)                          # (T*TB, OP)  time-major
        hout_ref, cout_ref = next(it), next(it)     # (L, TB, HP)
        x0_ref = next(it)                           # scratch (T*TB, 4*HP)
        seq_ref = next(it)                          # scratch (T*TB, HP)

        def sigmoid(z):                             # EUP tanh, no VALU divide
            return 0.5 * (jnp.tanh(0.5 * z) + 1.0)

        def mdot(a, b):                             # cast LHS to weight dtype (bf16 opt-in)
            return jnp.dot(a.astype(b.dtype), b, preferred_element_type=jnp.float32)

        # ---- embedding: fused context/movement + combine (lane-clean) ------
        x2 = x_ref[...].reshape(T * TB, F)          # time-major flatten: contiguous
        e = jnp.maximum(mdot(x2, wemb_ref[...]) + bemb_ref[...], 0.0)
        e = jnp.maximum(mdot(e, wcomb_ref[...]) + bcomb_ref[...], 0.0)

        # ---- hoisted layer-0 input projection (biases folded), time-major --
        x0_ref[...] = mdot(e, w_ih0_ref[...]) + b0_ref[...]

        w_hh0 = w_hh0_ref[...]
        wf = [w_fused[l][...] for l in range(L - 1)]
        bf = [b_fused[l][...] for l in range(L - 1)]

        h_init = tuple(h0_ref[l] for l in range(L))
        c_init = tuple(c0_ref[l] for l in range(L))

        def step(t, carry):
            h, c = carry
            h, c = list(h), list(c)
            row = t * TB
            if not isinstance(row, int):
                row = pl.multiple_of(row, TB)       # aligned dynamic start
            for l in range(L):                      # inner layer loop unrolled
                if l == 0:
                    gates = x0_ref[pl.ds(row, TB), :] + mdot(h[0], w_hh0)
                else:
                    # fused [w_ih; w_hh]: one MXU push / drain per cell
                    lhs = jnp.concatenate([h[l - 1], h[l]], axis=-1)
                    gates = mdot(lhs, wf[l - 1]) + bf[l - 1]
                # gate slices land on full-vreg (128-lane) boundaries
                i_g = sigmoid(gates[:, 0 * HP:1 * HP])
                f_g = sigmoid(gates[:, 1 * HP:2 * HP])
                g_g = jnp.tanh(gates[:, 2 * HP:3 * HP])
                o_g = sigmoid(gates[:, 3 * HP:4 * HP])
                c[l] = f_g * c[l] + i_g * g_g
                h[l] = o_g * jnp.tanh(c[l])
            # contiguous, lane-dense (TB, HP) store once per timestep
            seq_ref[pl.ds(row, TB), :] = h[L - 1]
            return tuple(h), tuple(c)

        if T <= 16:                                 # small T: static unroll
            carry = (h_init, c_init)
            for t in range(T):
                carry = step(t, carry)
            h_fin, c_fin = carry
        else:                                       # large T: bound vreg live ranges
            h_fin, c_fin = lax.fori_loop(0, T, step, (h_init, c_init))

        for l in range(L):
            hout_ref[l] = h_fin[l]
            cout_ref[l] = c_fin[l]

        # ---- fc: one lane-dense (T*TB, HP) @ (HP, OP) matmul ----------------
        out_ref[...] = mdot(seq_ref[...], wfc_ref[...]) + bfc_ref[...]

    return kernel


def apply_data_type_mask(x, data_type):
    """Reproduces the in-place masking in BActAnticipationModel.embedding."""
    xc = x[..., :CTX_DIM]
    xm = x[..., CTX_DIM:]
    if 'g' not in data_type:
        xc = xc.at[:, :, 2:].set(-1.0)
    if 'o' not in data_type:
        xc = xc.at[:, :, :2].set(-1.0)
    if 'm' not in data_type:
        xm = jnp.full_like(xm, -1.0)
    return jnp.concatenate([xc, xm], axis=-1)


def init_params(key, F, H, O, L):
    Fm = F - CTX_DIM
    keys = jax.random.split(key, 4 + L)

    def linear(k, out_d, in_d):
        k_w, k_b = jax.random.split(k)
        bound = 1.0 / math.sqrt(in_d)
        w = jax.random.uniform(k_w, (out_d, in_d), jnp.float32, -bound, bound)
        b = jax.random.uniform(k_b, (1, out_d), jnp.float32, -bound, bound)
        return w, b

    wm, bm = linear(keys[0], Fm, Fm)            # MovementModel (approx.)
    wc, bc = linear(keys[1], CTX_DIM, CTX_DIM)  # ContextModel (approx.)
    wcomb, bcomb = linear(keys[2], F, F)        # fc_combine
    wfc, bfc = linear(keys[3], O, H)            # fc
    lstm = []
    for l in range(L):
        in_dim = F if l == 0 else H
        k1, k2, k3, k4 = jax.random.split(keys[4 + l], 4)
        bound = 1.0 / math.sqrt(H)
        w_ih = jax.random.uniform(k1, (4 * H, in_dim), jnp.float32, -bound, bound)
        w_hh = jax.random.uniform(k2, (4 * H, H), jnp.float32, -bound, bound)
        b_ih = jax.random.uniform(k3, (1, 4 * H), jnp.float32, -bound, bound)
        b_hh = jax.random.uniform(k4, (1, 4 * H), jnp.float32, -bound, bound)
        lstm.append((w_ih, w_hh, b_ih, b_hh))
    return dict(wm=wm, bm=bm, wc=wc, bc=bc, wcomb=wcomb, bcomb=bcomb,
                wfc=wfc, bfc=bfc, lstm=lstm)


def prepare_weights(params, F, H, O, L, compute_dtype=jnp.float32):
    """One-time weight reordering / gate padding.  The result is constant
    across forward calls: cache it so only the kernel's own weight DMA remains
    per call.  Set compute_dtype=jnp.bfloat16 on v6e/v7x to halve weight DMA
    and double MXU rate (keep f32 on v5e: no bf16 VPU there)."""
    Fm = F - CTX_DIM
    HP = ((max(H, 128) + 127) // 128) * 128     # hidden padded to full lane width
    OP = ((O + 127) // 128) * 128               # fc output lane-padded

    # Block-diagonal context/movement weight in x's feature order [ctx, mov].
    wemb = jnp.zeros((F, F), jnp.float32)
    wemb = wemb.at[:CTX_DIM, :CTX_DIM].set(params["wc"].T)
    wemb = wemb.at[CTX_DIM:, CTX_DIM:].set(params["wm"].T)
    bemb = jnp.concatenate([params["bc"], params["bm"]], axis=-1)

    # fc_combine consumes cat(movement, context); pre-reorder its input rows so
    # the kernel can feed [ctx, mov] directly with no slicing.
    wcomb_t = params["wcomb"].T                 # rows: [mov(Fm), ctx(12)]
    wcomb_r = jnp.concatenate([wcomb_t[Fm:, :], wcomb_t[:Fm, :]], axis=0)
    bcomb = params["bcomb"]

    def pad_gate_cols(w_t):   # (in, 4H) -> (in, 4*HP); gate k lives at [k*HP : k*HP+H]
        in_dim = w_t.shape[0]
        out = jnp.zeros((in_dim, 4 * HP), jnp.float32)
        for k in range(4):
            out = out.at[:, k * HP:k * HP + H].set(w_t[:, k * H:(k + 1) * H])
        return out

    def pad_gate_rows(w):     # (in, 4*HP) -> (HP, 4*HP), zero rows beyond in
        return jnp.zeros((HP, 4 * HP), jnp.float32).at[:w.shape[0], :].set(w)

    def pad_gate_bias(b):     # (1, 4H) -> (1, 4*HP)
        out = jnp.zeros((1, 4 * HP), jnp.float32)
        for k in range(4):
            out = out.at[:, k * HP:k * HP + H].set(b[:, k * H:(k + 1) * H])
        return out

    w_ih0, w_hh0, b_ih0, b_hh0 = params["lstm"][0]
    lstm0 = (pad_gate_cols(w_ih0.T),                    # (F, 4*HP)
             pad_gate_rows(pad_gate_cols(w_hh0.T)),     # (HP, 4*HP)
             pad_gate_bias(b_ih0 + b_hh0))              # (1, 4*HP)

    fused_w, fused_b = [], []
    for l in range(1, L):
        w_ih, w_hh, b_ih, b_hh = params["lstm"][l]
        wi = pad_gate_rows(pad_gate_cols(w_ih.T))
        wh = pad_gate_rows(pad_gate_cols(w_hh.T))
        fused_w.append(jnp.concatenate([wi, wh], axis=0))   # (2*HP, 4*HP)
        fused_b.append(pad_gate_bias(b_ih + b_hh))

    wfc_p = jnp.zeros((HP, OP), jnp.float32).at[:H, :O].set(params["wfc"].T)
    bfc_p = jnp.zeros((1, OP), jnp.float32).at[:, :O].set(params["bfc"])

    cd = compute_dtype
    return dict(
        wemb=wemb.astype(cd), bemb=bemb,
        wcomb=wcomb_r.astype(cd), bcomb=bcomb,
        lstm0=(lstm0[0].astype(cd), lstm0[1].astype(cd), lstm0[2]),
        fused_w=[w.astype(cd) for w in fused_w], fused_b=fused_b,
        wfc=wfc_p.astype(cd), bfc=bfc_p,
        H=H, O=O, HP=HP, OP=OP)


def bact_forward(x, h0, c0, prepped, data_type="gom", batch_tile=None):
    B, T, F = x.shape
    L, _, H = h0.shape
    HP, OP, O = prepped["HP"], prepped["OP"], prepped["O"]

    x = apply_data_type_mask(x, data_type)

    # Pad batch rows to a multiple of 8 (f32 sublane height) so every recurrent
    # matmul LHS fills whole sublanes; pad hidden state to HP lanes.  The pad
    # lanes of h/c stay exactly zero through the recurrence.
    BP = ((B + 7) // 8) * 8
    if BP != B:
        x = jnp.pad(x, ((0, BP - B), (0, 0), (0, 0)))
        h0 = jnp.pad(h0, ((0, 0), (0, BP - B), (0, 0)))
        c0 = jnp.pad(c0, ((0, 0), (0, BP - B), (0, 0)))
    h0p = jnp.zeros((L, BP, HP), jnp.float32).at[:, :, :H].set(h0)
    c0p = jnp.zeros((L, BP, HP), jnp.float32).at[:, :, :H].set(c0)

    x_tm = jnp.transpose(x, (1, 0, 2)).astype(jnp.float32)   # time-major (T, BP, F)

    if batch_tile is None:
        # Single block per call.  On v7x pass batch_tile = BP // 2 (a multiple
        # of 8 dividing BP) so the "parallel" batch grid shards over both TCs.
        TB = BP
    else:
        TB = batch_tile
    assert BP % TB == 0 and TB % 8 == 0, "batch tile must be a multiple of 8 dividing padded batch"
    nb = BP // TB

    inputs = [x_tm, prepped["wemb"], prepped["bemb"], prepped["wcomb"], prepped["bcomb"],
              *prepped["lstm0"], *prepped["fused_w"], *prepped["fused_b"],
              prepped["wfc"], prepped["bfc"], h0p, c0p]

    def _rep(a):   # weights: same block for every batch grid step
        nd = a.ndim
        return pl.BlockSpec(a.shape, lambda i, _nd=nd: (0,) * _nd)
    # TODO(synk): for large H on v7x (64 MiB VMEM), single-buffer these
    # replicated weight blocks (pipeline_mode=pl.Buffered(1) or one-shot DMA
    # into scratch) so they are not double-buffered.

    in_specs = [pl.BlockSpec((T, TB, F), lambda i: (0, i, 0))]
    in_specs += [_rep(a) for a in inputs[1:-2]]
    in_specs += [pl.BlockSpec((L, TB, HP), lambda i: (0, i, 0)),
                 pl.BlockSpec((L, TB, HP), lambda i: (0, i, 0))]

    out_specs = (pl.BlockSpec((T * TB, OP), lambda i: (i, 0)),
                 pl.BlockSpec((L, TB, HP), lambda i: (0, i, 0)),
                 pl.BlockSpec((L, TB, HP), lambda i: (0, i, 0)))
    out_shapes = (jax.ShapeDtypeStruct((nb * T * TB, OP), jnp.float32),
                  jax.ShapeDtypeStruct((L, BP, HP), jnp.float32),
                  jax.ShapeDtypeStruct((L, BP, HP), jnp.float32))

    # Advisory cost estimate so XLA schedules surrounding ops sensibly.
    flops = 2 * T * BP * (2 * F * F + F * 4 * HP + HP * 4 * HP
                          + (L - 1) * 2 * HP * 4 * HP + HP * OP)
    transc = 5 * T * BP * L * HP
    bytes_acc = (sum(int(a.size) * a.dtype.itemsize for a in inputs)
                 + 4 * (nb * T * TB * OP + 2 * L * BP * HP))

    out_p, h_out, c_out = pl.pallas_call(
        make_forward_kernel(TB, T, F, HP, OP, L),
        out_shape=out_shapes,
        grid=(nb,),
        in_specs=in_specs,
        out_specs=out_specs,
        scratch_shapes=[pltpu.VMEM((T * TB, 4 * HP), jnp.float32),   # x0 (time-major)
                        pltpu.VMEM((T * TB, HP), jnp.float32)],      # last-layer h
        compiler_params=pltpu.CompilerParams(
            dimension_semantics=("parallel",),
            vmem_limit_bytes=32 * 1024 * 1024),
        cost_estimate=pl.CostEstimate(
            flops=int(flops), transcendentals=int(transc),
            bytes_accessed=int(bytes_acc)),
    )(*inputs)

    # Undo the time-major / padded layout outside the kernel (layout plumbing).
    out = (out_p.reshape(nb, T, TB, OP).transpose(0, 2, 1, 3)
           .reshape(BP, T, OP)[:B, :, :O].reshape(B * T, O))
    return out, (h_out[:, :B, :H], c_out[:, :B, :H])


def reference_forward(x, h0, c0, params, data_type="gom"):
    """Pure-JAX reference mirroring the PyTorch forward semantics."""
    B, T, F = x.shape
    L, _, H = h0.shape
    x = apply_data_type_mask(x, data_type)
    xc = x[..., :CTX_DIM]
    xm = x[..., CTX_DIM:]
    xc = jax.nn.relu(xc @ params["wc"].T + params["bc"])
    xm = jax.nn.relu(xm @ params["wm"].T + params["bm"])
    e = jnp.concatenate([xm, xc], axis=-1)
    e = jax.nn.relu(e @ params["wcomb"].T + params["bcomb"])
    layer_in = e
    h_fin, c_fin = [], []
    for l in range(L):
        w_ih, w_hh, b_ih, b_hh = params["lstm"][l]
        h, c = h0[l], c0[l]
        outs = []
        for t in range(T):
            g = layer_in[:, t, :] @ w_ih.T + b_ih + h @ w_hh.T + b_hh
            i_g = jax.nn.sigmoid(g[:, 0 * H:1 * H])
            f_g = jax.nn.sigmoid(g[:, 1 * H:2 * H])
            g_g = jnp.tanh(g[:, 2 * H:3 * H])
            o_g = jax.nn.sigmoid(g[:, 3 * H:4 * H])
            c = f_g * c + i_g * g_g
            h = o_g * jnp.tanh(c)
            outs.append(h)
        layer_in = jnp.stack(outs, axis=1)
        h_fin.append(h)
        c_fin.append(c)
    out = layer_in.reshape(B * T, H) @ params["wfc"].T + params["bfc"]
    return out, (jnp.stack(h_fin), jnp.stack(c_fin))


if __name__ == "__main__":
    B, T = 2, 8                 # batch, sequence length
    F, H, O, L = 16, 32, 10, 2  # input_size, hidden_dim, output_size, n_layers

    key = jax.random.PRNGKey(0)
    kx, kp = jax.random.split(key)
    x = jax.random.normal(kx, (B, T, F), jnp.float32)
    params = init_params(kp, F, H, O, L)
    h0 = jnp.zeros((L, B, H), jnp.float32)
    c0 = jnp.zeros((L, B, H), jnp.float32)

    # One-time weight prep (constant across calls).  Kept f32 here so the
    # numerical check is tight; use compute_dtype=jnp.bfloat16 on v6e/v7x.
    prepped = prepare_weights(params, F, H, O, L, compute_dtype=jnp.float32)

    out, (h_out, c_out) = bact_forward(x, h0, c0, prepped, data_type="gom")
    jax.block_until_ready((out, h_out, c_out))

    ref_out, (ref_h, ref_c) = reference_forward(x, h0, c0, params, data_type="gom")
    assert out.shape == (B * T, O)
    assert jnp.allclose(out, ref_out, atol=2e-4, rtol=2e-4)
    assert jnp.allclose(h_out, ref_h, atol=2e-4, rtol=2e-4)
    assert jnp.allclose(c_out, ref_c, atol=2e-4, rtol=2e-4)
    print("KERNEL_OK")
</pallas_src>

<mosaic_0001>
module attributes {stable_mosaic.version = 11 : i64} {
  func.func @kernel(%arg0: i32, %arg1: memref<8x8x16xf32, #tpu.memory_space<vmem>>, %arg2: memref<16x16xf32, #tpu.memory_space<vmem>>, %arg3: memref<1x16xf32, #tpu.memory_space<vmem>>, %arg4: memref<16x16xf32, #tpu.memory_space<vmem>>, %arg5: memref<1x16xf32, #tpu.memory_space<vmem>>, %arg6: memref<16x512xf32, #tpu.memory_space<vmem>>, %arg7: memref<128x512xf32, #tpu.memory_space<vmem>>, %arg8: memref<1x512xf32, #tpu.memory_space<vmem>>, %arg9: memref<256x512xf32, #tpu.memory_space<vmem>>, %arg10: memref<1x512xf32, #tpu.memory_space<vmem>>, %arg11: memref<128x128xf32, #tpu.memory_space<vmem>>, %arg12: memref<1x128xf32, #tpu.memory_space<vmem>>, %arg13: memref<2x8x128xf32, #tpu.memory_space<vmem>>, %arg14: memref<2x8x128xf32, #tpu.memory_space<vmem>>, %arg15: memref<64x128xf32, #tpu.memory_space<vmem>>, %arg16: memref<2x8x128xf32, #tpu.memory_space<vmem>>, %arg17: memref<2x8x128xf32, #tpu.memory_space<vmem>>, %arg18: memref<64x512xf32, #tpu.memory_space<vmem>>, %arg19: memref<64x128xf32, #tpu.memory_space<vmem>>) attributes {dimension_semantics = [#tpu.dimension_semantics<parallel>], iteration_bounds = array<i64: 1>, scalar_prefetch = 0 : i64, scratch_operands = 2 : i64, tpu.core_type = #tpu.core_type<tc>, window_params = [{transform_indices = @transform_0, window_bounds = array<i64: 8, 8, 16>}, {pipeline_mode = #tpu.pipeline_mode<synchronous>, transform_indices = @transform_1, window_bounds = array<i64: 16, 16>}, {pipeline_mode = #tpu.pipeline_mode<synchronous>, transform_indices = @transform_2, window_bounds = array<i64: 1, 16>}, {pipeline_mode = #tpu.pipeline_mode<synchronous>, transform_indices = @transform_3, window_bounds = array<i64: 16, 16>}, {pipeline_mode = #tpu.pipeline_mode<synchronous>, transform_indices = @transform_4, window_bounds = array<i64: 1, 16>}, {pipeline_mode = #tpu.pipeline_mode<synchronous>, transform_indices = @transform_5, window_bounds = array<i64: 16, 512>}, {pipeline_mode = #tpu.pipeline_mode<synchronous>, transform_indices = @transform_6, window_bounds = array<i64: 128, 512>}, {pipeline_mode = #tpu.pipeline_mode<synchronous>, transform_indices = @transform_7, window_bounds = array<i64: 1, 512>}, {pipeline_mode = #tpu.pipeline_mode<synchronous>, transform_indices = @transform_8, window_bounds = array<i64: 256, 512>}, {pipeline_mode = #tpu.pipeline_mode<synchronous>, transform_indices = @transform_9, window_bounds = array<i64: 1, 512>}, {pipeline_mode = #tpu.pipeline_mode<synchronous>, transform_indices = @transform_10, window_bounds = array<i64: 128, 128>}, {pipeline_mode = #tpu.pipeline_mode<synchronous>, transform_indices = @transform_11, window_bounds = array<i64: 1, 128>}, {transform_indices = @transform_12, window_bounds = array<i64: 2, 8, 128>}, {transform_indices = @transform_13, window_bounds = array<i64: 2, 8, 128>}, {transform_indices = @transform_14, window_bounds = array<i64: 64, 128>}, {transform_indices = @transform_15, window_bounds = array<i64: 2, 8, 128>}, {transform_indices = @transform_16, window_bounds = array<i64: 2, 8, 128>}]} {
    %c0 = arith.constant 0 : index
    %c0_0 = arith.constant 0 : index
    %c0_1 = arith.constant 0 : index
    %0 = vector.load %arg1[%c0, %c0_0, %c0_1] : memref<8x8x16xf32, #tpu.memory_space<vmem>>, vector<8x8x16xf32>
    %1 = vector.shape_cast %0 : vector<8x8x16xf32> to vector<64x16xf32>
    %c0_2 = arith.constant 0 : index
    %c0_3 = arith.constant 0 : index
    %2 = vector.load %arg2[%c0_2, %c0_3] : memref<16x16xf32, #tpu.memory_space<vmem>>, vector<16x16xf32>
    %cst = arith.constant dense<0.000000e+00> : vector<64x16xf32>
    %3 = tpu.matmul %1, %2, %cst {dimension_numbers = #tpu.dot_dimension_numbers<[1], [0], [0], [1], [0, 0, 1, 1], [], []>} : vector<64x16xf32>, vector<16x16xf32>, vector<64x16xf32> -> vector<64x16xf32>
    %c0_4 = arith.constant 0 : index
    %c0_5 = arith.constant 0 : index
    %4 = vector.load %arg3[%c0_4, %c0_5] : memref<1x16xf32, #tpu.memory_space<vmem>>, vector<1x16xf32>
    %5 = vector.broadcast %4 : vector<1x16xf32> to vector<64x16xf32>
    %6 = arith.addf %3, %5 : vector<64x16xf32>
    %cst_6 = arith.constant 0.000000e+00 : f32
    %7 = vector.broadcast %cst_6 : f32 to vector<64x16xf32>
    %8 = arith.maximumf %6, %7 : vector<64x16xf32>
    %c0_7 = arith.constant 0 : index
    %c0_8 = arith.constant 0 : index
    %9 = vector.load %arg4[%c0_7, %c0_8] : memref<16x16xf32, #tpu.memory_space<vmem>>, vector<16x16xf32>
    %cst_9 = arith.constant dense<0.000000e+00> : vector<64x16xf32>
    %10 = tpu.matmul %8, %9, %cst_9 {dimension_numbers = #tpu.dot_dimension_numbers<[1], [0], [0], [1], [0, 0, 1, 1], [], []>} : vector<64x16xf32>, vector<16x16xf32>, vector<64x16xf32> -> vector<64x16xf32>
    %c0_10 = arith.constant 0 : index
    %c0_11 = arith.constant 0 : index
    %11 = vector.load %arg5[%c0_10, %c0_11] : memref<1x16xf32, #tpu.memory_space<vmem>>, vector<1x16xf32>
    %12 = vector.broadcast %11 : vector<1x16xf32> to vector<64x16xf32>
    %13 = arith.addf %10, %12 : vector<64x16xf32>
    %cst_12 = arith.constant 0.000000e+00 : f32
    %14 = vector.broadcast %cst_12 : f32 to vector<64x16xf32>
    %15 = arith.maximumf %13, %14 : vector<64x16xf32>
    %c0_13 = arith.constant 0 : index
    %c0_14 = arith.constant 0 : index
    %16 = vector.load %arg6[%c0_13, %c0_14] : memref<16x512xf32, #tpu.memory_space<vmem>>, vector<16x512xf32>
    %cst_15 = arith.constant dense<0.000000e+00> : vector<64x512xf32>
    %17 = tpu.matmul %15, %16, %cst_15 {dimension_numbers = #tpu.dot_dimension_numbers<[1], [0], [0], [1], [0, 0, 1, 1], [], []>} : vector<64x16xf32>, vector<16x512xf32>, vector<64x512xf32> -> vector<64x512xf32>
    %c0_16 = arith.constant 0 : index
    %c0_17 = arith.constant 0 : index
    %18 = vector.load %arg8[%c0_16, %c0_17] : memref<1x512xf32, #tpu.memory_space<vmem>>, vector<1x512xf32>
    %19 = vector.broadcast %18 : vector<1x512xf32> to vector<64x512xf32>
    %20 = arith.addf %17, %19 : vector<64x512xf32>
    %c0_18 = arith.constant 0 : index
    %c0_19 = arith.constant 0 : index
    %21 = vector.load %arg18[%c0_18, %c0_19] : memref<64x512xf32, #tpu.memory_space<vmem>>, vector<64x512xf32>
    tpu.vector_store %arg18[%c0_18, %c0_19], %20 {strides = array<i32>} : memref<64x512xf32, #tpu.memory_space<vmem>>, vector<64x512xf32>,
    %c0_20 = arith.constant 0 : index
    %c0_21 = arith.constant 0 : index
    %22 = vector.load %arg7[%c0_20, %c0_21] : memref<128x512xf32, #tpu.memory_space<vmem>>, vector<128x512xf32>
    %c0_22 = arith.constant 0 : index
    %c0_23 = arith.constant 0 : index
    %23 = vector.load %arg9[%c0_22, %c0_23] : memref<256x512xf32, #tpu.memory_space<vmem>>, vector<256x512xf32>
    %c0_24 = arith.constant 0 : index
    %c0_25 = arith.constant 0 : index
    %24 = vector.load %arg10[%c0_24, %c0_25] : memref<1x512xf32, #tpu.memory_space<vmem>>, vector<1x512xf32>
    %c0_26 = arith.constant 0 : index
    %c0_27 = arith.constant 0 : index
    %c0_28 = arith.constant 0 : index
    %25 = vector.load %arg13[%c0_26, %c0_27, %c0_28] : memref<2x8x128xf32, #tpu.memory_space<vmem>>, vector<1x8x128xf32>
    %26 = vector.shape_cast %25 : vector<1x8x128xf32> to vector<8x128xf32>
    %c1 = arith.constant 1 : index
    %c0_29 = arith.constant 0 : index
    %c0_30 = arith.constant 0 : index
    %27 = vector.load %arg13[%c1, %c0_29, %c0_30] : memref<2x8x128xf32, #tpu.memory_space<vmem>>, vector<1x8x128xf32>
    %28 = vector.shape_cast %27 : vector<1x8x128xf32> to vector<8x128xf32>
    %c0_31 = arith.constant 0 : index
    %c0_32 = arith.constant 0 : index
    %c0_33 = arith.constant 0 : index
    %29 = vector.load %arg14[%c0_31, %c0_32, %c0_33] : memref<2x8x128xf32, #tpu.memory_space<vmem>>, vector<1x8x128xf32>
    %30 = vector.shape_cast %29 : vector<1x8x128xf32> to vector<8x128xf32>
    %c1_34 = arith.constant 1 : index
    %c0_35 = arith.constant 0 : index
    %c0_36 = arith.constant 0 : index
    %31 = vector.load %arg14[%c1_34, %c0_35, %c0_36] : memref<2x8x128xf32, #tpu.memory_space<vmem>>, vector<1x8x128xf32>
    %32 = vector.shape_cast %31 : vector<1x8x128xf32> to vector<8x128xf32>
    %c0_37 = arith.constant 0 : index
    %c0_38 = arith.constant 0 : index
    %33 = vector.load %arg18[%c0_37, %c0_38] : memref<64x512xf32, #tpu.memory_space<vmem>>, vector<8x512xf32>
    %cst_39 = arith.constant dense<0.000000e+00> : vector<8x512xf32>
    %34 = tpu.matmul %26, %22, %cst_39 {dimension_numbers = #tpu.dot_dimension_numbers<[1], [0], [0], [1], [0, 0, 1, 1], [], []>} : vector<8x128xf32>, vector<128x512xf32>, vector<8x512xf32> -> vector<8x512xf32>
    %35 = arith.addf %33, %34 : vector<8x512xf32>
    %36 = vector.extract_strided_slice %35 {offsets = [0, 0], sizes = [8, 128], strides = [1, 1]} : vector<8x512xf32> to vector<8x128xf32>
    %cst_40 = arith.constant 5.000000e-01 : f32
    %37 = vector.broadcast %cst_40 : f32 to vector<8x128xf32>
    %38 = arith.mulf %37, %36 : vector<8x128xf32>
    %39 = math.tanh %38 : vector<8x128xf32>
    %cst_41 = arith.constant 1.000000e+00 : f32
    %40 = vector.broadcast %cst_41 : f32 to vector<8x128xf32>
    %41 = arith.addf %39, %40 : vector<8x128xf32>
    %cst_42 = arith.constant 5.000000e-01 : f32
    %42 = vector.broadcast %cst_42 : f32 to vector<8x128xf32>
    %43 = arith.mulf %42, %41 : vector<8x128xf32>
    %44 = vector.extract_strided_slice %35 {offsets = [0, 128], sizes = [8, 128], strides = [1, 1]} : vector<8x512xf32> to vector<8x128xf32>
    %cst_43 = arith.constant 5.000000e-01 : f32
    %45 = vector.broadcast %cst_43 : f32 to vector<8x128xf32>
    %46 = arith.mulf %45, %44 : vector<8x128xf32>
    %47 = math.tanh %46 : vector<8x128xf32>
    %cst_44 = arith.constant 1.000000e+00 : f32
    %48 = vector.broadcast %cst_44 : f32 to vector<8x128xf32>
    %49 = arith.addf %47, %48 : vector<8x128xf32>
    %cst_45 = arith.constant 5.000000e-01 : f32
    %50 = vector.broadcast %cst_45 : f32 to vector<8x128xf32>
    %51 = arith.mulf %50, %49 : vector<8x128xf32>
    %52 = vector.extract_strided_slice %35 {offsets = [0, 256], sizes = [8, 128], strides = [1, 1]} : vector<8x512xf32> to vector<8x128xf32>
    %53 = math.tanh %52 : vector<8x128xf32>
    %54 = vector.extract_strided_slice %35 {offsets = [0, 384], sizes = [8, 128], strides = [1, 1]} : vector<8x512xf32> to vector<8x128xf32>
    %cst_46 = arith.constant 5.000000e-01 : f32
    %55 = vector.broadcast %cst_46 : f32 to vector<8x128xf32>
    %56 = arith.mulf %55, %54 : vector<8x128xf32>
    %57 = math.tanh %56 : vector<8x128xf32>
    %cst_47 = arith.constant 1.000000e+00 : f32
    %58 = vector.broadcast %cst_47 : f32 to vector<8x128xf32>
    %59 = arith.addf %57, %58 : vector<8x128xf32>
    %cst_48 = arith.constant 5.000000e-01 : f32
    %60 = vector.broadcast %cst_48 : f32 to vector<8x128xf32>
    %61 = arith.mulf %60, %59 : vector<8x128xf32>
    %62 = arith.mulf %51, %30 : vector<8x128xf32>
    %63 = arith.mulf %43, %53 : vector<8x128xf32>
    %64 = arith.addf %62, %63 : vector<8x128xf32>
    %65 = math.tanh %64 : vector<8x128xf32>
    %66 = arith.mulf %61, %65 : vector<8x128xf32>
    %67 = tpu.concatenate %66, %28 in 1 : vector<8x128xf32>, vector<8x128xf32> -> vector<8x256xf32>
    %cst_49 = arith.constant dense<0.000000e+00> : vector<8x512xf32>
    %68 = tpu.matmul %67, %23, %cst_49 {dimension_numbers = #tpu.dot_dimension_numbers<[1], [0], [0], [1], [0, 0, 1, 1], [], []>} : vector<8x256xf32>, vector<256x512xf32>, vector<8x512xf32> -> vector<8x512xf32>
    %69 = vector.broadcast %24 : vector<1x512xf32> to vector<8x512xf32>
    %70 = arith.addf %68, %69 : vector<8x512xf32>
    %71 = vector.extract_strided_slice %70 {offsets = [0, 0], sizes = [8, 128], strides = [1, 1]} : vector<8x512xf32> to vector<8x128xf32>
    %cst_50 = arith.constant 5.000000e-01 : f32
    %72 = vector.broadcast %cst_50 : f32 to vector<8x128xf32>
    %73 = arith.mulf %72, %71 : vector<8x128xf32>
    %74 = math.tanh %73 : vector<8x128xf32>
    %cst_51 = arith.constant 1.000000e+00 : f32
    %75 = vector.broadcast %cst_51 : f32 to vector<8x128xf32>
    %76 = arith.addf %74, %75 : vector<8x128xf32>
    %cst_52 = arith.constant 5.000000e-01 : f32
    %77 = vector.broadcast %cst_52 : f32 to vector<8x128xf32>
    %78 = arith.mulf %77, %76 : vector<8x128xf32>
    %79 = vector.extract_strided_slice %70 {offsets = [0, 128], sizes = [8, 128], strides = [1, 1]} : vector<8x512xf32> to vector<8x128xf32>
    %cst_53 = arith.constant 5.000000e-01 : f32
    %80 = vector.broadcast %cst_53 : f32 to vector<8x128xf32>
    %81 = arith.mulf %80, %79 : vector<8x128xf32>
    %82 = math.tanh %81 : vector<8x128xf32>
    %cst_54 = arith.constant 1.000000e+00 : f32
    %83 = vector.broadcast %cst_54 : f32 to vector<8x128xf32>
    %84 = arith.addf %82, %83 : vector<8x128xf32>
    %cst_55 = arith.constant 5.000000e-01 : f32
    %85 = vector.broadcast %cst_55 : f32 to vector<8x128xf32>
    %86 = arith.mulf %85, %84 : vector<8x128xf32>
    %87 = vector.extract_strided_slice %70 {offsets = [0, 256], sizes = [8, 128], strides = [1, 1]} : vector<8x512xf32> to vector<8x128xf32>
    %88 = math.tanh %87 : vector<8x128xf32>
    %89 = vector.extract_strided_slice %70 {offsets = [0, 384], sizes = [8, 128], strides = [1, 1]} : vector<8x512xf32> to vector<8x128xf32>
    %cst_56 = arith.constant 5.000000e-01 : f32
    %90 = vector.broadcast %cst_56 : f32 to vector<8x128xf32>
    %91 = arith.mulf %90, %89 : vector<8x128xf32>
    %92 = math.tanh %91 : vector<8x128xf32>
    %cst_57 = arith.constant 1.000000e+00 : f32
    %93 = vector.broadcast %cst_57 : f32 to vector<8x128xf32>
    %94 = arith.addf %92, %93 : vector<8x128xf32>
    %cst_58 = arith.constant 5.000000e-01 : f32
    %95 = vector.broadcast %cst_58 : f32 to vector<8x128xf32>
    %96 = arith.mulf %95, %94 : vector<8x128xf32>
    %97 = arith.mulf %86, %32 : vector<8x128xf32>
    %98 = arith.mulf %78, %88 : vector<8x128xf32>
    %99 = arith.addf %97, %98 : vector<8x128xf32>
    %100 = math.tanh %99 : vector<8x128xf32>
    %101 = arith.mulf %96, %100 : vector<8x128xf32>
    %c0_59 = arith.constant 0 : index
    %c0_60 = arith.constant 0 : index
    %102 = vector.load %arg19[%c0_59, %c0_60] : memref<64x128xf32, #tpu.memory_space<vmem>>, vector<8x128xf32>
    tpu.vector_store %arg19[%c0_59, %c0_60], %101 {strides = array<i32>} : memref<64x128xf32, #tpu.memory_space<vmem>>, vector<8x128xf32>,
    %c8 = arith.constant 8 : index
    %c0_61 = arith.constant 0 : index
    %103 = vector.load %arg18[%c8, %c0_61] : memref<64x512xf32, #tpu.memory_space<vmem>>, vector<8x512xf32>
    %cst_62 = arith.constant dense<0.000000e+00> : vector<8x512xf32>
    %104 = tpu.matmul %66, %22, %cst_62 {dimension_numbers = #tpu.dot_dimension_numbers<[1], [0], [0], [1], [0, 0, 1, 1], [], []>} : vector<8x128xf32>, vector<128x512xf32>, vector<8x512xf32> -> vector<8x512xf32>
    %105 = arith.addf %103, %104 : vector<8x512xf32>
    %106 = vector.extract_strided_slice %105 {offsets = [0, 0], sizes = [8, 128], strides = [1, 1]} : vector<8x512xf32> to vector<8x128xf32>
    %cst_63 = arith.constant 5.000000e-01 : f32
    %107 = vector.broadcast %cst_63 : f32 to vector<8x128xf32>
    %108 = arith.mulf %107, %106 : vector<8x128xf32>
    %109 = math.tanh %108 : vector<8x128xf32>
    %cst_64 = arith.constant 1.000000e+00 : f32
    %110 = vector.broadcast %cst_64 : f32 to vector<8x128xf32>
    %111 = arith.addf %109, %110 : vector<8x128xf32>
    %cst_65 = arith.constant 5.000000e-01 : f32
    %112 = vector.broadcast %cst_65 : f32 to vector<8x128xf32>
    %113 = arith.mulf %112, %111 : vector<8x128xf32>
    %114 = vector.extract_strided_slice %105 {offsets = [0, 128], sizes = [8, 128], strides = [1, 1]} : vector<8x512xf32> to vector<8x128xf32>
    %cst_66 = arith.constant 5.000000e-01 : f32
    %115 = vector.broadcast %cst_66 : f32 to vector<8x128xf32>
    %116 = arith.mulf %115, %114 : vector<8x128xf32>
    %117 = math.tanh %116 : vector<8x128xf32>
    %cst_67 = arith.constant 1.000000e+00 : f32
    %118 = vector.broadcast %cst_67 : f32 to vector<8x128xf32>
    %119 = arith.addf %117, %118 : vector<8x128xf32>
    %cst_68 = arith.constant 5.000000e-01 : f32
    %120 = vector.broadcast %cst_68 : f32 to vector<8x128xf32>
    %121 = arith.mulf %120, %119 : vector<8x128xf32>
    %122 = vector.extract_strided_slice %105 {offsets = [0, 256], sizes = [8, 128], strides = [1, 1]} : vector<8x512xf32> to vector<8x128xf32>
    %123 = math.tanh %122 : vector<8x128xf32>
    %124 = vector.extract_strided_slice %105 {offsets = [0, 384], sizes = [8, 128], strides = [1, 1]} : vector<8x512xf32> to vector<8x128xf32>
    %cst_69 = arith.constant 5.000000e-01 : f32
    %125 = vector.broadcast %cst_69 : f32 to vector<8x128xf32>
    %126 = arith.mulf %125, %124 : vector<8x128xf32>
    %127 = math.tanh %126 : vector<8x128xf32>
    %cst_70 = arith.constant 1.000000e+00 : f32
    %128 = vector.broadcast %cst_70 : f32 to vector<8x128xf32>
    %129 = arith.addf %127, %128 : vector<8x128xf32>
    %cst_71 = arith.constant 5.000000e-01 : f32
    %130 = vector.broadcast %cst_71 : f32 to vector<8x128xf32>
    %131 = arith.mulf %130, %129 : vector<8x128xf32>
    %132 = arith.mulf %121, %64 : vector<8x128xf32>
    %133 = arith.mulf %113, %123 : vector<8x128xf32>
    %134 = arith.addf %132, %133 : vector<8x128xf32>
    %135 = math.tanh %134 : vector<8x128xf32>
    %136 = arith.mulf %131, %135 : vector<8x128xf32>
    %137 = tpu.concatenate %136, %101 in 1 : vector<8x128xf32>, vector<8x128xf32> -> vector<8x256xf32>
    %cst_72 = arith.constant dense<0.000000e+00> : vector<8x512xf32>
    %138 = tpu.matmul %137, %23, %cst_72 {dimension_numbers = #tpu.dot_dimension_numbers<[1], [0], [0], [1], [0, 0, 1, 1], [], []>} : vector<8x256xf32>, vector<256x512xf32>, vector<8x512xf32> -> vector<8x512xf32>
    %139 = vector.broadcast %24 : vector<1x512xf32> to vector<8x512xf32>
    %140 = arith.addf %138, %139 : vector<8x512xf32>
    %141 = vector.extract_strided_slice %140 {offsets = [0, 0], sizes = [8, 128], strides = [1, 1]} : vector<8x512xf32> to vector<8x128xf32>
    %cst_73 = arith.constant 5.000000e-01 : f32
    %142 = vector.broadcast %cst_73 : f32 to vector<8x128xf32>
    %143 = arith.mulf %142, %141 : vector<8x128xf32>
    %144 = math.tanh %143 : vector<8x128xf32>
    %cst_74 = arith.constant 1.000000e+00 : f32
    %145 = vector.broadcast %cst_74 : f32 to vector<8x128xf32>
    %146 = arith.addf %144, %145 : vector<8x128xf32>
    %cst_75 = arith.constant 5.000000e-01 : f32
    %147 = vector.broadcast %cst_75 : f32 to vector<8x128xf32>
    %148 = arith.mulf %147, %146 : vector<8x128xf32>
    %149 = vector.extract_strided_slice %140 {offsets = [0, 128], sizes = [8, 128], strides = [1, 1]} : vector<8x512xf32> to vector<8x128xf32>
    %cst_76 = arith.constant 5.000000e-01 : f32
    %150 = vector.broadcast %cst_76 : f32 to vector<8x128xf32>
    %151 = arith.mulf %150, %149 : vector<8x128xf32>
    %152 = math.tanh %151 : vector<8x128xf32>
    %cst_77 = arith.constant 1.000000e+00 : f32
    %153 = vector.broadcast %cst_77 : f32 to vector<8x128xf32>
    %154 = arith.addf %152, %153 : vector<8x128xf32>
    %cst_78 = arith.constant 5.000000e-01 : f32
    %155 = vector.broadcast %cst_78 : f32 to vector<8x128xf32>
    %156 = arith.mulf %155, %154 : vector<8x128xf32>
    %157 = vector.extract_strided_slice %140 {offsets = [0, 256], sizes = [8, 128], strides = [1, 1]} : vector<8x512xf32> to vector<8x128xf32>
    %158 = math.tanh %157 : vector<8x128xf32>
    %159 = vector.extract_strided_slice %140 {offsets = [0, 384], sizes = [8, 128], strides = [1, 1]} : vector<8x512xf32> to vector<8x128xf32>
    %cst_79 = arith.constant 5.000000e-01 : f32
    %160 = vector.broadcast %cst_79 : f32 to vector<8x128xf32>
    %161 = arith.mulf %160, %159 : vector<8x128xf32>
    %162 = math.tanh %161 : vector<8x128xf32>
    %cst_80 = arith.constant 1.000000e+00 : f32
    %163 = vector.broadcast %cst_80 : f32 to vector<8x128xf32>
    %164 = arith.addf %162, %163 : vector<8x128xf32>
    %cst_81 = arith.constant 5.000000e-01 : f32
    %165 = vector.broadcast %cst_81 : f32 to vector<8x128xf32>
    %166 = arith.mulf %165, %164 : vector<8x128xf32>
    %167 = arith.mulf %156, %99 : vector<8x128xf32>
    %168 = arith.mulf %148, %158 : vector<8x128xf32>
    %169 = arith.addf %167, %168 : vector<8x128xf32>
    %170 = math.tanh %169 : vector<8x128xf32>
    %171 = arith.mulf %166, %170 : vector<8x128xf32>
    %c8_82 = arith.constant 8 : index
    %c0_83 = arith.constant 0 : index
    %172 = vector.load %arg19[%c8_82, %c0_83] : memref<64x128xf32, #tpu.memory_space<vmem>>, vector<8x128xf32>
    tpu.vector_store %arg19[%c8_82, %c0_83], %171 {strides = array<i32>} : memref<64x128xf32, #tpu.memory_space<vmem>>, vector<8x128xf32>,
    %c16 = arith.constant 16 : index
    %c0_84 = arith.constant 0 : index
    %173 = vector.load %arg18[%c16, %c0_84] : memref<64x512xf32, #tpu.memory_space<vmem>>, vector<8x512xf32>
    %cst_85 = arith.constant dense<0.000000e+00> : vector<8x512xf32>
    %174 = tpu.matmul %136, %22, %cst_85 {dimension_numbers = #tpu.dot_dimension_numbers<[1], [0], [0], [1], [0, 0, 1, 1], [], []>} : vector<8x128xf32>, vector<128x512xf32>, vector<8x512xf32> -> vector<8x512xf32>
    %175 = arith.addf %173, %174 : vector<8x512xf32>
    %176 = vector.extract_strided_slice %175 {offsets = [0, 0], sizes = [8, 128], strides = [1, 1]} : vector<8x512xf32> to vector<8x128xf32>
    %cst_86 = arith.constant 5.000000e-01 : f32
    %177 = vector.broadcast %cst_86 : f32 to vector<8x128xf32>
    %178 = arith.mulf %177, %176 : vector<8x128xf32>
    %179 = math.tanh %178 : vector<8x128xf32>
    %cst_87 = arith.constant 1.000000e+00 : f32
    %180 = vector.broadcast %cst_87 : f32 to vector<8x128xf32>
    %181 = arith.addf %179, %180 : vector<8x128xf32>
    %cst_88 = arith.constant 5.000000e-01 : f32
    %182 = vector.broadcast %cst_88 : f32 to vector<8x128xf32>
    %183 = arith.mulf %182, %181 : vector<8x128xf32>
    %184 = vector.extract_strided_slice %175 {offsets = [0, 128], sizes = [8, 128], strides = [1, 1]} : vector<8x512xf32> to vector<8x128xf32>
    %cst_89 = arith.constant 5.000000e-01 : f32
    %185 = vector.broadcast %cst_89 : f32 to vector<8x128xf32>
    %186 = arith.mulf %185, %184 : vector<8x128xf32>
    %187 = math.tanh %186 : vector<8x128xf32>
    %cst_90 = arith.constant 1.000000e+00 : f32
    %188 = vector.broadcast %cst_90 : f32 to vector<8x128xf32>
    %189 = arith.addf %187, %188 : vector<8x128xf32>
    %cst_91 = arith.constant 5.000000e-01 : f32
    %190 = vector.broadcast %cst_91 : f32 to vector<8x128xf32>
    %191 = arith.mulf %190, %189 : vector<8x128xf32>
    %192 = vector.extract_strided_slice %175 {offsets = [0, 256], sizes = [8, 128], strides = [1, 1]} : vector<8x512xf32> to vector<8x128xf32>
    %193 = math.tanh %192 : vector<8x128xf32>
    %194 = vector.extract_strided_slice %175 {offsets = [0, 384], sizes = [8, 128], strides = [1, 1]} : vector<8x512xf32> to vector<8x128xf32>
    %cst_92 = arith.constant 5.000000e-01 : f32
    %195 = vector.broadcast %cst_92 : f32 to vector<8x128xf32>
    %196 = arith.mulf %195, %194 : vector<8x128xf32>
    %197 = math.tanh %196 : vector<8x128xf32>
    %cst_93 = arith.constant 1.000000e+00 : f32
    %198 = vector.broadcast %cst_93 : f32 to vector<8x128xf32>
    %199 = arith.addf %197, %198 : vector<8x128xf32>
    %cst_94 = arith.constant 5.000000e-01 : f32
    %200 = vector.broadcast %cst_94 : f32 to vector<8x128xf32>
    %201 = arith.mulf %200, %199 : vector<8x128xf32>
    %202 = arith.mulf %191, %134 : vector<8x128xf32>
    %203 = arith.mulf %183, %193 : vector<8x128xf32>
    %204 = arith.addf %202, %203 : vector<8x128xf32>
    %205 = math.tanh %204 : vector<8x128xf32>
    %206 = arith.mulf %201, %205 : vector<8x128xf32>
    %207 = tpu.concatenate %206, %171 in 1 : vector<8x128xf32>, vector<8x128xf32> -> vector<8x256xf32>
    %cst_95 = arith.constant dense<0.000000e+00> : vector<8x512xf32>
    %208 = tpu.matmul %207, %23, %cst_95 {dimension_numbers = #tpu.dot_dimension_numbers<[1], [0], [0], [1], [0, 0, 1, 1], [], []>} : vector<8x256xf32>, vector<256x512xf32>, vector<8x512xf32> -> vector<8x512xf32>
    %209 = vector.broadcast %24 : vector<1x512xf32> to vector<8x512xf32>
    %210 = arith.addf %208, %209 : vector<8x512xf32>
    %211 = vector.extract_strided_slice %210 {offsets = [0, 0], sizes = [8, 128], strides = [1, 1]} : vector<8x512xf32> to vector<8x128xf32>
    %cst_96 = arith.constant 5.000000e-01 : f32
    %212 = vector.broadcast %cst_96 : f32 to vector<8x128xf32>
    %213 = arith.mulf %212, %211 : vector<8x128xf32>
    %214 = math.tanh %213 : vector<8x128xf32>
    %cst_97 = arith.constant 1.000000e+00 : f32
    %215 = vector.broadcast %cst_97 : f32 to vector<8x128xf32>
    %216 = arith.addf %214, %215 : vector<8x128xf32>
    %cst_98 = arith.constant 5.000000e-01 : f32
    %217 = vector.broadcast %cst_98 : f32 to vector<8x128xf32>
    %218 = arith.mulf %217, %216 : vector<8x128xf32>
    %219 = vector.extract_strided_slice %210 {offsets = [0, 128], sizes = [8, 128], strides = [1, 1]} : vector<8x512xf32> to vector<8x128xf32>
    %cst_99 = arith.constant 5.000000e-01 : f32
    %220 = vector.broadcast %cst_99 : f32 to vector<8x128xf32>
    %221 = arith.mulf %220, %219 : vector<8x128xf32>
    %222 = math.tanh %221 : vector<8x128xf32>
    %cst_100 = arith.constant 1.000000e+00 : f32
    %223 = vector.broadcast %cst_100 : f32 to vector<8x128xf32>
    %224 = arith.addf %222, %223 : vector<8x128xf32>
    %cst_101 = arith.constant 5.000000e-01 : f32
    %225 = vector.broadcast %cst_101 : f32 to vector<8x128xf32>
    %226 = arith.mulf %225, %224 : vector<8x128xf32>
    %227 = vector.extract_strided_slice %210 {offsets = [0, 256], sizes = [8, 128], strides = [1, 1]} : vector<8x512xf32> to vector<8x128xf32>
    %228 = math.tanh %227 : vector<8x128xf32>
    %229 = vector.extract_strided_slice %210 {offsets = [0, 384], sizes = [8, 128], strides = [1, 1]} : vector<8x512xf32> to vector<8x128xf32>
    %cst_102 = arith.constant 5.000000e-01 : f32
    %230 = vector.broadcast %cst_102 : f32 to vector<8x128xf32>
    %231 = arith.mulf %230, %229 : vector<8x128xf32>
    %232 = math.tanh %231 : vector<8x128xf32>
    %cst_103 = arith.constant 1.000000e+00 : f32
    %233 = vector.broadcast %cst_103 : f32 to vector<8x128xf32>
    %234 = arith.addf %232, %233 : vector<8x128xf32>
    %cst_104 = arith.constant 5.000000e-01 : f32
    %235 = vector.broadcast %cst_104 : f32 to vector<8x128xf32>
    %236 = arith.mulf %235, %234 : vector<8x128xf32>
    %237 = arith.mulf %226, %169 : vector<8x128xf32>
    %238 = arith.mulf %218, %228 : vector<8x128xf32>
    %239 = arith.addf %237, %238 : vector<8x128xf32>
    %240 = math.tanh %239 : vector<8x128xf32>
    %241 = arith.mulf %236, %240 : vector<8x128xf32>
    %c16_105 = arith.constant 16 : index
    %c0_106 = arith.constant 0 : index
    %242 = vector.load %arg19[%c16_105, %c0_106] : memref<64x128xf32, #tpu.memory_space<vmem>>, vector<8x128xf32>
    tpu.vector_store %arg19[%c16_105, %c0_106], %241 {strides = array<i32>} : memref<64x128xf32, #tpu.memory_space<vmem>>, vector<8x128xf32>,
    %c24 = arith.constant 24 : index
    %c0_107 = arith.constant 0 : index
    %243 = vector.load %arg18[%c24, %c0_107] : memref<64x512xf32, #tpu.memory_space<vmem>>, vector<8x512xf32>
    %cst_108 = arith.constant dense<0.000000e+00> : vector<8x512xf32>
    %244 = tpu.matmul %206, %22, %cst_108 {dimension_numbers = #tpu.dot_dimension_numbers<[1], [0], [0], [1], [0, 0, 1, 1], [], []>} : vector<8x128xf32>, vector<128x512xf32>, vector<8x512xf32> -> vector<8x512xf32>
    %245 = arith.addf %243, %244 : vector<8x512xf32>
    %246 = vector.extract_strided_slice %245 {offsets = [0, 0], sizes = [8, 128], strides = [1, 1]} : vector<8x512xf32> to vector<8x128xf32>
    %cst_109 = arith.constant 5.000000e-01 : f32
    %247 = vector.broadcast %cst_109 : f32 to vector<8x128xf32>
    %248 = arith.mulf %247, %246 : vector<8x128xf32>
    %249 = math.tanh %248 : vector<8x128xf32>
    %cst_110 = arith.constant 1.000000e+00 : f32
    %250 = vector.broadcast %cst_110 : f32 to vector<8x128xf32>
    %251 = arith.addf %249, %250 : vector<8x128xf32>
    %cst_111 = arith.constant 5.000000e-01 : f32
    %252 = vector.broadcast %cst_111 : f32 to vector<8x128xf32>
    %253 = arith.mulf %252, %251 : vector<8x128xf32>
    %254 = vector.extract_strided_slice %245 {offsets = [0, 128], sizes = [8, 128], strides = [1, 1]} : vector<8x512xf32> to vector<8x128xf32>
    %cst_112 = arith.constant 5.000000e-01 : f32
    %255 = vector.broadcast %cst_112 : f32 to vector<8x128xf32>
    %256 = arith.mulf %255, %254 : vector<8x128xf32>
    %257 = math.tanh %256 : vector<8x128xf32>
    %cst_113 = arith.constant 1.000000e+00 : f32
    %258 = vector.broadcast %cst_113 : f32 to vector<8x128xf32>
    %259 = arith.addf %257, %258 : vector<8x128xf32>
    %cst_114 = arith.constant 5.000000e-01 : f32
    %260 = vector.broadcast %cst_114 : f32 to vector<8x128xf32>
    %261 = arith.mulf %260, %259 : vector<8x128xf32>
    %262 = vector.extract_strided_slice %245 {offsets = [0, 256], sizes = [8, 128], strides = [1, 1]} : vector<8x512xf32> to vector<8x128xf32>
    %263 = math.tanh %262 : vector<8x128xf32>
    %264 = vector.extract_strided_slice %245 {offsets = [0, 384], sizes = [8, 128], strides = [1, 1]} : vector<8x512xf32> to vector<8x128xf32>
    %cst_115 = arith.constant 5.000000e-01 : f32
    %265 = vector.broadcast %cst_115 : f32 to vector<8x128xf32>
    %266 = arith.mulf %265, %264 : vector<8x128xf32>
    %267 = math.tanh %266 : vector<8x128xf32>
    %cst_116 = arith.constant 1.000000e+00 : f32
    %268 = vector.broadcast %cst_116 : f32 to vector<8x128xf32>
    %269 = arith.addf %267, %268 : vector<8x128xf32>
    %cst_117 = arith.constant 5.000000e-01 : f32
    %270 = vector.broadcast %cst_117 : f32 to vector<8x128xf32>
    %271 = arith.mulf %270, %269 : vector<8x128xf32>
    %272 = arith.mulf %261, %204 : vector<8x128xf32>
    %273 = arith.mulf %253, %263 : vector<8x128xf32>
    %274 = arith.addf %272, %273 : vector<8x128xf32>
    %275 = math.tanh %274 : vector<8x128xf32>
    %276 = arith.mulf %271, %275 : vector<8x128xf32>
    %277 = tpu.concatenate %276, %241 in 1 : vector<8x128xf32>, vector<8x128xf32> -> vector<8x256xf32>
    %cst_118 = arith.constant dense<0.000000e+00> : vector<8x512xf32>
    %278 = tpu.matmul %277, %23, %cst_118 {dimension_numbers = #tpu.dot_dimension_numbers<[1], [0], [0], [1], [0, 0, 1, 1], [], []>} : vector<8x256xf32>, vector<256x512xf32>, vector<8x512xf32> -> vector<8x512xf32>
    %279 = vector.broadcast %24 : vector<1x512xf32> to vector<8x512xf32>
    %280 = arith.addf %278, %279 : vector<8x512xf32>
    %281 = vector.extract_strided_slice %280 {offsets = [0, 0], sizes = [8, 128], strides = [1, 1]} : vector<8x512xf32> to vector<8x128xf32>
    %cst_119 = arith.constant 5.000000e-01 : f32
    %282 = vector.broadcast %cst_119 : f32 to vector<8x128xf32>
    %283 = arith.mulf %282, %281 : vector<8x128xf32>
    %284 = math.tanh %283 : vector<8x128xf32>
    %cst_120 = arith.constant 1.000000e+00 : f32
    %285 = vector.broadcast %cst_120 : f32 to vector<8x128xf32>
    %286 = arith.addf %284, %285 : vector<8x128xf32>
    %cst_121 = arith.constant 5.000000e-01 : f32
    %287 = vector.broadcast %cst_121 : f32 to vector<8x128xf32>
    %288 = arith.mulf %287, %286 : vector<8x128xf32>
    %289 = vector.extract_strided_slice %280 {offsets = [0, 128], sizes = [8, 128], strides = [1, 1]} : vector<8x512xf32> to vector<8x128xf32>
    %cst_122 = arith.constant 5.000000e-01 : f32
    %290 = vector.broadcast %cst_122 : f32 to vector<8x128xf32>
    %291 = arith.mulf %290, %289 : vector<8x128xf32>
    %292 = math.tanh %291 : vector<8x128xf32>
    %cst_123 = arith.constant 1.000000e+00 : f32
    %293 = vector.broadcast %cst_123 : f32 to vector<8x128xf32>
    %294 = arith.addf %292, %293 : vector<8x128xf32>
    %cst_124 = arith.constant 5.000000e-01 : f32
    %295 = vector.broadcast %cst_124 : f32 to vector<8x128xf32>
    %296 = arith.mulf %295, %294 : vector<8x128xf32>
    %297 = vector.extract_strided_slice %280 {offsets = [0, 256], sizes = [8, 128], strides = [1, 1]} : vector<8x512xf32> to vector<8x128xf32>
    %298 = math.tanh %297 : vector<8x128xf32>
    %299 = vector.extract_strided_slice %280 {offsets = [0, 384], sizes = [8, 128], strides = [1, 1]} : vector<8x512xf32> to vector<8x128xf32>
    %cst_125 = arith.constant 5.000000e-01 : f32
    %300 = vector.broadcast %cst_125 : f32 to vector<8x128xf32>
    %301 = arith.mulf %300, %299 : vector<8x128xf32>
    %302 = math.tanh %301 : vector<8x128xf32>
    %cst_126 = arith.constant 1.000000e+00 : f32
    %303 = vector.broadcast %cst_126 : f32 to vector<8x128xf32>
    %304 = arith.addf %302, %303 : vector<8x128xf32>
    %cst_127 = arith.constant 5.000000e-01 : f32
    %305 = vector.broadcast %cst_127 : f32 to vector<8x128xf32>
    %306 = arith.mulf %305, %304 : vector<8x128xf32>
    %307 = arith.mulf %296, %239 : vector<8x128xf32>
    %308 = arith.mulf %288, %298 : vector<8x128xf32>
    %309 = arith.addf %307, %308 : vector<8x128xf32>
    %310 = math.tanh %309 : vector<8x128xf32>
    %311 = arith.mulf %306, %310 : vector<8x128xf32>
    %c24_128 = arith.constant 24 : index
    %c0_129 = arith.constant 0 : index
    %312 = vector.load %arg19[%c24_128, %c0_129] : memref<64x128xf32, #tpu.memory_space<vmem>>, vector<8x128xf32>
    tpu.vector_store %arg19[%c24_128, %c0_129], %311 {strides = array<i32>} : memref<64x128xf32, #tpu.memory_space<vmem>>, vector<8x128xf32>,
    %c32 = arith.constant 32 : index
    %c0_130 = arith.constant 0 : index
    %313 = vector.load %arg18[%c32, %c0_130] : memref<64x512xf32, #tpu.memory_space<vmem>>, vector<8x512xf32>
    %cst_131 = arith.constant dense<0.000000e+00> : vector<8x512xf32>
    %314 = tpu.matmul %276, %22, %cst_131 {dimension_numbers = #tpu.dot_dimension_numbers<[1], [0], [0], [1], [0, 0, 1, 1], [], []>} : vector<8x128xf32>, vector<128x512xf32>, vector<8x512xf32> -> vector<8x512xf32>
    %315 = arith.addf %313, %314 : vector<8x512xf32>
    %316 = vector.extract_strided_slice %315 {offsets = [0, 0], sizes = [8, 128], strides = [1, 1]} : vector<8x512xf32> to vector<8x128xf32>
    %cst_132 = arith.constant 5.000000e-01 : f32
    %317 = vector.broadcast %cst_132 : f32 to vector<8x128xf32>
    %318 = arith.mulf %317, %316 : vector<8x128xf32>
    %319 = math.tanh %318 : vector<8x128xf32>
    %cst_133 = arith.constant 1.000000e+00 : f32
    %320 = vector.broadcast %cst_133 : f32 to vector<8x128xf32>
    %321 = arith.addf %319, %320 : vector<8x128xf32>
    %cst_134 = arith.constant 5.000000e-01 : f32
    %322 = vector.broadcast %cst_134 : f32 to vector<8x128xf32>
    %323 = arith.mulf %322, %321 : vector<8x128xf32>
    %324 = vector.extract_strided_slice %315 {offsets = [0, 128], sizes = [8, 128], strides = [1, 1]} : vector<8x512xf32> to vector<8x128xf32>
    %cst_135 = arith.constant 5.000000e-01 : f32
    %325 = vector.broadcast %cst_135 : f32 to vector<8x128xf32>
    %326 = arith.mulf %325, %324 : vector<8x128xf32>
    %327 = math.tanh %326 : vector<8x128xf32>
    %cst_136 = arith.constant 1.000000e+00 : f32
    %328 = vector.broadcast %cst_136 : f32 to vector<8x128xf32>
    %329 = arith.addf %327, %328 : vector<8x128xf32>
    %cst_137 = arith.constant 5.000000e-01 : f32
    %330 = vector.broadcast %cst_137 : f32 to vector<8x128xf32>
    %331 = arith.mulf %330, %329 : vector<8x128xf32>
    %332 = vector.extract_strided_slice %315 {offsets = [0, 256], sizes = [8, 128], strides = [1, 1]} : vector<8x512xf32> to vector<8x128xf32>
    %333 = math.tanh %332 : vector<8x128xf32>
    %334 = vector.extract_strided_slice %315 {offsets = [0, 384], sizes = [8, 128], strides = [1, 1]} : vector<8x512xf32> to vector<8x128xf32>
    %cst_138 = arith.constant 5.000000e-01 : f32
    %335 = vector.broadcast %cst_138 : f32 to vector<8x128xf32>
    %336 = arith.mulf %335, %334 : vector<8x128xf32>
    %337 = math.tanh %336 : vector<8x128xf32>
    %cst_139 = arith.constant 1.000000e+00 : f32
    %338 = vector.broadcast %cst_139 : f32 to vector<8x128xf32>
    %339 = arith.addf %337, %338 : vector<8x128xf32>
    %cst_140 = arith.constant 5.000000e-01 : f32
    %340 = vector.broadcast %cst_140 : f32 to vector<8x128xf32>
    %341 = arith.mulf %340, %339 : vector<8x128xf32>
    %342 = arith.mulf %331, %274 : vector<8x128xf32>
    %343 = arith.mulf %323, %333 : vector<8x128xf32>
    %344 = arith.addf %342, %343 : vector<8x128xf32>
    %345 = math.tanh %344 : vector<8x128xf32>
    %346 = arith.mulf %341, %345 : vector<8x128xf32>
    %347 = tpu.concatenate %346, %311 in 1 : vector<8x128xf32>, vector<8x128xf32> -> vector<8x256xf32>
    %cst_141 = arith.constant dense<0.000000e+00> : vector<8x512xf32>
    %348 = tpu.matmul %347, %23, %cst_141 {dimension_numbers = #tpu.dot_dimension_numbers<[1], [0], [0], [1], [0, 0, 1, 1], [], []>} : vector<8x256xf32>, vector<256x512xf32>, vector<8x512xf32> -> vector<8x512xf32>
    %349 = vector.broadcast %24 : vector<1x512xf32> to vector<8x512xf32>
    %350 = arith.addf %348, %349 : vector<8x512xf32>
    %351 = vector.extract_strided_slice %350 {offsets = [0, 0], sizes = [8, 128], strides = [1, 1]} : vector<8x512xf32> to vector<8x128xf32>
    %cst_142 = arith.constant 5.000000e-01 : f32
    %352 = vector.broadcast %cst_142 : f32 to vector<8x128xf32>
    %353 = arith.mulf %352, %351 : vector<8x128xf32>
    %354 = math.tanh %353 : vector<8x128xf32>
    %cst_143 = arith.constant 1.000000e+00 : f32
    %355 = vector.broadcast %cst_143 : f32 to vector<8x128xf32>
    %356 = arith.addf %354, %355 : vector<8x128xf32>
    %cst_144 = arith.constant 5.000000e-01 : f32
    %357 = vector.broadcast %cst_144 : f32 to vector<8x128xf32>
    %358 = arith.mulf %357, %356 : vector<8x128xf32>
    %359 = vector.extract_strided_slice %350 {offsets = [0, 128], sizes = [8, 128], strides = [1, 1]} : vector<8x512xf32> to vector<8x128xf32>
    %cst_145 = arith.constant 5.000000e-01 : f32
    %360 = vector.broadcast %cst_145 : f32 to vector<8x128xf32>
    %361 = arith.mulf %360, %359 : vector<8x128xf32>
    %362 = math.tanh %361 : vector<8x128xf32>
    %cst_146 = arith.constant 1.000000e+00 : f32
    %363 = vector.broadcast %cst_146 : f32 to vector<8x128xf32>
    %364 = arith.addf %362, %363 : vector<8x128xf32>
    %cst_147 = arith.constant 5.000000e-01 : f32
    %365 = vector.broadcast %cst_147 : f32 to vector<8x128xf32>
    %366 = arith.mulf %365, %364 : vector<8x128xf32>
    %367 = vector.extract_strided_slice %350 {offsets = [0, 256], sizes = [8, 128], strides = [1, 1]} : vector<8x512xf32> to vector<8x128xf32>
    %368 = math.tanh %367 : vector<8x128xf32>
    %369 = vector.extract_strided_slice %350 {offsets = [0, 384], sizes = [8, 128], strides = [1, 1]} : vector<8x512xf32> to vector<8x128xf32>
    %cst_148 = arith.constant 5.000000e-01 : f32
    %370 = vector.broadcast %cst_148 : f32 to vector<8x128xf32>
    %371 = arith.mulf %370, %369 : vector<8x128xf32>
    %372 = math.tanh %371 : vector<8x128xf32>
    %cst_149 = arith.constant 1.000000e+00 : f32
    %373 = vector.broadcast %cst_149 : f32 to vector<8x128xf32>
    %374 = arith.addf %372, %373 : vector<8x128xf32>
    %cst_150 = arith.constant 5.000000e-01 : f32
    %375 = vector.broadcast %cst_150 : f32 to vector<8x128xf32>
    %376 = arith.mulf %375, %374 : vector<8x128xf32>
    %377 = arith.mulf %366, %309 : vector<8x128xf32>
    %378 = arith.mulf %358, %368 : vector<8x128xf32>
    %379 = arith.addf %377, %378 : vector<8x128xf32>
    %380 = math.tanh %379 : vector<8x128xf32>
    %381 = arith.mulf %376, %380 : vector<8x128xf32>
    %c32_151 = arith.constant 32 : index
    %c0_152 = arith.constant 0 : index
    %382 = vector.load %arg19[%c32_151, %c0_152] : memref<64x128xf32, #tpu.memory_space<vmem>>, vector<8x128xf32>
    tpu.vector_store %arg19[%c32_151, %c0_152], %381 {strides = array<i32>} : memref<64x128xf32, #tpu.memory_space<vmem>>, vector<8x128xf32>,
    %c40 = arith.constant 40 : index
    %c0_153 = arith.constant 0 : index
    %383 = vector.load %arg18[%c40, %c0_153] : memref<64x512xf32, #tpu.memory_space<vmem>>, vector<8x512xf32>
    %cst_154 = arith.constant dense<0.000000e+00> : vector<8x512xf32>
    %384 = tpu.matmul %346, %22, %cst_154 {dimension_numbers = #tpu.dot_dimension_numbers<[1], [0], [0], [1], [0, 0, 1, 1], [], []>} : vector<8x128xf32>, vector<128x512xf32>, vector<8x512xf32> -> vector<8x512xf32>
    %385 = arith.addf %383, %384 : vector<8x512xf32>
    %386 = vector.extract_strided_slice %385 {offsets = [0, 0], sizes = [8, 128], strides = [1, 1]} : vector<8x512xf32> to vector<8x128xf32>
    %cst_155 = arith.constant 5.000000e-01 : f32
    %387 = vector.broadcast %cst_155 : f32 to vector<8x128xf32>
    %388 = arith.mulf %387, %386 : vector<8x128xf32>
    %389 = math.tanh %388 : vector<8x128xf32>
    %cst_156 = arith.constant 1.000000e+00 : f32
    %390 = vector.broadcast %cst_156 : f32 to vector<8x128xf32>
    %391 = arith.addf %389, %390 : vector<8x128xf32>
    %cst_157 = arith.constant 5.000000e-01 : f32
    %392 = vector.broadcast %cst_157 : f32 to vector<8x128xf32>
    %393 = arith.mulf %392, %391 : vector<8x128xf32>
    %394 = vector.extract_strided_slice %385 {offsets = [0, 128], sizes = [8, 128], strides = [1, 1]} : vector<8x512xf32> to vector<8x128xf32>
    %cst_158 = arith.constant 5.000000e-01 : f32
    %395 = vector.broadcast %cst_158 : f32 to vector<8x128xf32>
    %396 = arith.mulf %395, %394 : vector<8x128xf32>
    %397 = math.tanh %396 : vector<8x128xf32>
    %cst_159 = arith.constant 1.000000e+00 : f32
    %398 = vector.broadcast %cst_159 : f32 to vector<8x128xf32>
    %399 = arith.addf %397, %398 : vector<8x128xf32>
    %cst_160 = arith.constant 5.000000e-01 : f32
    %400 = vector.broadcast %cst_160 : f32 to vector<8x128xf32>
    %401 = arith.mulf %400, %399 : vector<8x128xf32>
    %402 = vector.extract_strided_slice %385 {offsets = [0, 256], sizes = [8, 128], strides = [1, 1]} : vector<8x512xf32> to vector<8x128xf32>
    %403 = math.tanh %402 : vector<8x128xf32>
    %404 = vector.extract_strided_slice %385 {offsets = [0, 384], sizes = [8, 128], strides = [1, 1]} : vector<8x512xf32> to vector<8x128xf32>
    %cst_161 = arith.constant 5.000000e-01 : f32
    %405 = vector.broadcast %cst_161 : f32 to vector<8x128xf32>
    %406 = arith.mulf %405, %404 : vector<8x128xf32>
    %407 = math.tanh %406 : vector<8x128xf32>
    %cst_162 = arith.constant 1.000000e+00 : f32
    %408 = vector.broadcast %cst_162 : f32 to vector<8x128xf32>
    %409 = arith.addf %407, %408 : vector<8x128xf32>
    %cst_163 = arith.constant 5.000000e-01 : f32
    %410 = vector.broadcast %cst_163 : f32 to vector<8x128xf32>
    %411 = arith.mulf %410, %409 : vector<8x128xf32>
    %412 = arith.mulf %401, %344 : vector<8x128xf32>
    %413 = arith.mulf %393, %403 : vector<8x128xf32>
    %414 = arith.addf %412, %413 : vector<8x128xf32>
    %415 = math.tanh %414 : vector<8x128xf32>
    %416 = arith.mulf %411, %415 : vector<8x128xf32>
    %417 = tpu.concatenate %416, %381 in 1 : vector<8x128xf32>, vector<8x128xf32> -> vector<8x256xf32>
    %cst_164 = arith.constant dense<0.000000e+00> : vector<8x512xf32>
    %418 = tpu.matmul %417, %23, %cst_164 {dimension_numbers = #tpu.dot_dimension_numbers<[1], [0], [0], [1], [0, 0, 1, 1], [], []>} : vector<8x256xf32>, vector<256x512xf32>, vector<8x512xf32> -> vector<8x512xf32>
    %419 = vector.broadcast %24 : vector<1x512xf32> to vector<8x512xf32>
    %420 = arith.addf %418, %419 : vector<8x512xf32>
    %421 = vector.extract_strided_slice %420 {offsets = [0, 0], sizes = [8, 128], strides = [1, 1]} : vector<8x512xf32> to vector<8x128xf32>
    %cst_165 = arith.constant 5.000000e-01 : f32
    %422 = vector.broadcast %cst_165 : f32 to vector<8x128xf32>
    %423 = arith.mulf %422, %421 : vector<8x128xf32>
    %424 = math.tanh %423 : vector<8x128xf32>
    %cst_166 = arith.constant 1.000000e+00 : f32
    %425 = vector.broadcast %cst_166 : f32 to vector<8x128xf32>
    %426 = arith.addf %424, %425 : vector<8x128xf32>
    %cst_167 = arith.constant 5.000000e-01 : f32
    %427 = vector.broadcast %cst_167 : f32 to vector<8x128xf32>
    %428 = arith.mulf %427, %426 : vector<8x128xf32>
    %429 = vector.extract_strided_slice %420 {offsets = [0, 128], sizes = [8, 128], strides = [1, 1]} : vector<8x512xf32> to vector<8x128xf32>
    %cst_168 = arith.constant 5.000000e-01 : f32
    %430 = vector.broadcast %cst_168 : f32 to vector<8x128xf32>
    %431 = arith.mulf %430, %429 : vector<8x128xf32>
    %432 = math.tanh %431 : vector<8x128xf32>
    %cst_169 = arith.constant 1.000000e+00 : f32
    %433 = vector.broadcast %cst_169 : f32 to vector<8x128xf32>
    %434 = arith.addf %432, %433 : vector<8x128xf32>
    %cst_170 = arith.constant 5.000000e-01 : f32
    %435 = vector.broadcast %cst_170 : f32 to vector<8x128xf32>
    %436 = arith.mulf %435, %434 : vector<8x128xf32>
    %437 = vector.extract_strided_slice %420 {offsets = [0, 256], sizes = [8, 128], strides = [1, 1]} : vector<8x512xf32> to vector<8x128xf32>
    %438 = math.tanh %437 : vector<8x128xf32>
    %439 = vector.extract_strided_slice %420 {offsets = [0, 384], sizes = [8, 128], strides = [1, 1]} : vector<8x512xf32> to vector<8x128xf32>
    %cst_171 = arith.constant 5.000000e-01 : f32
    %440 = vector.broadcast %cst_171 : f32 to vector<8x128xf32>
    %441 = arith.mulf %440, %439 : vector<8x128xf32>
    %442 = math.tanh %441 : vector<8x128xf32>
    %cst_172 = arith.constant 1.000000e+00 : f32
    %443 = vector.broadcast %cst_172 : f32 to vector<8x128xf32>
    %444 = arith.addf %442, %443 : vector<8x128xf32>
    %cst_173 = arith.constant 5.000000e-01 : f32
    %445 = vector.broadcast %cst_173 : f32 to vector<8x128xf32>
    %446 = arith.mulf %445, %444 : vector<8x128xf32>
    %447 = arith.mulf %436, %379 : vector<8x128xf32>
    %448 = arith.mulf %428, %438 : vector<8x128xf32>
    %449 = arith.addf %447, %448 : vector<8x128xf32>
    %450 = math.tanh %449 : vector<8x128xf32>
    %451 = arith.mulf %446, %450 : vector<8x128xf32>
    %c40_174 = arith.constant 40 : index
    %c0_175 = arith.constant 0 : index
    %452 = vector.load %arg19[%c40_174, %c0_175] : memref<64x128xf32, #tpu.memory_space<vmem>>, vector<8x128xf32>
    tpu.vector_store %arg19[%c40_174, %c0_175], %451 {strides = array<i32>} : memref<64x128xf32, #tpu.memory_space<vmem>>, vector<8x128xf32>,
    %c48 = arith.constant 48 : index
    %c0_176 = arith.constant 0 : index
    %453 = vector.load %arg18[%c48, %c0_176] : memref<64x512xf32, #tpu.memory_space<vmem>>, vector<8x512xf32>
    %cst_177 = arith.constant dense<0.000000e+00> : vector<8x512xf32>
    %454 = tpu.matmul %416, %22, %cst_177 {dimension_numbers = #tpu.dot_dimension_numbers<[1], [0], [0], [1], [0, 0, 1, 1], [], []>} : vector<8x128xf32>, vector<128x512xf32>, vector<8x512xf32> -> vector<8x512xf32>
    %455 = arith.addf %453, %454 : vector<8x512xf32>
    %456 = vector.extract_strided_slice %455 {offsets = [0, 0], sizes = [8, 128], strides = [1, 1]} : vector<8x512xf32> to vector<8x128xf32>
    %cst_178 = arith.constant 5.000000e-01 : f32
    %457 = vector.broadcast %cst_178 : f32 to vector<8x128xf32>
    %458 = arith.mulf %457, %456 : vector<8x128xf32>
    %459 = math.tanh %458 : vector<8x128xf32>
    %cst_179 = arith.constant 1.000000e+00 : f32
    %460 = vector.broadcast %cst_179 : f32 to vector<8x128xf32>
    %461 = arith.addf %459, %460 : vector<8x128xf32>
    %cst_180 = arith.constant 5.000000e-01 : f32
    %462 = vector.broadcast %cst_180 : f32 to vector<8x128xf32>
    %463 = arith.mulf %462, %461 : vector<8x128xf32>
    %464 = vector.extract_strided_slice %455 {offsets = [0, 128], sizes = [8, 128], strides = [1, 1]} : vector<8x512xf32> to vector<8x128xf32>
    %cst_181 = arith.constant 5.000000e-01 : f32
    %465 = vector.broadcast %cst_181 : f32 to vector<8x128xf32>
    %466 = arith.mulf %465, %464 : vector<8x128xf32>
    %467 = math.tanh %466 : vector<8x128xf32>
    %cst_182 = arith.constant 1.000000e+00 : f32
    %468 = vector.broadcast %cst_182 : f32 to vector<8x128xf32>
    %469 = arith.addf %467, %468 : vector<8x128xf32>
    %cst_183 = arith.constant 5.000000e-01 : f32
    %470 = vector.broadcast %cst_183 : f32 to vector<8x128xf32>
    %471 = arith.mulf %470, %469 : vector<8x128xf32>
    %472 = vector.extract_strided_slice %455 {offsets = [0, 256], sizes = [8, 128], strides = [1, 1]} : vector<8x512xf32> to vector<8x128xf32>
    %473 = math.tanh %472 : vector<8x128xf32>
    %474 = vector.extract_strided_slice %455 {offsets = [0, 384], sizes = [8, 128], strides = [1, 1]} : vector<8x512xf32> to vector<8x128xf32>
    %cst_184 = arith.constant 5.000000e-01 : f32
    %475 = vector.broadcast %cst_184 : f32 to vector<8x128xf32>
    %476 = arith.mulf %475, %474 : vector<8x128xf32>
    %477 = math.tanh %476 : vector<8x128xf32>
    %cst_185 = arith.constant 1.000000e+00 : f32
    %478 = vector.broadcast %cst_185 : f32 to vector<8x128xf32>
    %479 = arith.addf %477, %478 : vector<8x128xf32>
    %cst_186 = arith.constant 5.000000e-01 : f32
    %480 = vector.broadcast %cst_186 : f32 to vector<8x128xf32>
    %481 = arith.mulf %480, %479 : vector<8x128xf32>
    %482 = arith.mulf %471, %414 : vector<8x128xf32>
    %483 = arith.mulf %463, %473 : vector<8x128xf32>
    %484 = arith.addf %482, %483 : vector<8x128xf32>
    %485 = math.tanh %484 : vector<8x128xf32>
    %486 = arith.mulf %481, %485 : vector<8x128xf32>
    %487 = tpu.concatenate %486, %451 in 1 : vector<8x128xf32>, vector<8x128xf32> -> vector<8x256xf32>
    %cst_187 = arith.constant dense<0.000000e+00> : vector<8x512xf32>
    %488 = tpu.matmul %487, %23, %cst_187 {dimension_numbers = #tpu.dot_dimension_numbers<[1], [0], [0], [1], [0, 0, 1, 1], [], []>} : vector<8x256xf32>, vector<256x512xf32>, vector<8x512xf32> -> vector<8x512xf32>
    %489 = vector.broadcast %24 : vector<1x512xf32> to vector<8x512xf32>
    %490 = arith.addf %488, %489 : vector<8x512xf32>
    %491 = vector.extract_strided_slice %490 {offsets = [0, 0], sizes = [8, 128], strides = [1, 1]} : vector<8x512xf32> to vector<8x128xf32>
    %cst_188 = arith.constant 5.000000e-01 : f32
    %492 = vector.broadcast %cst_188 : f32 to vector<8x128xf32>
    %493 = arith.mulf %492, %491 : vector<8x128xf32>
    %494 = math.tanh %493 : vector<8x128xf32>
    %cst_189 = arith.constant 1.000000e+00 : f32
    %495 = vector.broadcast %cst_189 : f32 to vector<8x128xf32>
    %496 = arith.addf %494, %495 : vector<8x128xf32>
    %cst_190 = arith.constant 5.000000e-01 : f32
    %497 = vector.broadcast %cst_190 : f32 to vector<8x128xf32>
    %498 = arith.mulf %497, %496 : vector<8x128xf32>
    %499 = vector.extract_strided_slice %490 {offsets = [0, 128], sizes = [8, 128], strides = [1, 1]} : vector<8x512xf32> to vector<8x128xf32>
    %cst_191 = arith.constant 5.000000e-01 : f32
    %500 = vector.broadcast %cst_191 : f32 to vector<8x128xf32>
    %501 = arith.mulf %500, %499 : vector<8x128xf32>
    %502 = math.tanh %501 : vector<8x128xf32>
    %cst_192 = arith.constant 1.000000e+00 : f32
    %503 = vector.broadcast %cst_192 : f32 to vector<8x128xf32>
    %504 = arith.addf %502, %503 : vector<8x128xf32>
    %cst_193 = arith.constant 5.000000e-01 : f32
    %505 = vector.broadcast %cst_193 : f32 to vector<8x128xf32>
    %506 = arith.mulf %505, %504 : vector<8x128xf32>
    %507 = vector.extract_strided_slice %490 {offsets = [0, 256], sizes = [8, 128], strides = [1, 1]} : vector<8x512xf32> to vector<8x128xf32>
    %508 = math.tanh %507 : vector<8x128xf32>
    %509 = vector.extract_strided_slice %490 {offsets = [0, 384], sizes = [8, 128], strides = [1, 1]} : vector<8x512xf32> to vector<8x128xf32>
    %cst_194 = arith.constant 5.000000e-01 : f32
    %510 = vector.broadcast %cst_194 : f32 to vector<8x128xf32>
    %511 = arith.mulf %510, %509 : vector<8x128xf32>
    %512 = math.tanh %511 : vector<8x128xf32>
    %cst_195 = arith.constant 1.000000e+00 : f32
    %513 = vector.broadcast %cst_195 : f32 to vector<8x128xf32>
    %514 = arith.addf %512, %513 : vector<8x128xf32>
    %cst_196 = arith.constant 5.000000e-01 : f32
    %515 = vector.broadcast %cst_196 : f32 to vector<8x128xf32>
    %516 = arith.mulf %515, %514 : vector<8x128xf32>
    %517 = arith.mulf %506, %449 : vector<8x128xf32>
    %518 = arith.mulf %498, %508 : vector<8x128xf32>
    %519 = arith.addf %517, %518 : vector<8x128xf32>
    %520 = math.tanh %519 : vector<8x128xf32>
    %521 = arith.mulf %516, %520 : vector<8x128xf32>
    %c48_197 = arith.constant 48 : index
    %c0_198 = arith.constant 0 : index
    %522 = vector.load %arg19[%c48_197, %c0_198] : memref<64x128xf32, #tpu.memory_space<vmem>>, vector<8x128xf32>
    tpu.vector_store %arg19[%c48_197, %c0_198], %521 {strides = array<i32>} : memref<64x128xf32, #tpu.memory_space<vmem>>, vector<8x128xf32>,
    %c56 = arith.constant 56 : index
    %c0_199 = arith.constant 0 : index
    %523 = vector.load %arg18[%c56, %c0_199] : memref<64x512xf32, #tpu.memory_space<vmem>>, vector<8x512xf32>
    %cst_200 = arith.constant dense<0.000000e+00> : vector<8x512xf32>
    %524 = tpu.matmul %486, %22, %cst_200 {dimension_numbers = #tpu.dot_dimension_numbers<[1], [0], [0], [1], [0, 0, 1, 1], [], []>} : vector<8x128xf32>, vector<128x512xf32>, vector<8x512xf32> -> vector<8x512xf32>
    %525 = arith.addf %523, %524 : vector<8x512xf32>
    %526 = vector.extract_strided_slice %525 {offsets = [0, 0], sizes = [8, 128], strides = [1, 1]} : vector<8x512xf32> to vector<8x128xf32>
    %cst_201 = arith.constant 5.000000e-01 : f32
    %527 = vector.broadcast %cst_201 : f32 to vector<8x128xf32>
    %528 = arith.mulf %527, %526 : vector<8x128xf32>
    %529 = math.tanh %528 : vector<8x128xf32>
    %cst_202 = arith.constant 1.000000e+00 : f32
    %530 = vector.broadcast %cst_202 : f32 to vector<8x128xf32>
    %531 = arith.addf %529, %530 : vector<8x128xf32>
    %cst_203 = arith.constant 5.000000e-01 : f32
    %532 = vector.broadcast %cst_203 : f32 to vector<8x128xf32>
    %533 = arith.mulf %532, %531 : vector<8x128xf32>
    %534 = vector.extract_strided_slice %525 {offsets = [0, 128], sizes = [8, 128], strides = [1, 1]} : vector<8x512xf32> to vector<8x128xf32>
    %cst_204 = arith.constant 5.000000e-01 : f32
    %535 = vector.broadcast %cst_204 : f32 to vector<8x128xf32>
    %536 = arith.mulf %535, %534 : vector<8x128xf32>
    %537 = math.tanh %536 : vector<8x128xf32>
    %cst_205 = arith.constant 1.000000e+00 : f32
    %538 = vector.broadcast %cst_205 : f32 to vector<8x128xf32>
    %539 = arith.addf %537, %538 : vector<8x128xf32>
    %cst_206 = arith.constant 5.000000e-01 : f32
    %540 = vector.broadcast %cst_206 : f32 to vector<8x128xf32>
    %541 = arith.mulf %540, %539 : vector<8x128xf32>
    %542 = vector.extract_strided_slice %525 {offsets = [0, 256], sizes = [8, 128], strides = [1, 1]} : vector<8x512xf32> to vector<8x128xf32>
    %543 = math.tanh %542 : vector<8x128xf32>
    %544 = vector.extract_strided_slice %525 {offsets = [0, 384], sizes = [8, 128], strides = [1, 1]} : vector<8x512xf32> to vector<8x128xf32>
    %cst_207 = arith.constant 5.000000e-01 : f32
    %545 = vector.broadcast %cst_207 : f32 to vector<8x128xf32>
    %546 = arith.mulf %545, %544 : vector<8x128xf32>
    %547 = math.tanh %546 : vector<8x128xf32>
    %cst_208 = arith.constant 1.000000e+00 : f32
    %548 = vector.broadcast %cst_208 : f32 to vector<8x128xf32>
    %549 = arith.addf %547, %548 : vector<8x128xf32>
    %cst_209 = arith.constant 5.000000e-01 : f32
    %550 = vector.broadcast %cst_209 : f32 to vector<8x128xf32>
    %551 = arith.mulf %550, %549 : vector<8x128xf32>
    %552 = arith.mulf %541, %484 : vector<8x128xf32>
    %553 = arith.mulf %533, %543 : vector<8x128xf32>
    %554 = arith.addf %552, %553 : vector<8x128xf32>
    %555 = math.tanh %554 : vector<8x128xf32>
    %556 = arith.mulf %551, %555 : vector<8x128xf32>
    %557 = tpu.concatenate %556, %521 in 1 : vector<8x128xf32>, vector<8x128xf32> -> vector<8x256xf32>
    %cst_210 = arith.constant dense<0.000000e+00> : vector<8x512xf32>
    %558 = tpu.matmul %557, %23, %cst_210 {dimension_numbers = #tpu.dot_dimension_numbers<[1], [0], [0], [1], [0, 0, 1, 1], [], []>} : vector<8x256xf32>, vector<256x512xf32>, vector<8x512xf32> -> vector<8x512xf32>
    %559 = vector.broadcast %24 : vector<1x512xf32> to vector<8x512xf32>
    %560 = arith.addf %558, %559 : vector<8x512xf32>
    %561 = vector.extract_strided_slice %560 {offsets = [0, 0], sizes = [8, 128], strides = [1, 1]} : vector<8x512xf32> to vector<8x128xf32>
    %cst_211 = arith.constant 5.000000e-01 : f32
    %562 = vector.broadcast %cst_211 : f32 to vector<8x128xf32>
    %563 = arith.mulf %562, %561 : vector<8x128xf32>
    %564 = math.tanh %563 : vector<8x128xf32>
    %cst_212 = arith.constant 1.000000e+00 : f32
    %565 = vector.broadcast %cst_212 : f32 to vector<8x128xf32>
    %566 = arith.addf %564, %565 : vector<8x128xf32>
    %cst_213 = arith.constant 5.000000e-01 : f32
    %567 = vector.broadcast %cst_213 : f32 to vector<8x128xf32>
    %568 = arith.mulf %567, %566 : vector<8x128xf32>
    %569 = vector.extract_strided_slice %560 {offsets = [0, 128], sizes = [8, 128], strides = [1, 1]} : vector<8x512xf32> to vector<8x128xf32>
    %cst_214 = arith.constant 5.000000e-01 : f32
    %570 = vector.broadcast %cst_214 : f32 to vector<8x128xf32>
    %571 = arith.mulf %570, %569 : vector<8x128xf32>
    %572 = math.tanh %571 : vector<8x128xf32>
    %cst_215 = arith.constant 1.000000e+00 : f32
    %573 = vector.broadcast %cst_215 : f32 to vector<8x128xf32>
    %574 = arith.addf %572, %573 : vector<8x128xf32>
    %cst_216 = arith.constant 5.000000e-01 : f32
    %575 = vector.broadcast %cst_216 : f32 to vector<8x128xf32>
    %576 = arith.mulf %575, %574 : vector<8x128xf32>
    %577 = vector.extract_strided_slice %560 {offsets = [0, 256], sizes = [8, 128], strides = [1, 1]} : vector<8x512xf32> to vector<8x128xf32>
    %578 = math.tanh %577 : vector<8x128xf32>
    %579 = vector.extract_strided_slice %560 {offsets = [0, 384], sizes = [8, 128], strides = [1, 1]} : vector<8x512xf32> to vector<8x128xf32>
    %cst_217 = arith.constant 5.000000e-01 : f32
    %580 = vector.broadcast %cst_217 : f32 to vector<8x128xf32>
    %581 = arith.mulf %580, %579 : vector<8x128xf32>
    %582 = math.tanh %581 : vector<8x128xf32>
    %cst_218 = arith.constant 1.000000e+00 : f32
    %583 = vector.broadcast %cst_218 : f32 to vector<8x128xf32>
    %584 = arith.addf %582, %583 : vector<8x128xf32>
    %cst_219 = arith.constant 5.000000e-01 : f32
    %585 = vector.broadcast %cst_219 : f32 to vector<8x128xf32>
    %586 = arith.mulf %585, %584 : vector<8x128xf32>
    %587 = arith.mulf %576, %519 : vector<8x128xf32>
    %588 = arith.mulf %568, %578 : vector<8x128xf32>
    %589 = arith.addf %587, %588 : vector<8x128xf32>
    %590 = math.tanh %589 : vector<8x128xf32>
    %591 = arith.mulf %586, %590 : vector<8x128xf32>
    %c56_220 = arith.constant 56 : index
    %c0_221 = arith.constant 0 : index
    %592 = vector.load %arg19[%c56_220, %c0_221] : memref<64x128xf32, #tpu.memory_space<vmem>>, vector<8x128xf32>
    tpu.vector_store %arg19[%c56_220, %c0_221], %591 {strides = array<i32>} : memref<64x128xf32, #tpu.memory_space<vmem>>, vector<8x128xf32>,
    %c0_222 = arith.constant 0 : index
    %c0_223 = arith.constant 0 : index
    %c0_224 = arith.constant 0 : index
    %593 = vector.load %arg16[%c0_222, %c0_223, %c0_224] : memref<2x8x128xf32, #tpu.memory_space<vmem>>, vector<1x8x128xf32>
    %594 = vector.shape_cast %593 : vector<1x8x128xf32> to vector<8x128xf32>
    %595 = vector.shape_cast %556 : vector<8x128xf32> to vector<1x8x128xf32>
    tpu.vector_store %arg16[%c0_222, %c0_223, %c0_224], %595 {strides = array<i32>} : memref<2x8x128xf32, #tpu.memory_space<vmem>>, vector<1x8x128xf32>,
    %c0_225 = arith.constant 0 : index
    %c0_226 = arith.constant 0 : index
    %c0_227 = arith.constant 0 : index
    %596 = vector.load %arg17[%c0_225, %c0_226, %c0_227] : memref<2x8x128xf32, #tpu.memory_space<vmem>>, vector<1x8x128xf32>
    %597 = vector.shape_cast %596 : vector<1x8x128xf32> to vector<8x128xf32>
    %598 = vector.shape_cast %554 : vector<8x128xf32> to vector<1x8x128xf32>
    tpu.vector_store %arg17[%c0_225, %c0_226, %c0_227], %598 {strides = array<i32>} : memref<2x8x128xf32, #tpu.memory_space<vmem>>, vector<1x8x128xf32>,
    %c1_228 = arith.constant 1 : index
    %c0_229 = arith.constant 0 : index
    %c0_230 = arith.constant 0 : index
    %599 = vector.load %arg16[%c1_228, %c0_229, %c0_230] : memref<2x8x128xf32, #tpu.memory_space<vmem>>, vector<1x8x128xf32>
    %600 = vector.shape_cast %599 : vector<1x8x128xf32> to vector<8x128xf32>
    %601 = vector.shape_cast %591 : vector<8x128xf32> to vector<1x8x128xf32>
    tpu.vector_store %arg16[%c1_228, %c0_229, %c0_230], %601 {strides = array<i32>} : memref<2x8x128xf32, #tpu.memory_space<vmem>>, vector<1x8x128xf32>,
    %c1_231 = arith.constant 1 : index
    %c0_232 = arith.constant 0 : index
    %c0_233 = arith.constant 0 : index
    %602 = vector.load %arg17[%c1_231, %c0_232, %c0_233] : memref<2x8x128xf32, #tpu.memory_space<vmem>>, vector<1x8x128xf32>
    %603 = vector.shape_cast %602 : vector<1x8x128xf32> to vector<8x128xf32>
    %604 = vector.shape_cast %589 : vector<8x128xf32> to vector<1x8x128xf32>
    tpu.vector_store %arg17[%c1_231, %c0_232, %c0_233], %604 {strides = array<i32>} : memref<2x8x128xf32, #tpu.memory_space<vmem>>, vector<1x8x128xf32>,
    %c0_234 = arith.constant 0 : index
    %c0_235 = arith.constant 0 : index
    %605 = vector.load %arg19[%c0_234, %c0_235] : memref<64x128xf32, #tpu.memory_space<vmem>>, vector<64x128xf32>
    %c0_236 = arith.constant 0 : index
    %c0_237 = arith.constant 0 : index
    %606 = vector.load %arg11[%c0_236, %c0_237] : memref<128x128xf32, #tpu.memory_space<vmem>>, vector<128x128xf32>
    %cst_238 = arith.constant dense<0.000000e+00> : vector<64x128xf32>
    %607 = tpu.matmul %605, %606, %cst_238 {dimension_numbers = #tpu.dot_dimension_numbers<[1], [0], [0], [1], [0, 0, 1, 1], [], []>} : vector<64x128xf32>, vector<128x128xf32>, vector<64x128xf32> -> vector<64x128xf32>
    %c0_239 = arith.constant 0 : index
    %c0_240 = arith.constant 0 : index
    %608 = vector.load %arg12[%c0_239, %c0_240] : memref<1x128xf32, #tpu.memory_space<vmem>>, vector<1x128xf32>
    %609 = vector.broadcast %608 : vector<1x128xf32> to vector<64x128xf32>
    %610 = arith.addf %607, %609 : vector<64x128xf32>
    %c0_241 = arith.constant 0 : index
    %c0_242 = arith.constant 0 : index
    %611 = vector.load %arg15[%c0_241, %c0_242] : memref<64x128xf32, #tpu.memory_space<vmem>>, vector<64x128xf32>
    tpu.vector_store %arg15[%c0_241, %c0_242], %610 {strides = array<i32>} : memref<64x128xf32, #tpu.memory_space<vmem>>, vector<64x128xf32>,
    return
  }
  func.func @transform_0(%arg0: i32) -> (i32, i32, i32) {
    %c0_i32 = arith.constant 0 : i32
    %c0_i32_0 = arith.constant 0 : i32
    %c0_i32_1 = arith.constant 0 : i32
    return %c0_i32, %arg0, %c0_i32_0 : i32, i32, i32
  }
  func.func @transform_1(%arg0: i32) -> (i32, i32) {
    %c0_i32 = arith.constant 0 : i32
    %c0_i32_0 = arith.constant 0 : i32
    %c0_i32_1 = arith.constant 0 : i32
    return %c0_i32, %c0_i32_0 : i32, i32
  }
  func.func @transform_2(%arg0: i32) -> (i32, i32) {
    %c0_i32 = arith.constant 0 : i32
    %c0_i32_0 = arith.constant 0 : i32
    %c0_i32_1 = arith.constant 0 : i32
    return %c0_i32, %c0_i32_0 : i32, i32
  }
  func.func @transform_3(%arg0: i32) -> (i32, i32) {
    %c0_i32 = arith.constant 0 : i32
    %c0_i32_0 = arith.constant 0 : i32
    %c0_i32_1 = arith.constant 0 : i32
    return %c0_i32, %c0_i32_0 : i32, i32
  }
  func.func @transform_4(%arg0: i32) -> (i32, i32) {
    %c0_i32 = arith.constant 0 : i32
    %c0_i32_0 = arith.constant 0 : i32
    %c0_i32_1 = arith.constant 0 : i32
    return %c0_i32, %c0_i32_0 : i32, i32
  }
  func.func @transform_5(%arg0: i32) -> (i32, i32) {
    %c0_i32 = arith.constant 0 : i32
    %c0_i32_0 = arith.constant 0 : i32
    %c0_i32_1 = arith.constant 0 : i32
    return %c0_i32, %c0_i32_0 : i32, i32
  }
  func.func @transform_6(%arg0: i32) -> (i32, i32) {
    %c0_i32 = arith.constant 0 : i32
    %c0_i32_0 = arith.constant 0 : i32
    %c0_i32_1 = arith.constant 0 : i32
    return %c0_i32, %c0_i32_0 : i32, i32
  }
  func.func @transform_7(%arg0: i32) -> (i32, i32) {
    %c0_i32 = arith.constant 0 : i32
    %c0_i32_0 = arith.constant 0 : i32
    %c0_i32_1 = arith.constant 0 : i32
    return %c0_i32, %c0_i32_0 : i32, i32
  }
  func.func @transform_8(%arg0: i32) -> (i32, i32) {
    %c0_i32 = arith.constant 0 : i32
    %c0_i32_0 = arith.constant 0 : i32
    %c0_i32_1 = arith.constant 0 : i32
    return %c0_i32, %c0_i32_0 : i32, i32
  }
  func.func @transform_9(%arg0: i32) -> (i32, i32) {
    %c0_i32 = arith.constant 0 : i32
    %c0_i32_0 = arith.constant 0 : i32
    %c0_i32_1 = arith.constant 0 : i32
    return %c0_i32, %c0_i32_0 : i32, i32
  }
  func.func @transform_10(%arg0: i32) -> (i32, i32) {
    %c0_i32 = arith.constant 0 : i32
    %c0_i32_0 = arith.constant 0 : i32
    %c0_i32_1 = arith.constant 0 : i32
    return %c0_i32, %c0_i32_0 : i32, i32
  }
  func.func @transform_11(%arg0: i32) -> (i32, i32) {
    %c0_i32 = arith.constant 0 : i32
    %c0_i32_0 = arith.constant 0 : i32
    %c0_i32_1 = arith.constant 0 : i32
    return %c0_i32, %c0_i32_0 : i32, i32
  }
  func.func @transform_12(%arg0: i32) -> (i32, i32, i32) {
    %c0_i32 = arith.constant 0 : i32
    %c0_i32_0 = arith.constant 0 : i32
    %c0_i32_1 = arith.constant 0 : i32
    return %c0_i32, %arg0, %c0_i32_0 : i32, i32, i32
  }
  func.func @transform_13(%arg0: i32) -> (i32, i32, i32) {
    %c0_i32 = arith.constant 0 : i32
    %c0_i32_0 = arith.constant 0 : i32
    %c0_i32_1 = arith.constant 0 : i32
    return %c0_i32, %arg0, %c0_i32_0 : i32, i32, i32
  }
  func.func @transform_14(%arg0: i32) -> (i32, i32) {
    %c0_i32 = arith.constant 0 : i32
    %c0_i32_0 = arith.constant 0 : i32
    return %arg0, %c0_i32 : i32, i32
  }
  func.func @transform_15(%arg0: i32) -> (i32, i32, i32) {
    %c0_i32 = arith.constant 0 : i32
    %c0_i32_0 = arith.constant 0 : i32
    %c0_i32_1 = arith.constant 0 : i32
    return %c0_i32, %arg0, %c0_i32_0 : i32, i32, i32
  }
  func.func @transform_16(%arg0: i32) -> (i32, i32, i32) {
    %c0_i32 = arith.constant 0 : i32
    %c0_i32_0 = arith.constant 0 : i32
    %c0_i32_1 = arith.constant 0 : i32
    return %c0_i32, %arg0, %c0_i32_0 : i32, i32, i32
  }
}

</mosaic_0001>

<bundles_post_ra>
// kernel: tpu_custom_call.1
= control target key start
LH: loop header
LB: loop body
LE: loop exit
PB: predicated region body
PF: predicated region fallthrough
CT: control target
= control target key end

     0   :  { %s8038_s0 = inlined_call_operand.hbm [shape: f32[8,8,16], index: 0, kind: input, shape index: {}]   ;;  %s8039_s1 = inlined_call_operand.hbm [shape: f32[16,16], index: 1, kind: input, shape index: {}]   ;;  %s8040_s2 = inlined_call_operand.hbm [shape: f32[1,16], index: 2, kind: input, shape index: {}]   ;;  %s8041_s3 = inlined_call_operand.hbm [shape: f32[16,16], index: 3, kind: input, shape index: {}]   ;;  %s8042_s4 = inlined_call_operand.hbm [shape: f32[1,16], index: 4, kind: input, shape index: {}]   ;;  %s8043_s5 = inlined_call_operand.hbm [shape: f32[16,512], index: 5, kind: input, shape index: {}]   ;;  %s8044_s6 = inlined_call_operand.hbm [shape: f32[128,512], index: 6, kind: input, shape index: {}]   ;;  %s8045_s7 = inlined_call_operand.vmem [shape: f32[1,512], index: 7, kind: input, shape index: {}]   ;;  %s8046_s8 = inlined_call_operand.hbm [shape: f32[256,512], index: 8, kind: input, shape index: {}]   ;;  %s8047_s9 = inlined_call_operand.vmem [shape: f32[1,512], index: 9, kind: input, shape index: {}]   ;;  %s8048_s10 = inlined_call_operand.hbm [shape: f32[128,128], index: 10, kind: input, shape index: {}]   ;;  %s8049_s11 = inlined_call_operand.vmem [shape: f32[1,128], index: 11, kind: input, shape index: {}]   ;;  %s8050_s12 = inlined_call_operand.hbm [shape: f32[2,8,128], index: 12, kind: input, shape index: {}]   ;;  %s8051_s13 = inlined_call_operand.hbm [shape: f32[2,8,128], index: 13, kind: input, shape index: {}]   ;;  %s8052_s14 = inlined_call_operand.hbm [shape: f32[64,128], index: 14, kind: output, shape index: {0}]   ;;  %s8053_s15 = inlined_call_operand.hbm [shape: f32[2,8,128], index: 15, kind: output, shape index: {1}]   ;;  %s8054_s16 = inlined_call_operand.hbm [shape: f32[2,8,128], index: 16, kind: output, shape index: {2}]  }
   0x1   :  { %8584 = sst [smem:[#allocation200_spill]] %s8038_s0 }
   0x2   :  { %22 = vsyncpa [#allocation5], 0 }
   0x3   :  { %23 = vsyncpa [#allocation8], 0 }
   0x4   :  { %24 = vsyncpa [#allocation11], 0 }
   0x5   :  { %25 = vsyncpa [#allocation14], 0 }
   0x6   :  { %26 = vsyncpa [#allocation17], 0 }
   0x7   :  { %27 = vsyncpa [#allocation20], 0 }
   0x8   :  { %28 = vsyncpa [#allocation6], 0 }
   0x9   :  { %29 = vsyncpa [#allocation24], 0  ;;  %s47_s23 = sshll.u32 %s8039_s1, 4  ;;  %s4431_s24 = smov [#allocation7]   ;;  %s48_s23 = int_to_ptr.hbm [resolvable:$true] %s47_s23 }
   0xa   :  { %s49_s25 = sshll.u32 %s4431_s24, 4  ;;  %s71_s28 = sshll.u32 %s8041_s3, 4  ;;  %s50_s25 = int_to_ptr.vmem [resolvable:$true] %s49_s25  ;;  %s72_s28 = int_to_ptr.hbm [resolvable:$true] %s71_s28 }
   0xb   :  { %s4432_s29 = smov 128   ;;  %s4433_s30 = smov 8  }
   0xc   :  { %55 = dma.hbm_to_vmem [thread:$0]  %s48_s23, 256, %s50_s25, [#allocation8], %s4432_s29, %s4432_s29, %s4433_s30  }
   0xd   :  { %s4434_s0 = smov [#allocation10]   ;;  %s95_s1 = sshll.u32 %s8043_s5, 4  ;;  %s96_s1 = int_to_ptr.hbm [resolvable:$true] %s95_s1 }
   0xe   :  { %s73_s17 = sshll.u32 %s4434_s0, 4  ;;  %s4435_s3 = smov [#allocation13]   ;;  %s74_s17 = int_to_ptr.vmem [resolvable:$true] %s73_s17 }
   0xf   :  { %79 = dma.hbm_to_vmem [thread:$0]  %s72_s28, 256, %s74_s17, [#allocation11], %s4432_s29, %s4432_s29, %s4433_s30  }
  0x10   :  { %s97_s20 = sshll.u32 %s4435_s3, 4  ;;  %s123_s23 = sshll.u32 %s8046_s8, 4  ;;  %s98_s20 = int_to_ptr.vmem [resolvable:$true] %s97_s20  ;;  %s124_s23 = int_to_ptr.hbm [resolvable:$true] %s123_s23 }
  0x11   :  { %s4436_s24 = smov 512   ;;  %s4437_s25 = smov 32  }
  0x12   :  { %103 = dma.hbm_to_vmem [thread:$0]  %s96_s1, 1024, %s98_s20, [#allocation14], %s4436_s24, %s4436_s24, %s4437_s25  }
  0x13   :  { %s4438_s5 = smov [#allocation16]   ;;  %s153_s28 = sshll.u32 %s8050_s12, 4  ;;  %s154_s28 = int_to_ptr.hbm [resolvable:$true] %s153_s28 }
  0x14   :  { %s125_s26 = sshll.u32 %s4438_s5, 4  ;;  %s8585_s18 = sld [smem:[#allocation200_spill]]  ;;  %s126_s26 = int_to_ptr.vmem [resolvable:$true] %s125_s26 }
  0x15   :  { %131 = dma.hbm_to_vmem [thread:$0]  %s124_s23, 16384, %s126_s26, [#allocation17], %s4436_s24, %s4436_s24, %s4437_s25  }
  0x16   :  { %s4439_s3 = smov [#allocation19]   ;;  %s4440_s1 = smov [#allocation4]  }
  0x17   :  { %s155_s21 = sshll.u32 %s4439_s3, 4  ;;  %s36_s12 = sshll.u32 %s4440_s1, 4  ;;  %s156_s21 = int_to_ptr.vmem [resolvable:$true] %s155_s21  ;;  %s37_s12 = int_to_ptr.vmem [resolvable:$true] %s36_s12 }
  0x18   :  { %161 = dma.hbm_to_vmem [thread:$0]  %s154_s28, 256, %s156_s21, [#allocation20], %s4432_s29, %s4432_s29, %s4433_s30  }
  0x19   :  { %s61_s5 = sshll.u32 %s8040_s2, 4  ;;  %s85_s27 = sshll.u32 %s8042_s4, 4  ;;  %s62_s5 = int_to_ptr.hbm [resolvable:$true] %s61_s5  ;;  %s86_s27 = int_to_ptr.hbm [resolvable:$true] %s85_s27 }
  0x1a   :  { %s34_s19 = sshll.u32 %s8585_s18, 4  ;;  %s4441_s0 = smov [#allocation9]   ;;  %s35_s19 = int_to_ptr.hbm [resolvable:$true] %s34_s19 }
  0x1b   :  { %42 = dma.hbm_to_vmem [thread:$0]  %s35_s19, 1024, %s37_s12, [#allocation5], %s4432_s29, %s4432_s29, %s4433_s30  }
  0x1c   :  { %s63_s8 = sshll.u32 %s4441_s0, 4  ;;  %s4442_s28 = smov [#allocation12]   ;;  %s64_s8 = int_to_ptr.vmem [resolvable:$true] %s63_s8 }
  0x1d   :  { %66 = dma.hbm_to_vmem [thread:$0]  %s62_s5, 16, %s64_s8, [#allocation8]  }
  0x1e   :  { %s87_s17 = sshll.u32 %s4442_s28, 4  ;;  %s108_s2 = sshll.u32 %s8044_s6, 4  ;;  %s88_s17 = int_to_ptr.vmem [resolvable:$true] %s87_s17  ;;  %s109_s2 = int_to_ptr.hbm [resolvable:$true] %s108_s2 }
  0x1f   :  { %90 = dma.hbm_to_vmem [thread:$0]  %s86_s27, 16, %s88_s17, [#allocation11]  }
  0x20   :  { %s138_s1 = sshll.u32 %s8048_s10, 4  ;;  %s4443_s12 = smov [#allocation15]   ;;  %s139_s1 = int_to_ptr.hbm [resolvable:$true] %s138_s1 }
  0x21   :  { %s110_s4 = sshll.u32 %s4443_s12, 4  ;;  %s4444_s20 = smov [#allocation18]   ;;  %s111_s4 = int_to_ptr.vmem [resolvable:$true] %s110_s4 }
  0x22   :  { %116 = dma.hbm_to_vmem [thread:$0]  %s109_s2, 8192, %s111_s4, [#allocation14], %s4436_s24, %s4436_s24, %s4437_s25  }
  0x23   :  { %s140_s22 = sshll.u32 %s4444_s20, 4  ;;  %s166_s6 = sshll.u32 %s8051_s13, 4  ;;  %s141_s22 = int_to_ptr.vmem [resolvable:$true] %s140_s22  ;;  %s167_s6 = int_to_ptr.hbm [resolvable:$true] %s166_s6 }
  0x24   :  { %146 = dma.hbm_to_vmem [thread:$0]  %s139_s1, 2048, %s141_s22, [#allocation17], %s4432_s29, %s4432_s29, %s4433_s30  }
  0x25   :  { %s4445_s10 = smov [#allocation21]  }
  0x26   :  { %s168_s26 = sshll.u32 %s4445_s10, 4  ;;  %s169_s26 = int_to_ptr.vmem [resolvable:$true] %s168_s26 }
  0x27   :  { %174 = dma.hbm_to_vmem [thread:$0]  %s167_s6, 256, %s169_s26, [#allocation20], %s4432_s29, %s4432_s29, %s4433_s30  }
  0x28   :  { %4415 = dma.done.wait [#allocation5], 1024  }
  0x29   :  { %4416 = vsyncadd [#allocation5], 4294966272 }
  0x2a   :  { %4417 = dma.done.wait [#allocation8], 272  }
  0x2b   :  { %4418 = vsyncadd [#allocation8], 4294967024 }
  0x2c   :  { %4419 = dma.done.wait [#allocation11], 272  }
  0x2d   :  { %4420 = vsyncadd [#allocation11], 4294967024 }
  0x2e   :  { %4421 = dma.done.wait [#allocation14], 9216  }
  0x2f   :  { %4422 = vsyncadd [#allocation14], 4294958080 }
  0x30   :  { %4423 = dma.done.wait [#allocation17], 18432  }
  0x31   :  { %4424 = vsyncadd [#allocation17], 4294948864 }
  0x32   :  { %4425 = dma.done.wait [#allocation20], 512  }
  0x33   :  { %4426 = vsyncadd [#allocation20], 4294966784  ;;  %v228_v0 = vld [vmem:[#allocation7 + $0x8] sm:$0xff]  ;;  %v227_v1 = vld [vmem:[#allocation7] sm:$0xff]  ;;  %vm233_vm0 = vcmask 130048   ;;  %s4446_s0 = smov [#allocation23]  }
  0x34   :  { %272 = vmatpush.msra.mxu1 %v228_v0  ;;  %v219_v2 = vld [vmem:[#allocation4] sm:$0xff]  ;;  %3302 = vmatpush.msra.mxu2 %v228_v0  ;;  %v222_v3 = vld [vmem:[#allocation4 + $0x18] sm:$0xff]  ;;  %v225_v4 = vld [vmem:[#allocation4 + $0x30] sm:$0xff]  ;;  %s3212_s8 = sshll.u32 %s4446_s0, 4  ;;  %s3214_s18 = sshll.u32 %s8053_s15, 4  ;;  %s3213_s8 = int_to_ptr.vmem [resolvable:$true] %s3212_s8  ;;  %s3215_s18 = int_to_ptr.hbm [resolvable:$true] %s3214_s18 }
  0x35   :  { %3303 = vmatpush.msra.mxu3 %v228_v0  ;;  %v308_v5 = vld [vmem:[#allocation10 + $0x8] sm:$0xff]  ;;  %v307_v6 = vld [vmem:[#allocation10] sm:$0xff]  ;;  %v220_v7 = vld [vmem:[#allocation4 + $0x8] sm:$0xff]  ;;  %s3227_s19 = sshll.u32 %s8054_s16, 4  ;;  %s4448_s15 = smov [#allocation22]   ;;  %s3228_s19 = int_to_ptr.hbm [resolvable:$true] %s3227_s19 }
  0x36   :  { %273 = vmatpush.msra.mxu1 %v227_v1  ;;  %3304 = vmatpush.msra.mxu2 %v227_v1  ;;  %v223_v8 = vld [vmem:[#allocation4 + $0x20] sm:$0xff]  ;;  %v226_v9 = vld [vmem:[#allocation4 + $0x38] sm:$0xff]  ;;  %v221_v10 = vld [vmem:[#allocation4 + $0x10] sm:$0xff]  ;;  %s3199_s16 = sshll.u32 %s4448_s15, 4  ;;  %s3201_s4 = sshll.u32 %s8052_s14, 4  ;;  %s3200_s16 = int_to_ptr.vmem [resolvable:$true] %s3199_s16  ;;  %s3202_s4 = int_to_ptr.hbm [resolvable:$true] %s3201_s4 }
  0x37   :  { %3254 = vmatmul.msk.f32.vlgmr.msra.gmra.mxu1 %vm233_vm0, %v219_v2  ;;  %3257 = vmatmul.msk.f32.vlgmr.msra.gmra.mxu2 %vm233_vm0, %v222_v3  ;;  %v224_v11 = vld [vmem:[#allocation4 + $0x28] sm:$0xff]  ;;  %v3324_v12 = vld [vmem:[#allocation9] ss:$0 sm:$0xff]  ;;  %v392_v41 = vld [vmem:[#allocation13 + $0x30] sm:$0xff] }
  0x38   :  { %3305 = vmatpush.msra.mxu3 %v227_v1  ;;  %351 = vmatpush.msrb.mxu1 %v308_v5  ;;  %v390_v27 = vld [vmem:[#allocation13 + $0x20] sm:$0xff]  ;;  %v391_v28 = vld [vmem:[#allocation13 + $0x28] sm:$0xff]  ;;  %v393_v42 = vld [vmem:[#allocation13 + $0x38] sm:$0xff] }
  0x39   :  { %3260 = vmatmul.msk.f32.vlgmr.msra.gmra.mxu3 %vm233_vm0, %v225_v4  ;;  %v386_v29 = vld [vmem:[#allocation13] sm:$0xff]  ;;  %442 = vmatpush.msrb.mxu2 %v390_v27  ;;  %v387_v30 = vld [vmem:[#allocation13 + $0x8] sm:$0xff]  ;;  %v388_v43 = vld [vmem:[#allocation13 + $0x10] sm:$0xff] }
  0x3a   :  { %352 = vmatpush.msrb.mxu1 %v307_v6  ;;  %483 = vmatpush.msrb.mxu3 %v391_v28  ;;  %v389_v44 = vld [vmem:[#allocation13 + $0x18] sm:$0xff]  ;;  %v684_v45 = vld [vmem:[#allocation15 + $0x1e0] sm:$0xff]  ;;  %v4610_v46 = vld [vmem:[#allocation15 + $0x1e8] sm:$0xff] }
  0x3b   :  { %443 = vmatpush.msrb.mxu2 %v386_v29  ;;  %524 = vmatpush.msra.mxu0 %v392_v41  ;;  %v680_v47 = vld [vmem:[#allocation15 + $0x1c0] sm:$0xff]  ;;  %v4613_v48 = vld [vmem:[#allocation15 + $0x1c8] sm:$0xff]  ;;  %v4631_v59 = vld [vmem:[#allocation12] ss:$0 sm:$0xff] }
  0x3c   :  { %484 = vmatpush.msrb.mxu3 %v387_v30  ;;  %565 = vmatpush.msra.mxu1 %v393_v42  ;;  %v676_v49 = vld [vmem:[#allocation15 + $0x1a0] sm:$0xff]  ;;  %v4616_v50 = vld [vmem:[#allocation15 + $0x1a8] sm:$0xff]  ;;  %v4683_v27 = vld [vmem:[#allocation15 + $0x1b0] sm:$0xff] }
  0x3d   :  { %525 = vmatpush.msra.mxu0 %v388_v43  ;;  %827 = vmatpush.msra.mxu2 %v684_v45  ;;  %v672_v51 = vld [vmem:[#allocation15 + $0x180] sm:$0xff]  ;;  %v4619_v52 = vld [vmem:[#allocation15 + $0x188] sm:$0xff]  ;;  %8588 = vst [vmem:[#allocation36_spill] sm:$0xff] %v4683_v27  ;;  %v4685_v28 = vld [vmem:[#allocation15 + $0x1b8] sm:$0xff] }
  0x3e   :  { %566 = vmatpush.msra.mxu1 %v389_v44  ;;  %847 = vmatpush.msra.mxu3 %v4610_v46  ;;  %v668_v53 = vld [vmem:[#allocation15 + $0x160] sm:$0xff]  ;;  %v4622_v54 = vld [vmem:[#allocation15 + $0x168] sm:$0xff]  ;;  %v4691_v29 = vld [vmem:[#allocation15 + $0x190] sm:$0xff] }
  0x3f   :  { %3255 = vmatmul.msk.f32.gmra.mxu1 %vm233_vm0, %v220_v7  ;;  %3258 = vmatmul.msk.f32.gmra.mxu2 %vm233_vm0, %v223_v8  ;;  %v664_v55 = vld [vmem:[#allocation15 + $0x140] sm:$0xff]  ;;  %v4625_v56 = vld [vmem:[#allocation15 + $0x148] sm:$0xff]  ;;  %8589 = vst [vmem:[#allocation37_spill] sm:$0xff] %v4691_v29  ;;  %v4693_v30 = vld [vmem:[#allocation15 + $0x198] sm:$0xff] }
  0x40   :  { %828 = vmatpush.msra.mxu2 %v680_v47  ;;  %848 = vmatpush.msra.mxu3 %v4613_v48  ;;  %v660_v57 = vld [vmem:[#allocation15 + $0x120] sm:$0xff]  ;;  %v4628_v58 = vld [vmem:[#allocation15 + $0x128] sm:$0xff]  ;;  %v4720_v41 = vld [vmem:[#allocation15 + $0x110] sm:$0xff] }
  0x41   :  { %3261 = vmatmul.msk.f32.gmra.mxu3 %vm233_vm0, %v226_v9  ;;  %v656_v60 = vld [vmem:[#allocation15 + $0x100] sm:$0xff]  ;;  %v4633_v61 = vld [vmem:[#allocation15 + $0x108] sm:$0xff]  ;;  %8593 = vst [vmem:[#allocation41_spill] sm:$0xff] %v4720_v41  ;;  %v4722_v42 = vld [vmem:[#allocation15 + $0x118] sm:$0xff] }
  0x42   :  { %829 = vmatpush.msra.mxu2 %v676_v49  ;;  %849 = vmatpush.msra.mxu3 %v4616_v50  ;;  %v652_v62 = vld [vmem:[#allocation15 + $0xe0] sm:$0xff]  ;;  %v4636_v63 = vld [vmem:[#allocation15 + $0xe8] sm:$0xff]  ;;  %v4729_v45 = vld [vmem:[#allocation15 + $0xf0] sm:$0xff] }
  0x43   :  { %v648_v2 = vld [vmem:[#allocation15 + $0xc0] sm:$0xff]  ;;  %v4640_v3 = vld [vmem:[#allocation15 + $0xc8] sm:$0xff]  ;;  %8594 = vst [vmem:[#allocation42_spill] sm:$0xff] %v4729_v45  ;;  %v4731_v47 = vld [vmem:[#allocation15 + $0xf8] sm:$0xff] }
  0x44   :  { %830 = vmatpush.msra.mxu2 %v672_v51  ;;  %850 = vmatpush.msra.mxu3 %v4619_v52  ;;  %v644_v5 = vld [vmem:[#allocation15 + $0xa0] sm:$0xff]  ;;  %v4643_v6 = vld [vmem:[#allocation15 + $0xa8] sm:$0xff]  ;;  %v4737_v49 = vld [vmem:[#allocation15 + $0xd0] sm:$0xff] }
  0x45   :  { %v640_v7 = vld [vmem:[#allocation15 + $0x80] sm:$0xff]  ;;  %v4648_v8 = vld [vmem:[#allocation15 + $0x88] sm:$0xff]  ;;  %8595 = vst [vmem:[#allocation43_spill] sm:$0xff] %v4737_v49  ;;  %v4739_v51 = vld [vmem:[#allocation15 + $0xd8] sm:$0xff] }
  0x46   :  { %831 = vmatpush.msra.mxu2 %v668_v53  ;;  %851 = vmatpush.msra.mxu3 %v4622_v54  ;;  %v636_v9 = vld [vmem:[#allocation15 + $0x60] sm:$0xff] }
  0x47   :  { %3256 = vmatmul.msk.f32.gmra.mxu1 %vm233_vm0, %v221_v10  ;;  %3259 = vmatmul.msk.f32.gmra.mxu2 %vm233_vm0, %v224_v11  ;;  %v4652_v10 = vld [vmem:[#allocation15 + $0x68] sm:$0xff] }
  0x48   :  { %832 = vmatpush.msra.mxu2 %v664_v55  ;;  %852 = vmatpush.msra.mxu3 %v4625_v56  ;;  %v4743_v55 = vld [vmem:[#allocation15 + $0xb0] sm:$0xff] }
  0x49   :  { %8596 = vst [vmem:[#allocation44_spill] sm:$0xff] %v4743_v55 }
  0x4a   :  { %833 = vmatpush.msra.mxu2 %v660_v57  ;;  %853 = vmatpush.msra.mxu3 %v4628_v58  ;;  %v4745_v57 = vld [vmem:[#allocation15 + $0xb8] sm:$0xff] }
  0x4c   :  { %834 = vmatpush.msra.mxu2 %v656_v60  ;;  %854 = vmatpush.msra.mxu3 %v4633_v61 }
  0x4e   :  { %835 = vmatpush.msra.mxu2 %v652_v62  ;;  %855 = vmatpush.msra.mxu3 %v4636_v63 }
  0x50   :  { %836 = vmatpush.msra.mxu2 %v648_v2  ;;  %856 = vmatpush.msra.mxu3 %v4640_v3  ;;  %v4760_v2 = vld [vmem:[#allocation15 + $0x70] sm:$0xff] }
  0x51   :  { %8598 = vst [vmem:[#allocation46_spill] sm:$0xff] %v4760_v2 }
  0x52   :  { %837 = vmatpush.msra.mxu2 %v644_v5  ;;  %857 = vmatpush.msra.mxu3 %v4643_v6 }
  0x54   :  { %838 = vmatpush.msra.mxu2 %v640_v7  ;;  %858 = vmatpush.msra.mxu3 %v4648_v8  ;;  %v4766_v7 = vld [vmem:[#allocation15 + $0x50] sm:$0xff] }
  0x55   :  { %8599 = vst [vmem:[#allocation47_spill] sm:$0xff] %v4766_v7 }
  0x56   :  { %839 = vmatpush.msra.mxu2 %v636_v9  ;;  %859 = vmatpush.msra.mxu3 %v4652_v10  ;;  %v4768_v9 = vld [vmem:[#allocation15 + $0x58] sm:$0xff] }
  0xb4   :  { %v275_v13 = vpop.f32.mrf.mxu1 }
  0xb5   :  { %v276_v14 = vadd.f32 %v3324_v12, %v275_v13  ;;  %v632_v13 = vld [vmem:[#allocation15 + $0x40] sm:$0xff] }
  0xb6   :  { %840 = vmatpush.msra.mxu2 %v632_v13  ;;  %v4775_v13 = vld [vmem:[#allocation15 + $0x30] sm:$0xff] }
  0xb7   :  { %v299_v15 = vmax.f32 %v276_v14, 0.0  ;;  %v4657_v14 = vld [vmem:[#allocation15 + $0x48] sm:$0xff]  ;;  %8600 = vst [vmem:[#allocation48_spill] sm:$0xff] %v4775_v13 }
  0xb8   :  { %860 = vmatpush.msra.mxu3 %v4657_v14 }
  0xb9   :  { %3262 = vmatmul.msk.f32.vlgmr.msrb.gmra.mxu1 %vm233_vm0, %v299_v15 }
  0xba   :  { %v284_v19 = vpop.f32.mrf.mxu2 }
  0xbb   :  { %v285_v23 = vadd.f32 %v3324_v12, %v284_v19  ;;  %v4666_v19 = vld [vmem:[#allocation15 + $0x8] sm:$0xff] }
  0xbc   :  { %v278_v16 = vpop.f32.mrf.mxu1  ;;  %v293_v34 = vpop.f32.mrf.mxu3 }
  0xbd   :  { %v279_v17 = vadd.f32 %v3324_v12, %v278_v16  ;;  %v302_v25 = vmax.f32 %v285_v23, 0.0  ;;  %v294_v36 = vadd.f32 %v3324_v12, %v293_v34  ;;  %v628_v16 = vld [vmem:[#allocation15 + $0x20] sm:$0xff] }
  0xbe   :  { %841 = vmatpush.msra.mxu2 %v628_v16  ;;  %v4783_v16 = vld [vmem:[#allocation15 + $0x10] sm:$0xff] }
  0xbf   :  { %v300_v18 = vmax.f32 %v279_v17, 0.0  ;;  %v305_v37 = vmax.f32 %v294_v36, 0.0  ;;  %v4660_v17 = vld [vmem:[#allocation15 + $0x28] sm:$0xff]  ;;  %v4706_v36 = vld [vmem:[#allocation15 + $0x150] sm:$0xff]  ;;  %8601 = vst [vmem:[#allocation49_spill] sm:$0xff] %v4783_v16 }
  0xc0   :  { %861 = vmatpush.msra.mxu3 %v4660_v17  ;;  %8591 = vst [vmem:[#allocation39_spill] sm:$0xff] %v4706_v36 }
  0xc1   :  { %3263 = vmatmul.msk.f32.gmra.mxu1 %vm233_vm0, %v300_v18  ;;  %v624_v18 = vld [vmem:[#allocation15] sm:$0xff] }
  0xc2   :  { %v287_v24 = vpop.f32.mrf.mxu2  ;;  %842 = vmatpush.msra.mxu2 %v624_v18  ;;  %862 = vmatpush.msra.mxu3 %v4666_v19  ;;  %v4785_v18 = vld [vmem:[#allocation15 + $0x18] sm:$0xff] }
  0xc3   :  { %v288_v26 = vadd.f32 %v3324_v12, %v287_v24  ;;  %v4675_v24 = vld [vmem:[#allocation15 + $0x1d0] sm:$0xff] }
  0xc4   :  { %v281_v20 = vpop.f32.mrf.mxu1  ;;  %v296_v38 = vpop.f32.mrf.mxu3  ;;  %8587 = vst [vmem:[#allocation35_spill] sm:$0xff] %v4675_v24 }
  0xc5   :  { %v282_v21 = vadd.f32 %v3324_v12, %v281_v20  ;;  %v303_v31 = vmax.f32 %v288_v26, 0.0  ;;  %v297_v39 = vadd.f32 %v3324_v12, %v296_v38  ;;  %v4669_v20 = vld [vmem:[#allocation15 + $0x1f0] sm:$0xff] }
  0xc6   :  { %8586 = vst [vmem:[#allocation34_spill] sm:$0xff] %v4669_v20  ;;  %v4714_v38 = vld [vmem:[#allocation15 + $0x130] sm:$0xff] }
  0xc7   :  { %v301_v22 = vmax.f32 %v282_v21, 0.0  ;;  %v306_v40 = vmax.f32 %v297_v39, 0.0  ;;  %v4671_v21 = vld [vmem:[#allocation15 + $0x1f8] sm:$0xff]  ;;  %8592 = vst [vmem:[#allocation40_spill] sm:$0xff] %v4714_v38 }
  0xc8   :  { %v4716_v39 = vld [vmem:[#allocation15 + $0x138] sm:$0xff] }
  0xc9   :  { %3264 = vmatmul.msk.f32.gmra.mxu1 %vm233_vm0, %v301_v22 }
  0xca   :  { %v290_v32 = vpop.f32.mrf.mxu2 }
  0xcb   :  { %v291_v33 = vadd.f32 %v3324_v12, %v290_v32  ;;  %v4697_v32 = vld [vmem:[#allocation15 + $0x170] sm:$0xff] }
  0xcc   :  { %8590 = vst [vmem:[#allocation38_spill] sm:$0xff] %v4697_v32 }
  0xcd   :  { %v304_v35 = vmax.f32 %v291_v33, 0.0  ;;  %v4699_v33 = vld [vmem:[#allocation15 + $0x178] sm:$0xff] }
  0xd1   :  { %3265 = vmatmul.msk.f32.gmra.mxu1 %vm233_vm0, %v302_v25  ;;  %v4677_v25 = vld [vmem:[#allocation15 + $0x1d8] sm:$0xff] }
  0xd9   :  { %3266 = vmatmul.msk.f32.gmra.mxu1 %vm233_vm0, %v303_v31 }
  0xe1   :  { %3267 = vmatmul.msk.f32.gmra.mxu1 %vm233_vm0, %v304_v35 }
  0xe9   :  { %3268 = vmatmul.msk.f32.gmra.mxu1 %vm233_vm0, %v305_v37  ;;  %v4708_v37 = vld [vmem:[#allocation15 + $0x158] sm:$0xff] }
  0xf1   :  { %3269 = vmatmul.msk.f32.gmra.mxu1 %vm233_vm0, %v306_v40 }
 0x136   :  { %v354_v0 = vpop.f32.mrf.mxu1 }
 0x137   :  { %v355_v1 = vadd.f32 %v4631_v59, %v354_v0  ;;  %v4752_v0 = vld [vmem:[#allocation15 + $0x90] sm:$0xff] }
 0x138   :  { %8597 = vst [vmem:[#allocation45_spill] sm:$0xff] %v4752_v0 }
 0x139   :  { %v378_v4 = vmax.f32 %v355_v1, 0.0  ;;  %v4754_v1 = vld [vmem:[#allocation15 + $0x98] sm:$0xff] }
 0x13b   :  { %3270 = vmatmul.msk.f32.vlgmr.msrb.gmra.mxu2 %vm233_vm0, %v378_v4  ;;  %3278 = vmatmul.msk.f32.vlgmr.msrb.gmra.mxu3 %vm233_vm0, %v378_v4 }
 0x13c   :  { %3286 = vmatmul.msk.f32.vlgmr.msra.gmra.mxu0 %vm233_vm0, %v378_v4  ;;  %3294 = vmatmul.msk.f32.vlgmr.msra.gmra.mxu1 %vm233_vm0, %v378_v4  ;;  %v4762_v4 = vld [vmem:[#allocation15 + $0x78] sm:$0xff] }
 0x13d   :  { %867 = vmatpush.msrb.mxu2 %v4669_v20  ;;  %887 = vmatpush.msrb.mxu3 %v4671_v21 }
 0x13e   :  { %v357_v11 = vpop.f32.mrf.mxu1 }
 0x13f   :  { %v358_v12 = vadd.f32 %v4631_v59, %v357_v11  ;;  %868 = vmatpush.msrb.mxu2 %v4675_v24  ;;  %888 = vmatpush.msrb.mxu3 %v4677_v25  ;;  %v4884_v24 = vld [vmem:[#allocation16 + $0x1e0] sm:$0xff] }
 0x140   :  { %8613 = vst [vmem:[#allocation61_spill] sm:$0xff] %v4884_v24  ;;  %938 = vmatpush.msrb.mxu0 %v4884_v24  ;;  %v4903_v24 = vld [vmem:[#allocation16 + $0x3f8] sm:$0xff] }
 0x141   :  { %v379_v15 = vmax.f32 %v358_v12, 0.0  ;;  %869 = vmatpush.msrb.mxu2 %v4683_v27  ;;  %889 = vmatpush.msrb.mxu3 %v4685_v28  ;;  %v4882_v27 = vld [vmem:[#allocation16 + $0x228] sm:$0xff]  ;;  %8618 = vst [vmem:[#allocation66_spill] sm:$0xff] %v4903_v24 }
 0x142   :  { %8612 = vst [vmem:[#allocation60_spill] sm:$0xff] %v4882_v27 }
 0x143   :  { %3271 = vmatmul.msk.f32.gmra.mxu2 %vm233_vm0, %v379_v15  ;;  %3279 = vmatmul.msk.f32.gmra.mxu3 %vm233_vm0, %v379_v15 }
 0x144   :  { %3287 = vmatmul.msk.f32.gmra.mxu0 %vm233_vm0, %v379_v15  ;;  %3295 = vmatmul.msk.f32.gmra.mxu1 %vm233_vm0, %v379_v15  ;;  %v4777_v15 = vld [vmem:[#allocation15 + $0x38] sm:$0xff] }
 0x145   :  { %870 = vmatpush.msrb.mxu2 %v4691_v29  ;;  %890 = vmatpush.msrb.mxu3 %v4693_v30  ;;  %v4878_v29 = vld [vmem:[#allocation16 + $0x220] sm:$0xff] }
 0x146   :  { %v360_v22 = vpop.f32.mrf.mxu1  ;;  %8611 = vst [vmem:[#allocation59_spill] sm:$0xff] %v4878_v29 }
 0x147   :  { %v361_v23 = vadd.f32 %v4631_v59, %v360_v22  ;;  %871 = vmatpush.msrb.mxu2 %v4697_v32  ;;  %891 = vmatpush.msrb.mxu3 %v4699_v33  ;;  %v4876_v32 = vld [vmem:[#allocation16 + $0x248] sm:$0xff] }
 0x148   :  { %8610 = vst [vmem:[#allocation58_spill] sm:$0xff] %v4876_v32 }
 0x149   :  { %v380_v26 = vmax.f32 %v361_v23, 0.0  ;;  %872 = vmatpush.msrb.mxu2 %v4706_v36  ;;  %892 = vmatpush.msrb.mxu3 %v4708_v37  ;;  %v4874_v36 = vld [vmem:[#allocation16 + $0x240] sm:$0xff] }
 0x14a   :  { %8609 = vst [vmem:[#allocation57_spill] sm:$0xff] %v4874_v36 }
 0x14b   :  { %3272 = vmatmul.msk.f32.gmra.mxu2 %vm233_vm0, %v380_v26  ;;  %3280 = vmatmul.msk.f32.gmra.mxu3 %vm233_vm0, %v380_v26 }
 0x14c   :  { %3288 = vmatmul.msk.f32.gmra.mxu0 %vm233_vm0, %v380_v26  ;;  %3296 = vmatmul.msk.f32.gmra.mxu1 %vm233_vm0, %v380_v26 }
 0x14d   :  { %873 = vmatpush.msrb.mxu2 %v4714_v38  ;;  %893 = vmatpush.msrb.mxu3 %v4716_v39  ;;  %v4870_v38 = vld [vmem:[#allocation16 + $0x268] sm:$0xff] }
 0x14e   :  { %v363_v31 = vpop.f32.mrf.mxu1  ;;  %8608 = vst [vmem:[#allocation56_spill] sm:$0xff] %v4870_v38 }
 0x14f   :  { %v364_v34 = vadd.f32 %v4631_v59, %v363_v31  ;;  %874 = vmatpush.msrb.mxu2 %v4720_v41  ;;  %894 = vmatpush.msrb.mxu3 %v4722_v42  ;;  %v817_v31 = vld [vmem:[#allocation19] sm:$0xff] }
 0x150   :  { %v4868_v41 = vld [vmem:[#allocation16 + $0x260] sm:$0xff] }
 0x151   :  { %v381_v35 = vmax.f32 %v364_v34, 0.0  ;;  %875 = vmatpush.msrb.mxu2 %v4729_v45  ;;  %895 = vmatpush.msrb.mxu3 %v4731_v47  ;;  %v4796_v34 = vld [vmem:[#allocation16 + $0x3e0] sm:$0xff]  ;;  %v4864_v45 = vld [vmem:[#allocation16 + $0x288] sm:$0xff]  ;;  %8607 = vst [vmem:[#allocation55_spill] sm:$0xff] %v4868_v41 }
 0x152   :  { %958 = vmatpush.msrb.mxu1 %v4796_v34  ;;  %8606 = vst [vmem:[#allocation54_spill] sm:$0xff] %v4864_v45 }
 0x153   :  { %3273 = vmatmul.msk.f32.gmra.mxu2 %vm233_vm0, %v381_v35  ;;  %3281 = vmatmul.msk.f32.gmra.mxu3 %vm233_vm0, %v381_v35 }
 0x154   :  { %3289 = vmatmul.msk.f32.gmra.mxu0 %vm233_vm0, %v381_v35  ;;  %3297 = vmatmul.msk.f32.gmra.mxu1 %vm233_vm0, %v381_v35  ;;  %v4802_v35 = vld [vmem:[#allocation16 + $0x3c0] sm:$0xff] }
 0x155   :  { %876 = vmatpush.msrb.mxu2 %v4737_v49  ;;  %896 = vmatpush.msrb.mxu3 %v4739_v51  ;;  %v4862_v49 = vld [vmem:[#allocation16 + $0x280] sm:$0xff] }
 0x156   :  { %v366_v40 = vpop.f32.mrf.mxu1  ;;  %959 = vmatpush.msrb.mxu1 %v4802_v35  ;;  %8605 = vst [vmem:[#allocation53_spill] sm:$0xff] %v4862_v49 }
 0x157   :  { %v367_v43 = vadd.f32 %v4631_v59, %v366_v40  ;;  %877 = vmatpush.msrb.mxu2 %v4743_v55  ;;  %897 = vmatpush.msrb.mxu3 %v4745_v57  ;;  %v4804_v40 = vld [vmem:[#allocation16 + $0x3c8] sm:$0xff] }
 0x158   :  { %v4858_v55 = vld [vmem:[#allocation16 + $0x2a8] sm:$0xff] }
 0x159   :  { %v382_v44 = vmax.f32 %v367_v43, 0.0  ;;  %878 = vmatpush.msrb.mxu2 %v4752_v0  ;;  %898 = vmatpush.msrb.mxu3 %v4754_v1  ;;  %v4806_v43 = vld [vmem:[#allocation16 + $0x3a0] sm:$0xff]  ;;  %8604 = vst [vmem:[#allocation52_spill] sm:$0xff] %v4858_v55 }
 0x15a   :  { %960 = vmatpush.msrb.mxu1 %v4806_v43  ;;  %v4854_v0 = vld [vmem:[#allocation16 + $0x2a0] sm:$0xff] }
 0x15b   :  { %3274 = vmatmul.msk.f32.gmra.mxu2 %vm233_vm0, %v382_v44  ;;  %3282 = vmatmul.msk.f32.gmra.mxu3 %vm233_vm0, %v382_v44  ;;  %8603 = vst [vmem:[#allocation51_spill] sm:$0xff] %v4854_v0 }
 0x15c   :  { %3290 = vmatmul.msk.f32.gmra.mxu0 %vm233_vm0, %v382_v44  ;;  %3298 = vmatmul.msk.f32.gmra.mxu1 %vm233_vm0, %v382_v44  ;;  %v4810_v44 = vld [vmem:[#allocation16 + $0x3a8] sm:$0xff] }
 0x15d   :  { %879 = vmatpush.msrb.mxu2 %v4760_v2  ;;  %899 = vmatpush.msrb.mxu3 %v4762_v4  ;;  %v4852_v2 = vld [vmem:[#allocation16 + $0x2c8] sm:$0xff] }
 0x15e   :  { %v369_v53 = vpop.f32.mrf.mxu1  ;;  %8602 = vst [vmem:[#allocation50_spill] sm:$0xff] %v4852_v2 }
 0x15f   :  { %v370_v60 = vadd.f32 %v4631_v59, %v369_v53  ;;  %880 = vmatpush.msrb.mxu2 %v4766_v7  ;;  %900 = vmatpush.msrb.mxu3 %v4768_v9  ;;  %v4814_v53 = vld [vmem:[#allocation16 + $0x380] sm:$0xff] }
 0x160   :  { %961 = vmatpush.msrb.mxu1 %v4814_v53  ;;  %v4850_v7 = vld [vmem:[#allocation16 + $0x2c0] sm:$0xff] }
 0x161   :  { %v383_v62 = vmax.f32 %v370_v60, 0.0  ;;  %881 = vmatpush.msrb.mxu2 %v4775_v13  ;;  %901 = vmatpush.msrb.mxu3 %v4777_v15  ;;  %v4816_v60 = vld [vmem:[#allocation16 + $0x388] sm:$0xff] }
 0x162   :  { %v4846_v13 = vld [vmem:[#allocation16 + $0x2e8] sm:$0xff] }
 0x163   :  { %3275 = vmatmul.msk.f32.gmra.mxu2 %vm233_vm0, %v383_v62  ;;  %3283 = vmatmul.msk.f32.gmra.mxu3 %vm233_vm0, %v383_v62 }
 0x164   :  { %3291 = vmatmul.msk.f32.gmra.mxu0 %vm233_vm0, %v383_v62  ;;  %3299 = vmatmul.msk.f32.gmra.mxu1 %vm233_vm0, %v383_v62  ;;  %v4820_v62 = vld [vmem:[#allocation16 + $0x360] sm:$0xff] }
 0x165   :  { %882 = vmatpush.msrb.mxu2 %v4783_v16  ;;  %902 = vmatpush.msrb.mxu3 %v4785_v18  ;;  %v4844_v16 = vld [vmem:[#allocation16 + $0x2e0] sm:$0xff] }
 0x166   :  { %v372_v5 = vpop.f32.mrf.mxu1  ;;  %962 = vmatpush.msrb.mxu1 %v4820_v62 }
 0x167   :  { %v373_v11 = vadd.f32 %v4631_v59, %v372_v5  ;;  %v4822_v5 = vld [vmem:[#allocation16 + $0x368] sm:$0xff] }
 0x169   :  { %v384_v12 = vmax.f32 %v373_v11, 0.0  ;;  %v4826_v11 = vld [vmem:[#allocation16 + $0x340] sm:$0xff] }
 0x16a   :  { %963 = vmatpush.msrb.mxu1 %v4826_v11 }
 0x16b   :  { %3276 = vmatmul.msk.f32.gmra.mxu2 %vm233_vm0, %v384_v12  ;;  %3284 = vmatmul.msk.f32.gmra.mxu3 %vm233_vm0, %v384_v12 }
 0x16c   :  { %3292 = vmatmul.msk.f32.gmra.mxu0 %vm233_vm0, %v384_v12  ;;  %3300 = vmatmul.msk.f32.gmra.mxu1 %vm233_vm0, %v384_v12  ;;  %v4828_v12 = vld [vmem:[#allocation16 + $0x348] sm:$0xff] }
 0x16e   :  { %v375_v22 = vpop.f32.mrf.mxu1 }
 0x16f   :  { %v376_v23 = vadd.f32 %v4631_v59, %v375_v22  ;;  %v4798_v59 = vld [vmem:[#allocation16 + $0x3e8] sm:$0xff]  ;;  %v4830_v22 = vld [vmem:[#allocation16 + $0x320] sm:$0xff] }
 0x170   :  { %964 = vmatpush.msrb.mxu1 %v4830_v22 }
 0x171   :  { %v385_v26 = vmax.f32 %v376_v23, 0.0  ;;  %v4834_v23 = vld [vmem:[#allocation16 + $0x328] sm:$0xff] }
 0x173   :  { %3277 = vmatmul.msk.f32.gmra.mxu2 %vm233_vm0, %v385_v26  ;;  %3285 = vmatmul.msk.f32.gmra.mxu3 %vm233_vm0, %v385_v26 }
 0x174   :  { %3293 = vmatmul.msk.f32.gmra.mxu0 %vm233_vm0, %v385_v26  ;;  %3301 = vmatmul.msk.f32.gmra.mxu1 %vm233_vm0, %v385_v26  ;;  %v4838_v26 = vld [vmem:[#allocation16 + $0x300] sm:$0xff] }
 0x175   :  { %965 = vmatpush.msrb.mxu1 %v4838_v26 }
 0x177   :  { %966 = vmatpush.msrb.mxu1 %v4844_v16 }
 0x179   :  { %967 = vmatpush.msrb.mxu1 %v4850_v7 }
 0x17b   :  { %843 = vmatmul.f32.vlgmr.msra.gmra.mxu2 %v817_v31  ;;  %863 = vmatmul.f32.vlgmr.msra.gmra.mxu3 %v817_v31 }
 0x17c   :  { %998 = vmatpush.msra.mxu3 %v4798_v59  ;;  %968 = vmatpush.msrb.mxu1 %v4854_v0  ;;  %v4936_v0 = vld [vmem:[#allocation16 + $0x398] sm:$0xff] }
 0x17d   :  { %8630 = vst [vmem:[#allocation78_spill] sm:$0xff] %v4936_v0 }
 0x17e   :  { %999 = vmatpush.msra.mxu3 %v4804_v40  ;;  %969 = vmatpush.msrb.mxu1 %v4862_v49  ;;  %v4912_v49 = vld [vmem:[#allocation16 + $0x3d0] sm:$0xff] }
 0x17f   :  { %8621 = vst [vmem:[#allocation69_spill] sm:$0xff] %v4912_v49 }
 0x180   :  { %1000 = vmatpush.msra.mxu3 %v4810_v44  ;;  %970 = vmatpush.msrb.mxu1 %v4868_v41  ;;  %v4893_v41 = vld [vmem:[#allocation16 + $0x200] sm:$0xff] }
 0x181   :  { %8614 = vst [vmem:[#allocation62_spill] sm:$0xff] %v4893_v41 }
 0x182   :  { %1001 = vmatpush.msra.mxu3 %v4816_v60  ;;  %971 = vmatpush.msrb.mxu1 %v4874_v36  ;;  %v4901_v36 = vld [vmem:[#allocation16 + $0x3f0] sm:$0xff] }
 0x183   :  { %883 = vmatmul.f32.vlgmr.msrb.gmra.mxu2 %v817_v31  ;;  %903 = vmatmul.f32.vlgmr.msrb.gmra.mxu3 %v817_v31  ;;  %v4840_v31 = vld [vmem:[#allocation16 + $0x308] sm:$0xff]  ;;  %8617 = vst [vmem:[#allocation65_spill] sm:$0xff] %v4901_v36 }
 0x184   :  { %1002 = vmatpush.msra.mxu3 %v4822_v5  ;;  %972 = vmatpush.msrb.mxu1 %v4878_v29  ;;  %v4910_v29 = vld [vmem:[#allocation16 + $0x1c8] sm:$0xff] }
 0x185   :  { %8620 = vst [vmem:[#allocation68_spill] sm:$0xff] %v4910_v29 }
 0x186   :  { %1003 = vmatpush.msra.mxu3 %v4828_v12  ;;  %973 = vmatpush.msrb.mxu1 %v4893_v41  ;;  %v4918_v41 = vld [vmem:[#allocation16 + $0x1a0] sm:$0xff] }
 0x187   :  { %8623 = vst [vmem:[#allocation71_spill] sm:$0xff] %v4918_v41 }
 0x188   :  { %1004 = vmatpush.msra.mxu3 %v4834_v23  ;;  %1038 = vmatpush.msra.mxu1 %v4901_v36  ;;  %v4928_v36 = vld [vmem:[#allocation16 + $0x180] sm:$0xff] }
 0x189   :  { %8627 = vst [vmem:[#allocation75_spill] sm:$0xff] %v4928_v36 }
 0x18a   :  { %1005 = vmatpush.msra.mxu3 %v4840_v31  ;;  %1039 = vmatpush.msra.mxu1 %v4912_v49 }
 0x18c   :  { %1006 = vmatpush.msra.mxu3 %v4846_v13 }
 0x18e   :  { %1007 = vmatpush.msra.mxu3 %v4852_v2  ;;  %v4952_v2 = vld [vmem:[#allocation16 + $0x370] sm:$0xff] }
 0x18f   :  { %8635 = vst [vmem:[#allocation83_spill] sm:$0xff] %v4952_v2 }
 0x190   :  { %1008 = vmatpush.msra.mxu3 %v4858_v55  ;;  %v4920_v55 = vld [vmem:[#allocation16 + $0x1a8] sm:$0xff] }
 0x191   :  { %8624 = vst [vmem:[#allocation72_spill] sm:$0xff] %v4920_v55 }
 0x192   :  { %1009 = vmatpush.msra.mxu3 %v4864_v45  ;;  %v4895_v45 = vld [vmem:[#allocation16 + $0x208] sm:$0xff] }
 0x193   :  { %8615 = vst [vmem:[#allocation63_spill] sm:$0xff] %v4895_v45 }
 0x194   :  { %1010 = vmatpush.msra.mxu3 %v4870_v38 }
 0x196   :  { %1011 = vmatpush.msra.mxu3 %v4876_v32  ;;  %v4899_v32 = vld [vmem:[#allocation16 + $0x1e8] sm:$0xff] }
 0x197   :  { %8616 = vst [vmem:[#allocation64_spill] sm:$0xff] %v4899_v32  ;;  %978 = vmatpush.msra.mxu2 %v4899_v32  ;;  %v4924_v32 = vld [vmem:[#allocation16 + $0x3b0] sm:$0xff] }
 0x198   :  { %1012 = vmatpush.msra.mxu3 %v4882_v27  ;;  %v4908_v27 = vld [vmem:[#allocation16 + $0x1c0] sm:$0xff]  ;;  %8625 = vst [vmem:[#allocation73_spill] sm:$0xff] %v4924_v32  ;;  %1040 = vmatpush.msra.mxu1 %v4924_v32  ;;  %v5004_v32 = vld [vmem:[#allocation16 + $0x2f0] sm:$0xff] }
 0x199   :  { %8619 = vst [vmem:[#allocation67_spill] sm:$0xff] %v4908_v27  ;;  %939 = vmatpush.msrb.mxu0 %v4908_v27  ;;  %979 = vmatpush.msra.mxu2 %v4910_v29  ;;  %v4932_v29 = vld [vmem:[#allocation16 + $0x188] sm:$0xff]  ;;  %v4934_v27 = vld [vmem:[#allocation16 + $0x390] sm:$0xff] }
 0x19a   :  { %1013 = vmatpush.msra.mxu3 %v4895_v45  ;;  %v4916_v45 = vld [vmem:[#allocation16 + $0x3d8] sm:$0xff]  ;;  %8628 = vst [vmem:[#allocation76_spill] sm:$0xff] %v4932_v29  ;;  %1041 = vmatpush.msra.mxu1 %v4934_v27 }
 0x19b   :  { %8622 = vst [vmem:[#allocation70_spill] sm:$0xff] %v4916_v45  ;;  %940 = vmatpush.msrb.mxu0 %v4918_v41  ;;  %980 = vmatpush.msra.mxu2 %v4920_v55  ;;  %v4948_v55 = vld [vmem:[#allocation16 + $0x160] sm:$0xff]  ;;  %v4950_v41 = vld [vmem:[#allocation16 + $0x168] sm:$0xff] }
 0x19c   :  { %1078 = vmatpush.msrb.mxu3 %v4903_v24  ;;  %v4926_v24 = vld [vmem:[#allocation16 + $0x3b8] sm:$0xff]  ;;  %8629 = vst [vmem:[#allocation77_spill] sm:$0xff] %v4934_v27  ;;  %1042 = vmatpush.msra.mxu1 %v4952_v2  ;;  %v4980_v27 = vld [vmem:[#allocation16 + $0x100] sm:$0xff] }
 0x19d   :  { %8626 = vst [vmem:[#allocation74_spill] sm:$0xff] %v4926_v24  ;;  %941 = vmatpush.msrb.mxu0 %v4928_v36  ;;  %981 = vmatpush.msra.mxu2 %v4932_v29  ;;  %v4962_v29 = vld [vmem:[#allocation16 + $0x148] sm:$0xff]  ;;  %v4964_v36 = vld [vmem:[#allocation16 + $0x350] sm:$0xff]  ;;  %v4978_v2 = vld [vmem:[#allocation16 + $0x338] sm:$0xff] }
 0x19e   :  { %1079 = vmatpush.msrb.mxu3 %v4916_v45  ;;  %8633 = vst [vmem:[#allocation81_spill] sm:$0xff] %v4948_v55  ;;  %1043 = vmatpush.msra.mxu1 %v4964_v36 }
 0x19f   :  { %8634 = vst [vmem:[#allocation82_spill] sm:$0xff] %v4950_v41  ;;  %942 = vmatpush.msrb.mxu0 %v4948_v55  ;;  %982 = vmatpush.msra.mxu2 %v4950_v41  ;;  %v4970_v55 = vld [vmem:[#allocation16 + $0x120] sm:$0xff]  ;;  %v4972_v41 = vld [vmem:[#allocation16 + $0x128] sm:$0xff] }
 0x1a0   :  { %1080 = vmatpush.msrb.mxu3 %v4926_v24  ;;  %8638 = vst [vmem:[#allocation86_spill] sm:$0xff] %v4962_v29  ;;  %v4988_v24 = vld [vmem:[#allocation16 + $0x318] sm:$0xff] }
 0x1a1   :  { %8639 = vst [vmem:[#allocation87_spill] sm:$0xff] %v4964_v36  ;;  %983 = vmatpush.msra.mxu2 %v4962_v29  ;;  %v4984_v29 = vld [vmem:[#allocation16 + $0x108] sm:$0xff] }
 0x1a2   :  { %1081 = vmatpush.msrb.mxu3 %v4936_v0  ;;  %v4968_v0 = vld [vmem:[#allocation16 + $0x358] sm:$0xff]  ;;  %8641 = vst [vmem:[#allocation89_spill] sm:$0xff] %v4970_v55 }
 0x1a3   :  { %8640 = vst [vmem:[#allocation88_spill] sm:$0xff] %v4968_v0  ;;  %984 = vmatpush.msra.mxu2 %v4972_v41 }
 0x1a4   :  { %8642 = vst [vmem:[#allocation90_spill] sm:$0xff] %v4972_v41  ;;  %v5000_v41 = vld [vmem:[#allocation16 + $0xe0] sm:$0xff] }
 0x1a5   :  { %8644 = vst [vmem:[#allocation92_spill] sm:$0xff] %v4978_v2  ;;  %985 = vmatpush.msra.mxu2 %v4984_v29 }
 0x1a6   :  { %8645 = vst [vmem:[#allocation93_spill] sm:$0xff] %v4980_v27 }
 0x1a7   :  { %8646 = vst [vmem:[#allocation94_spill] sm:$0xff] %v4984_v29  ;;  %v5014_v29 = vld [vmem:[#allocation16 + $0xc8] sm:$0xff] }
 0x1a8   :  { %8648 = vst [vmem:[#allocation96_spill] sm:$0xff] %v4988_v24 }
 0x1a9   :  { %8651 = vst [vmem:[#allocation99_spill] sm:$0xff] %v5000_v41 }
 0x1aa   :  { %8653 = vst [vmem:[#allocation101_spill] sm:$0xff] %v5004_v32 }
 0x1ab   :  { %8656 = vst [vmem:[#allocation104_spill] sm:$0xff] %v5014_v29 }
 0x1be   :  { %v4889_v20 = vpop.f32.mrf.mxu2  ;;  %v4891_v38 = vpop.f32.mrf.mxu3 }
 0x1c6   :  { %v4940_v45 = vpop.f32.mrf.mxu2  ;;  %v4942_v49 = vpop.f32.mrf.mxu3 }
 0x1c7   :  { %8631 = vst [vmem:[#allocation79_spill] sm:$0xff] %v4940_v45  ;;  %v4956_v45 = vld [vmem:[#allocation16 + $0x378] sm:$0xff] }
 0x1c8   :  { %8632 = vst [vmem:[#allocation80_spill] sm:$0xff] %v4942_v49  ;;  %1082 = vmatpush.msrb.mxu3 %v4956_v45  ;;  %v4960_v49 = vld [vmem:[#allocation16 + $0x140] sm:$0xff] }
 0x1c9   :  { %8636 = vst [vmem:[#allocation84_spill] sm:$0xff] %v4956_v45  ;;  %943 = vmatpush.msrb.mxu0 %v4960_v49  ;;  %v4976_v45 = vld [vmem:[#allocation16 + $0x330] sm:$0xff] }
 0x1ca   :  { %8637 = vst [vmem:[#allocation85_spill] sm:$0xff] %v4960_v49  ;;  %1083 = vmatpush.msrb.mxu3 %v4968_v0  ;;  %v4986_v49 = vld [vmem:[#allocation16 + $0x310] sm:$0xff]  ;;  %1044 = vmatpush.msra.mxu1 %v4976_v45 }
 0x1cb   :  { %8643 = vst [vmem:[#allocation91_spill] sm:$0xff] %v4976_v45  ;;  %944 = vmatpush.msrb.mxu0 %v4970_v55  ;;  %v5002_v55 = vld [vmem:[#allocation16 + $0xe8] sm:$0xff]  ;;  %v5056_v45 = vld [vmem:[#allocation16 + $0x270] sm:$0xff] }
 0x1cc   :  { %8647 = vst [vmem:[#allocation95_spill] sm:$0xff] %v4986_v49  ;;  %1084 = vmatpush.msrb.mxu3 %v4978_v2  ;;  %1045 = vmatpush.msra.mxu1 %v4986_v49  ;;  %v5032_v49 = vld [vmem:[#allocation16 + $0x80] sm:$0xff]  ;;  %v5040_v2 = vld [vmem:[#allocation16 + $0x298] sm:$0xff] }
 0x1cd   :  { %945 = vmatpush.msrb.mxu0 %v4980_v27  ;;  %8652 = vst [vmem:[#allocation100_spill] sm:$0xff] %v5002_v55  ;;  %986 = vmatpush.msra.mxu2 %v5002_v55  ;;  %v5016_v27 = vld [vmem:[#allocation16 + $0x2d0] sm:$0xff]  ;;  %v5024_v55 = vld [vmem:[#allocation16 + $0xa8] sm:$0xff] }
 0x1ce   :  { %v4992_v0 = vpop.f32.mrf.mxu2  ;;  %v4994_v36 = vpop.f32.mrf.mxu3  ;;  %1085 = vmatpush.msrb.mxu3 %v4988_v24  ;;  %1046 = vmatpush.msra.mxu1 %v5004_v32  ;;  %8657 = vst [vmem:[#allocation105_spill] sm:$0xff] %v5016_v27  ;;  %v5020_v24 = vld [vmem:[#allocation16 + $0x2d8] sm:$0xff] }
 0x1cf   :  { %8649 = vst [vmem:[#allocation97_spill] sm:$0xff] %v4992_v0  ;;  %946 = vmatpush.msrb.mxu0 %v5000_v41  ;;  %v5008_v0 = vld [vmem:[#allocation16 + $0x2f8] sm:$0xff]  ;;  %987 = vmatpush.msra.mxu2 %v5014_v29  ;;  %v5022_v41 = vld [vmem:[#allocation16 + $0xa0] sm:$0xff]  ;;  %v5036_v29 = vld [vmem:[#allocation16 + $0x88] sm:$0xff] }
 0x1d0   :  { %8650 = vst [vmem:[#allocation98_spill] sm:$0xff] %v4994_v36  ;;  %1086 = vmatpush.msrb.mxu3 %v5008_v0  ;;  %v5012_v36 = vld [vmem:[#allocation16 + $0xc0] sm:$0xff]  ;;  %1047 = vmatpush.msra.mxu1 %v5016_v27  ;;  %v5030_v32 = vld [vmem:[#allocation16 + $0x2b8] sm:$0xff] }
 0x1d1   :  { %8654 = vst [vmem:[#allocation102_spill] sm:$0xff] %v5008_v0  ;;  %947 = vmatpush.msrb.mxu0 %v5012_v36  ;;  %v5028_v0 = vld [vmem:[#allocation16 + $0x2b0] sm:$0xff]  ;;  %988 = vmatpush.msra.mxu2 %v5024_v55 }
 0x1d2   :  { %8655 = vst [vmem:[#allocation103_spill] sm:$0xff] %v5012_v36  ;;  %1087 = vmatpush.msrb.mxu3 %v5020_v24  ;;  %v5038_v36 = vld [vmem:[#allocation16 + $0x290] sm:$0xff]  ;;  %1048 = vmatpush.msra.mxu1 %v5028_v0 }
 0x1d3   :  { %8658 = vst [vmem:[#allocation106_spill] sm:$0xff] %v5020_v24  ;;  %948 = vmatpush.msrb.mxu0 %v5022_v41  ;;  %989 = vmatpush.msra.mxu2 %v5036_v29 }
 0x1d4   :  { %8659 = vst [vmem:[#allocation107_spill] sm:$0xff] %v5022_v41  ;;  %1088 = vmatpush.msrb.mxu3 %v5030_v32  ;;  %1049 = vmatpush.msra.mxu1 %v5038_v36  ;;  %v5054_v41 = vld [vmem:[#allocation16 + $0x68] sm:$0xff] }
 0x1d5   :  { %8660 = vst [vmem:[#allocation108_spill] sm:$0xff] %v5024_v55  ;;  %949 = vmatpush.msrb.mxu0 %v5032_v49  ;;  %v5052_v55 = vld [vmem:[#allocation16 + $0x60] sm:$0xff]  ;;  %990 = vmatpush.msra.mxu2 %v5054_v41 }
 0x1d6   :  { %8661 = vst [vmem:[#allocation109_spill] sm:$0xff] %v5028_v0  ;;  %v5044_v24 = vpop.f32.mrf.mxu2  ;;  %v5046_v27 = vpop.f32.mrf.mxu3  ;;  %1089 = vmatpush.msrb.mxu3 %v5040_v2  ;;  %1050 = vmatpush.msra.mxu1 %v5056_v45 }
 0x1d7   :  { %8662 = vst [vmem:[#allocation110_spill] sm:$0xff] %v5030_v32  ;;  %950 = vmatpush.msrb.mxu0 %v5052_v55  ;;  %v5080_v32 = vld [vmem:[#allocation16 + $0x238] sm:$0xff] }
 0x1d8   :  { %8663 = vst [vmem:[#allocation111_spill] sm:$0xff] %v5032_v49  ;;  %v5064_v49 = vld [vmem:[#allocation16 + $0x48] sm:$0xff] }
 0x1d9   :  { %8664 = vst [vmem:[#allocation112_spill] sm:$0xff] %v5036_v29  ;;  %v5068_v29 = vld [vmem:[#allocation16 + $0x250] sm:$0xff]  ;;  %991 = vmatpush.msra.mxu2 %v5064_v49 }
 0x1da   :  { %8665 = vst [vmem:[#allocation113_spill] sm:$0xff] %v5038_v36  ;;  %v5072_v36 = vld [vmem:[#allocation16 + $0x20] sm:$0xff]  ;;  %1051 = vmatpush.msra.mxu1 %v5068_v29 }
 0x1db   :  { %8666 = vst [vmem:[#allocation114_spill] sm:$0xff] %v5040_v2  ;;  %v5070_v2 = vld [vmem:[#allocation16 + $0x258] sm:$0xff] }
 0x1dc   :  { %8667 = vst [vmem:[#allocation115_spill] sm:$0xff] %v5044_v24  ;;  %v5060_v24 = vld [vmem:[#allocation16 + $0x278] sm:$0xff] }
 0x1dd   :  { %8668 = vst [vmem:[#allocation116_spill] sm:$0xff] %v5046_v27  ;;  %v5062_v27 = vld [vmem:[#allocation16 + $0x40] sm:$0xff]  ;;  %1090 = vmatpush.msrb.mxu3 %v5060_v24 }
 0x1de   :  { %8669 = vst [vmem:[#allocation117_spill] sm:$0xff] %v5052_v55  ;;  %951 = vmatpush.msrb.mxu0 %v5062_v27  ;;  %v5078_v55 = vld [vmem:[#allocation16 + $0x230] sm:$0xff]  ;;  %v5096_v0 = vpop.f32.mrf.mxu2 }
 0x1df   :  { %8670 = vst [vmem:[#allocation118_spill] sm:$0xff] %v5054_v41  ;;  %v5076_v41 = vld [vmem:[#allocation16 + $0x28] sm:$0xff]  ;;  %1091 = vmatpush.msrb.mxu3 %v5070_v2  ;;  %1052 = vmatpush.msra.mxu1 %v5078_v55 }
 0x1e0   :  { %8671 = vst [vmem:[#allocation119_spill] sm:$0xff] %v5056_v45  ;;  %v5086_v45 = vld [vmem:[#allocation16 + $0x8] sm:$0xff]  ;;  %952 = vmatpush.msrb.mxu0 %v5072_v36  ;;  %992 = vmatpush.msra.mxu2 %v5076_v41 }
 0x1e1   :  { %8672 = vst [vmem:[#allocation120_spill] sm:$0xff] %v5060_v24  ;;  %v5084_v24 = vld [vmem:[#allocation16] sm:$0xff]  ;;  %1092 = vmatpush.msrb.mxu3 %v5080_v32 }
 0x1e2   :  { %8673 = vst [vmem:[#allocation121_spill] sm:$0xff] %v5062_v27  ;;  %v5090_v27 = vld [vmem:[#allocation16 + $0x210] sm:$0xff]  ;;  %953 = vmatpush.msrb.mxu0 %v5084_v24  ;;  %993 = vmatpush.msra.mxu2 %v5086_v45 }
 0x1e3   :  { %8674 = vst [vmem:[#allocation122_spill] sm:$0xff] %v5064_v49  ;;  %v5092_v49 = vld [vmem:[#allocation16 + $0x218] sm:$0xff]  ;;  %1053 = vmatpush.msra.mxu1 %v5090_v27 }
 0x1e4   :  { %8675 = vst [vmem:[#allocation123_spill] sm:$0xff] %v5068_v29  ;;  %v5098_v29 = vpop.f32.mrf.mxu3  ;;  %1093 = vmatpush.msrb.mxu3 %v5092_v49 }
 0x1e5   :  { %8676 = vst [vmem:[#allocation124_spill] sm:$0xff] %v5070_v2  ;;  %v5102_v2 = vld [vmem:[#allocation19 + $0x8] sm:$0xff] }
 0x1e6   :  { %8677 = vst [vmem:[#allocation125_spill] sm:$0xff] %v5072_v36  ;;  %v5104_v36 = vld [vmem:[#allocation16 + $0x1f0] sm:$0xff]  ;;  %974 = vmatmul.f32.vlgmr.msrb.gmra.mxu1 %v5102_v2  ;;  %1014 = vmatmul.f32.vlgmr.msra.gmra.mxu3 %v5102_v2 }
 0x1e7   :  { %8678 = vst [vmem:[#allocation126_spill] sm:$0xff] %v5076_v41  ;;  %v5106_v41 = vld [vmem:[#allocation16 + $0x1f8] sm:$0xff]  ;;  %1018 = vmatpush.msra.mxu0 %v5104_v36  ;;  %1141 = vmatpush.msrb.mxu1 %v4610_v46  ;;  %v5134_v46 = vpop.f32.mrf.mxu2 }
 0x1e8   :  { %8679 = vst [vmem:[#allocation127_spill] sm:$0xff] %v5084_v24  ;;  %1058 = vmatpush.msrb.mxu2 %v5106_v41  ;;  %1181 = vmatpush.msra.mxu3 %v4671_v21  ;;  %v5122_v24 = vld [vmem:[#allocation16 + $0x1b8] sm:$0xff] }
 0x1e9   :  { %8680 = vst [vmem:[#allocation128_spill] sm:$0xff] %v5086_v45  ;;  %v5120_v45 = vld [vmem:[#allocation16 + $0x1b0] sm:$0xff]  ;;  %1142 = vmatpush.msrb.mxu1 %v4613_v48  ;;  %v5142_v48 = vld [vmem:[#allocation16 + $0x178] sm:$0xff] }
 0x1ea   :  { %8681 = vst [vmem:[#allocation129_spill] sm:$0xff] %v5092_v49  ;;  %1182 = vmatpush.msra.mxu3 %v4677_v25  ;;  %v5128_v49 = vld [vmem:[#allocation16 + $0x190] sm:$0xff] }
 0x1eb   :  { %8682 = vst [vmem:[#allocation130_spill] sm:$0xff] %v5096_v0  ;;  %v5112_v0 = vld [vmem:[#allocation16 + $0x1d0] sm:$0xff]  ;;  %1143 = vmatpush.msrb.mxu1 %v4616_v50 }
 0x1ec   :  { %8683 = vst [vmem:[#allocation131_spill] sm:$0xff] %v5098_v29  ;;  %v5114_v29 = vld [vmem:[#allocation16 + $0x1d8] sm:$0xff]  ;;  %1019 = vmatpush.msra.mxu0 %v5112_v0  ;;  %v5136_v21 = vpop.f32.mrf.mxu3  ;;  %1183 = vmatpush.msra.mxu3 %v4685_v28  ;;  %v5148_v25 = vld [vmem:[#allocation16 + $0x150] sm:$0xff] }
 0x1ed   :  { %8684 = vst [vmem:[#allocation132_spill] sm:$0xff] %v5104_v36  ;;  %1059 = vmatpush.msrb.mxu2 %v5114_v29  ;;  %v5130_v36 = vld [vmem:[#allocation16 + $0x198] sm:$0xff]  ;;  %1144 = vmatpush.msrb.mxu1 %v4619_v52  ;;  %v5156_v50 = vld [vmem:[#allocation16 + $0x130] sm:$0xff] }
 0x1ee   :  { %8685 = vst [vmem:[#allocation133_spill] sm:$0xff] %v5114_v29  ;;  %1020 = vmatpush.msra.mxu0 %v5120_v45  ;;  %v5140_v29 = vld [vmem:[#allocation16 + $0x170] sm:$0xff]  ;;  %1184 = vmatpush.msra.mxu3 %v4693_v30  ;;  %v5158_v28 = vld [vmem:[#allocation16 + $0x138] sm:$0xff] }
 0x1ef   :  { %1060 = vmatpush.msrb.mxu2 %v5122_v24  ;;  %8686 = vst [vmem:[#allocation134_spill] sm:$0xff] %v5134_v46  ;;  %v5150_v46 = vld [vmem:[#allocation16 + $0x158] sm:$0xff]  ;;  %1145 = vmatpush.msrb.mxu1 %v4622_v54  ;;  %v5164_v52 = vld [vmem:[#allocation16 + $0x110] sm:$0xff]  ;;  %v5170_v54 = vpop.f32.mrf.mxu2 }
 0x1f0   :  { %8687 = vst [vmem:[#allocation135_spill] sm:$0xff] %v5136_v21  ;;  %1021 = vmatpush.msra.mxu0 %v5128_v49  ;;  %1185 = vmatpush.msra.mxu3 %v4699_v33  ;;  %v5166_v30 = vld [vmem:[#allocation16 + $0x118] sm:$0xff]  ;;  %v5176_v21 = vld [vmem:[#allocation16 + $0xf0] sm:$0xff] }
 0x1f1   :  { %1061 = vmatpush.msrb.mxu2 %v5130_v36  ;;  %1146 = vmatpush.msrb.mxu1 %v4625_v56  ;;  %8688 = vst [vmem:[#allocation136_spill] sm:$0xff] %v5170_v54  ;;  %v5178_v56 = vld [vmem:[#allocation16 + $0xf8] sm:$0xff] }
 0x1f2   :  { %1022 = vmatpush.msra.mxu0 %v5140_v29  ;;  %1186 = vmatpush.msra.mxu3 %v4708_v37  ;;  %v5184_v37 = vld [vmem:[#allocation16 + $0xd0] sm:$0xff]  ;;  %v5186_v54 = vld [vmem:[#allocation16 + $0xd8] sm:$0xff] }
 0x1f3   :  { %1062 = vmatpush.msrb.mxu2 %v5142_v48  ;;  %1147 = vmatpush.msrb.mxu1 %v4628_v58  ;;  %v5192_v58 = vld [vmem:[#allocation16 + $0xb0] sm:$0xff] }
 0x1f4   :  { %1023 = vmatpush.msra.mxu0 %v5148_v25  ;;  %v5172_v33 = vpop.f32.mrf.mxu3  ;;  %1187 = vmatpush.msra.mxu3 %v4716_v39  ;;  %v5194_v39 = vld [vmem:[#allocation16 + $0xb8] sm:$0xff] }
 0x1f5   :  { %1063 = vmatpush.msrb.mxu2 %v5150_v46  ;;  %8689 = vst [vmem:[#allocation137_spill] sm:$0xff] %v5172_v33  ;;  %1148 = vmatpush.msrb.mxu1 %v4633_v61  ;;  %v5200_v61 = vld [vmem:[#allocation16 + $0x90] sm:$0xff]  ;;  %v394_v33 = vld [vmem:[%s8045_s7] sm:$0xf] }
 0x1f6   :  { %1024 = vmatpush.msra.mxu0 %v5156_v50  ;;  %1188 = vmatpush.msra.mxu3 %v4722_v42  ;;  %v5202_v42 = vld [vmem:[#allocation16 + $0x98] sm:$0xff] }
 0x1f7   :  { %1064 = vmatpush.msrb.mxu2 %v5158_v28  ;;  %1149 = vmatpush.msrb.mxu1 %v4636_v63  ;;  %8690 = vst [vmem:[#allocation138_spill] sm:$0xff] %v5202_v42  ;;  %v5206_v63 = vpop.f32.mrf.mxu2 }
 0x1f8   :  { %1025 = vmatpush.msra.mxu0 %v5164_v52  ;;  %1189 = vmatpush.msra.mxu3 %v4731_v47  ;;  %8691 = vst [vmem:[#allocation139_spill] sm:$0xff] %v5206_v63  ;;  %v5223_v63 = vperm.slane %v394_v33, 0 }
 0x1f9   :  { %1065 = vmatpush.msrb.mxu2 %v5166_v30  ;;  %1150 = vmatpush.msrb.mxu1 %v4640_v3  ;;  %v5214_v3 = vld [vmem:[#allocation16 + $0x70] sm:$0xff] }
 0x1fa   :  { %1026 = vmatpush.msra.mxu0 %v5176_v21  ;;  %1190 = vmatpush.msra.mxu3 %v4739_v51  ;;  %8693 = vst [vmem:[#allocation141_spill] sm:$0xff] %v5214_v3  ;;  %v5216_v51 = vld [vmem:[#allocation16 + $0x78] sm:$0xff] }
 0x1fb   :  { %1066 = vmatpush.msrb.mxu2 %v5178_v56  ;;  %1151 = vmatpush.msrb.mxu1 %v4643_v6  ;;  %8694 = vst [vmem:[#allocation142_spill] sm:$0xff] %v5216_v51  ;;  %v5225_v6 = vperm.slane %v394_v33, 1 }
 0x1fc   :  { %1027 = vmatpush.msra.mxu0 %v5184_v37  ;;  %v5208_v47 = vpop.f32.mrf.mxu3  ;;  %1191 = vmatpush.msra.mxu3 %v4745_v57  ;;  %v5229_v57 = vld [vmem:[#allocation16 + $0x50] sm:$0xff] }
 0x1fd   :  { %1067 = vmatpush.msrb.mxu2 %v5186_v54  ;;  %8692 = vst [vmem:[#allocation140_spill] sm:$0xff] %v5208_v47  ;;  %1152 = vmatpush.msrb.mxu1 %v4648_v8  ;;  %v5231_v47 = vld [vmem:[#allocation16 + $0x58] sm:$0xff]  ;;  %v5237_v8 = vld [vmem:[#allocation16 + $0x30] sm:$0xff] }
 0x1fe   :  { %1028 = vmatpush.msra.mxu0 %v5192_v58  ;;  %1192 = vmatpush.msra.mxu3 %v4754_v1  ;;  %8695 = vst [vmem:[#allocation143_spill] sm:$0xff] %v5229_v57  ;;  %v5239_v1 = vld [vmem:[#allocation16 + $0x38] sm:$0xff] }
 0x1ff   :  { %1068 = vmatpush.msrb.mxu2 %v5194_v39  ;;  %1054 = vmatmul.f32.vlgmr.msra.gmra.mxu1 %v5102_v2  ;;  %8696 = vst [vmem:[#allocation144_spill] sm:$0xff] %v5231_v47 }
 0x200   :  { %1029 = vmatpush.msra.mxu0 %v5200_v61  ;;  %1094 = vmatmul.f32.vlgmr.msrb.gmra.mxu3 %v5102_v2  ;;  %v446_v2 = vadd.f32 %v4889_v20, %v5223_v63  ;;  %v5261_v20 = vperm.slane %v394_v33, 3 }
 0x201   :  { %1069 = vmatpush.msrb.mxu2 %v5202_v42  ;;  %1153 = vmatpush.msrb.mxu1 %v4652_v10  ;;  %v5249_v10 = vld [vmem:[#allocation16 + $0x10] sm:$0xff] }
 0x202   :  { %1030 = vmatpush.msra.mxu0 %v5214_v3  ;;  %1193 = vmatpush.msra.mxu3 %v4762_v4  ;;  %v487_v3 = vadd.f32 %v4891_v38, %v5225_v6  ;;  %v5251_v4 = vld [vmem:[#allocation16 + $0x18] sm:$0xff] }
 0x203   :  { %1070 = vmatpush.msrb.mxu2 %v5216_v51  ;;  %1154 = vmatpush.msrb.mxu1 %v4657_v14  ;;  %v844_v51 = vpop.f32.mrf.mxu2  ;;  %v5259_v14 = vperm.slane %v394_v33, 2 }
 0x204   :  { %1031 = vmatpush.msra.mxu0 %v5229_v57  ;;  %1194 = vmatpush.msra.mxu3 %v4768_v9  ;;  %v864_v42 = vpop.f32.mrf.mxu3 }
 0x205   :  { %1071 = vmatpush.msrb.mxu2 %v5231_v47  ;;  %v907_v47 = vadd.f32 %v844_v51, %v446_v2  ;;  %v908_v57 = vadd.f32 %v864_v42, %v487_v3  ;;  %1155 = vmatpush.msrb.mxu1 %v4660_v17  ;;  %v527_v51 = vpop.f32.mrf.mxu0  ;;  %v568_v42 = vpop.f32.mrf.mxu1 }
 0x206   :  { %1032 = vmatpush.msra.mxu0 %v5237_v8  ;;  %1195 = vmatpush.msra.mxu3 %v4777_v15  ;;  %v528_v17 = vadd.f32 %v527_v51, %v5259_v14  ;;  %v569_v15 = vadd.f32 %v568_v42, %v5261_v20  ;;  %v8705_v42 = vld [vmem:[#allocation58_spill] sm:$0xff] }
 0x207   :  { %1072 = vmatpush.msrb.mxu2 %v5239_v1  ;;  %v911_v38 = vmul.f32 0.5, %v907_v47  ;;  %v915_v9 = vmul.f32 0.5, %v908_v57  ;;  %1156 = vmatpush.msrb.mxu1 %v4666_v19 }
 0x208   :  { %1033 = vmatpush.msra.mxu0 %v5249_v10  ;;  %1196 = vmatpush.msra.mxu3 %v4785_v18 }
 0x209   :  { %1073 = vmatpush.msrb.mxu2 %v5251_v4  ;;  %1243 = vmatpush.msra.mxu1 %v4796_v34  ;;  %3327 = vtanh.f32 %v911_v38 }
 0x20a   :  { %1283 = vmatpush.msrb.mxu3 %v4798_v59  ;;  %3329 = vtanh.f32 %v915_v9 }
 0x20b   :  { %1244 = vmatpush.msra.mxu1 %v4802_v35  ;;  %v884_v33 = vpop.f32.mrf.mxu2 }
 0x20c   :  { %1284 = vmatpush.msrb.mxu3 %v4804_v40  ;;  %v904_v19 = vpop.f32.mrf.mxu3  ;;  %v909_v18 = vadd.f32 %v884_v33, %v528_v17  ;;  %v5302_v17 = vld [vmem:[#allocation15 + $0x1e0] sm:$0xff] }
 0x20d   :  { %1245 = vmatpush.msra.mxu1 %v4806_v43  ;;  %v910_v34 = vadd.f32 %v904_v19, %v569_v15  ;;  %v820_v43 = vld [vmem:[#allocation21] sm:$0xff]  ;;  %v8706_v15 = vld [vmem:[#allocation34_spill] sm:$0xff]  ;;  %v8707_v19 = vld [vmem:[#allocation59_spill] sm:$0xff] }
 0x20e   :  { %1285 = vmatpush.msrb.mxu3 %v4810_v44  ;;  %3331 = vtanh.f32 %v909_v18  ;;  %v5308_v33 = vld [vmem:[#allocation15 + $0x1c0] sm:$0xff]  ;;  %v8708_v18 = vld [vmem:[#allocation35_spill] sm:$0xff] }
 0x20f   :  { %1246 = vmatpush.msra.mxu1 %v4814_v53  ;;  %v3328_v59 = vpop.eup %3327  ;;  %v920_v35 = vmul.f32 0.5, %v910_v34  ;;  %v8709_v34 = vld [vmem:[#allocation60_spill] sm:$0xff] }
 0x210   :  { %1286 = vmatpush.msrb.mxu3 %v4816_v60  ;;  %v3330_v40 = vpop.eup %3329  ;;  %v913_v47 = vadd.f32 1.0, %v3328_v59  ;;  %v5314_v59 = vld [vmem:[#allocation15 + $0x1a0] sm:$0xff] }
 0x211   :  { %1247 = vmatpush.msra.mxu1 %v4820_v62  ;;  %v917_v3 = vadd.f32 1.0, %v3330_v40  ;;  %3333 = vtanh.f32 %v920_v35  ;;  %v8710_v35 = vld [vmem:[#allocation62_spill] sm:$0xff]  ;;  %v8711_v40 = vld [vmem:[#allocation36_spill] sm:$0xff] }
 0x212   :  { %1287 = vmatpush.msrb.mxu3 %v4822_v5  ;;  %v914_v53 = vmul.f32 0.5, %v913_v47  ;;  %v8712_v47 = vld [vmem:[#allocation63_spill] sm:$0xff] }
 0x213   :  { %1248 = vmatpush.msra.mxu1 %v4826_v11  ;;  %v918_v44 = vmul.f32 0.5, %v917_v3  ;;  %v8697_v11 = vld [vmem:[#allocation50_spill] sm:$0xff] }
 0x214   :  { %1288 = vmatpush.msrb.mxu3 %v4828_v12  ;;  %v3332_v60 = vpop.eup %3331  ;;  %v5320_v3 = vld [vmem:[#allocation15 + $0x180] sm:$0xff] }
 0x215   :  { %1249 = vmatpush.msra.mxu1 %v4830_v22  ;;  %v924_v57 = vmul.f32 %v918_v44, %v820_v43  ;;  %v925_v2 = vmul.f32 %v3332_v60, %v914_v53  ;;  %v8698_v22 = vld [vmem:[#allocation51_spill] sm:$0xff]  ;;  %v8713_v43 = vld [vmem:[#allocation65_spill] sm:$0xff]  ;;  %v5327_v53 = vld [vmem:[#allocation15 + $0x160] sm:$0xff] }
 0x216   :  { %1289 = vmatpush.msrb.mxu3 %v4834_v23  ;;  %v8699_v23 = vld [vmem:[#allocation52_spill] sm:$0xff]  ;;  %v8714_v44 = vld [vmem:[#allocation37_spill] sm:$0xff]  ;;  %v8715_v60 = vld [vmem:[#allocation38_spill] sm:$0xff] }
 0x217   :  { %1250 = vmatpush.msra.mxu1 %v4838_v26  ;;  %v3334_v62 = vpop.eup %3333  ;;  %v5283_v5 = vadd.f32 %v925_v2, %v924_v57  ;;  %v8700_v26 = vld [vmem:[#allocation53_spill] sm:$0xff]  ;;  %v8716_v57 = vld [vmem:[#allocation66_spill] sm:$0xff] }
 0x218   :  { %1290 = vmatpush.msrb.mxu3 %v4840_v31  ;;  %v922_v12 = vadd.f32 1.0, %v3334_v62  ;;  %v8701_v31 = vld [vmem:[#allocation54_spill] sm:$0xff]  ;;  %v8717_v62 = vld [vmem:[#allocation69_spill] sm:$0xff] }
 0x219   :  { %1251 = vmatpush.msra.mxu1 %v4844_v16  ;;  %3335 = vtanh.f32 %v5283_v5  ;;  %v8702_v16 = vld [vmem:[#allocation55_spill] sm:$0xff]  ;;  %v5332_v2 = vld [vmem:[#allocation15 + $0x140] sm:$0xff] }
 0x21a   :  { %1291 = vmatpush.msrb.mxu3 %v4846_v13  ;;  %v923_v38 = vmul.f32 0.5, %v922_v12  ;;  %v8703_v13 = vld [vmem:[#allocation56_spill] sm:$0xff]  ;;  %v8719_v12 = vld [vmem:[#allocation70_spill] sm:$0xff] }
 0x21b   :  { %1252 = vmatpush.msra.mxu1 %v4850_v7  ;;  %v8704_v7 = vld [vmem:[#allocation57_spill] sm:$0xff] }
 0x21c   :  { %1292 = vmatpush.msrb.mxu3 %v8697_v11  ;;  %v8718_v11 = vld [vmem:[#allocation39_spill] sm:$0xff] }
 0x21d   :  { %1253 = vmatpush.msra.mxu1 %v8698_v22  ;;  %v5338_v22 = vld [vmem:[#allocation15 + $0x120] sm:$0xff] }
 0x21e   :  { %1293 = vmatpush.msrb.mxu3 %v8699_v23  ;;  %v8720_v23 = vld [vmem:[#allocation73_spill] sm:$0xff] }
 0x21f   :  { %1254 = vmatpush.msra.mxu1 %v8700_v26  ;;  %v3336_v9 = vpop.eup %3335  ;;  %v8721_v26 = vld [vmem:[#allocation40_spill] sm:$0xff] }
 0x220   :  { %1294 = vmatpush.msrb.mxu3 %v8701_v31  ;;  %v5296_v51 = vmul.f32 %v3336_v9, %v923_v38  ;;  %v8722_v31 = vld [vmem:[#allocation74_spill] sm:$0xff]  ;;  %v8723_v9 = vld [vmem:[#allocation77_spill] sm:$0xff] }
 0x221   :  { %1255 = vmatpush.msra.mxu1 %v8702_v16  ;;  %v5344_v38 = vld [vmem:[#allocation15 + $0x100] sm:$0xff]  ;;  %v8724_v16 = vld [vmem:[#allocation41_spill] sm:$0xff] }
 0x222   :  { %1295 = vmatpush.msrb.mxu3 %v8703_v13  ;;  %954 = vmatmul.f32.vlgmr.msrb.gmra.mxu0 %v5296_v51  ;;  %v8725_v13 = vld [vmem:[#allocation78_spill] sm:$0xff] }
 0x223   :  { %1256 = vmatpush.msra.mxu1 %v8704_v7  ;;  %994 = vmatmul.f32.vlgmr.msra.gmra.mxu2 %v5296_v51  ;;  %v5350_v7 = vld [vmem:[#allocation15 + $0xe0] sm:$0xff] }
 0x224   :  { %1296 = vmatpush.msrb.mxu3 %v8705_v42  ;;  %1121 = vmatpush.msrb.mxu0 %v5302_v17  ;;  %v8726_v42 = vld [vmem:[#allocation83_spill] sm:$0xff] }
 0x225   :  { %1157 = vmatmul.f32.vlgmr.msrb.gmra.mxu1 %v5296_v51  ;;  %1161 = vmatpush.msra.mxu2 %v8706_v15  ;;  %v8727_v15 = vld [vmem:[#allocation42_spill] sm:$0xff] }
 0x226   :  { %1197 = vmatmul.f32.vlgmr.msra.gmra.mxu3 %v5296_v51  ;;  %1122 = vmatpush.msrb.mxu0 %v5308_v33 }
 0x227   :  { %1257 = vmatpush.msra.mxu1 %v8707_v19  ;;  %1162 = vmatpush.msra.mxu2 %v8708_v18  ;;  %v8728_v19 = vld [vmem:[#allocation84_spill] sm:$0xff]  ;;  %v5356_v18 = vld [vmem:[#allocation15 + $0xc0] sm:$0xff] }
 0x228   :  { %1297 = vmatpush.msrb.mxu3 %v8709_v34  ;;  %1123 = vmatpush.msrb.mxu0 %v5314_v59  ;;  %v8729_v34 = vld [vmem:[#allocation87_spill] sm:$0xff] }
 0x229   :  { %1258 = vmatpush.msra.mxu1 %v8710_v35  ;;  %1163 = vmatpush.msra.mxu2 %v8711_v40  ;;  %v8730_v35 = vld [vmem:[#allocation43_spill] sm:$0xff]  ;;  %v8731_v40 = vld [vmem:[#allocation88_spill] sm:$0xff] }
 0x22a   :  { %1298 = vmatpush.msrb.mxu3 %v8712_v47  ;;  %1124 = vmatpush.msrb.mxu0 %v5320_v3  ;;  %v5362_v47 = vld [vmem:[#allocation15 + $0xa0] sm:$0xff] }
 0x22b   :  { %1323 = vmatpush.msrb.mxu1 %v8713_v43  ;;  %1164 = vmatpush.msra.mxu2 %v8714_v44  ;;  %v8732_v43 = vld [vmem:[#allocation91_spill] sm:$0xff]  ;;  %v8733_v44 = vld [vmem:[#allocation44_spill] sm:$0xff] }
 0x22c   :  { %1034 = vmatmul.f32.vlgmr.msra.gmra.mxu0 %v5296_v51  ;;  %1074 = vmatmul.f32.vlgmr.msrb.gmra.mxu2 %v5296_v51 }
 0x22d   :  { %1125 = vmatpush.msrb.mxu0 %v5327_v53  ;;  %1165 = vmatpush.msra.mxu2 %v8715_v60  ;;  %v8734_v60 = vld [vmem:[#allocation92_spill] sm:$0xff] }
 0x22e   :  { %1363 = vmatpush.msra.mxu3 %v8716_v57  ;;  %1324 = vmatpush.msrb.mxu1 %v8717_v62  ;;  %v5368_v57 = vld [vmem:[#allocation15 + $0x80] sm:$0xff]  ;;  %v8735_v62 = vld [vmem:[#allocation95_spill] sm:$0xff] }
 0x22f   :  { %1126 = vmatpush.msrb.mxu0 %v5332_v2  ;;  %1166 = vmatpush.msra.mxu2 %v8718_v11  ;;  %v8736_v11 = vld [vmem:[#allocation45_spill] sm:$0xff] }
 0x230   :  { %1364 = vmatpush.msra.mxu3 %v8719_v12  ;;  %1325 = vmatpush.msrb.mxu1 %v8720_v23  ;;  %v8737_v12 = vld [vmem:[#allocation96_spill] sm:$0xff]  ;;  %v5374_v23 = vld [vmem:[#allocation15 + $0x60] sm:$0xff] }
 0x231   :  { %1127 = vmatpush.msrb.mxu0 %v5338_v22  ;;  %1167 = vmatpush.msra.mxu2 %v8721_v26  ;;  %v8738_v26 = vld [vmem:[#allocation101_spill] sm:$0xff] }
 0x232   :  { %1365 = vmatpush.msra.mxu3 %v8722_v31  ;;  %1326 = vmatpush.msrb.mxu1 %v8723_v9  ;;  %v8739_v31 = vld [vmem:[#allocation46_spill] sm:$0xff] }
 0x233   :  { %1128 = vmatpush.msrb.mxu0 %v5344_v38  ;;  %1168 = vmatpush.msra.mxu2 %v8724_v16  ;;  %v8740_v9 = vld [vmem:[#allocation102_spill] sm:$0xff] }
 0x234   :  { %1366 = vmatpush.msra.mxu3 %v8725_v13  ;;  %1327 = vmatpush.msrb.mxu1 %v8726_v42  ;;  %v5380_v16 = vld [vmem:[#allocation15 + $0x40] sm:$0xff]  ;;  %v8741_v13 = vld [vmem:[#allocation105_spill] sm:$0xff]  ;;  %v8742_v42 = vld [vmem:[#allocation47_spill] sm:$0xff] }
 0x235   :  { %1129 = vmatpush.msrb.mxu0 %v5350_v7  ;;  %1169 = vmatpush.msra.mxu2 %v8727_v15  ;;  %v8743_v15 = vld [vmem:[#allocation106_spill] sm:$0xff] }
 0x236   :  { %1367 = vmatpush.msra.mxu3 %v8728_v19  ;;  %1328 = vmatpush.msrb.mxu1 %v8729_v34  ;;  %v5386_v19 = vld [vmem:[#allocation15 + $0x20] sm:$0xff]  ;;  %v8744_v34 = vld [vmem:[#allocation109_spill] sm:$0xff] }
 0x237   :  { %1130 = vmatpush.msrb.mxu0 %v5356_v18  ;;  %1170 = vmatpush.msra.mxu2 %v8730_v35  ;;  %v8745_v35 = vld [vmem:[#allocation48_spill] sm:$0xff] }
 0x238   :  { %1368 = vmatpush.msra.mxu3 %v8731_v40  ;;  %1329 = vmatpush.msrb.mxu1 %v8732_v43  ;;  %v8746_v40 = vld [vmem:[#allocation110_spill] sm:$0xff] }
 0x239   :  { %1131 = vmatpush.msrb.mxu0 %v5362_v47  ;;  %1171 = vmatpush.msra.mxu2 %v8733_v44  ;;  %v5392_v43 = vld [vmem:[#allocation15] sm:$0xff]  ;;  %v8747_v44 = vld [vmem:[#allocation113_spill] sm:$0xff] }
 0x23a   :  { %1369 = vmatpush.msra.mxu3 %v8734_v60  ;;  %1330 = vmatpush.msrb.mxu1 %v8735_v62  ;;  %v8748_v60 = vld [vmem:[#allocation49_spill] sm:$0xff] }
 0x23b   :  { %1132 = vmatpush.msrb.mxu0 %v5368_v57  ;;  %1172 = vmatpush.msra.mxu2 %v8736_v11  ;;  %v8749_v62 = vld [vmem:[#allocation61_spill] sm:$0xff]  ;;  %v8750_v11 = vld [vmem:[#allocation64_spill] sm:$0xff] }
 0x23c   :  { %1370 = vmatpush.msra.mxu3 %v8737_v12  ;;  %1331 = vmatpush.msrb.mxu1 %v8738_v26  ;;  %v8751_v12 = vld [vmem:[#allocation114_spill] sm:$0xff]  ;;  %v8752_v26 = vld [vmem:[#allocation67_spill] sm:$0xff] }
 0x23d   :  { %1133 = vmatpush.msrb.mxu0 %v5374_v23  ;;  %1173 = vmatpush.msra.mxu2 %v8739_v31  ;;  %v8753_v31 = vld [vmem:[#allocation119_spill] sm:$0xff] }
 0x23e   :  { %1371 = vmatpush.msra.mxu3 %v8740_v9  ;;  %1332 = vmatpush.msrb.mxu1 %v8741_v13  ;;  %v8754_v9 = vld [vmem:[#allocation68_spill] sm:$0xff] }
 0x23f   :  { %1134 = vmatpush.msrb.mxu0 %v5380_v16  ;;  %1174 = vmatpush.msra.mxu2 %v8742_v42  ;;  %v8755_v13 = vld [vmem:[#allocation120_spill] sm:$0xff]  ;;  %v8756_v42 = vld [vmem:[#allocation71_spill] sm:$0xff] }
 0x240   :  { %1372 = vmatpush.msra.mxu3 %v8743_v15  ;;  %1333 = vmatpush.msrb.mxu1 %v8744_v34  ;;  %v8757_v15 = vld [vmem:[#allocation123_spill] sm:$0xff]  ;;  %v8758_v34 = vld [vmem:[#allocation72_spill] sm:$0xff] }
 0x241   :  { %1135 = vmatpush.msrb.mxu0 %v5386_v19  ;;  %1175 = vmatpush.msra.mxu2 %v8745_v35  ;;  %v8760_v35 = vld [vmem:[#allocation75_spill] sm:$0xff] }
 0x242   :  { %1373 = vmatpush.msra.mxu3 %v8746_v40  ;;  %1334 = vmatpush.msrb.mxu1 %v8747_v44  ;;  %v8761_v40 = vld [vmem:[#allocation76_spill] sm:$0xff]  ;;  %v8762_v44 = vld [vmem:[#allocation81_spill] sm:$0xff] }
 0x243   :  { %1136 = vmatpush.msrb.mxu0 %v5392_v43  ;;  %1176 = vmatpush.msra.mxu2 %v8748_v60  ;;  %v8763_v60 = vld [vmem:[#allocation82_spill] sm:$0xff] }
 0x244   :  { %1137 = vmatmul.f32.vlgmr.msrb.gmra.mxu0 %v5296_v51  ;;  %1177 = vmatmul.f32.vlgmr.msra.gmra.mxu2 %v5296_v51  ;;  %v8759_v51 = vld [vmem:[#allocation124_spill] sm:$0xff] }
 0x245   :  { %1223 = vmatpush.msra.mxu0 %v8749_v62  ;;  %1263 = vmatpush.msrb.mxu2 %v8750_v11  ;;  %v8764_v62 = vld [vmem:[#allocation129_spill] sm:$0xff] }
 0x246   :  { %1374 = vmatpush.msra.mxu3 %v8751_v12  ;;  %1335 = vmatpush.msrb.mxu1 %v8753_v31  ;;  %v8765_v11 = vld [vmem:[#allocation85_spill] sm:$0xff]  ;;  %v8766_v12 = vld [vmem:[#allocation86_spill] sm:$0xff] }
 0x247   :  { %1224 = vmatpush.msra.mxu0 %v8752_v26  ;;  %1264 = vmatpush.msrb.mxu2 %v8754_v9  ;;  %v8767_v26 = vld [vmem:[#allocation89_spill] sm:$0xff]  ;;  %v8768_v31 = vld [vmem:[#allocation90_spill] sm:$0xff] }
 0x248   :  { %1375 = vmatpush.msra.mxu3 %v8755_v13  ;;  %1336 = vmatpush.msrb.mxu1 %v8757_v15  ;;  %v8770_v9 = vld [vmem:[#allocation94_spill] sm:$0xff]  ;;  %v8772_v13 = vld [vmem:[#allocation100_spill] sm:$0xff]  ;;  %v8775_v15 = vld [vmem:[#allocation107_spill] sm:$0xff] }
 0x249   :  { %1225 = vmatpush.msra.mxu0 %v8756_v42  ;;  %1265 = vmatpush.msrb.mxu2 %v8758_v34  ;;  %v8774_v42 = vld [vmem:[#allocation104_spill] sm:$0xff] }
 0x24a   :  { %1376 = vmatpush.msra.mxu3 %v8759_v51  ;;  %1337 = vmatpush.msrb.mxu1 %v5078_v55  ;;  %v8769_v55 = vld [vmem:[#allocation93_spill] sm:$0xff]  ;;  %v8776_v34 = vld [vmem:[#allocation108_spill] sm:$0xff]  ;;  %v8777_v51 = vld [vmem:[#allocation111_spill] sm:$0xff] }
 0x24b   :  { %1226 = vmatpush.msra.mxu0 %v8760_v35  ;;  %1266 = vmatpush.msrb.mxu2 %v8761_v40  ;;  %v8778_v35 = vld [vmem:[#allocation112_spill] sm:$0xff]  ;;  %v5432_v40 = vpop.f32.mrf.mxu0 }
 0x24c   :  { %1377 = vmatpush.msra.mxu3 %v5080_v32  ;;  %1338 = vmatpush.msrb.mxu1 %v5090_v27  ;;  %v8771_v32 = vld [vmem:[#allocation99_spill] sm:$0xff] }
 0x24d   :  { %1227 = vmatpush.msra.mxu0 %v8762_v44  ;;  %1267 = vmatpush.msrb.mxu2 %v8763_v60  ;;  %v8773_v27 = vld [vmem:[#allocation103_spill] sm:$0xff]  ;;  %v5434_v44 = vpop.f32.mrf.mxu1  ;;  %v8779_v60 = vld [vmem:[#allocation117_spill] sm:$0xff] }
 0x24e   :  { %1378 = vmatpush.msra.mxu3 %v8764_v62  ;;  %v8780_v62 = vld [vmem:[#allocation118_spill] sm:$0xff] }
 0x24f   :  { %1228 = vmatpush.msra.mxu0 %v8765_v11  ;;  %1268 = vmatpush.msrb.mxu2 %v8766_v12  ;;  %v8781_v11 = vld [vmem:[#allocation121_spill] sm:$0xff]  ;;  %v8782_v12 = vld [vmem:[#allocation122_spill] sm:$0xff] }
 0x251   :  { %1229 = vmatpush.msra.mxu0 %v8767_v26  ;;  %1269 = vmatpush.msrb.mxu2 %v8768_v31  ;;  %v8783_v26 = vld [vmem:[#allocation125_spill] sm:$0xff]  ;;  %v8784_v31 = vld [vmem:[#allocation126_spill] sm:$0xff] }
 0x253   :  { %1230 = vmatpush.msra.mxu0 %v8769_v55  ;;  %1270 = vmatpush.msrb.mxu2 %v8770_v9  ;;  %v8785_v55 = vld [vmem:[#allocation127_spill] sm:$0xff]  ;;  %v8786_v9 = vld [vmem:[#allocation128_spill] sm:$0xff] }
 0x255   :  { %1231 = vmatpush.msra.mxu0 %v8771_v32  ;;  %1271 = vmatpush.msrb.mxu2 %v8772_v13  ;;  %v8787_v32 = vld [vmem:[#allocation132_spill] sm:$0xff]  ;;  %v5447_v13 = vpop.f32.mrf.mxu0 }
 0x257   :  { %1232 = vmatpush.msra.mxu0 %v8773_v27  ;;  %1272 = vmatpush.msrb.mxu2 %v8774_v42  ;;  %v5449_v27 = vpop.f32.mrf.mxu1  ;;  %v8788_v42 = vld [vmem:[#allocation133_spill] sm:$0xff] }
 0x259   :  { %1233 = vmatpush.msra.mxu0 %v8775_v15  ;;  %1273 = vmatpush.msrb.mxu2 %v8776_v34 }
 0x25b   :  { %1234 = vmatpush.msra.mxu0 %v8777_v51  ;;  %1274 = vmatpush.msrb.mxu2 %v8778_v35 }
 0x25d   :  { %1235 = vmatpush.msra.mxu0 %v8779_v60  ;;  %1275 = vmatpush.msrb.mxu2 %v8780_v62 }
 0x25f   :  { %1236 = vmatpush.msra.mxu0 %v8781_v11  ;;  %1276 = vmatpush.msrb.mxu2 %v8782_v12 }
 0x261   :  { %1237 = vmatpush.msra.mxu0 %v8783_v26  ;;  %1277 = vmatpush.msrb.mxu2 %v8784_v31 }
 0x263   :  { %1238 = vmatpush.msra.mxu0 %v8785_v55  ;;  %1278 = vmatpush.msrb.mxu2 %v8786_v9 }
 0x265   :  { %1303 = vmatpush.msrb.mxu0 %v8787_v32  ;;  %1343 = vmatpush.msra.mxu2 %v5106_v41  ;;  %v5461_v41 = vpop.f32.mrf.mxu0 }
 0x266   :  { %8789 = vst [vmem:[#allocation50_spill] sm:$0xff] %v5461_v41  ;;  %v5661_v41 = vld [vmem:[#allocation16 + $0x3e0] sm:$0xff] }
 0x267   :  { %1304 = vmatpush.msrb.mxu0 %v5112_v0  ;;  %1344 = vmatpush.msra.mxu2 %v8788_v42  ;;  %v5463_v0 = vpop.f32.mrf.mxu1  ;;  %8811 = vst [vmem:[#allocation63_spill] sm:$0xff] %v5661_v41 }
 0x268   :  { %8790 = vst [vmem:[#allocation51_spill] sm:$0xff] %v5463_v0  ;;  %v5664_v0 = vld [vmem:[#allocation15 + $0x150] sm:$0xff] }
 0x269   :  { %1305 = vmatpush.msrb.mxu0 %v5120_v45  ;;  %1345 = vmatpush.msra.mxu2 %v5122_v24  ;;  %v8794_v45 = vld [vmem:[#allocation141_spill] sm:$0xff]  ;;  %v1015_v15 = vpop.f32.mrf.mxu3  ;;  %8812 = vst [vmem:[#allocation65_spill] sm:$0xff] %v5664_v0 }
 0x26b   :  { %1306 = vmatpush.msrb.mxu0 %v5128_v49  ;;  %1346 = vmatpush.msra.mxu2 %v5130_v36  ;;  %v8793_v36 = vld [vmem:[#allocation138_spill] sm:$0xff] }
 0x26c   :  { %v8795_v49 = vld [vmem:[#allocation142_spill] sm:$0xff] }
 0x26d   :  { %1307 = vmatpush.msrb.mxu0 %v5140_v29  ;;  %1347 = vmatpush.msra.mxu2 %v5142_v48  ;;  %v5475_v24 = vpop.f32.mrf.mxu0 }
 0x26e   :  { %8791 = vst [vmem:[#allocation52_spill] sm:$0xff] %v5475_v24  ;;  %v5643_v24 = vld [vmem:[#allocation15 + $0x190] sm:$0xff] }
 0x26f   :  { %1308 = vmatpush.msrb.mxu0 %v5148_v25  ;;  %1348 = vmatpush.msra.mxu2 %v5150_v46  ;;  %v5477_v29 = vpop.f32.mrf.mxu1  ;;  %v8796_v46 = vld [vmem:[#allocation143_spill] sm:$0xff]  ;;  %8809 = vst [vmem:[#allocation62_spill] sm:$0xff] %v5643_v24 }
 0x270   :  { %8792 = vst [vmem:[#allocation53_spill] sm:$0xff] %v5477_v29  ;;  %v5646_v29 = vld [vmem:[#allocation15 + $0x8] sm:$0xff] }
 0x271   :  { %1309 = vmatpush.msrb.mxu0 %v5156_v50  ;;  %1349 = vmatpush.msra.mxu2 %v5158_v28 }
 0x273   :  { %1310 = vmatpush.msrb.mxu0 %v5164_v52  ;;  %1350 = vmatpush.msra.mxu2 %v5166_v30 }
 0x275   :  { %1311 = vmatpush.msrb.mxu0 %v5176_v21  ;;  %1351 = vmatpush.msra.mxu2 %v5178_v56  ;;  %v8797_v21 = vld [vmem:[#allocation144_spill] sm:$0xff]  ;;  %v5488_v48 = vpop.f32.mrf.mxu0 }
 0x276   :  { %8798 = vst [vmem:[#allocation54_spill] sm:$0xff] %v5488_v48  ;;  %v5633_v48 = vld [vmem:[#allocation15 + $0x1b0] sm:$0xff] }
 0x277   :  { %1312 = vmatpush.msrb.mxu0 %v5184_v37  ;;  %1352 = vmatpush.msra.mxu2 %v5186_v54  ;;  %v5490_v25 = vpop.f32.mrf.mxu1  ;;  %v816_v54 = vld [vmem:[%s8047_s9] sm:$0xf] }
 0x278   :  { %8799 = vst [vmem:[#allocation55_spill] sm:$0xff] %v5490_v25  ;;  %v5503_v56 = vperm.slane %v816_v54, 0  ;;  %v5512_v26 = vperm.slane %v816_v54, 3  ;;  %v5636_v25 = vld [vmem:[#allocation15 + $0x28] sm:$0xff] }
 0x279   :  { %1313 = vmatpush.msrb.mxu0 %v5192_v58  ;;  %1353 = vmatpush.msra.mxu2 %v5194_v39 }
 0x27a   :  { %8804 = vst [vmem:[#allocation59_spill] sm:$0xff] %v5503_v56 }
 0x27b   :  { %1314 = vmatpush.msrb.mxu0 %v5200_v61  ;;  %1354 = vmatpush.msra.mxu2 %v8793_v36 }
 0x27d   :  { %1315 = vmatpush.msrb.mxu0 %v8794_v45  ;;  %1355 = vmatpush.msra.mxu2 %v8795_v49  ;;  %v5492_v50 = vpop.f32.mrf.mxu0 }
 0x27e   :  { %8800 = vst [vmem:[#allocation56_spill] sm:$0xff] %v5492_v50  ;;  %v5623_v50 = vld [vmem:[#allocation15 + $0x1d0] sm:$0xff] }
 0x27f   :  { %1316 = vmatpush.msrb.mxu0 %v8796_v46  ;;  %1356 = vmatpush.msra.mxu2 %v8797_v21  ;;  %v5494_v28 = vpop.f32.mrf.mxu1 }
 0x280   :  { %8801 = vst [vmem:[#allocation57_spill] sm:$0xff] %v5494_v28  ;;  %v5626_v28 = vld [vmem:[#allocation15 + $0x48] sm:$0xff] }
 0x281   :  { %1317 = vmatpush.msrb.mxu0 %v5237_v8  ;;  %1357 = vmatpush.msra.mxu2 %v5239_v1  ;;  %v5506_v8 = vperm.slane %v816_v54, 1 }
 0x283   :  { %1318 = vmatpush.msrb.mxu0 %v5249_v10  ;;  %1358 = vmatpush.msra.mxu2 %v5251_v4  ;;  %8805 = vst [vmem:[#allocation35_spill] sm:$0xff] %v5506_v8  ;;  %v5508_v10 = vperm.slane %v816_v54, 2  ;;  %v1095_v32 = vpop.f32.mrf.mxu3 }
 0x285   :  { %v5496_v52 = vpop.f32.mrf.mxu0 }
 0x286   :  { %8802 = vst [vmem:[#allocation58_spill] sm:$0xff] %v5496_v52  ;;  %v5604_v52 = vld [vmem:[#allocation15 + $0x88] sm:$0xff] }
 0x287   :  { %v5498_v30 = vpop.f32.mrf.mxu1 }
 0x288   :  { %8803 = vst [vmem:[#allocation34_spill] sm:$0xff] %v5498_v30  ;;  %v5607_v30 = vld [vmem:[#allocation15 + $0x98] sm:$0xff] }
 0x28f   :  { %v975_v37 = vpop.f32.mrf.mxu1 }
 0x297   :  { %v1055_v62 = vpop.f32.mrf.mxu1 }
 0x29f   :  { %v955_v58 = vpop.f32.mrf.mxu0 }
 0x2a0   :  { %v956_v39 = vadd.f32 %v955_v58, %v5503_v56  ;;  %v822_v58 = vld [vmem:[#allocation21 + $0x8] sm:$0xff] }
 0x2a2   :  { %v976_v61 = vadd.f32 %v975_v37, %v956_v39  ;;  %v1158_v37 = vpop.f32.mrf.mxu1  ;;  %v8806_v39 = vld [vmem:[#allocation80_spill] sm:$0xff] }
 0x2a4   :  { %v1098_v1 = vmul.f32 0.5, %v976_v61  ;;  %v490_v61 = vadd.f32 %v8806_v39, %v5225_v6  ;;  %v5533_v39 = vld [vmem:[#allocation15 + $0x1f8] sm:$0xff] }
 0x2a6   :  { %v995_v4 = vpop.f32.mrf.mxu2  ;;  %3337 = vtanh.f32 %v1098_v1 }
 0x2a7   :  { %v996_v34 = vadd.f32 %v995_v4, %v5506_v8  ;;  %v1202_v4 = vadd.f32 %v1158_v37, %v490_v61  ;;  %v531_v37 = vadd.f32 %v5432_v40, %v5259_v14 }
 0x2a9   :  { %v1035_v51 = vpop.f32.mrf.mxu0  ;;  %v1016_v35 = vadd.f32 %v1015_v15, %v996_v34 }
 0x2aa   :  { %v1036_v60 = vadd.f32 %v1035_v51, %v5508_v10 }
 0x2ab   :  { %v1102_v11 = vmul.f32 0.5, %v1016_v35 }
 0x2ac   :  { %v1056_v12 = vadd.f32 %v1055_v62, %v1036_v60  ;;  %v3338_v31 = vpop.eup %3337  ;;  %v1209_v60 = vmul.f32 0.5, %v1202_v4 }
 0x2ad   :  { %3339 = vtanh.f32 %v1102_v11  ;;  %v1100_v42 = vadd.f32 1.0, %v3338_v31  ;;  %v8807_v11 = vld [vmem:[#allocation79_spill] sm:$0xff] }
 0x2ae   :  { %3341 = vtanh.f32 %v1056_v12  ;;  %v449_v12 = vadd.f32 %v8807_v11, %v5223_v63  ;;  %v5551_v11 = vld [vmem:[#allocation15 + $0x198] sm:$0xff] }
 0x2af   :  { %v1075_v55 = vpop.f32.mrf.mxu2  ;;  %v1101_v54 = vmul.f32 0.5, %v1100_v42  ;;  %v1198_v42 = vpop.f32.mrf.mxu3 }
 0x2b0   :  { %v1076_v9 = vadd.f32 %v1075_v55, %v5512_v26 }
 0x2b2   :  { %v1096_v36 = vadd.f32 %v1095_v32, %v1076_v9 }
 0x2b3   :  { %v3340_v45 = vpop.eup %3339 }
 0x2b4   :  { %v1104_v49 = vadd.f32 1.0, %v3340_v45  ;;  %v1107_v46 = vmul.f32 0.5, %v1096_v36  ;;  %v3342_v21 = vpop.eup %3341  ;;  %v572_v36 = vadd.f32 %v5434_v44, %v5261_v20 }
 0x2b5   :  { %v1112_v34 = vmul.f32 %v3342_v21, %v1101_v54  ;;  %v5536_v54 = vld [vmem:[#allocation15 + $0x1c8] sm:$0xff] }
 0x2b6   :  { %v1105_v1 = vmul.f32 0.5, %v1104_v49  ;;  %3343 = vtanh.f32 %v1107_v46  ;;  %v1204_v46 = vadd.f32 %v1198_v42, %v572_v36  ;;  %v5562_v42 = vld [vmem:[#allocation15 + $0x148] sm:$0xff]  ;;  %v5565_v36 = vld [vmem:[#allocation15 + $0x158] sm:$0xff] }
 0x2b8   :  { %v1111_v15 = vmul.f32 %v1105_v1, %v822_v58  ;;  %v5530_v58 = vld [vmem:[#allocation15 + $0x1e8] sm:$0xff]  ;;  %v5539_v1 = vld [vmem:[#allocation15 + $0x1d8] sm:$0xff]  ;;  %v1214_v40 = vmul.f32 0.5, %v1204_v46 }
 0x2ba   :  { %v5517_v51 = vadd.f32 %v1112_v34, %v1111_v15  ;;  %v5542_v15 = vld [vmem:[#allocation15 + $0x1a8] sm:$0xff]  ;;  %v5545_v34 = vld [vmem:[#allocation15 + $0x1b8] sm:$0xff] }
 0x2bc   :  { %v3344_v35 = vpop.eup %3343  ;;  %3345 = vtanh.f32 %v5517_v51 }
 0x2bd   :  { %v1109_v62 = vadd.f32 1.0, %v3344_v35  ;;  %3347 = vtanh.f32 %v1209_v60 }
 0x2bf   :  { %v1110_v55 = vmul.f32 0.5, %v1109_v62  ;;  %v5548_v62 = vld [vmem:[#allocation15 + $0x188] sm:$0xff] }
 0x2c1   :  { %v1138_v31 = vpop.f32.mrf.mxu0 }
 0x2c2   :  { %v1201_v9 = vadd.f32 %v1138_v31, %v449_v12  ;;  %v3346_v32 = vpop.eup %3345 }
 0x2c3   :  { %v5524_v45 = vmul.f32 %v3346_v32, %v1110_v55  ;;  %v3348_v21 = vpop.eup %3347  ;;  %v5556_v55 = vld [vmem:[#allocation15 + $0x168] sm:$0xff] }
 0x2c4   :  { %v1205_v49 = vmul.f32 0.5, %v1201_v9  ;;  %v1211_v4 = vadd.f32 1.0, %v3348_v21  ;;  %v5559_v9 = vld [vmem:[#allocation15 + $0x178] sm:$0xff]  ;;  %v5569_v21 = vld [vmem:[#allocation15 + $0x128] sm:$0xff] }
 0x2c5   :  { %8808 = vst [vmem:[#allocation60_spill] sm:$0xff] %v5524_v45  ;;  %1259 = vmatmul.f32.vlgmr.msra.gmra.mxu1 %v5524_v45  ;;  %1299 = vmatmul.f32.vlgmr.msrb.gmra.mxu3 %v5524_v45 }
 0x2c6   :  { %3349 = vtanh.f32 %v1205_v49  ;;  %1426 = vmatpush.msra.mxu1 %v5530_v58  ;;  %1466 = vmatpush.msrb.mxu3 %v5533_v39  ;;  %v1212_v12 = vmul.f32 0.5, %v1211_v4  ;;  %v5577_v4 = vld [vmem:[#allocation15 + $0x108] sm:$0xff] }
 0x2c7   :  { %v1178_v44 = vpop.f32.mrf.mxu2 }
 0x2c8   :  { %v1203_v61 = vadd.f32 %v1178_v44, %v531_v37  ;;  %1427 = vmatpush.msra.mxu1 %v5536_v54  ;;  %1467 = vmatpush.msrb.mxu3 %v5539_v1  ;;  %v1218_v49 = vmul.f32 %v1212_v12, %v5283_v5  ;;  %v5572_v37 = vld [vmem:[#allocation15 + $0x138] sm:$0xff]  ;;  %v5590_v12 = vld [vmem:[#allocation15 + $0xc8] sm:$0xff] }
 0x2ca   :  { %3351 = vtanh.f32 %v1203_v61  ;;  %1428 = vmatpush.msra.mxu1 %v5542_v15  ;;  %1468 = vmatpush.msrb.mxu3 %v5545_v34 }
 0x2cb   :  { %3353 = vtanh.f32 %v1214_v40  ;;  %v5580_v40 = vld [vmem:[#allocation15 + $0x118] sm:$0xff] }
 0x2cc   :  { %v3350_v35 = vpop.eup %3349  ;;  %1429 = vmatpush.msra.mxu1 %v5548_v62  ;;  %1469 = vmatpush.msrb.mxu3 %v5551_v11 }
 0x2cd   :  { %v1207_v60 = vadd.f32 1.0, %v3350_v35  ;;  %1339 = vmatmul.f32.vlgmr.msrb.gmra.mxu1 %v5524_v45  ;;  %1379 = vmatmul.f32.vlgmr.msra.gmra.mxu3 %v5524_v45  ;;  %v5584_v35 = vld [vmem:[#allocation15 + $0xe8] sm:$0xff] }
 0x2ce   :  { %1430 = vmatpush.msra.mxu1 %v5556_v55  ;;  %1470 = vmatpush.msrb.mxu3 %v5559_v9 }
 0x2cf   :  { %v1208_v31 = vmul.f32 0.5, %v1207_v60  ;;  %v5587_v60 = vld [vmem:[#allocation15 + $0xf8] sm:$0xff] }
 0x2d0   :  { %v3352_v32 = vpop.eup %3351  ;;  %1431 = vmatpush.msra.mxu1 %v5562_v42  ;;  %1471 = vmatpush.msrb.mxu3 %v5565_v36 }
 0x2d1   :  { %v1219_v46 = vmul.f32 %v3352_v32, %v1208_v31  ;;  %v3354_v44 = vpop.eup %3353  ;;  %v5593_v31 = vld [vmem:[#allocation15 + $0xd8] sm:$0xff] }
 0x2d2   :  { %1432 = vmatpush.msra.mxu1 %v5569_v21  ;;  %1472 = vmatpush.msrb.mxu3 %v5572_v37  ;;  %v1216_v5 = vadd.f32 1.0, %v3354_v44 }
 0x2d3   :  { %v5575_v61 = vadd.f32 %v1219_v46, %v1218_v49  ;;  %v5596_v49 = vld [vmem:[#allocation15 + $0xa8] sm:$0xff]  ;;  %v5599_v46 = vld [vmem:[#allocation15 + $0xb8] sm:$0xff] }
 0x2d4   :  { %1433 = vmatpush.msra.mxu1 %v5577_v4  ;;  %1473 = vmatpush.msrb.mxu3 %v5580_v40  ;;  %v1217_v32 = vmul.f32 0.5, %v1216_v5  ;;  %v5613_v5 = vld [vmem:[#allocation15 + $0x1f0] sm:$0xff] }
 0x2d5   :  { %3355 = vtanh.f32 %v5575_v61 }
 0x2d6   :  { %1434 = vmatpush.msra.mxu1 %v5584_v35  ;;  %1474 = vmatpush.msrb.mxu3 %v5587_v60 }
 0x2d8   :  { %1435 = vmatpush.msra.mxu1 %v5590_v12  ;;  %1475 = vmatpush.msrb.mxu3 %v5593_v31 }
 0x2da   :  { %1436 = vmatpush.msra.mxu1 %v5596_v49  ;;  %1476 = vmatpush.msrb.mxu3 %v5599_v46 }
 0x2db   :  { %v3356_v44 = vpop.eup %3355 }
 0x2dc   :  { %v5602_v45 = vmul.f32 %v3356_v44, %v1217_v32  ;;  %1437 = vmatpush.msra.mxu1 %v5604_v52  ;;  %1477 = vmatpush.msrb.mxu3 %v5607_v30  ;;  %v5616_v32 = vld [vmem:[#allocation15 + $0x68] sm:$0xff]  ;;  %v5619_v44 = vld [vmem:[#allocation15 + $0x78] sm:$0xff] }
 0x2de   :  { %1239 = vmatmul.f32.vlgmr.msra.gmra.mxu0 %v5602_v45  ;;  %1279 = vmatmul.f32.vlgmr.msrb.gmra.mxu2 %v5602_v45 }
 0x2df   :  { %1406 = vmatpush.msra.mxu0 %v5302_v17  ;;  %1446 = vmatpush.msrb.mxu2 %v5613_v5  ;;  %v5629_v17 = vld [vmem:[#allocation15 + $0x58] sm:$0xff] }
 0x2e0   :  { %1438 = vmatpush.msra.mxu1 %v5616_v32  ;;  %1478 = vmatpush.msrb.mxu3 %v5619_v44 }
 0x2e1   :  { %1407 = vmatpush.msra.mxu0 %v5308_v33  ;;  %1447 = vmatpush.msrb.mxu2 %v5623_v50  ;;  %v5639_v33 = vld [vmem:[#allocation15 + $0x38] sm:$0xff] }
 0x2e2   :  { %1439 = vmatpush.msra.mxu1 %v5626_v28  ;;  %1479 = vmatpush.msrb.mxu3 %v5629_v17 }
 0x2e3   :  { %1408 = vmatpush.msra.mxu0 %v5314_v59  ;;  %1448 = vmatpush.msrb.mxu2 %v5633_v48  ;;  %v5649_v59 = vld [vmem:[#allocation15 + $0x18] sm:$0xff] }
 0x2e4   :  { %1440 = vmatpush.msra.mxu1 %v5636_v25  ;;  %1480 = vmatpush.msrb.mxu3 %v5639_v33 }
 0x2e5   :  { %1409 = vmatpush.msra.mxu0 %v5320_v3  ;;  %1449 = vmatpush.msrb.mxu2 %v5643_v24  ;;  %v5656_v3 = vld [vmem:[#allocation15 + $0x170] sm:$0xff]  ;;  %v5667_v24 = vld [vmem:[#allocation16 + $0x3e8] sm:$0xff] }
 0x2e6   :  { %1441 = vmatpush.msra.mxu1 %v5646_v29  ;;  %1481 = vmatpush.msrb.mxu3 %v5649_v59  ;;  %8810 = vst [vmem:[#allocation36_spill] sm:$0xff] %v5656_v3 }
 0x2e7   :  { %1319 = vmatmul.f32.vlgmr.msrb.gmra.mxu0 %v5602_v45  ;;  %1359 = vmatmul.f32.vlgmr.msra.gmra.mxu2 %v5602_v45  ;;  %8813 = vst [vmem:[#allocation37_spill] sm:$0xff] %v5667_v24 }
 0x2e8   :  { %1410 = vmatpush.msra.mxu0 %v5327_v53  ;;  %1442 = vmatmul.f32.vlgmr.msra.gmra.mxu1 %v5602_v45  ;;  %v5671_v53 = vld [vmem:[#allocation16 + $0x3c0] sm:$0xff] }
 0x2e9   :  { %1450 = vmatpush.msrb.mxu2 %v5656_v3  ;;  %1482 = vmatmul.f32.vlgmr.msrb.gmra.mxu3 %v5602_v45  ;;  %8814 = vst [vmem:[#allocation38_spill] sm:$0xff] %v5671_v53  ;;  %v5674_v3 = vld [vmem:[#allocation15 + $0x130] sm:$0xff] }
 0x2ea   :  { %1411 = vmatpush.msra.mxu0 %v5332_v2  ;;  %1528 = vmatpush.msrb.mxu1 %v5661_v41  ;;  %8815 = vst [vmem:[#allocation66_spill] sm:$0xff] %v5674_v3  ;;  %v5677_v2 = vld [vmem:[#allocation16 + $0x3c8] sm:$0xff] }
 0x2eb   :  { %1451 = vmatpush.msrb.mxu2 %v5664_v0  ;;  %1568 = vmatpush.msra.mxu3 %v5667_v24  ;;  %8816 = vst [vmem:[#allocation69_spill] sm:$0xff] %v5677_v2  ;;  %v5681_v0 = vld [vmem:[#allocation16 + $0x3a0] sm:$0xff]  ;;  %v5684_v24 = vld [vmem:[#allocation15 + $0x110] sm:$0xff] }
 0x2ec   :  { %1412 = vmatpush.msra.mxu0 %v5338_v22  ;;  %1529 = vmatpush.msrb.mxu1 %v5671_v53  ;;  %8817 = vst [vmem:[#allocation39_spill] sm:$0xff] %v5681_v0  ;;  %v5687_v22 = vld [vmem:[#allocation16 + $0x3a8] sm:$0xff] }
 0x2ed   :  { %1452 = vmatpush.msrb.mxu2 %v5674_v3  ;;  %1569 = vmatpush.msra.mxu3 %v5677_v2  ;;  %8818 = vst [vmem:[#allocation70_spill] sm:$0xff] %v5684_v24  ;;  %v5691_v3 = vld [vmem:[#allocation16 + $0x380] sm:$0xff]  ;;  %v5694_v2 = vld [vmem:[#allocation15 + $0xf0] sm:$0xff] }
 0x2ee   :  { %1413 = vmatpush.msra.mxu0 %v5344_v38  ;;  %1530 = vmatpush.msrb.mxu1 %v5681_v0  ;;  %8819 = vst [vmem:[#allocation73_spill] sm:$0xff] %v5687_v22  ;;  %v5697_v38 = vld [vmem:[#allocation16 + $0x388] sm:$0xff] }
 0x2ef   :  { %1453 = vmatpush.msrb.mxu2 %v5684_v24  ;;  %1570 = vmatpush.msra.mxu3 %v5687_v22  ;;  %8820 = vst [vmem:[#allocation40_spill] sm:$0xff] %v5691_v3  ;;  %v5701_v24 = vld [vmem:[#allocation16 + $0x360] sm:$0xff]  ;;  %v5704_v22 = vld [vmem:[#allocation15 + $0xd0] sm:$0xff] }
 0x2f0   :  { %1414 = vmatpush.msra.mxu0 %v5350_v7  ;;  %1531 = vmatpush.msrb.mxu1 %v5691_v3  ;;  %8821 = vst [vmem:[#allocation74_spill] sm:$0xff] %v5694_v2  ;;  %v5707_v7 = vld [vmem:[#allocation16 + $0x368] sm:$0xff] }
 0x2f1   :  { %1454 = vmatpush.msrb.mxu2 %v5694_v2  ;;  %8822 = vst [vmem:[#allocation77_spill] sm:$0xff] %v5697_v38  ;;  %1571 = vmatpush.msra.mxu3 %v5697_v38  ;;  %v5711_v2 = vld [vmem:[#allocation16 + $0x340] sm:$0xff]  ;;  %v5714_v38 = vld [vmem:[#allocation15 + $0xb0] sm:$0xff] }
 0x2f2   :  { %1415 = vmatpush.msra.mxu0 %v5356_v18  ;;  %8823 = vst [vmem:[#allocation41_spill] sm:$0xff] %v5701_v24  ;;  %1532 = vmatpush.msrb.mxu1 %v5701_v24  ;;  %v5717_v18 = vld [vmem:[#allocation16 + $0x348] sm:$0xff] }
 0x2f3   :  { %8824 = vst [vmem:[#allocation78_spill] sm:$0xff] %v5704_v22  ;;  %1455 = vmatpush.msrb.mxu2 %v5704_v22  ;;  %1572 = vmatpush.msra.mxu3 %v5707_v7  ;;  %v5721_v22 = vld [vmem:[#allocation16 + $0x320] sm:$0xff] }
 0x2f4   :  { %8825 = vst [vmem:[#allocation83_spill] sm:$0xff] %v5707_v7  ;;  %1416 = vmatpush.msra.mxu0 %v5362_v47  ;;  %1533 = vmatpush.msrb.mxu1 %v5711_v2  ;;  %v5724_v7 = vld [vmem:[#allocation15 + $0x90] sm:$0xff]  ;;  %v5727_v47 = vld [vmem:[#allocation16 + $0x328] sm:$0xff] }
 0x2f5   :  { %8826 = vst [vmem:[#allocation42_spill] sm:$0xff] %v5711_v2  ;;  %1456 = vmatpush.msrb.mxu2 %v5714_v38  ;;  %1573 = vmatpush.msra.mxu3 %v5717_v18 }
 0x2f6   :  { %8827 = vst [vmem:[#allocation84_spill] sm:$0xff] %v5714_v38  ;;  %1417 = vmatpush.msra.mxu0 %v5368_v57  ;;  %1534 = vmatpush.msrb.mxu1 %v5721_v22  ;;  %v5731_v38 = vld [vmem:[#allocation16 + $0x300] sm:$0xff]  ;;  %v5737_v57 = vld [vmem:[#allocation16 + $0x308] sm:$0xff] }
 0x2f7   :  { %8828 = vst [vmem:[#allocation87_spill] sm:$0xff] %v5717_v18  ;;  %1457 = vmatpush.msrb.mxu2 %v5724_v7  ;;  %1574 = vmatpush.msra.mxu3 %v5727_v47  ;;  %v5734_v18 = vld [vmem:[#allocation15 + $0x70] sm:$0xff] }
 0x2f8   :  { %8829 = vst [vmem:[#allocation43_spill] sm:$0xff] %v5721_v22  ;;  %1418 = vmatpush.msra.mxu0 %v5374_v23  ;;  %1535 = vmatpush.msrb.mxu1 %v5731_v38  ;;  %v5747_v23 = vld [vmem:[#allocation16 + $0x2e8] sm:$0xff] }
 0x2f9   :  { %8830 = vst [vmem:[#allocation88_spill] sm:$0xff] %v5724_v7  ;;  %1458 = vmatpush.msrb.mxu2 %v5734_v18  ;;  %1575 = vmatpush.msra.mxu3 %v5737_v57  ;;  %v5741_v7 = vld [vmem:[#allocation16 + $0x2e0] sm:$0xff] }
 0x2fa   :  { %8831 = vst [vmem:[#allocation91_spill] sm:$0xff] %v5727_v47  ;;  %1419 = vmatpush.msra.mxu0 %v5380_v16  ;;  %1536 = vmatpush.msrb.mxu1 %v5741_v7  ;;  %v5744_v47 = vld [vmem:[#allocation15 + $0x50] sm:$0xff]  ;;  %v5757_v16 = vld [vmem:[#allocation16 + $0x2c8] sm:$0xff] }
 0x2fb   :  { %8832 = vst [vmem:[#allocation44_spill] sm:$0xff] %v5731_v38  ;;  %1459 = vmatpush.msrb.mxu2 %v5744_v47  ;;  %1576 = vmatpush.msra.mxu3 %v5747_v23 }
 0x2fc   :  { %8833 = vst [vmem:[#allocation92_spill] sm:$0xff] %v5734_v18  ;;  %1420 = vmatpush.msra.mxu0 %v5386_v19  ;;  %v5751_v18 = vld [vmem:[#allocation16 + $0x2c0] sm:$0xff]  ;;  %v5769_v19 = vld [vmem:[#allocation16 + $0x2a8] sm:$0xff] }
 0x2fd   :  { %8834 = vst [vmem:[#allocation95_spill] sm:$0xff] %v5737_v57  ;;  %1537 = vmatpush.msrb.mxu1 %v5751_v18  ;;  %v5754_v57 = vld [vmem:[#allocation15 + $0x30] sm:$0xff]  ;;  %1577 = vmatpush.msra.mxu3 %v5757_v16 }
 0x2fe   :  { %8835 = vst [vmem:[#allocation45_spill] sm:$0xff] %v5741_v7  ;;  %1460 = vmatpush.msrb.mxu2 %v5754_v57  ;;  %1421 = vmatpush.msra.mxu0 %v5392_v43  ;;  %v5775_v43 = vld [vmem:[#allocation16 + $0x1e0] sm:$0xff] }
 0x2ff   :  { %8836 = vst [vmem:[#allocation96_spill] sm:$0xff] %v5744_v47  ;;  %v5761_v47 = vld [vmem:[#allocation16 + $0x2a0] sm:$0xff]  ;;  %1422 = vmatmul.f32.vlgmr.msra.gmra.mxu0 %v5602_v45  ;;  %1578 = vmatpush.msra.mxu3 %v5769_v19 }
 0x300   :  { %8837 = vst [vmem:[#allocation101_spill] sm:$0xff] %v5747_v23  ;;  %1538 = vmatpush.msrb.mxu1 %v5761_v47  ;;  %v5764_v23 = vld [vmem:[#allocation15 + $0x10] sm:$0xff]  ;;  %1508 = vmatpush.msrb.mxu0 %v5775_v43 }
 0x301   :  { %8838 = vst [vmem:[#allocation46_spill] sm:$0xff] %v5751_v18  ;;  %1461 = vmatpush.msrb.mxu2 %v5764_v23 }
 0x302   :  { %8839 = vst [vmem:[#allocation102_spill] sm:$0xff] %v5754_v57  ;;  %1462 = vmatmul.f32.vlgmr.msrb.gmra.mxu2 %v5602_v45  ;;  %v5772_v57 = vld [vmem:[#allocation16 + $0x280] sm:$0xff] }
 0x303   :  { %8840 = vst [vmem:[#allocation105_spill] sm:$0xff] %v5757_v16  ;;  %1539 = vmatpush.msrb.mxu1 %v5772_v57  ;;  %v5784_v45 = vld [vmem:[#allocation16 + $0x260] sm:$0xff] }
 0x304   :  { %8841 = vst [vmem:[#allocation47_spill] sm:$0xff] %v5761_v47  ;;  %v5778_v47 = vld [vmem:[#allocation16 + $0x288] sm:$0xff] }
 0x305   :  { %8842 = vst [vmem:[#allocation106_spill] sm:$0xff] %v5764_v23  ;;  %1579 = vmatpush.msra.mxu3 %v5778_v47  ;;  %v5781_v23 = vld [vmem:[#allocation16 + $0x1e8] sm:$0xff]  ;;  %1540 = vmatpush.msrb.mxu1 %v5784_v45 }
 0x306   :  { %8843 = vst [vmem:[#allocation109_spill] sm:$0xff] %v5769_v19  ;;  %1548 = vmatpush.msra.mxu2 %v5781_v23  ;;  %v5787_v19 = vld [vmem:[#allocation16 + $0x1c0] sm:$0xff] }
 0x307   :  { %8844 = vst [vmem:[#allocation48_spill] sm:$0xff] %v5772_v57  ;;  %1509 = vmatpush.msrb.mxu0 %v5787_v19  ;;  %v5790_v57 = vld [vmem:[#allocation16 + $0x268] sm:$0xff] }
 0x308   :  { %8845 = vst [vmem:[#allocation110_spill] sm:$0xff] %v5775_v43  ;;  %1580 = vmatpush.msra.mxu3 %v5790_v57  ;;  %v5793_v43 = vld [vmem:[#allocation16 + $0x1c8] sm:$0xff] }
 0x309   :  { %8846 = vst [vmem:[#allocation113_spill] sm:$0xff] %v5778_v47  ;;  %1549 = vmatpush.msra.mxu2 %v5793_v43  ;;  %v5796_v47 = vld [vmem:[#allocation16 + $0x240] sm:$0xff] }
 0x30a   :  { %8847 = vst [vmem:[#allocation49_spill] sm:$0xff] %v5781_v23  ;;  %1541 = vmatpush.msrb.mxu1 %v5796_v47  ;;  %v5799_v23 = vld [vmem:[#allocation16 + $0x1a0] sm:$0xff] }
 0x30b   :  { %8848 = vst [vmem:[#allocation61_spill] sm:$0xff] %v5784_v45  ;;  %1510 = vmatpush.msrb.mxu0 %v5799_v23  ;;  %v5802_v45 = vld [vmem:[#allocation16 + $0x248] sm:$0xff] }
 0x30c   :  { %8849 = vst [vmem:[#allocation64_spill] sm:$0xff] %v5787_v19  ;;  %1581 = vmatpush.msra.mxu3 %v5802_v45  ;;  %v5805_v19 = vld [vmem:[#allocation16 + $0x1a8] sm:$0xff] }
 0x30d   :  { %8850 = vst [vmem:[#allocation114_spill] sm:$0xff] %v5790_v57  ;;  %1550 = vmatpush.msra.mxu2 %v5805_v19  ;;  %v5808_v57 = vld [vmem:[#allocation16 + $0x220] sm:$0xff] }
 0x30e   :  { %8851 = vst [vmem:[#allocation67_spill] sm:$0xff] %v5793_v43  ;;  %1542 = vmatpush.msrb.mxu1 %v5808_v57  ;;  %v5811_v43 = vld [vmem:[#allocation16 + $0x180] sm:$0xff] }
 0x30f   :  { %8852 = vst [vmem:[#allocation119_spill] sm:$0xff] %v5796_v47  ;;  %1511 = vmatpush.msrb.mxu0 %v5811_v43  ;;  %v5814_v47 = vld [vmem:[#allocation16 + $0x228] sm:$0xff] }
 0x310   :  { %8853 = vst [vmem:[#allocation68_spill] sm:$0xff] %v5799_v23  ;;  %1582 = vmatpush.msra.mxu3 %v5814_v47  ;;  %v5817_v23 = vld [vmem:[#allocation16 + $0x188] sm:$0xff] }
 0x311   :  { %8854 = vst [vmem:[#allocation120_spill] sm:$0xff] %v5802_v45  ;;  %1551 = vmatpush.msra.mxu2 %v5817_v23  ;;  %v5820_v45 = vld [vmem:[#allocation16 + $0x200] sm:$0xff] }
 0x312   :  { %8855 = vst [vmem:[#allocation71_spill] sm:$0xff] %v5805_v19  ;;  %1543 = vmatpush.msrb.mxu1 %v5820_v45  ;;  %v5823_v19 = vld [vmem:[#allocation16 + $0x160] sm:$0xff] }
 0x313   :  { %8856 = vst [vmem:[#allocation123_spill] sm:$0xff] %v5808_v57  ;;  %1512 = vmatpush.msrb.mxu0 %v5823_v19  ;;  %v5826_v57 = vld [vmem:[#allocation16 + $0x208] sm:$0xff] }
 0x314   :  { %8857 = vst [vmem:[#allocation72_spill] sm:$0xff] %v5811_v43  ;;  %1583 = vmatpush.msra.mxu3 %v5826_v57  ;;  %v5829_v43 = vld [vmem:[#allocation16 + $0x168] sm:$0xff] }
 0x315   :  { %8858 = vst [vmem:[#allocation124_spill] sm:$0xff] %v5814_v47  ;;  %1552 = vmatpush.msra.mxu2 %v5829_v43  ;;  %v5832_v47 = vld [vmem:[#allocation16 + $0x3f0] sm:$0xff] }
 0x316   :  { %8859 = vst [vmem:[#allocation75_spill] sm:$0xff] %v5817_v23  ;;  %1608 = vmatpush.msra.mxu1 %v5832_v47  ;;  %v5835_v23 = vld [vmem:[#allocation16 + $0x3f8] sm:$0xff] }
 0x317   :  { %8860 = vst [vmem:[#allocation76_spill] sm:$0xff] %v5820_v45  ;;  %1648 = vmatpush.msrb.mxu3 %v5835_v23  ;;  %v5838_v45 = vld [vmem:[#allocation16 + $0x140] sm:$0xff] }
 0x318   :  { %8861 = vst [vmem:[#allocation81_spill] sm:$0xff] %v5823_v19  ;;  %1513 = vmatpush.msrb.mxu0 %v5838_v45  ;;  %v5841_v19 = vld [vmem:[#allocation16 + $0x148] sm:$0xff] }
 0x319   :  { %8862 = vst [vmem:[#allocation82_spill] sm:$0xff] %v5826_v57  ;;  %1553 = vmatpush.msra.mxu2 %v5841_v19  ;;  %v5844_v57 = vld [vmem:[#allocation16 + $0x3d0] sm:$0xff] }
 0x31a   :  { %8863 = vst [vmem:[#allocation129_spill] sm:$0xff] %v5829_v43  ;;  %1609 = vmatpush.msra.mxu1 %v5844_v57  ;;  %v5847_v43 = vld [vmem:[#allocation16 + $0x3d8] sm:$0xff] }
 0x31b   :  { %8864 = vst [vmem:[#allocation85_spill] sm:$0xff] %v5832_v47  ;;  %1649 = vmatpush.msrb.mxu3 %v5847_v43  ;;  %v5850_v47 = vld [vmem:[#allocation16 + $0x120] sm:$0xff] }
 0x31c   :  { %8865 = vst [vmem:[#allocation86_spill] sm:$0xff] %v5835_v23  ;;  %1514 = vmatpush.msrb.mxu0 %v5850_v47  ;;  %v5853_v23 = vld [vmem:[#allocation16 + $0x128] sm:$0xff] }
 0x31d   :  { %8866 = vst [vmem:[#allocation89_spill] sm:$0xff] %v5838_v45  ;;  %1554 = vmatpush.msra.mxu2 %v5853_v23  ;;  %v5856_v45 = vld [vmem:[#allocation16 + $0x3b0] sm:$0xff] }
 0x31e   :  { %8867 = vst [vmem:[#allocation90_spill] sm:$0xff] %v5841_v19  ;;  %1610 = vmatpush.msra.mxu1 %v5856_v45  ;;  %v5859_v19 = vld [vmem:[#allocation16 + $0x3b8] sm:$0xff] }
 0x31f   :  { %8868 = vst [vmem:[#allocation93_spill] sm:$0xff] %v5844_v57  ;;  %1650 = vmatpush.msrb.mxu3 %v5859_v19  ;;  %v5862_v57 = vld [vmem:[#allocation16 + $0x100] sm:$0xff] }
 0x320   :  { %8869 = vst [vmem:[#allocation94_spill] sm:$0xff] %v5847_v43  ;;  %1515 = vmatpush.msrb.mxu0 %v5862_v57  ;;  %v5865_v43 = vld [vmem:[#allocation16 + $0x108] sm:$0xff] }
 0x321   :  { %8870 = vst [vmem:[#allocation99_spill] sm:$0xff] %v5850_v47  ;;  %1555 = vmatpush.msra.mxu2 %v5865_v43  ;;  %v5868_v47 = vld [vmem:[#allocation16 + $0x390] sm:$0xff] }
 0x322   :  { %8871 = vst [vmem:[#allocation100_spill] sm:$0xff] %v5853_v23  ;;  %1611 = vmatpush.msra.mxu1 %v5868_v47  ;;  %v5871_v23 = vld [vmem:[#allocation16 + $0x398] sm:$0xff] }
 0x323   :  { %8872 = vst [vmem:[#allocation103_spill] sm:$0xff] %v5856_v45  ;;  %1651 = vmatpush.msrb.mxu3 %v5871_v23  ;;  %v5874_v45 = vld [vmem:[#allocation16 + $0xe0] sm:$0xff] }
 0x324   :  { %8873 = vst [vmem:[#allocation104_spill] sm:$0xff] %v5859_v19  ;;  %1516 = vmatpush.msrb.mxu0 %v5874_v45  ;;  %v5877_v19 = vld [vmem:[#allocation16 + $0xe8] sm:$0xff] }
 0x325   :  { %8874 = vst [vmem:[#allocation107_spill] sm:$0xff] %v5862_v57  ;;  %1556 = vmatpush.msra.mxu2 %v5877_v19  ;;  %v5880_v57 = vld [vmem:[#allocation16 + $0x370] sm:$0xff] }
 0x326   :  { %8875 = vst [vmem:[#allocation108_spill] sm:$0xff] %v5865_v43  ;;  %1612 = vmatpush.msra.mxu1 %v5880_v57  ;;  %v5883_v43 = vld [vmem:[#allocation16 + $0x378] sm:$0xff] }
 0x327   :  { %8876 = vst [vmem:[#allocation111_spill] sm:$0xff] %v5868_v47  ;;  %1652 = vmatpush.msrb.mxu3 %v5883_v43  ;;  %v5886_v47 = vld [vmem:[#allocation16 + $0xc0] sm:$0xff] }
 0x328   :  { %8877 = vst [vmem:[#allocation112_spill] sm:$0xff] %v5871_v23  ;;  %1517 = vmatpush.msrb.mxu0 %v5886_v47  ;;  %v5889_v23 = vld [vmem:[#allocation16 + $0xc8] sm:$0xff] }
 0x329   :  { %8878 = vst [vmem:[#allocation117_spill] sm:$0xff] %v5874_v45  ;;  %1557 = vmatpush.msra.mxu2 %v5889_v23  ;;  %v5892_v45 = vld [vmem:[#allocation16 + $0x350] sm:$0xff] }
 0x32a   :  { %8879 = vst [vmem:[#allocation118_spill] sm:$0xff] %v5877_v19  ;;  %1613 = vmatpush.msra.mxu1 %v5892_v45  ;;  %v5895_v19 = vld [vmem:[#allocation16 + $0x358] sm:$0xff] }
 0x32b   :  { %8880 = vst [vmem:[#allocation121_spill] sm:$0xff] %v5880_v57  ;;  %1653 = vmatpush.msrb.mxu3 %v5895_v19  ;;  %v5898_v57 = vld [vmem:[#allocation16 + $0xa0] sm:$0xff] }
 0x32c   :  { %8881 = vst [vmem:[#allocation122_spill] sm:$0xff] %v5883_v43  ;;  %1518 = vmatpush.msrb.mxu0 %v5898_v57  ;;  %v5901_v43 = vld [vmem:[#allocation16 + $0xa8] sm:$0xff] }
 0x32d   :  { %8882 = vst [vmem:[#allocation125_spill] sm:$0xff] %v5886_v47  ;;  %1558 = vmatpush.msra.mxu2 %v5901_v43  ;;  %v5904_v47 = vld [vmem:[#allocation16 + $0x330] sm:$0xff] }
 0x32e   :  { %8883 = vst [vmem:[#allocation126_spill] sm:$0xff] %v5889_v23  ;;  %1614 = vmatpush.msra.mxu1 %v5904_v47  ;;  %v5907_v23 = vld [vmem:[#allocation16 + $0x338] sm:$0xff] }
 0x32f   :  { %8884 = vst [vmem:[#allocation127_spill] sm:$0xff] %v5892_v45  ;;  %1654 = vmatpush.msrb.mxu3 %v5907_v23  ;;  %v5910_v45 = vld [vmem:[#allocation16 + $0x80] sm:$0xff] }
 0x330   :  { %8885 = vst [vmem:[#allocation128_spill] sm:$0xff] %v5895_v19  ;;  %1519 = vmatpush.msrb.mxu0 %v5910_v45  ;;  %v5913_v19 = vld [vmem:[#allocation16 + $0x88] sm:$0xff] }
 0x331   :  { %8886 = vst [vmem:[#allocation132_spill] sm:$0xff] %v5898_v57  ;;  %1559 = vmatpush.msra.mxu2 %v5913_v19  ;;  %v5916_v57 = vld [vmem:[#allocation16 + $0x310] sm:$0xff] }
 0x332   :  { %8887 = vst [vmem:[#allocation133_spill] sm:$0xff] %v5901_v43  ;;  %1615 = vmatpush.msra.mxu1 %v5916_v57  ;;  %v5919_v43 = vld [vmem:[#allocation16 + $0x318] sm:$0xff] }
 0x333   :  { %8888 = vst [vmem:[#allocation138_spill] sm:$0xff] %v5904_v47  ;;  %1655 = vmatpush.msrb.mxu3 %v5919_v43  ;;  %v5922_v47 = vld [vmem:[#allocation16 + $0x60] sm:$0xff] }
 0x334   :  { %8889 = vst [vmem:[#allocation141_spill] sm:$0xff] %v5907_v23  ;;  %1520 = vmatpush.msrb.mxu0 %v5922_v47  ;;  %v5925_v23 = vld [vmem:[#allocation16 + $0x68] sm:$0xff] }
 0x335   :  { %8890 = vst [vmem:[#allocation142_spill] sm:$0xff] %v5910_v45  ;;  %1560 = vmatpush.msra.mxu2 %v5925_v23  ;;  %v5928_v45 = vld [vmem:[#allocation16 + $0x2f0] sm:$0xff] }
 0x336   :  { %8891 = vst [vmem:[#allocation143_spill] sm:$0xff] %v5913_v19  ;;  %1616 = vmatpush.msra.mxu1 %v5928_v45  ;;  %v5931_v19 = vld [vmem:[#allocation16 + $0x2f8] sm:$0xff] }
 0x337   :  { %8892 = vst [vmem:[#allocation144_spill] sm:$0xff] %v5916_v57  ;;  %1656 = vmatpush.msrb.mxu3 %v5931_v19  ;;  %v5934_v57 = vld [vmem:[#allocation16 + $0x40] sm:$0xff] }
 0x338   :  { %8893 = vst [vmem:[#allocation80_spill] sm:$0xff] %v5919_v43  ;;  %1521 = vmatpush.msrb.mxu0 %v5934_v57  ;;  %v5937_v43 = vld [vmem:[#allocation16 + $0x48] sm:$0xff] }
 0x339   :  { %8894 = vst [vmem:[#allocation79_spill] sm:$0xff] %v5922_v47  ;;  %1561 = vmatpush.msra.mxu2 %v5937_v43  ;;  %v5940_v47 = vld [vmem:[#allocation16 + $0x2d0] sm:$0xff] }
 0x33a   :  { %8895 = vst [vmem:[#allocation145_spill] sm:$0xff] %v5925_v23  ;;  %1617 = vmatpush.msra.mxu1 %v5940_v47  ;;  %v5943_v23 = vld [vmem:[#allocation16 + $0x2d8] sm:$0xff] }
 0x33b   :  { %8896 = vst [vmem:[#allocation146_spill] sm:$0xff] %v5928_v45  ;;  %1657 = vmatpush.msrb.mxu3 %v5943_v23  ;;  %v5946_v45 = vld [vmem:[#allocation16 + $0x20] sm:$0xff] }
 0x33c   :  { %8897 = vst [vmem:[#allocation147_spill] sm:$0xff] %v5931_v19  ;;  %1522 = vmatpush.msrb.mxu0 %v5946_v45  ;;  %v5949_v19 = vld [vmem:[#allocation16 + $0x28] sm:$0xff] }
 0x33d   :  { %8898 = vst [vmem:[#allocation148_spill] sm:$0xff] %v5934_v57  ;;  %1562 = vmatpush.msra.mxu2 %v5949_v19  ;;  %v5952_v57 = vld [vmem:[#allocation16 + $0x2b0] sm:$0xff] }
 0x33e   :  { %8899 = vst [vmem:[#allocation149_spill] sm:$0xff] %v5937_v43  ;;  %1618 = vmatpush.msra.mxu1 %v5952_v57  ;;  %v5955_v43 = vld [vmem:[#allocation16 + $0x2b8] sm:$0xff] }
 0x33f   :  { %8900 = vst [vmem:[#allocation150_spill] sm:$0xff] %v5940_v47  ;;  %1658 = vmatpush.msrb.mxu3 %v5955_v43  ;;  %v5958_v47 = vld [vmem:[#allocation16] sm:$0xff] }
 0x340   :  { %8901 = vst [vmem:[#allocation151_spill] sm:$0xff] %v5943_v23  ;;  %1523 = vmatpush.msrb.mxu0 %v5958_v47  ;;  %v5961_v23 = vld [vmem:[#allocation16 + $0x8] sm:$0xff] }
 0x341   :  { %8902 = vst [vmem:[#allocation152_spill] sm:$0xff] %v5946_v45  ;;  %1563 = vmatpush.msra.mxu2 %v5961_v23  ;;  %v5964_v45 = vld [vmem:[#allocation16 + $0x290] sm:$0xff] }
 0x342   :  { %8903 = vst [vmem:[#allocation153_spill] sm:$0xff] %v5949_v19  ;;  %1619 = vmatpush.msra.mxu1 %v5964_v45  ;;  %v5967_v19 = vld [vmem:[#allocation16 + $0x298] sm:$0xff]  ;;  %v1260_v16 = vpop.f32.mrf.mxu1 }
 0x343   :  { %8904 = vst [vmem:[#allocation154_spill] sm:$0xff] %v5952_v57  ;;  %1659 = vmatpush.msrb.mxu3 %v5967_v19  ;;  %v5970_v57 = vld [vmem:[#allocation16 + $0x1f0] sm:$0xff] }
 0x344   :  { %8905 = vst [vmem:[#allocation155_spill] sm:$0xff] %v5955_v43  ;;  %1588 = vmatpush.msra.mxu0 %v5970_v57  ;;  %v5973_v43 = vld [vmem:[#allocation16 + $0x1f8] sm:$0xff] }
 0x345   :  { %8906 = vst [vmem:[#allocation156_spill] sm:$0xff] %v5958_v47  ;;  %1628 = vmatpush.msrb.mxu2 %v5973_v43  ;;  %v5976_v47 = vld [vmem:[#allocation16 + $0x270] sm:$0xff] }
 0x346   :  { %8907 = vst [vmem:[#allocation157_spill] sm:$0xff] %v5961_v23  ;;  %1620 = vmatpush.msra.mxu1 %v5976_v47  ;;  %v5979_v23 = vld [vmem:[#allocation16 + $0x278] sm:$0xff] }
 0x347   :  { %8908 = vst [vmem:[#allocation158_spill] sm:$0xff] %v5964_v45  ;;  %1660 = vmatpush.msrb.mxu3 %v5979_v23  ;;  %v5982_v45 = vld [vmem:[#allocation16 + $0x1d0] sm:$0xff] }
 0x348   :  { %8909 = vst [vmem:[#allocation159_spill] sm:$0xff] %v5967_v19  ;;  %1589 = vmatpush.msra.mxu0 %v5982_v45  ;;  %v5985_v19 = vld [vmem:[#allocation16 + $0x1d8] sm:$0xff] }
 0x349   :  { %8910 = vst [vmem:[#allocation160_spill] sm:$0xff] %v5970_v57  ;;  %1629 = vmatpush.msrb.mxu2 %v5985_v19  ;;  %v5988_v57 = vld [vmem:[#allocation16 + $0x250] sm:$0xff] }
 0x34a   :  { %8911 = vst [vmem:[#allocation161_spill] sm:$0xff] %v5973_v43  ;;  %1621 = vmatpush.msra.mxu1 %v5988_v57  ;;  %v5991_v43 = vld [vmem:[#allocation16 + $0x258] sm:$0xff] }
 0x34b   :  { %8912 = vst [vmem:[#allocation162_spill] sm:$0xff] %v5976_v47  ;;  %1661 = vmatpush.msrb.mxu3 %v5991_v43  ;;  %v5994_v47 = vld [vmem:[#allocation16 + $0x1b0] sm:$0xff] }
 0x34c   :  { %8913 = vst [vmem:[#allocation163_spill] sm:$0xff] %v5979_v23  ;;  %1590 = vmatpush.msra.mxu0 %v5994_v47  ;;  %v5997_v23 = vld [vmem:[#allocation16 + $0x1b8] sm:$0xff] }
 0x34d   :  { %8914 = vst [vmem:[#allocation164_spill] sm:$0xff] %v5982_v45  ;;  %1630 = vmatpush.msrb.mxu2 %v5997_v23  ;;  %v6000_v45 = vld [vmem:[#allocation16 + $0x230] sm:$0xff] }
 0x34e   :  { %8915 = vst [vmem:[#allocation165_spill] sm:$0xff] %v5985_v19  ;;  %1622 = vmatpush.msra.mxu1 %v6000_v45  ;;  %v6003_v19 = vld [vmem:[#allocation16 + $0x238] sm:$0xff] }
 0x34f   :  { %8916 = vst [vmem:[#allocation166_spill] sm:$0xff] %v5988_v57  ;;  %1662 = vmatpush.msrb.mxu3 %v6003_v19  ;;  %v6006_v57 = vld [vmem:[#allocation16 + $0x190] sm:$0xff] }
 0x350   :  { %8917 = vst [vmem:[#allocation167_spill] sm:$0xff] %v5991_v43  ;;  %1591 = vmatpush.msra.mxu0 %v6006_v57  ;;  %v6009_v43 = vld [vmem:[#allocation16 + $0x198] sm:$0xff] }
 0x351   :  { %8918 = vst [vmem:[#allocation168_spill] sm:$0xff] %v5994_v47  ;;  %1631 = vmatpush.msrb.mxu2 %v6009_v43  ;;  %v6012_v47 = vld [vmem:[#allocation16 + $0x210] sm:$0xff] }
 0x352   :  { %8919 = vst [vmem:[#allocation169_spill] sm:$0xff] %v5997_v23  ;;  %1623 = vmatpush.msra.mxu1 %v6012_v47  ;;  %v6015_v23 = vld [vmem:[#allocation16 + $0x218] sm:$0xff] }
 0x353   :  { %8920 = vst [vmem:[#allocation170_spill] sm:$0xff] %v6000_v45  ;;  %1663 = vmatpush.msrb.mxu3 %v6015_v23  ;;  %v6018_v45 = vld [vmem:[#allocation16 + $0x170] sm:$0xff] }
 0x354   :  { %8921 = vst [vmem:[#allocation171_spill] sm:$0xff] %v6003_v19  ;;  %1592 = vmatpush.msra.mxu0 %v6018_v45  ;;  %v6021_v19 = vld [vmem:[#allocation16 + $0x178] sm:$0xff] }
 0x355   :  { %8922 = vst [vmem:[#allocation172_spill] sm:$0xff] %v6006_v57  ;;  %1632 = vmatpush.msrb.mxu2 %v6021_v19  ;;  %v6024_v57 = vld [vmem:[#allocation16 + $0x150] sm:$0xff] }
 0x356   :  { %8923 = vst [vmem:[#allocation173_spill] sm:$0xff] %v6009_v43  ;;  %1593 = vmatpush.msra.mxu0 %v6024_v57  ;;  %v6027_v43 = vld [vmem:[#allocation16 + $0x158] sm:$0xff] }
 0x357   :  { %8924 = vst [vmem:[#allocation174_spill] sm:$0xff] %v6012_v47  ;;  %1633 = vmatpush.msrb.mxu2 %v6027_v43  ;;  %v6030_v47 = vld [vmem:[#allocation16 + $0x130] sm:$0xff] }
 0x358   :  { %8925 = vst [vmem:[#allocation175_spill] sm:$0xff] %v6015_v23  ;;  %1594 = vmatpush.msra.mxu0 %v6030_v47  ;;  %v6033_v23 = vld [vmem:[#allocation16 + $0x138] sm:$0xff] }
 0x359   :  { %8926 = vst [vmem:[#allocation176_spill] sm:$0xff] %v6018_v45  ;;  %1634 = vmatpush.msrb.mxu2 %v6033_v23  ;;  %v6036_v45 = vld [vmem:[#allocation16 + $0x110] sm:$0xff] }
 0x35a   :  { %8927 = vst [vmem:[#allocation177_spill] sm:$0xff] %v6021_v19  ;;  %1595 = vmatpush.msra.mxu0 %v6036_v45  ;;  %v6039_v19 = vld [vmem:[#allocation16 + $0x118] sm:$0xff] }
 0x35b   :  { %8928 = vst [vmem:[#allocation178_spill] sm:$0xff] %v6024_v57  ;;  %1635 = vmatpush.msrb.mxu2 %v6039_v19  ;;  %v6042_v57 = vld [vmem:[#allocation16 + $0xf0] sm:$0xff] }
 0x35c   :  { %8929 = vst [vmem:[#allocation179_spill] sm:$0xff] %v6027_v43  ;;  %1596 = vmatpush.msra.mxu0 %v6042_v57  ;;  %v6045_v43 = vld [vmem:[#allocation16 + $0xf8] sm:$0xff] }
 0x35d   :  { %8930 = vst [vmem:[#allocation180_spill] sm:$0xff] %v6030_v47  ;;  %1636 = vmatpush.msrb.mxu2 %v6045_v43  ;;  %v6048_v47 = vld [vmem:[#allocation16 + $0xd0] sm:$0xff] }
 0x35e   :  { %8931 = vst [vmem:[#allocation181_spill] sm:$0xff] %v6033_v23  ;;  %1597 = vmatpush.msra.mxu0 %v6048_v47  ;;  %v6051_v23 = vld [vmem:[#allocation16 + $0xd8] sm:$0xff] }
 0x35f   :  { %8932 = vst [vmem:[#allocation182_spill] sm:$0xff] %v6036_v45  ;;  %1637 = vmatpush.msrb.mxu2 %v6051_v23  ;;  %v6054_v45 = vld [vmem:[#allocation16 + $0xb0] sm:$0xff] }
 0x360   :  { %8933 = vst [vmem:[#allocation183_spill] sm:$0xff] %v6039_v19  ;;  %1598 = vmatpush.msra.mxu0 %v6054_v45  ;;  %v6057_v19 = vld [vmem:[#allocation16 + $0xb8] sm:$0xff] }
 0x361   :  { %8934 = vst [vmem:[#allocation184_spill] sm:$0xff] %v6042_v57  ;;  %1638 = vmatpush.msrb.mxu2 %v6057_v19  ;;  %v6060_v57 = vld [vmem:[#allocation16 + $0x90] sm:$0xff]  ;;  %v1280_v38 = vpop.f32.mrf.mxu2 }
 0x362   :  { %8935 = vst [vmem:[#allocation185_spill] sm:$0xff] %v6045_v43  ;;  %1599 = vmatpush.msra.mxu0 %v6060_v57  ;;  %v6063_v43 = vld [vmem:[#allocation16 + $0x98] sm:$0xff]  ;;  %v1281_v22 = vadd.f32 %v1280_v38, %v5506_v8 }
 0x363   :  { %8936 = vst [vmem:[#allocation186_spill] sm:$0xff] %v6048_v47  ;;  %1639 = vmatpush.msrb.mxu2 %v6063_v43  ;;  %v6066_v47 = vld [vmem:[#allocation16 + $0x70] sm:$0xff] }
 0x364   :  { %8937 = vst [vmem:[#allocation187_spill] sm:$0xff] %v6051_v23  ;;  %1600 = vmatpush.msra.mxu0 %v6066_v47  ;;  %v6069_v23 = vld [vmem:[#allocation16 + $0x78] sm:$0xff] }
 0x365   :  { %8938 = vst [vmem:[#allocation188_spill] sm:$0xff] %v6054_v45  ;;  %1640 = vmatpush.msrb.mxu2 %v6069_v23  ;;  %v6072_v45 = vld [vmem:[#allocation16 + $0x50] sm:$0xff] }
 0x366   :  { %8939 = vst [vmem:[#allocation189_spill] sm:$0xff] %v6057_v19  ;;  %1601 = vmatpush.msra.mxu0 %v6072_v45  ;;  %v6075_v19 = vld [vmem:[#allocation16 + $0x58] sm:$0xff] }
 0x367   :  { %8940 = vst [vmem:[#allocation190_spill] sm:$0xff] %v6060_v57  ;;  %1641 = vmatpush.msrb.mxu2 %v6075_v19  ;;  %v6078_v57 = vld [vmem:[#allocation16 + $0x30] sm:$0xff] }
 0x368   :  { %8941 = vst [vmem:[#allocation191_spill] sm:$0xff] %v6063_v43  ;;  %1602 = vmatpush.msra.mxu0 %v6078_v57  ;;  %v6081_v43 = vld [vmem:[#allocation16 + $0x38] sm:$0xff] }
 0x369   :  { %8942 = vst [vmem:[#allocation192_spill] sm:$0xff] %v6066_v47  ;;  %1642 = vmatpush.msrb.mxu2 %v6081_v43  ;;  %v6084_v47 = vld [vmem:[#allocation16 + $0x10] sm:$0xff] }
 0x36a   :  { %8943 = vst [vmem:[#allocation193_spill] sm:$0xff] %v6069_v23  ;;  %1603 = vmatpush.msra.mxu0 %v6084_v47  ;;  %v6087_v23 = vld [vmem:[#allocation16 + $0x18] sm:$0xff]  ;;  %v1360_v53 = vpop.f32.mrf.mxu2 }
 0x36b   :  { %8944 = vst [vmem:[#allocation194_spill] sm:$0xff] %v6072_v45  ;;  %1643 = vmatpush.msrb.mxu2 %v6087_v23  ;;  %v1240_v45 = vpop.f32.mrf.mxu0 }
 0x36c   :  { %8945 = vst [vmem:[#allocation195_spill] sm:$0xff] %v6075_v19  ;;  %v1241_v19 = vadd.f32 %v1240_v45, %v5503_v56  ;;  %v1361_v45 = vadd.f32 %v1360_v53, %v5512_v26 }
 0x36d   :  { %8946 = vst [vmem:[#allocation196_spill] sm:$0xff] %v6078_v57  ;;  %v1300_v57 = vpop.f32.mrf.mxu3 }
 0x36e   :  { %8947 = vst [vmem:[#allocation197_spill] sm:$0xff] %v6081_v43  ;;  %v1261_v18 = vadd.f32 %v1260_v16, %v1241_v19  ;;  %v1301_v43 = vadd.f32 %v1300_v57, %v1281_v22 }
 0x36f   :  { %8948 = vst [vmem:[#allocation198_spill] sm:$0xff] %v6084_v47  ;;  %v1340_v47 = vpop.f32.mrf.mxu1 }
 0x370   :  { %8949 = vst [vmem:[#allocation199_spill] sm:$0xff] %v6087_v23  ;;  %v1383_v7 = vmul.f32 0.5, %v1261_v18  ;;  %v1387_v3 = vmul.f32 0.5, %v1301_v43 }
 0x372   :  { %3357 = vtanh.f32 %v1383_v7 }
 0x373   :  { %v1320_v2 = vpop.f32.mrf.mxu0  ;;  %3359 = vtanh.f32 %v1387_v3 }
 0x374   :  { %v1321_v24 = vadd.f32 %v1320_v2, %v5508_v10  ;;  %v8950_v2 = vld [vmem:[#allocation98_spill] sm:$0xff] }
 0x375   :  { %v1380_v16 = vpop.f32.mrf.mxu3 }
 0x376   :  { %v1341_v0 = vadd.f32 %v1340_v47, %v1321_v24  ;;  %v1381_v19 = vadd.f32 %v1380_v16, %v1361_v45  ;;  %v493_v24 = vadd.f32 %v8950_v2, %v5225_v6  ;;  %v8951_v45 = vld [vmem:[#allocation97_spill] sm:$0xff] }
 0x377   :  { %v1443_v8 = vpop.f32.mrf.mxu1  ;;  %v452_v16 = vadd.f32 %v8951_v45, %v5223_v63  ;;  %v6206_v45 = vld [vmem:[#allocation15 + $0xa0] sm:$0xff] }
 0x378   :  { %v3358_v23 = vpop.eup %3357  ;;  %3361 = vtanh.f32 %v1341_v0  ;;  %v1392_v38 = vmul.f32 0.5, %v1381_v19  ;;  %v1487_v47 = vadd.f32 %v1443_v8, %v493_v24  ;;  %v575_v8 = vadd.f32 %v5449_v27, %v5261_v20 }
 0x379   :  { %v1385_v18 = vadd.f32 1.0, %v3358_v23  ;;  %v3360_v56 = vpop.eup %3359  ;;  %v534_v24 = vadd.f32 %v5447_v13, %v5259_v14 }
 0x37a   :  { %v1389_v41 = vadd.f32 1.0, %v3360_v56  ;;  %3363 = vtanh.f32 %v1392_v38  ;;  %v1494_v23 = vmul.f32 0.5, %v1487_v47 }
 0x37b   :  { %v1386_v22 = vmul.f32 0.5, %v1385_v18 }
 0x37c   :  { %v1390_v57 = vmul.f32 0.5, %v1389_v41  ;;  %v1423_v18 = vpop.f32.mrf.mxu0 }
 0x37d   :  { %v1486_v38 = vadd.f32 %v1423_v18, %v452_v16  ;;  %v8970_v16 = vld [vmem:[#allocation42_spill] sm:$0xff]  ;;  %v8972_v18 = vld [vmem:[#allocation87_spill] sm:$0xff] }
 0x37e   :  { %v3362_v7 = vpop.eup %3361  ;;  %v1396_v3 = vmul.f32 %v1390_v57, %v5517_v51  ;;  %v1483_v51 = vpop.f32.mrf.mxu3 }
 0x37f   :  { %v1397_v0 = vmul.f32 %v3362_v7, %v1386_v22  ;;  %v1490_v7 = vmul.f32 0.5, %v1486_v38  ;;  %v1489_v22 = vadd.f32 %v1483_v51, %v575_v8  ;;  %v8973_v38 = vld [vmem:[#allocation43_spill] sm:$0xff]  ;;  %v8974_v51 = vld [vmem:[#allocation88_spill] sm:$0xff] }
 0x380   :  { %v3364_v53 = vpop.eup %3363  ;;  %v8975_v8 = vld [vmem:[#allocation91_spill] sm:$0xff] }
 0x381   :  { %v6097_v43 = vadd.f32 %v1397_v0, %v1396_v3  ;;  %v1394_v56 = vadd.f32 1.0, %v3364_v53  ;;  %v1499_v47 = vmul.f32 0.5, %v1489_v22  ;;  %v8967_v53 = vld [vmem:[#allocation41_spill] sm:$0xff]  ;;  %v8976_v22 = vld [vmem:[#allocation44_spill] sm:$0xff] }
 0x383   :  { %3365 = vtanh.f32 %v6097_v43  ;;  %v1395_v41 = vmul.f32 0.5, %v1394_v56  ;;  %v8969_v56 = vld [vmem:[#allocation83_spill] sm:$0xff] }
 0x384   :  { %3367 = vtanh.f32 %v1494_v23  ;;  %v8968_v23 = vld [vmem:[#allocation78_spill] sm:$0xff] }
 0x385   :  { %3369 = vtanh.f32 %v1490_v7  ;;  %v1463_v3 = vpop.f32.mrf.mxu2  ;;  %v6218_v7 = vld [vmem:[#allocation15 + $0x60] sm:$0xff] }
 0x386   :  { %v1488_v27 = vadd.f32 %v1463_v3, %v534_v24  ;;  %v8978_v24 = vld [vmem:[#allocation95_spill] sm:$0xff]  ;;  %v6224_v3 = vld [vmem:[#allocation15 + $0x40] sm:$0xff] }
 0x388   :  { %3371 = vtanh.f32 %v1488_v27  ;;  %v8979_v27 = vld [vmem:[#allocation45_spill] sm:$0xff] }
 0x389   :  { %v3366_v19 = vpop.eup %3365  ;;  %3373 = vtanh.f32 %v1499_v47  ;;  %v8981_v47 = vld [vmem:[#allocation101_spill] sm:$0xff] }
 0x38a   :  { %v6102_v2 = vmul.f32 %v3366_v19, %v1395_v41  ;;  %v3368_v57 = vpop.eup %3367  ;;  %v8971_v41 = vld [vmem:[#allocation84_spill] sm:$0xff]  ;;  %v6212_v19 = vld [vmem:[#allocation15 + $0x80] sm:$0xff] }
 0x38b   :  { %v1496_v0 = vadd.f32 1.0, %v3368_v57  ;;  %v8977_v57 = vld [vmem:[#allocation92_spill] sm:$0xff] }
 0x38c   :  { %8952 = vst [vmem:[#allocation98_spill] sm:$0xff] %v6102_v2  ;;  %1544 = vmatmul.f32.vlgmr.msrb.gmra.mxu1 %v6102_v2  ;;  %1584 = vmatmul.f32.vlgmr.msra.gmra.mxu3 %v6102_v2 }
 0x38d   :  { %1711 = vmatpush.msrb.mxu1 %v5530_v58  ;;  %1751 = vmatpush.msra.mxu3 %v5533_v39  ;;  %v3370_v58 = vpop.eup %3369  ;;  %v1497_v13 = vmul.f32 0.5, %v1496_v0  ;;  %v8980_v0 = vld [vmem:[#allocation96_spill] sm:$0xff] }
 0x38e   :  { %v1492_v39 = vadd.f32 1.0, %v3370_v58  ;;  %v6230_v58 = vld [vmem:[#allocation15 + $0x20] sm:$0xff] }
 0x38f   :  { %1712 = vmatpush.msrb.mxu1 %v5536_v54  ;;  %1752 = vmatpush.msra.mxu3 %v5539_v1  ;;  %v3372_v1 = vpop.eup %3371 }
 0x390   :  { %v1493_v54 = vmul.f32 0.5, %v1492_v39  ;;  %v8982_v39 = vld [vmem:[#allocation46_spill] sm:$0xff] }
 0x391   :  { %1713 = vmatpush.msrb.mxu1 %v5542_v15  ;;  %1753 = vmatpush.msra.mxu3 %v5545_v34  ;;  %v1503_v15 = vmul.f32 %v1497_v13, %v5575_v61  ;;  %v8956_v61 = vld [vmem:[#allocation65_spill] sm:$0xff]  ;;  %v8983_v13 = vld [vmem:[#allocation102_spill] sm:$0xff] }
 0x392   :  { %v1504_v34 = vmul.f32 %v3372_v1, %v1493_v54  ;;  %v8984_v54 = vld [vmem:[#allocation105_spill] sm:$0xff]  ;;  %v6236_v1 = vld [vmem:[#allocation15] sm:$0xff] }
 0x393   :  { %1714 = vmatpush.msrb.mxu1 %v5548_v62  ;;  %1754 = vmatpush.msra.mxu3 %v5551_v11  ;;  %v3374_v62 = vpop.eup %3373 }
 0x394   :  { %1624 = vmatmul.f32.vlgmr.msra.gmra.mxu1 %v6102_v2  ;;  %1664 = vmatmul.f32.vlgmr.msrb.gmra.mxu3 %v6102_v2  ;;  %v6127_v11 = vadd.f32 %v1504_v34, %v1503_v15  ;;  %v8985_v15 = vld [vmem:[#allocation47_spill] sm:$0xff]  ;;  %v8986_v34 = vld [vmem:[#allocation106_spill] sm:$0xff]  ;;  %v6514_v2 = vld [vmem:[#allocation15 + $0x130] sm:$0xff] }
 0x395   :  { %1715 = vmatpush.msrb.mxu1 %v5556_v55  ;;  %1755 = vmatpush.msra.mxu3 %v5559_v9  ;;  %v1501_v55 = vadd.f32 1.0, %v3374_v62  ;;  %v8987_v62 = vld [vmem:[#allocation109_spill] sm:$0xff] }
 0x396   :  { %3375 = vtanh.f32 %v6127_v11 }
 0x397   :  { %1716 = vmatpush.msrb.mxu1 %v5562_v42  ;;  %1756 = vmatpush.msra.mxu3 %v5565_v36  ;;  %v1502_v9 = vmul.f32 0.5, %v1501_v55  ;;  %v8988_v55 = vld [vmem:[#allocation48_spill] sm:$0xff] }
 0x399   :  { %1717 = vmatpush.msrb.mxu1 %v5569_v21  ;;  %1757 = vmatpush.msra.mxu3 %v5572_v37  ;;  %v6146_v21 = vld [vmem:[#allocation15 + $0x1e0] sm:$0xff] }
 0x39a   :  { %v8953_v37 = vld [vmem:[#allocation62_spill] sm:$0xff] }
 0x39b   :  { %1718 = vmatpush.msrb.mxu1 %v5577_v4  ;;  %1758 = vmatpush.msra.mxu3 %v5580_v40  ;;  %v8957_v4 = vld [vmem:[#allocation37_spill] sm:$0xff]  ;;  %v6182_v40 = vld [vmem:[#allocation15 + $0x120] sm:$0xff] }
 0x39c   :  { %v3376_v42 = vpop.eup %3375  ;;  %9105 = vst [vmem:[#allocation37_spill] sm:$0xff] %v6514_v2 }
 0x39d   :  { %1719 = vmatpush.msrb.mxu1 %v5584_v35  ;;  %1759 = vmatpush.msra.mxu3 %v5587_v60  ;;  %v6140_v36 = vmul.f32 %v3376_v42, %v1502_v9  ;;  %v8958_v35 = vld [vmem:[#allocation38_spill] sm:$0xff]  ;;  %v8990_v42 = vld [vmem:[#allocation113_spill] sm:$0xff] }
 0x39e   :  { %v8959_v60 = vld [vmem:[#allocation66_spill] sm:$0xff] }
 0x39f   :  { %1720 = vmatpush.msrb.mxu1 %v5590_v12  ;;  %1760 = vmatpush.msra.mxu3 %v5593_v31  ;;  %v8960_v12 = vld [vmem:[#allocation69_spill] sm:$0xff]  ;;  %v6188_v31 = vld [vmem:[#allocation15 + $0x100] sm:$0xff] }
 0x3a0   :  { %1524 = vmatmul.f32.vlgmr.msrb.gmra.mxu0 %v6140_v36  ;;  %1564 = vmatmul.f32.vlgmr.msra.gmra.mxu2 %v6140_v36  ;;  %v8989_v9 = vld [vmem:[#allocation110_spill] sm:$0xff] }
 0x3a1   :  { %1721 = vmatpush.msrb.mxu1 %v5596_v49  ;;  %1761 = vmatpush.msra.mxu3 %v5599_v46  ;;  %v8961_v49 = vld [vmem:[#allocation39_spill] sm:$0xff]  ;;  %v8962_v46 = vld [vmem:[#allocation70_spill] sm:$0xff] }
 0x3a2   :  { %1691 = vmatpush.msrb.mxu0 %v6146_v21  ;;  %1731 = vmatpush.msra.mxu2 %v5613_v5  ;;  %v8963_v5 = vld [vmem:[#allocation73_spill] sm:$0xff] }
 0x3a3   :  { %1722 = vmatpush.msrb.mxu1 %v5604_v52  ;;  %1762 = vmatpush.msra.mxu3 %v5607_v30  ;;  %v6152_v52 = vld [vmem:[#allocation15 + $0x1c0] sm:$0xff] }
 0x3a4   :  { %1692 = vmatpush.msrb.mxu0 %v6152_v52  ;;  %1732 = vmatpush.msra.mxu2 %v5623_v50  ;;  %v6158_v30 = vld [vmem:[#allocation15 + $0x1a0] sm:$0xff]  ;;  %v8955_v50 = vld [vmem:[#allocation63_spill] sm:$0xff] }
 0x3a5   :  { %1723 = vmatpush.msrb.mxu1 %v5616_v32  ;;  %1763 = vmatpush.msra.mxu3 %v5619_v44  ;;  %v6194_v32 = vld [vmem:[#allocation15 + $0xe0] sm:$0xff]  ;;  %v8964_v44 = vld [vmem:[#allocation40_spill] sm:$0xff] }
 0x3a6   :  { %1693 = vmatpush.msrb.mxu0 %v6158_v30  ;;  %1733 = vmatpush.msra.mxu2 %v5633_v48  ;;  %v8954_v48 = vld [vmem:[#allocation36_spill] sm:$0xff] }
 0x3a7   :  { %1724 = vmatpush.msrb.mxu1 %v5626_v28  ;;  %1764 = vmatpush.msra.mxu3 %v5629_v17  ;;  %v6164_v28 = vld [vmem:[#allocation15 + $0x180] sm:$0xff] }
 0x3a8   :  { %1694 = vmatpush.msrb.mxu0 %v6164_v28  ;;  %1734 = vmatpush.msra.mxu2 %v8953_v37  ;;  %v8965_v17 = vld [vmem:[#allocation74_spill] sm:$0xff]  ;;  %v8991_v37 = vld [vmem:[#allocation49_spill] sm:$0xff] }
 0x3a9   :  { %1725 = vmatpush.msrb.mxu1 %v5636_v25  ;;  %1765 = vmatpush.msra.mxu3 %v5639_v33  ;;  %v6170_v25 = vld [vmem:[#allocation15 + $0x160] sm:$0xff]  ;;  %v8966_v33 = vld [vmem:[#allocation77_spill] sm:$0xff] }
 0x3aa   :  { %1604 = vmatmul.f32.vlgmr.msra.gmra.mxu0 %v6140_v36  ;;  %1644 = vmatmul.f32.vlgmr.msrb.gmra.mxu2 %v6140_v36 }
 0x3ab   :  { %1726 = vmatpush.msrb.mxu1 %v5646_v29  ;;  %1766 = vmatpush.msra.mxu3 %v5649_v59  ;;  %v6176_v29 = vld [vmem:[#allocation15 + $0x140] sm:$0xff] }
 0x3ac   :  { %1695 = vmatpush.msrb.mxu0 %v6170_v25  ;;  %1727 = vmatmul.f32.vlgmr.msrb.gmra.mxu1 %v6140_v36  ;;  %v6200_v59 = vld [vmem:[#allocation15 + $0xc0] sm:$0xff] }
 0x3ad   :  { %1735 = vmatpush.msra.mxu2 %v8954_v48  ;;  %1767 = vmatmul.f32.vlgmr.msra.gmra.mxu3 %v6140_v36  ;;  %v8992_v48 = vld [vmem:[#allocation61_spill] sm:$0xff] }
 0x3ae   :  { %1696 = vmatpush.msrb.mxu0 %v6176_v29  ;;  %1813 = vmatpush.msra.mxu1 %v8955_v50  ;;  %v8993_v50 = vld [vmem:[#allocation64_spill] sm:$0xff] }
 0x3af   :  { %1736 = vmatpush.msra.mxu2 %v8956_v61  ;;  %1853 = vmatpush.msrb.mxu3 %v8957_v4  ;;  %v8994_v61 = vld [vmem:[#allocation114_spill] sm:$0xff]  ;;  %v8995_v4 = vld [vmem:[#allocation67_spill] sm:$0xff] }
 0x3b0   :  { %1697 = vmatpush.msrb.mxu0 %v6182_v40  ;;  %1814 = vmatpush.msra.mxu1 %v8958_v35  ;;  %v8996_v35 = vld [vmem:[#allocation119_spill] sm:$0xff] }
 0x3b1   :  { %1737 = vmatpush.msra.mxu2 %v8959_v60  ;;  %1854 = vmatpush.msrb.mxu3 %v8960_v12  ;;  %v8998_v60 = vld [vmem:[#allocation120_spill] sm:$0xff]  ;;  %v8999_v12 = vld [vmem:[#allocation71_spill] sm:$0xff] }
 0x3b2   :  { %1698 = vmatpush.msrb.mxu0 %v6188_v31  ;;  %1815 = vmatpush.msra.mxu1 %v8961_v49  ;;  %v9000_v49 = vld [vmem:[#allocation123_spill] sm:$0xff] }
 0x3b3   :  { %1738 = vmatpush.msra.mxu2 %v8962_v46  ;;  %1855 = vmatpush.msrb.mxu3 %v8963_v5  ;;  %v9001_v46 = vld [vmem:[#allocation72_spill] sm:$0xff] }
 0x3b4   :  { %1699 = vmatpush.msrb.mxu0 %v6194_v32  ;;  %1816 = vmatpush.msra.mxu1 %v8964_v44  ;;  %v9002_v5 = vld [vmem:[#allocation124_spill] sm:$0xff]  ;;  %v9003_v44 = vld [vmem:[#allocation75_spill] sm:$0xff] }
 0x3b5   :  { %1739 = vmatpush.msra.mxu2 %v8965_v17  ;;  %1856 = vmatpush.msrb.mxu3 %v8966_v33  ;;  %v9004_v17 = vld [vmem:[#allocation76_spill] sm:$0xff]  ;;  %v9005_v33 = vld [vmem:[#allocation81_spill] sm:$0xff] }
 0x3b6   :  { %1700 = vmatpush.msrb.mxu0 %v6200_v59  ;;  %1817 = vmatpush.msra.mxu1 %v8967_v53  ;;  %v9006_v53 = vld [vmem:[#allocation82_spill] sm:$0xff] }
 0x3b7   :  { %1740 = vmatpush.msra.mxu2 %v8968_v23  ;;  %1857 = vmatpush.msrb.mxu3 %v8969_v56  ;;  %v9007_v23 = vld [vmem:[#allocation129_spill] sm:$0xff] }
 0x3b8   :  { %1701 = vmatpush.msrb.mxu0 %v6206_v45  ;;  %1818 = vmatpush.msra.mxu1 %v8970_v16  ;;  %v9008_v56 = vld [vmem:[#allocation85_spill] sm:$0xff]  ;;  %v9009_v16 = vld [vmem:[#allocation86_spill] sm:$0xff] }
 0x3b9   :  { %1741 = vmatpush.msra.mxu2 %v8971_v41  ;;  %1858 = vmatpush.msrb.mxu3 %v8972_v18  ;;  %v9010_v41 = vld [vmem:[#allocation89_spill] sm:$0xff]  ;;  %v9011_v18 = vld [vmem:[#allocation90_spill] sm:$0xff] }
 0x3ba   :  { %1702 = vmatpush.msrb.mxu0 %v6212_v19  ;;  %1819 = vmatpush.msra.mxu1 %v8973_v38  ;;  %v9012_v38 = vld [vmem:[#allocation93_spill] sm:$0xff] }
 0x3bb   :  { %1742 = vmatpush.msra.mxu2 %v8974_v51  ;;  %1859 = vmatpush.msrb.mxu3 %v8975_v8  ;;  %v9013_v51 = vld [vmem:[#allocation94_spill] sm:$0xff]  ;;  %v9014_v8 = vld [vmem:[#allocation99_spill] sm:$0xff] }
 0x3bc   :  { %1703 = vmatpush.msrb.mxu0 %v6218_v7  ;;  %1820 = vmatpush.msra.mxu1 %v8976_v22  ;;  %v9015_v22 = vld [vmem:[#allocation100_spill] sm:$0xff] }
 0x3bd   :  { %1743 = vmatpush.msra.mxu2 %v8977_v57  ;;  %1860 = vmatpush.msrb.mxu3 %v8978_v24  ;;  %v9016_v57 = vld [vmem:[#allocation103_spill] sm:$0xff]  ;;  %v9017_v24 = vld [vmem:[#allocation104_spill] sm:$0xff] }
 0x3be   :  { %1704 = vmatpush.msrb.mxu0 %v6224_v3  ;;  %1821 = vmatpush.msra.mxu1 %v8979_v27  ;;  %v9018_v27 = vld [vmem:[#allocation107_spill] sm:$0xff] }
 0x3bf   :  { %1744 = vmatpush.msra.mxu2 %v8980_v0  ;;  %1861 = vmatpush.msrb.mxu3 %v8981_v47  ;;  %v9019_v0 = vld [vmem:[#allocation108_spill] sm:$0xff]  ;;  %v9020_v47 = vld [vmem:[#allocation111_spill] sm:$0xff] }
 0x3c0   :  { %1705 = vmatpush.msrb.mxu0 %v6230_v58  ;;  %1822 = vmatpush.msra.mxu1 %v8982_v39  ;;  %v9021_v39 = vld [vmem:[#allocation112_spill] sm:$0xff] }
 0x3c1   :  { %1745 = vmatpush.msra.mxu2 %v8983_v13  ;;  %1862 = vmatpush.msrb.mxu3 %v8984_v54  ;;  %v9022_v13 = vld [vmem:[#allocation117_spill] sm:$0xff]  ;;  %v9023_v54 = vld [vmem:[#allocation118_spill] sm:$0xff] }
 0x3c2   :  { %1706 = vmatpush.msrb.mxu0 %v6236_v1  ;;  %1823 = vmatpush.msra.mxu1 %v8985_v15  ;;  %v9024_v15 = vld [vmem:[#allocation121_spill] sm:$0xff] }
 0x3c3   :  { %1746 = vmatpush.msra.mxu2 %v8986_v34  ;;  %1707 = vmatmul.f32.vlgmr.msrb.gmra.mxu0 %v6140_v36  ;;  %v9025_v34 = vld [vmem:[#allocation122_spill] sm:$0xff] }
 0x3c4   :  { %1747 = vmatmul.f32.vlgmr.msra.gmra.mxu2 %v6140_v36  ;;  %1863 = vmatpush.msrb.mxu3 %v8987_v62  ;;  %v8997_v36 = vld [vmem:[#allocation68_spill] sm:$0xff]  ;;  %v9026_v62 = vld [vmem:[#allocation125_spill] sm:$0xff] }
 0x3c5   :  { %1824 = vmatpush.msra.mxu1 %v8988_v55  ;;  %1793 = vmatpush.msra.mxu0 %v8989_v9  ;;  %v9027_v55 = vld [vmem:[#allocation126_spill] sm:$0xff]  ;;  %v9028_v9 = vld [vmem:[#allocation127_spill] sm:$0xff] }
 0x3c6   :  { %1864 = vmatpush.msrb.mxu3 %v8990_v42  ;;  %1833 = vmatpush.msrb.mxu2 %v8991_v37  ;;  %v9029_v42 = vld [vmem:[#allocation128_spill] sm:$0xff] }
 0x3c7   :  { %1825 = vmatpush.msra.mxu1 %v8992_v48  ;;  %1794 = vmatpush.msra.mxu0 %v8993_v50  ;;  %v9030_v37 = vld [vmem:[#allocation132_spill] sm:$0xff]  ;;  %v9031_v48 = vld [vmem:[#allocation133_spill] sm:$0xff]  ;;  %v9032_v50 = vld [vmem:[#allocation138_spill] sm:$0xff] }
 0x3c8   :  { %1865 = vmatpush.msrb.mxu3 %v8994_v61  ;;  %1834 = vmatpush.msrb.mxu2 %v8995_v4  ;;  %v9033_v61 = vld [vmem:[#allocation141_spill] sm:$0xff]  ;;  %v9034_v4 = vld [vmem:[#allocation142_spill] sm:$0xff] }
 0x3c9   :  { %1826 = vmatpush.msra.mxu1 %v8996_v35  ;;  %1795 = vmatpush.msra.mxu0 %v8997_v36  ;;  %v9035_v35 = vld [vmem:[#allocation143_spill] sm:$0xff]  ;;  %v9036_v36 = vld [vmem:[#allocation144_spill] sm:$0xff] }
 0x3ca   :  { %1866 = vmatpush.msrb.mxu3 %v8998_v60  ;;  %1835 = vmatpush.msrb.mxu2 %v8999_v12  ;;  %v9037_v60 = vld [vmem:[#allocation80_spill] sm:$0xff]  ;;  %v9038_v12 = vld [vmem:[#allocation79_spill] sm:$0xff] }
 0x3cb   :  { %1827 = vmatpush.msra.mxu1 %v9000_v49  ;;  %1796 = vmatpush.msra.mxu0 %v9001_v46  ;;  %v9039_v49 = vld [vmem:[#allocation145_spill] sm:$0xff]  ;;  %v9040_v46 = vld [vmem:[#allocation146_spill] sm:$0xff] }
 0x3cc   :  { %1867 = vmatpush.msrb.mxu3 %v9002_v5  ;;  %1836 = vmatpush.msrb.mxu2 %v9003_v44  ;;  %v9041_v5 = vld [vmem:[#allocation147_spill] sm:$0xff]  ;;  %v9042_v44 = vld [vmem:[#allocation148_spill] sm:$0xff] }
 0x3cd   :  { %1828 = vmatpush.msra.mxu1 %v9004_v17  ;;  %1797 = vmatpush.msra.mxu0 %v9005_v33  ;;  %v9043_v17 = vld [vmem:[#allocation149_spill] sm:$0xff]  ;;  %v9044_v33 = vld [vmem:[#allocation150_spill] sm:$0xff] }
 0x3ce   :  { %1868 = vmatpush.msrb.mxu3 %v9006_v53  ;;  %1837 = vmatpush.msrb.mxu2 %v9007_v23  ;;  %v9045_v53 = vld [vmem:[#allocation151_spill] sm:$0xff]  ;;  %v9046_v23 = vld [vmem:[#allocation152_spill] sm:$0xff] }
 0x3cf   :  { %1893 = vmatpush.msrb.mxu1 %v9008_v56  ;;  %1798 = vmatpush.msra.mxu0 %v9010_v41  ;;  %v9047_v56 = vld [vmem:[#allocation153_spill] sm:$0xff]  ;;  %v9049_v41 = vld [vmem:[#allocation155_spill] sm:$0xff] }
 0x3d0   :  { %1933 = vmatpush.msra.mxu3 %v9009_v16  ;;  %1838 = vmatpush.msrb.mxu2 %v9011_v18  ;;  %v9048_v16 = vld [vmem:[#allocation154_spill] sm:$0xff]  ;;  %v9050_v18 = vld [vmem:[#allocation156_spill] sm:$0xff] }
 0x3d1   :  { %1894 = vmatpush.msrb.mxu1 %v9012_v38  ;;  %1799 = vmatpush.msra.mxu0 %v9014_v8  ;;  %v9051_v38 = vld [vmem:[#allocation157_spill] sm:$0xff]  ;;  %v9053_v8 = vld [vmem:[#allocation159_spill] sm:$0xff] }
 0x3d2   :  { %1934 = vmatpush.msra.mxu3 %v9013_v51  ;;  %1839 = vmatpush.msrb.mxu2 %v9015_v22  ;;  %v9052_v51 = vld [vmem:[#allocation158_spill] sm:$0xff]  ;;  %v9054_v22 = vld [vmem:[#allocation160_spill] sm:$0xff] }
 0x3d3   :  { %1895 = vmatpush.msrb.mxu1 %v9016_v57  ;;  %1800 = vmatpush.msra.mxu0 %v9018_v27  ;;  %v9055_v57 = vld [vmem:[#allocation161_spill] sm:$0xff]  ;;  %v9057_v27 = vld [vmem:[#allocation163_spill] sm:$0xff] }
 0x3d4   :  { %1935 = vmatpush.msra.mxu3 %v9017_v24  ;;  %1840 = vmatpush.msrb.mxu2 %v9019_v0  ;;  %v9056_v24 = vld [vmem:[#allocation162_spill] sm:$0xff]  ;;  %v9058_v0 = vld [vmem:[#allocation164_spill] sm:$0xff] }
 0x3d5   :  { %1896 = vmatpush.msrb.mxu1 %v9020_v47  ;;  %1801 = vmatpush.msra.mxu0 %v9022_v13  ;;  %v9059_v47 = vld [vmem:[#allocation165_spill] sm:$0xff]  ;;  %v9061_v13 = vld [vmem:[#allocation167_spill] sm:$0xff] }
 0x3d6   :  { %1936 = vmatpush.msra.mxu3 %v9021_v39  ;;  %1841 = vmatpush.msrb.mxu2 %v9023_v54  ;;  %v9060_v39 = vld [vmem:[#allocation166_spill] sm:$0xff]  ;;  %v9062_v54 = vld [vmem:[#allocation168_spill] sm:$0xff] }
 0x3d7   :  { %1897 = vmatpush.msrb.mxu1 %v9024_v15  ;;  %1802 = vmatpush.msra.mxu0 %v9026_v62  ;;  %v9063_v15 = vld [vmem:[#allocation169_spill] sm:$0xff]  ;;  %v9065_v62 = vld [vmem:[#allocation171_spill] sm:$0xff] }
 0x3d8   :  { %1937 = vmatpush.msra.mxu3 %v9025_v34  ;;  %1842 = vmatpush.msrb.mxu2 %v9027_v55  ;;  %v9064_v34 = vld [vmem:[#allocation170_spill] sm:$0xff]  ;;  %v9066_v55 = vld [vmem:[#allocation172_spill] sm:$0xff] }
 0x3d9   :  { %1898 = vmatpush.msrb.mxu1 %v9028_v9  ;;  %1803 = vmatpush.msra.mxu0 %v9030_v37  ;;  %v9067_v9 = vld [vmem:[#allocation173_spill] sm:$0xff]  ;;  %v9069_v37 = vld [vmem:[#allocation175_spill] sm:$0xff] }
 0x3da   :  { %1938 = vmatpush.msra.mxu3 %v9029_v42  ;;  %1843 = vmatpush.msrb.mxu2 %v9031_v48  ;;  %v9068_v42 = vld [vmem:[#allocation174_spill] sm:$0xff]  ;;  %v9070_v48 = vld [vmem:[#allocation176_spill] sm:$0xff] }
 0x3db   :  { %1899 = vmatpush.msrb.mxu1 %v9032_v50  ;;  %1804 = vmatpush.msra.mxu0 %v9034_v4  ;;  %v9071_v50 = vld [vmem:[#allocation177_spill] sm:$0xff]  ;;  %v9073_v4 = vld [vmem:[#allocation179_spill] sm:$0xff] }
 0x3dc   :  { %1939 = vmatpush.msra.mxu3 %v9033_v61  ;;  %1844 = vmatpush.msrb.mxu2 %v9035_v35  ;;  %v9072_v61 = vld [vmem:[#allocation178_spill] sm:$0xff]  ;;  %v9074_v35 = vld [vmem:[#allocation180_spill] sm:$0xff] }
 0x3dd   :  { %1900 = vmatpush.msrb.mxu1 %v9036_v36  ;;  %1805 = vmatpush.msra.mxu0 %v9038_v12  ;;  %v9075_v36 = vld [vmem:[#allocation181_spill] sm:$0xff]  ;;  %v9077_v12 = vld [vmem:[#allocation183_spill] sm:$0xff] }
 0x3de   :  { %1940 = vmatpush.msra.mxu3 %v9037_v60  ;;  %1845 = vmatpush.msrb.mxu2 %v9039_v49  ;;  %v9076_v60 = vld [vmem:[#allocation182_spill] sm:$0xff]  ;;  %v9078_v49 = vld [vmem:[#allocation184_spill] sm:$0xff] }
 0x3df   :  { %1901 = vmatpush.msrb.mxu1 %v9040_v46  ;;  %1806 = vmatpush.msra.mxu0 %v9042_v44  ;;  %v9079_v46 = vld [vmem:[#allocation185_spill] sm:$0xff]  ;;  %v9081_v44 = vld [vmem:[#allocation187_spill] sm:$0xff] }
 0x3e0   :  { %1941 = vmatpush.msra.mxu3 %v9041_v5  ;;  %1846 = vmatpush.msrb.mxu2 %v9043_v17  ;;  %v9080_v5 = vld [vmem:[#allocation186_spill] sm:$0xff]  ;;  %v9082_v17 = vld [vmem:[#allocation188_spill] sm:$0xff] }
 0x3e1   :  { %1902 = vmatpush.msrb.mxu1 %v9044_v33  ;;  %1807 = vmatpush.msra.mxu0 %v9046_v23  ;;  %v9083_v33 = vld [vmem:[#allocation189_spill] sm:$0xff]  ;;  %v9085_v23 = vld [vmem:[#allocation191_spill] sm:$0xff] }
 0x3e2   :  { %1942 = vmatpush.msra.mxu3 %v9045_v53  ;;  %1847 = vmatpush.msrb.mxu2 %v9047_v56  ;;  %v9084_v53 = vld [vmem:[#allocation190_spill] sm:$0xff]  ;;  %v9086_v56 = vld [vmem:[#allocation192_spill] sm:$0xff] }
 0x3e3   :  { %1903 = vmatpush.msrb.mxu1 %v9048_v16  ;;  %1808 = vmatpush.msra.mxu0 %v9050_v18  ;;  %v9087_v16 = vld [vmem:[#allocation193_spill] sm:$0xff]  ;;  %v9089_v18 = vld [vmem:[#allocation195_spill] sm:$0xff] }
 0x3e4   :  { %1943 = vmatpush.msra.mxu3 %v9049_v41  ;;  %1848 = vmatpush.msrb.mxu2 %v9051_v38  ;;  %v9088_v41 = vld [vmem:[#allocation194_spill] sm:$0xff]  ;;  %v9090_v38 = vld [vmem:[#allocation196_spill] sm:$0xff] }
 0x3e5   :  { %1904 = vmatpush.msrb.mxu1 %v9052_v51  ;;  %1873 = vmatpush.msrb.mxu0 %v9054_v22  ;;  %v9091_v51 = vld [vmem:[#allocation197_spill] sm:$0xff]  ;;  %v9093_v22 = vld [vmem:[#allocation199_spill] sm:$0xff] }
 0x3e6   :  { %1944 = vmatpush.msra.mxu3 %v9053_v8  ;;  %1913 = vmatpush.msra.mxu2 %v9055_v57  ;;  %v9092_v8 = vld [vmem:[#allocation198_spill] sm:$0xff] }
 0x3e7   :  { %1905 = vmatpush.msrb.mxu1 %v9056_v24  ;;  %1874 = vmatpush.msrb.mxu0 %v9058_v0 }
 0x3e8   :  { %1945 = vmatpush.msra.mxu3 %v9057_v27  ;;  %1914 = vmatpush.msra.mxu2 %v9059_v47  ;;  %v9094_v27 = vld [vmem:[#allocation59_spill] sm:$0xff] }
 0x3e9   :  { %1906 = vmatpush.msrb.mxu1 %v9060_v39  ;;  %1875 = vmatpush.msrb.mxu0 %v9062_v54 }
 0x3ea   :  { %1946 = vmatpush.msra.mxu3 %v9061_v13  ;;  %1915 = vmatpush.msra.mxu2 %v9063_v15  ;;  %v9095_v15 = vld [vmem:[#allocation35_spill] sm:$0xff] }
 0x3eb   :  { %1907 = vmatpush.msrb.mxu1 %v9064_v34  ;;  %1876 = vmatpush.msrb.mxu0 %v9066_v55 }
 0x3ec   :  { %1947 = vmatpush.msra.mxu3 %v9065_v62  ;;  %1916 = vmatpush.msra.mxu2 %v9067_v9 }
 0x3ed   :  { %1908 = vmatpush.msrb.mxu1 %v9068_v42  ;;  %1877 = vmatpush.msrb.mxu0 %v9070_v48 }
 0x3ee   :  { %1948 = vmatpush.msra.mxu3 %v9069_v37  ;;  %1917 = vmatpush.msra.mxu2 %v9071_v50 }
 0x3ef   :  { %1878 = vmatpush.msrb.mxu0 %v9072_v61 }
 0x3f0   :  { %1918 = vmatpush.msra.mxu2 %v9073_v4 }
 0x3f1   :  { %1879 = vmatpush.msrb.mxu0 %v9074_v35 }
 0x3f2   :  { %1919 = vmatpush.msra.mxu2 %v9075_v36 }
 0x3f3   :  { %1880 = vmatpush.msrb.mxu0 %v9076_v60 }
 0x3f4   :  { %1920 = vmatpush.msra.mxu2 %v9077_v12 }
 0x3f5   :  { %1881 = vmatpush.msrb.mxu0 %v9078_v49 }
 0x3f6   :  { %1921 = vmatpush.msra.mxu2 %v9079_v46 }
 0x3f7   :  { %1882 = vmatpush.msrb.mxu0 %v9080_v5 }
 0x3f8   :  { %1922 = vmatpush.msra.mxu2 %v9081_v44 }
 0x3f9   :  { %1883 = vmatpush.msrb.mxu0 %v9082_v17  ;;  %v9096_v17 = vld [vmem:[#allocation116_spill] sm:$0xff] }
 0x3fa   :  { %1923 = vmatpush.msra.mxu2 %v9083_v33  ;;  %v496_v33 = vadd.f32 %v9096_v17, %v5225_v6  ;;  %v6388_v17 = vld [vmem:[#allocation15 + $0x188] sm:$0xff] }
 0x3fb   :  { %1884 = vmatpush.msrb.mxu0 %v9084_v53 }
 0x3fc   :  { %1924 = vmatpush.msra.mxu2 %v9085_v23 }
 0x3fd   :  { %1885 = vmatpush.msrb.mxu0 %v9086_v56 }
 0x3fe   :  { %1925 = vmatpush.msra.mxu2 %v9087_v16 }
 0x3ff   :  { %1886 = vmatpush.msrb.mxu0 %v9088_v41 }
 0x400   :  { %1926 = vmatpush.msra.mxu2 %v9089_v18 }
 0x401   :  { %1887 = vmatpush.msrb.mxu0 %v9090_v38 }
 0x402   :  { %1927 = vmatpush.msra.mxu2 %v9091_v51 }
 0x403   :  { %1888 = vmatpush.msrb.mxu0 %v9092_v8 }
 0x404   :  { %1928 = vmatpush.msra.mxu2 %v9093_v22  ;;  %v9097_v22 = vld [vmem:[#allocation115_spill] sm:$0xff] }
 0x409   :  { %v1545_v57 = vpop.f32.mrf.mxu1 }
 0x40f   :  { %v1585_v13 = vpop.f32.mrf.mxu3 }
 0x411   :  { %v1625_v42 = vpop.f32.mrf.mxu1 }
 0x417   :  { %v1665_v35 = vpop.f32.mrf.mxu3 }
 0x41d   :  { %v1525_v24 = vpop.f32.mrf.mxu0 }
 0x41e   :  { %v1526_v0 = vadd.f32 %v1525_v24, %v9094_v27 }
 0x420   :  { %v1546_v47 = vadd.f32 %v1545_v57, %v1526_v0  ;;  %v455_v57 = vadd.f32 %v9097_v22, %v5223_v63 }
 0x422   :  { %v1668_v39 = vmul.f32 0.5, %v1546_v47 }
 0x423   :  { %v1565_v54 = vpop.f32.mrf.mxu2 }
 0x424   :  { %v1566_v34 = vadd.f32 %v1565_v54, %v9095_v15  ;;  %3377 = vtanh.f32 %v1668_v39 }
 0x426   :  { %v1586_v55 = vadd.f32 %v1585_v13, %v1566_v34 }
 0x427   :  { %v1605_v62 = vpop.f32.mrf.mxu0 }
 0x428   :  { %v1606_v9 = vadd.f32 %v1605_v62, %v5508_v10  ;;  %v1672_v37 = vmul.f32 0.5, %v1586_v55 }
 0x429   :  { %v1728_v44 = vpop.f32.mrf.mxu1 }
 0x42a   :  { %v1626_v48 = vadd.f32 %v1625_v42, %v1606_v9  ;;  %3379 = vtanh.f32 %v1672_v37  ;;  %v3378_v61 = vpop.eup %3377  ;;  %v1772_v41 = vadd.f32 %v1728_v44, %v496_v33  ;;  %v9100_v42 = vld [vmem:[#allocation50_spill] sm:$0xff]  ;;  %v6391_v33 = vld [vmem:[#allocation15 + $0x198] sm:$0xff] }
 0x42b   :  { %v1670_v60 = vadd.f32 1.0, %v3378_v61  ;;  %v537_v37 = vadd.f32 %v9100_v42, %v5259_v14  ;;  %v6436_v42 = vld [vmem:[#allocation15 + $0xa8] sm:$0xff] }
 0x42c   :  { %3381 = vtanh.f32 %v1626_v48  ;;  %v1779_v51 = vmul.f32 0.5, %v1772_v41  ;;  %v6370_v48 = vld [vmem:[#allocation15 + $0x1e8] sm:$0xff] }
 0x42d   :  { %v1645_v50 = vpop.f32.mrf.mxu2  ;;  %v1671_v53 = vmul.f32 0.5, %v1670_v60 }
 0x42e   :  { %v1646_v4 = vadd.f32 %v1645_v50, %v5512_v26  ;;  %v6373_v50 = vld [vmem:[#allocation15 + $0x1f8] sm:$0xff] }
 0x430   :  { %v1666_v36 = vadd.f32 %v1665_v35, %v1646_v4  ;;  %v3380_v12 = vpop.eup %3379  ;;  %v1768_v13 = vpop.f32.mrf.mxu3  ;;  %v6376_v35 = vld [vmem:[#allocation15 + $0x1c8] sm:$0xff] }
 0x431   :  { %v1674_v46 = vadd.f32 1.0, %v3380_v12 }
 0x432   :  { %v1677_v49 = vmul.f32 0.5, %v1666_v36  ;;  %v3382_v5 = vpop.eup %3381  ;;  %v6379_v36 = vld [vmem:[#allocation15 + $0x1d8] sm:$0xff] }
 0x433   :  { %v1675_v23 = vmul.f32 0.5, %v1674_v46  ;;  %v1682_v16 = vmul.f32 %v3382_v5, %v1671_v53  ;;  %v6385_v46 = vld [vmem:[#allocation15 + $0x1b8] sm:$0xff] }
 0x434   :  { %3383 = vtanh.f32 %v1677_v49  ;;  %v6382_v49 = vld [vmem:[#allocation15 + $0x1a8] sm:$0xff] }
 0x435   :  { %v1681_v56 = vmul.f32 %v1675_v23, %v6097_v43  ;;  %v9098_v43 = vld [vmem:[#allocation51_spill] sm:$0xff] }
 0x436   :  { %v578_v54 = vadd.f32 %v9098_v43, %v5261_v20  ;;  %v6424_v43 = vld [vmem:[#allocation15 + $0xe8] sm:$0xff] }
 0x437   :  { %v6357_v18 = vadd.f32 %v1682_v16, %v1681_v56  ;;  %v6396_v56 = vld [vmem:[#allocation15 + $0x168] sm:$0xff]  ;;  %v6399_v16 = vld [vmem:[#allocation15 + $0x178] sm:$0xff] }
 0x438   :  { %v1774_v55 = vadd.f32 %v1768_v13, %v578_v54  ;;  %v6420_v13 = vld [vmem:[#allocation15 + $0x118] sm:$0xff] }
 0x439   :  { %3385 = vtanh.f32 %v6357_v18  ;;  %v6427_v54 = vld [vmem:[#allocation15 + $0xf8] sm:$0xff] }
 0x43a   :  { %v3384_v38 = vpop.eup %3383  ;;  %3387 = vtanh.f32 %v1779_v51  ;;  %v1784_v12 = vmul.f32 0.5, %v1774_v55  ;;  %v6405_v51 = vld [vmem:[#allocation15 + $0x158] sm:$0xff] }
 0x43b   :  { %v1679_v8 = vadd.f32 1.0, %v3384_v38  ;;  %v6402_v38 = vld [vmem:[#allocation15 + $0x148] sm:$0xff]  ;;  %v6433_v55 = vld [vmem:[#allocation15 + $0xd8] sm:$0xff] }
 0x43d   :  { %v1680_v0 = vmul.f32 0.5, %v1679_v8 }
 0x43f   :  { %v3386_v39 = vpop.eup %3385 }
 0x440   :  { %v1708_v24 = vpop.f32.mrf.mxu0  ;;  %v6364_v34 = vmul.f32 %v3386_v39, %v1680_v0  ;;  %v3388_v9 = vpop.eup %3387  ;;  %v6417_v39 = vld [vmem:[#allocation15 + $0x108] sm:$0xff] }
 0x441   :  { %v1771_v47 = vadd.f32 %v1708_v24, %v455_v57  ;;  %v1781_v60 = vadd.f32 1.0, %v3388_v9  ;;  %v6409_v57 = vld [vmem:[#allocation15 + $0x128] sm:$0xff]  ;;  %v6412_v24 = vld [vmem:[#allocation15 + $0x138] sm:$0xff] }
 0x442   :  { %9099 = vst [vmem:[#allocation97_spill] sm:$0xff] %v6364_v34  ;;  %1829 = vmatmul.f32.vlgmr.msra.gmra.mxu1 %v6364_v34  ;;  %1869 = vmatmul.f32.vlgmr.msrb.gmra.mxu3 %v6364_v34 }
 0x443   :  { %v1775_v62 = vmul.f32 0.5, %v1771_v47  ;;  %1996 = vmatpush.msra.mxu1 %v6370_v48  ;;  %2036 = vmatpush.msrb.mxu3 %v6373_v50  ;;  %v1782_v53 = vmul.f32 0.5, %v1781_v60  ;;  %v6444_v60 = vld [vmem:[#allocation15 + $0x88] sm:$0xff] }
 0x445   :  { %3389 = vtanh.f32 %v1775_v62  ;;  %1997 = vmatpush.msra.mxu1 %v6376_v35  ;;  %2037 = vmatpush.msrb.mxu3 %v6379_v36  ;;  %v1788_v8 = vmul.f32 %v1782_v53, %v6127_v11  ;;  %v6430_v62 = vld [vmem:[#allocation15 + $0xc8] sm:$0xff]  ;;  %v6459_v53 = vld [vmem:[#allocation15 + $0x78] sm:$0xff] }
 0x447   :  { %v1748_v61 = vpop.f32.mrf.mxu2  ;;  %1998 = vmatpush.msra.mxu1 %v6382_v49  ;;  %2038 = vmatpush.msrb.mxu3 %v6385_v46 }
 0x448   :  { %v1773_v4 = vadd.f32 %v1748_v61, %v537_v37  ;;  %v6439_v37 = vld [vmem:[#allocation15 + $0xb8] sm:$0xff] }
 0x449   :  { %1999 = vmatpush.msra.mxu1 %v6388_v17  ;;  %2039 = vmatpush.msrb.mxu3 %v6391_v33 }
 0x44a   :  { %3391 = vtanh.f32 %v1773_v4  ;;  %1909 = vmatmul.f32.vlgmr.msrb.gmra.mxu1 %v6364_v34  ;;  %1949 = vmatmul.f32.vlgmr.msra.gmra.mxu3 %v6364_v34  ;;  %v6507_v34 = vld [vmem:[#allocation16 + $0x3e8] sm:$0xff] }
 0x44b   :  { %v3390_v5 = vpop.eup %3389  ;;  %3393 = vtanh.f32 %v1784_v12  ;;  %2000 = vmatpush.msra.mxu1 %v6396_v56  ;;  %2040 = vmatpush.msrb.mxu3 %v6399_v16  ;;  %v6447_v12 = vld [vmem:[#allocation15 + $0x98] sm:$0xff]  ;;  %9103 = vst [vmem:[#allocation63_spill] sm:$0xff] %v6507_v34 }
 0x44c   :  { %v1777_v44 = vadd.f32 1.0, %v3390_v5  ;;  %v6453_v5 = vld [vmem:[#allocation15 + $0x1f0] sm:$0xff] }
 0x44d   :  { %2001 = vmatpush.msra.mxu1 %v6402_v38  ;;  %2041 = vmatpush.msrb.mxu3 %v6405_v51 }
 0x44e   :  { %v1778_v23 = vmul.f32 0.5, %v1777_v44  ;;  %v6456_v44 = vld [vmem:[#allocation15 + $0x68] sm:$0xff] }
 0x44f   :  { %2002 = vmatpush.msra.mxu1 %v6409_v57  ;;  %2042 = vmatpush.msrb.mxu3 %v6412_v24 }
 0x450   :  { %v3392_v41 = vpop.eup %3391 }
 0x451   :  { %v1789_v22 = vmul.f32 %v3392_v41, %v1778_v23  ;;  %v3394_v0 = vpop.eup %3393  ;;  %2003 = vmatpush.msra.mxu1 %v6417_v39  ;;  %2043 = vmatpush.msrb.mxu3 %v6420_v13  ;;  %v6463_v23 = vld [vmem:[#allocation15 + $0x1d0] sm:$0xff]  ;;  %v6466_v41 = vld [vmem:[#allocation15 + $0x48] sm:$0xff] }
 0x452   :  { %v1786_v11 = vadd.f32 1.0, %v3394_v0  ;;  %v6483_v0 = vld [vmem:[#allocation15 + $0x190] sm:$0xff] }
 0x453   :  { %v6415_v47 = vadd.f32 %v1789_v22, %v1788_v8  ;;  %2004 = vmatpush.msra.mxu1 %v6424_v43  ;;  %2044 = vmatpush.msrb.mxu3 %v6427_v54  ;;  %v6473_v8 = vld [vmem:[#allocation15 + $0x1b0] sm:$0xff]  ;;  %v6476_v22 = vld [vmem:[#allocation15 + $0x28] sm:$0xff] }
 0x454   :  { %v1787_v9 = vmul.f32 0.5, %v1786_v11  ;;  %v6486_v11 = vld [vmem:[#allocation15 + $0x8] sm:$0xff] }
 0x455   :  { %3395 = vtanh.f32 %v6415_v47  ;;  %2005 = vmatpush.msra.mxu1 %v6430_v62  ;;  %2045 = vmatpush.msrb.mxu3 %v6433_v55 }
 0x457   :  { %2006 = vmatpush.msra.mxu1 %v6436_v42  ;;  %2046 = vmatpush.msrb.mxu3 %v6439_v37 }
 0x459   :  { %2007 = vmatpush.msra.mxu1 %v6444_v60  ;;  %2047 = vmatpush.msrb.mxu3 %v6447_v12 }
 0x45b   :  { %v3396_v61 = vpop.eup %3395  ;;  %2008 = vmatpush.msra.mxu1 %v6456_v44  ;;  %2048 = vmatpush.msrb.mxu3 %v6459_v53 }
 0x45c   :  { %v6442_v4 = vmul.f32 %v3396_v61, %v1787_v9  ;;  %v6501_v9 = vld [vmem:[#allocation16 + $0x3e0] sm:$0xff]  ;;  %v6504_v61 = vld [vmem:[#allocation15 + $0x150] sm:$0xff] }
 0x45d   :  { %2009 = vmatpush.msra.mxu1 %v6466_v41  ;;  %9101 = vst [vmem:[#allocation62_spill] sm:$0xff] %v6501_v9 }
 0x45e   :  { %1809 = vmatmul.f32.vlgmr.msra.gmra.mxu0 %v6442_v4  ;;  %1849 = vmatmul.f32.vlgmr.msrb.gmra.mxu2 %v6442_v4  ;;  %9102 = vst [vmem:[#allocation36_spill] sm:$0xff] %v6504_v61 }
 0x45f   :  { %1976 = vmatpush.msra.mxu0 %v6146_v21  ;;  %2016 = vmatpush.msrb.mxu2 %v6453_v5  ;;  %v6469_v21 = vld [vmem:[#allocation15 + $0x58] sm:$0xff] }
 0x460   :  { %2049 = vmatpush.msrb.mxu3 %v6469_v21  ;;  %2010 = vmatpush.msra.mxu1 %v6476_v22 }
 0x461   :  { %1977 = vmatpush.msra.mxu0 %v6152_v52  ;;  %2017 = vmatpush.msrb.mxu2 %v6463_v23  ;;  %v6479_v52 = vld [vmem:[#allocation15 + $0x38] sm:$0xff] }
 0x462   :  { %2050 = vmatpush.msrb.mxu3 %v6479_v52  ;;  %2011 = vmatpush.msra.mxu1 %v6486_v11 }
 0x463   :  { %1978 = vmatpush.msra.mxu0 %v6158_v30  ;;  %2018 = vmatpush.msrb.mxu2 %v6473_v8  ;;  %v6489_v30 = vld [vmem:[#allocation15 + $0x18] sm:$0xff] }
 0x464   :  { %2051 = vmatpush.msrb.mxu3 %v6489_v30  ;;  %2012 = vmatmul.f32.vlgmr.msra.gmra.mxu1 %v6442_v4 }
 0x465   :  { %1979 = vmatpush.msra.mxu0 %v6164_v28  ;;  %2019 = vmatpush.msrb.mxu2 %v6483_v0  ;;  %v6496_v28 = vld [vmem:[#allocation15 + $0x170] sm:$0xff] }
 0x466   :  { %1889 = vmatmul.f32.vlgmr.msrb.gmra.mxu0 %v6442_v4  ;;  %1929 = vmatmul.f32.vlgmr.msra.gmra.mxu2 %v6442_v4 }
 0x467   :  { %1980 = vmatpush.msra.mxu0 %v6170_v25  ;;  %2020 = vmatpush.msrb.mxu2 %v6496_v28  ;;  %v6511_v25 = vld [vmem:[#allocation16 + $0x3c0] sm:$0xff] }
 0x468   :  { %2052 = vmatmul.f32.vlgmr.msrb.gmra.mxu3 %v6442_v4  ;;  %2098 = vmatpush.msrb.mxu1 %v6501_v9  ;;  %9104 = vst [vmem:[#allocation65_spill] sm:$0xff] %v6511_v25 }
 0x469   :  { %1981 = vmatpush.msra.mxu0 %v6176_v29  ;;  %2021 = vmatpush.msrb.mxu2 %v6504_v61  ;;  %v6517_v29 = vld [vmem:[#allocation16 + $0x3c8] sm:$0xff]  ;;  %v6521_v61 = vld [vmem:[#allocation16 + $0x3a0] sm:$0xff] }
 0x46a   :  { %2138 = vmatpush.msra.mxu3 %v6507_v34  ;;  %2099 = vmatpush.msrb.mxu1 %v6511_v25  ;;  %9106 = vst [vmem:[#allocation38_spill] sm:$0xff] %v6517_v29  ;;  %v6524_v34 = vld [vmem:[#allocation15 + $0x110] sm:$0xff] }
 0x46b   :  { %1982 = vmatpush.msra.mxu0 %v6182_v40  ;;  %2022 = vmatpush.msrb.mxu2 %v6514_v2  ;;  %9107 = vst [vmem:[#allocation66_spill] sm:$0xff] %v6521_v61  ;;  %v6527_v40 = vld [vmem:[#allocation16 + $0x3a8] sm:$0xff]  ;;  %v6531_v2 = vld [vmem:[#allocation16 + $0x380] sm:$0xff] }
 0x46c   :  { %2139 = vmatpush.msra.mxu3 %v6517_v29  ;;  %2100 = vmatpush.msrb.mxu1 %v6521_v61  ;;  %9108 = vst [vmem:[#allocation69_spill] sm:$0xff] %v6524_v34  ;;  %v6534_v29 = vld [vmem:[#allocation15 + $0xf0] sm:$0xff] }
 0x46d   :  { %1983 = vmatpush.msra.mxu0 %v6188_v31  ;;  %2023 = vmatpush.msrb.mxu2 %v6524_v34  ;;  %9109 = vst [vmem:[#allocation39_spill] sm:$0xff] %v6527_v40  ;;  %v6537_v31 = vld [vmem:[#allocation16 + $0x388] sm:$0xff]  ;;  %v6541_v34 = vld [vmem:[#allocation16 + $0x360] sm:$0xff] }
 0x46e   :  { %2140 = vmatpush.msra.mxu3 %v6527_v40  ;;  %9110 = vst [vmem:[#allocation70_spill] sm:$0xff] %v6531_v2  ;;  %2101 = vmatpush.msrb.mxu1 %v6531_v2  ;;  %v6544_v40 = vld [vmem:[#allocation15 + $0xd0] sm:$0xff] }
 0x46f   :  { %1984 = vmatpush.msra.mxu0 %v6194_v32  ;;  %9111 = vst [vmem:[#allocation73_spill] sm:$0xff] %v6534_v29  ;;  %2024 = vmatpush.msrb.mxu2 %v6534_v29  ;;  %v6547_v32 = vld [vmem:[#allocation16 + $0x368] sm:$0xff]  ;;  %v6551_v29 = vld [vmem:[#allocation16 + $0x340] sm:$0xff] }
 0x470   :  { %9112 = vst [vmem:[#allocation40_spill] sm:$0xff] %v6537_v31  ;;  %2141 = vmatpush.msra.mxu3 %v6537_v31  ;;  %2102 = vmatpush.msrb.mxu1 %v6541_v34  ;;  %v6554_v31 = vld [vmem:[#allocation15 + $0xb0] sm:$0xff] }
 0x471   :  { %1985 = vmatpush.msra.mxu0 %v6200_v59  ;;  %9113 = vst [vmem:[#allocation74_spill] sm:$0xff] %v6541_v34  ;;  %2025 = vmatpush.msrb.mxu2 %v6544_v40  ;;  %v6557_v59 = vld [vmem:[#allocation16 + $0x348] sm:$0xff] }
 0x472   :  { %9114 = vst [vmem:[#allocation77_spill] sm:$0xff] %v6544_v40  ;;  %2142 = vmatpush.msra.mxu3 %v6547_v32  ;;  %2103 = vmatpush.msrb.mxu1 %v6551_v29  ;;  %v6561_v40 = vld [vmem:[#allocation16 + $0x320] sm:$0xff] }
 0x473   :  { %9115 = vst [vmem:[#allocation41_spill] sm:$0xff] %v6547_v32  ;;  %1986 = vmatpush.msra.mxu0 %v6206_v45  ;;  %2026 = vmatpush.msrb.mxu2 %v6554_v31  ;;  %v6564_v32 = vld [vmem:[#allocation15 + $0x90] sm:$0xff]  ;;  %v6567_v45 = vld [vmem:[#allocation16 + $0x328] sm:$0xff] }
 0x474   :  { %9116 = vst [vmem:[#allocation78_spill] sm:$0xff] %v6551_v29  ;;  %2143 = vmatpush.msra.mxu3 %v6557_v59  ;;  %2104 = vmatpush.msrb.mxu1 %v6561_v40 }
 0x475   :  { %9117 = vst [vmem:[#allocation83_spill] sm:$0xff] %v6554_v31  ;;  %1987 = vmatpush.msra.mxu0 %v6212_v19  ;;  %2027 = vmatpush.msrb.mxu2 %v6564_v32  ;;  %v6571_v31 = vld [vmem:[#allocation16 + $0x300] sm:$0xff]  ;;  %v6577_v19 = vld [vmem:[#allocation16 + $0x308] sm:$0xff] }
 0x476   :  { %9118 = vst [vmem:[#allocation42_spill] sm:$0xff] %v6557_v59  ;;  %2144 = vmatpush.msra.mxu3 %v6567_v45  ;;  %2105 = vmatpush.msrb.mxu1 %v6571_v31  ;;  %v6574_v59 = vld [vmem:[#allocation15 + $0x70] sm:$0xff] }
 0x477   :  { %9119 = vst [vmem:[#allocation84_spill] sm:$0xff] %v6561_v40  ;;  %1988 = vmatpush.msra.mxu0 %v6218_v7  ;;  %2028 = vmatpush.msrb.mxu2 %v6574_v59  ;;  %v6587_v7 = vld [vmem:[#allocation16 + $0x2e8] sm:$0xff] }
 0x478   :  { %9120 = vst [vmem:[#allocation87_spill] sm:$0xff] %v6564_v32  ;;  %2145 = vmatpush.msra.mxu3 %v6577_v19  ;;  %v6581_v32 = vld [vmem:[#allocation16 + $0x2e0] sm:$0xff] }
 0x479   :  { %9121 = vst [vmem:[#allocation43_spill] sm:$0xff] %v6567_v45  ;;  %1989 = vmatpush.msra.mxu0 %v6224_v3  ;;  %2106 = vmatpush.msrb.mxu1 %v6581_v32  ;;  %v6584_v45 = vld [vmem:[#allocation15 + $0x50] sm:$0xff]  ;;  %v6597_v3 = vld [vmem:[#allocation16 + $0x2c8] sm:$0xff] }
 0x47a   :  { %9122 = vst [vmem:[#allocation88_spill] sm:$0xff] %v6571_v31  ;;  %2029 = vmatpush.msrb.mxu2 %v6584_v45  ;;  %2146 = vmatpush.msra.mxu3 %v6587_v7 }
 0x47b   :  { %9123 = vst [vmem:[#allocation91_spill] sm:$0xff] %v6574_v59  ;;  %1990 = vmatpush.msra.mxu0 %v6230_v58  ;;  %v6591_v59 = vld [vmem:[#allocation16 + $0x2c0] sm:$0xff]  ;;  %v6609_v58 = vld [vmem:[#allocation16 + $0x2a8] sm:$0xff] }
 0x47c   :  { %9124 = vst [vmem:[#allocation44_spill] sm:$0xff] %v6577_v19  ;;  %2107 = vmatpush.msrb.mxu1 %v6591_v59  ;;  %v6594_v19 = vld [vmem:[#allocation15 + $0x30] sm:$0xff]  ;;  %2147 = vmatpush.msra.mxu3 %v6597_v3 }
 0x47d   :  { %9125 = vst [vmem:[#allocation92_spill] sm:$0xff] %v6581_v32  ;;  %2030 = vmatpush.msrb.mxu2 %v6594_v19  ;;  %1991 = vmatpush.msra.mxu0 %v6236_v1  ;;  %v6615_v1 = vld [vmem:[#allocation16 + $0x1e0] sm:$0xff] }
 0x47e   :  { %9126 = vst [vmem:[#allocation95_spill] sm:$0xff] %v6584_v45  ;;  %v6601_v45 = vld [vmem:[#allocation16 + $0x2a0] sm:$0xff]  ;;  %1992 = vmatmul.f32.vlgmr.msra.gmra.mxu0 %v6442_v4  ;;  %2148 = vmatpush.msra.mxu3 %v6609_v58 }
 0x47f   :  { %9127 = vst [vmem:[#allocation45_spill] sm:$0xff] %v6587_v7  ;;  %2108 = vmatpush.msrb.mxu1 %v6601_v45  ;;  %v6604_v7 = vld [vmem:[#allocation15 + $0x10] sm:$0xff]  ;;  %2078 = vmatpush.msrb.mxu0 %v6615_v1 }
 0x480   :  { %9128 = vst [vmem:[#allocation96_spill] sm:$0xff] %v6591_v59  ;;  %2031 = vmatpush.msrb.mxu2 %v6604_v7 }
 0x481   :  { %9129 = vst [vmem:[#allocation101_spill] sm:$0xff] %v6594_v19  ;;  %2032 = vmatmul.f32.vlgmr.msrb.gmra.mxu2 %v6442_v4  ;;  %v6612_v19 = vld [vmem:[#allocation16 + $0x280] sm:$0xff] }
 0x482   :  { %9130 = vst [vmem:[#allocation46_spill] sm:$0xff] %v6597_v3  ;;  %2109 = vmatpush.msrb.mxu1 %v6612_v19  ;;  %v6624_v4 = vld [vmem:[#allocation16 + $0x260] sm:$0xff] }
 0x483   :  { %9131 = vst [vmem:[#allocation102_spill] sm:$0xff] %v6601_v45  ;;  %v6618_v45 = vld [vmem:[#allocation16 + $0x288] sm:$0xff] }
 0x484   :  { %9132 = vst [vmem:[#allocation105_spill] sm:$0xff] %v6604_v7  ;;  %2149 = vmatpush.msra.mxu3 %v6618_v45  ;;  %v6621_v7 = vld [vmem:[#allocation16 + $0x1e8] sm:$0xff]  ;;  %2110 = vmatpush.msrb.mxu1 %v6624_v4 }
 0x485   :  { %9133 = vst [vmem:[#allocation47_spill] sm:$0xff] %v6609_v58  ;;  %2118 = vmatpush.msra.mxu2 %v6621_v7  ;;  %v6627_v58 = vld [vmem:[#allocation16 + $0x1c0] sm:$0xff] }
 0x486   :  { %9134 = vst [vmem:[#allocation106_spill] sm:$0xff] %v6612_v19  ;;  %2079 = vmatpush.msrb.mxu0 %v6627_v58  ;;  %v6630_v19 = vld [vmem:[#allocation16 + $0x268] sm:$0xff] }
 0x487   :  { %9135 = vst [vmem:[#allocation109_spill] sm:$0xff] %v6615_v1  ;;  %2150 = vmatpush.msra.mxu3 %v6630_v19  ;;  %v6633_v1 = vld [vmem:[#allocation16 + $0x1c8] sm:$0xff] }
 0x488   :  { %9136 = vst [vmem:[#allocation48_spill] sm:$0xff] %v6618_v45  ;;  %2119 = vmatpush.msra.mxu2 %v6633_v1  ;;  %v6636_v45 = vld [vmem:[#allocation16 + $0x240] sm:$0xff] }
 0x489   :  { %9137 = vst [vmem:[#allocation110_spill] sm:$0xff] %v6621_v7  ;;  %2111 = vmatpush.msrb.mxu1 %v6636_v45  ;;  %v6639_v7 = vld [vmem:[#allocation16 + $0x1a0] sm:$0xff] }
 0x48a   :  { %9138 = vst [vmem:[#allocation113_spill] sm:$0xff] %v6624_v4  ;;  %2080 = vmatpush.msrb.mxu0 %v6639_v7  ;;  %v6642_v4 = vld [vmem:[#allocation16 + $0x248] sm:$0xff] }
 0x48b   :  { %9139 = vst [vmem:[#allocation49_spill] sm:$0xff] %v6627_v58  ;;  %2151 = vmatpush.msra.mxu3 %v6642_v4  ;;  %v6645_v58 = vld [vmem:[#allocation16 + $0x1a8] sm:$0xff] }
 0x48c   :  { %9140 = vst [vmem:[#allocation61_spill] sm:$0xff] %v6630_v19  ;;  %2120 = vmatpush.msra.mxu2 %v6645_v58  ;;  %v6648_v19 = vld [vmem:[#allocation16 + $0x220] sm:$0xff] }
 0x48d   :  { %9141 = vst [vmem:[#allocation64_spill] sm:$0xff] %v6633_v1  ;;  %2112 = vmatpush.msrb.mxu1 %v6648_v19  ;;  %v6651_v1 = vld [vmem:[#allocation16 + $0x180] sm:$0xff] }
 0x48e   :  { %9142 = vst [vmem:[#allocation114_spill] sm:$0xff] %v6636_v45  ;;  %2081 = vmatpush.msrb.mxu0 %v6651_v1  ;;  %v6654_v45 = vld [vmem:[#allocation16 + $0x228] sm:$0xff] }
 0x48f   :  { %9143 = vst [vmem:[#allocation67_spill] sm:$0xff] %v6639_v7  ;;  %2152 = vmatpush.msra.mxu3 %v6654_v45  ;;  %v6657_v7 = vld [vmem:[#allocation16 + $0x188] sm:$0xff] }
 0x490   :  { %9144 = vst [vmem:[#allocation119_spill] sm:$0xff] %v6642_v4  ;;  %2121 = vmatpush.msra.mxu2 %v6657_v7  ;;  %v6660_v4 = vld [vmem:[#allocation16 + $0x200] sm:$0xff] }
 0x491   :  { %9145 = vst [vmem:[#allocation68_spill] sm:$0xff] %v6645_v58  ;;  %2113 = vmatpush.msrb.mxu1 %v6660_v4  ;;  %v6663_v58 = vld [vmem:[#allocation16 + $0x160] sm:$0xff] }
 0x492   :  { %9146 = vst [vmem:[#allocation120_spill] sm:$0xff] %v6648_v19  ;;  %2082 = vmatpush.msrb.mxu0 %v6663_v58  ;;  %v6666_v19 = vld [vmem:[#allocation16 + $0x208] sm:$0xff] }
 0x493   :  { %9147 = vst [vmem:[#allocation71_spill] sm:$0xff] %v6651_v1  ;;  %2153 = vmatpush.msra.mxu3 %v6666_v19  ;;  %v6669_v1 = vld [vmem:[#allocation16 + $0x168] sm:$0xff] }
 0x494   :  { %9148 = vst [vmem:[#allocation123_spill] sm:$0xff] %v6654_v45  ;;  %2122 = vmatpush.msra.mxu2 %v6669_v1  ;;  %v6672_v45 = vld [vmem:[#allocation16 + $0x3f0] sm:$0xff] }
 0x495   :  { %9149 = vst [vmem:[#allocation72_spill] sm:$0xff] %v6657_v7  ;;  %2178 = vmatpush.msra.mxu1 %v6672_v45  ;;  %v6675_v7 = vld [vmem:[#allocation16 + $0x3f8] sm:$0xff] }
 0x496   :  { %9150 = vst [vmem:[#allocation124_spill] sm:$0xff] %v6660_v4  ;;  %2218 = vmatpush.msrb.mxu3 %v6675_v7  ;;  %v6678_v4 = vld [vmem:[#allocation16 + $0x140] sm:$0xff] }
 0x497   :  { %9151 = vst [vmem:[#allocation75_spill] sm:$0xff] %v6663_v58  ;;  %2083 = vmatpush.msrb.mxu0 %v6678_v4  ;;  %v6681_v58 = vld [vmem:[#allocation16 + $0x148] sm:$0xff] }
 0x498   :  { %9152 = vst [vmem:[#allocation76_spill] sm:$0xff] %v6666_v19  ;;  %2123 = vmatpush.msra.mxu2 %v6681_v58  ;;  %v6684_v19 = vld [vmem:[#allocation16 + $0x3d0] sm:$0xff] }
 0x499   :  { %9153 = vst [vmem:[#allocation81_spill] sm:$0xff] %v6669_v1  ;;  %2179 = vmatpush.msra.mxu1 %v6684_v19  ;;  %v6687_v1 = vld [vmem:[#allocation16 + $0x3d8] sm:$0xff] }
 0x49a   :  { %9154 = vst [vmem:[#allocation82_spill] sm:$0xff] %v6672_v45  ;;  %2219 = vmatpush.msrb.mxu3 %v6687_v1  ;;  %v6690_v45 = vld [vmem:[#allocation16 + $0x120] sm:$0xff] }
 0x49b   :  { %9155 = vst [vmem:[#allocation129_spill] sm:$0xff] %v6675_v7  ;;  %2084 = vmatpush.msrb.mxu0 %v6690_v45  ;;  %v6693_v7 = vld [vmem:[#allocation16 + $0x128] sm:$0xff] }
 0x49c   :  { %9156 = vst [vmem:[#allocation85_spill] sm:$0xff] %v6678_v4  ;;  %2124 = vmatpush.msra.mxu2 %v6693_v7  ;;  %v6696_v4 = vld [vmem:[#allocation16 + $0x3b0] sm:$0xff] }
 0x49d   :  { %9157 = vst [vmem:[#allocation86_spill] sm:$0xff] %v6681_v58  ;;  %2180 = vmatpush.msra.mxu1 %v6696_v4  ;;  %v6699_v58 = vld [vmem:[#allocation16 + $0x3b8] sm:$0xff] }
 0x49e   :  { %9158 = vst [vmem:[#allocation89_spill] sm:$0xff] %v6684_v19  ;;  %2220 = vmatpush.msrb.mxu3 %v6699_v58  ;;  %v6702_v19 = vld [vmem:[#allocation16 + $0x100] sm:$0xff] }
 0x49f   :  { %9159 = vst [vmem:[#allocation90_spill] sm:$0xff] %v6687_v1  ;;  %2085 = vmatpush.msrb.mxu0 %v6702_v19  ;;  %v6705_v1 = vld [vmem:[#allocation16 + $0x108] sm:$0xff] }
 0x4a0   :  { %9160 = vst [vmem:[#allocation93_spill] sm:$0xff] %v6690_v45  ;;  %2125 = vmatpush.msra.mxu2 %v6705_v1  ;;  %v6708_v45 = vld [vmem:[#allocation16 + $0x390] sm:$0xff] }
 0x4a1   :  { %9161 = vst [vmem:[#allocation94_spill] sm:$0xff] %v6693_v7  ;;  %2181 = vmatpush.msra.mxu1 %v6708_v45  ;;  %v6711_v7 = vld [vmem:[#allocation16 + $0x398] sm:$0xff] }
 0x4a2   :  { %9162 = vst [vmem:[#allocation99_spill] sm:$0xff] %v6696_v4  ;;  %2221 = vmatpush.msrb.mxu3 %v6711_v7  ;;  %v6714_v4 = vld [vmem:[#allocation16 + $0xe0] sm:$0xff] }
 0x4a3   :  { %9163 = vst [vmem:[#allocation100_spill] sm:$0xff] %v6699_v58  ;;  %2086 = vmatpush.msrb.mxu0 %v6714_v4  ;;  %v6717_v58 = vld [vmem:[#allocation16 + $0xe8] sm:$0xff] }
 0x4a4   :  { %9164 = vst [vmem:[#allocation103_spill] sm:$0xff] %v6702_v19  ;;  %2126 = vmatpush.msra.mxu2 %v6717_v58  ;;  %v6720_v19 = vld [vmem:[#allocation16 + $0x370] sm:$0xff] }
 0x4a5   :  { %9165 = vst [vmem:[#allocation104_spill] sm:$0xff] %v6705_v1  ;;  %2182 = vmatpush.msra.mxu1 %v6720_v19  ;;  %v6723_v1 = vld [vmem:[#allocation16 + $0x378] sm:$0xff] }
 0x4a6   :  { %9166 = vst [vmem:[#allocation107_spill] sm:$0xff] %v6708_v45  ;;  %2222 = vmatpush.msrb.mxu3 %v6723_v1  ;;  %v6726_v45 = vld [vmem:[#allocation16 + $0xc0] sm:$0xff] }
 0x4a7   :  { %9167 = vst [vmem:[#allocation108_spill] sm:$0xff] %v6711_v7  ;;  %2087 = vmatpush.msrb.mxu0 %v6726_v45  ;;  %v6729_v7 = vld [vmem:[#allocation16 + $0xc8] sm:$0xff] }
 0x4a8   :  { %9168 = vst [vmem:[#allocation111_spill] sm:$0xff] %v6714_v4  ;;  %2127 = vmatpush.msra.mxu2 %v6729_v7  ;;  %v6732_v4 = vld [vmem:[#allocation16 + $0x350] sm:$0xff] }
 0x4a9   :  { %9169 = vst [vmem:[#allocation112_spill] sm:$0xff] %v6717_v58  ;;  %2183 = vmatpush.msra.mxu1 %v6732_v4  ;;  %v6735_v58 = vld [vmem:[#allocation16 + $0x358] sm:$0xff] }
 0x4aa   :  { %9170 = vst [vmem:[#allocation117_spill] sm:$0xff] %v6720_v19  ;;  %2223 = vmatpush.msrb.mxu3 %v6735_v58  ;;  %v6738_v19 = vld [vmem:[#allocation16 + $0xa0] sm:$0xff] }
 0x4ab   :  { %9171 = vst [vmem:[#allocation118_spill] sm:$0xff] %v6723_v1  ;;  %2088 = vmatpush.msrb.mxu0 %v6738_v19  ;;  %v6741_v1 = vld [vmem:[#allocation16 + $0xa8] sm:$0xff] }
 0x4ac   :  { %9172 = vst [vmem:[#allocation121_spill] sm:$0xff] %v6726_v45  ;;  %2128 = vmatpush.msra.mxu2 %v6741_v1  ;;  %v6744_v45 = vld [vmem:[#allocation16 + $0x330] sm:$0xff] }
 0x4ad   :  { %9173 = vst [vmem:[#allocation122_spill] sm:$0xff] %v6729_v7  ;;  %2184 = vmatpush.msra.mxu1 %v6744_v45  ;;  %v6747_v7 = vld [vmem:[#allocation16 + $0x338] sm:$0xff] }
 0x4ae   :  { %9174 = vst [vmem:[#allocation125_spill] sm:$0xff] %v6732_v4  ;;  %2224 = vmatpush.msrb.mxu3 %v6747_v7  ;;  %v6750_v4 = vld [vmem:[#allocation16 + $0x80] sm:$0xff] }
 0x4af   :  { %9175 = vst [vmem:[#allocation126_spill] sm:$0xff] %v6735_v58  ;;  %2089 = vmatpush.msrb.mxu0 %v6750_v4  ;;  %v6753_v58 = vld [vmem:[#allocation16 + $0x88] sm:$0xff] }
 0x4b0   :  { %9176 = vst [vmem:[#allocation127_spill] sm:$0xff] %v6738_v19  ;;  %2129 = vmatpush.msra.mxu2 %v6753_v58  ;;  %v6756_v19 = vld [vmem:[#allocation16 + $0x310] sm:$0xff] }
 0x4b1   :  { %9177 = vst [vmem:[#allocation128_spill] sm:$0xff] %v6741_v1  ;;  %2185 = vmatpush.msra.mxu1 %v6756_v19  ;;  %v6759_v1 = vld [vmem:[#allocation16 + $0x318] sm:$0xff] }
 0x4b2   :  { %9178 = vst [vmem:[#allocation132_spill] sm:$0xff] %v6744_v45  ;;  %2225 = vmatpush.msrb.mxu3 %v6759_v1  ;;  %v6762_v45 = vld [vmem:[#allocation16 + $0x60] sm:$0xff] }
 0x4b3   :  { %9179 = vst [vmem:[#allocation133_spill] sm:$0xff] %v6747_v7  ;;  %2090 = vmatpush.msrb.mxu0 %v6762_v45  ;;  %v6765_v7 = vld [vmem:[#allocation16 + $0x68] sm:$0xff] }
 0x4b4   :  { %9180 = vst [vmem:[#allocation138_spill] sm:$0xff] %v6750_v4  ;;  %2130 = vmatpush.msra.mxu2 %v6765_v7  ;;  %v6768_v4 = vld [vmem:[#allocation16 + $0x2f0] sm:$0xff] }
 0x4b5   :  { %9181 = vst [vmem:[#allocation141_spill] sm:$0xff] %v6753_v58  ;;  %2186 = vmatpush.msra.mxu1 %v6768_v4  ;;  %v6771_v58 = vld [vmem:[#allocation16 + $0x2f8] sm:$0xff] }
 0x4b6   :  { %9182 = vst [vmem:[#allocation142_spill] sm:$0xff] %v6756_v19  ;;  %2226 = vmatpush.msrb.mxu3 %v6771_v58  ;;  %v6774_v19 = vld [vmem:[#allocation16 + $0x40] sm:$0xff] }
 0x4b7   :  { %9183 = vst [vmem:[#allocation143_spill] sm:$0xff] %v6759_v1  ;;  %2091 = vmatpush.msrb.mxu0 %v6774_v19  ;;  %v6777_v1 = vld [vmem:[#allocation16 + $0x48] sm:$0xff] }
 0x4b8   :  { %9184 = vst [vmem:[#allocation144_spill] sm:$0xff] %v6762_v45  ;;  %2131 = vmatpush.msra.mxu2 %v6777_v1  ;;  %v6780_v45 = vld [vmem:[#allocation16 + $0x2d0] sm:$0xff] }
 0x4b9   :  { %9185 = vst [vmem:[#allocation80_spill] sm:$0xff] %v6765_v7  ;;  %2187 = vmatpush.msra.mxu1 %v6780_v45  ;;  %v6783_v7 = vld [vmem:[#allocation16 + $0x2d8] sm:$0xff] }
 0x4ba   :  { %9186 = vst [vmem:[#allocation79_spill] sm:$0xff] %v6768_v4  ;;  %2227 = vmatpush.msrb.mxu3 %v6783_v7  ;;  %v6786_v4 = vld [vmem:[#allocation16 + $0x20] sm:$0xff] }
 0x4bb   :  { %9187 = vst [vmem:[#allocation145_spill] sm:$0xff] %v6771_v58  ;;  %2092 = vmatpush.msrb.mxu0 %v6786_v4  ;;  %v6789_v58 = vld [vmem:[#allocation16 + $0x28] sm:$0xff] }
 0x4bc   :  { %9188 = vst [vmem:[#allocation146_spill] sm:$0xff] %v6774_v19  ;;  %2132 = vmatpush.msra.mxu2 %v6789_v58  ;;  %v6792_v19 = vld [vmem:[#allocation16 + $0x2b0] sm:$0xff] }
 0x4bd   :  { %9189 = vst [vmem:[#allocation147_spill] sm:$0xff] %v6777_v1  ;;  %2188 = vmatpush.msra.mxu1 %v6792_v19  ;;  %v6795_v1 = vld [vmem:[#allocation16 + $0x2b8] sm:$0xff] }
 0x4be   :  { %9190 = vst [vmem:[#allocation148_spill] sm:$0xff] %v6780_v45  ;;  %2228 = vmatpush.msrb.mxu3 %v6795_v1  ;;  %v6798_v45 = vld [vmem:[#allocation16] sm:$0xff] }
 0x4bf   :  { %9191 = vst [vmem:[#allocation149_spill] sm:$0xff] %v6783_v7  ;;  %2093 = vmatpush.msrb.mxu0 %v6798_v45  ;;  %v6801_v7 = vld [vmem:[#allocation16 + $0x8] sm:$0xff]  ;;  %v1830_v3 = vpop.f32.mrf.mxu1 }
 0x4c0   :  { %9192 = vst [vmem:[#allocation150_spill] sm:$0xff] %v6786_v4  ;;  %2133 = vmatpush.msra.mxu2 %v6801_v7  ;;  %v6804_v4 = vld [vmem:[#allocation16 + $0x290] sm:$0xff] }
 0x4c1   :  { %9193 = vst [vmem:[#allocation151_spill] sm:$0xff] %v6789_v58  ;;  %2189 = vmatpush.msra.mxu1 %v6804_v4  ;;  %v6807_v58 = vld [vmem:[#allocation16 + $0x298] sm:$0xff] }
 0x4c2   :  { %9194 = vst [vmem:[#allocation152_spill] sm:$0xff] %v6792_v19  ;;  %2229 = vmatpush.msrb.mxu3 %v6807_v58  ;;  %v6810_v19 = vld [vmem:[#allocation16 + $0x1f0] sm:$0xff] }
 0x4c3   :  { %9195 = vst [vmem:[#allocation153_spill] sm:$0xff] %v6795_v1  ;;  %2158 = vmatpush.msra.mxu0 %v6810_v19  ;;  %v6813_v1 = vld [vmem:[#allocation16 + $0x1f8] sm:$0xff] }
 0x4c4   :  { %9196 = vst [vmem:[#allocation154_spill] sm:$0xff] %v6798_v45  ;;  %2198 = vmatpush.msrb.mxu2 %v6813_v1  ;;  %v6816_v45 = vld [vmem:[#allocation16 + $0x270] sm:$0xff] }
 0x4c5   :  { %9197 = vst [vmem:[#allocation155_spill] sm:$0xff] %v6801_v7  ;;  %2190 = vmatpush.msra.mxu1 %v6816_v45  ;;  %v6819_v7 = vld [vmem:[#allocation16 + $0x278] sm:$0xff] }
 0x4c6   :  { %9198 = vst [vmem:[#allocation156_spill] sm:$0xff] %v6804_v4  ;;  %2230 = vmatpush.msrb.mxu3 %v6819_v7  ;;  %v6822_v4 = vld [vmem:[#allocation16 + $0x1d0] sm:$0xff] }
 0x4c7   :  { %9199 = vst [vmem:[#allocation157_spill] sm:$0xff] %v6807_v58  ;;  %2159 = vmatpush.msra.mxu0 %v6822_v4  ;;  %v6825_v58 = vld [vmem:[#allocation16 + $0x1d8] sm:$0xff] }
 0x4c8   :  { %9200 = vst [vmem:[#allocation158_spill] sm:$0xff] %v6810_v19  ;;  %2199 = vmatpush.msrb.mxu2 %v6825_v58  ;;  %v6828_v19 = vld [vmem:[#allocation16 + $0x250] sm:$0xff] }
 0x4c9   :  { %9201 = vst [vmem:[#allocation159_spill] sm:$0xff] %v6813_v1  ;;  %2191 = vmatpush.msra.mxu1 %v6828_v19  ;;  %v6831_v1 = vld [vmem:[#allocation16 + $0x258] sm:$0xff] }
 0x4ca   :  { %9202 = vst [vmem:[#allocation160_spill] sm:$0xff] %v6816_v45  ;;  %2231 = vmatpush.msrb.mxu3 %v6831_v1  ;;  %v6834_v45 = vld [vmem:[#allocation16 + $0x1b0] sm:$0xff] }
 0x4cb   :  { %9203 = vst [vmem:[#allocation161_spill] sm:$0xff] %v6819_v7  ;;  %2160 = vmatpush.msra.mxu0 %v6834_v45  ;;  %v6837_v7 = vld [vmem:[#allocation16 + $0x1b8] sm:$0xff] }
 0x4cc   :  { %9204 = vst [vmem:[#allocation162_spill] sm:$0xff] %v6822_v4  ;;  %2200 = vmatpush.msrb.mxu2 %v6837_v7  ;;  %v6840_v4 = vld [vmem:[#allocation16 + $0x230] sm:$0xff] }
 0x4cd   :  { %9205 = vst [vmem:[#allocation163_spill] sm:$0xff] %v6825_v58  ;;  %2192 = vmatpush.msra.mxu1 %v6840_v4  ;;  %v6843_v58 = vld [vmem:[#allocation16 + $0x238] sm:$0xff] }
 0x4ce   :  { %9206 = vst [vmem:[#allocation164_spill] sm:$0xff] %v6828_v19  ;;  %2232 = vmatpush.msrb.mxu3 %v6843_v58  ;;  %v6846_v19 = vld [vmem:[#allocation16 + $0x190] sm:$0xff] }
 0x4cf   :  { %9207 = vst [vmem:[#allocation165_spill] sm:$0xff] %v6831_v1  ;;  %2161 = vmatpush.msra.mxu0 %v6846_v19  ;;  %v6849_v1 = vld [vmem:[#allocation16 + $0x198] sm:$0xff] }
 0x4d0   :  { %9208 = vst [vmem:[#allocation166_spill] sm:$0xff] %v6834_v45  ;;  %2201 = vmatpush.msrb.mxu2 %v6849_v1  ;;  %v6852_v45 = vld [vmem:[#allocation16 + $0x210] sm:$0xff] }
 0x4d1   :  { %9209 = vst [vmem:[#allocation167_spill] sm:$0xff] %v6837_v7  ;;  %2193 = vmatpush.msra.mxu1 %v6852_v45  ;;  %v6855_v7 = vld [vmem:[#allocation16 + $0x218] sm:$0xff] }
 0x4d2   :  { %9210 = vst [vmem:[#allocation168_spill] sm:$0xff] %v6840_v4  ;;  %2233 = vmatpush.msrb.mxu3 %v6855_v7  ;;  %v6858_v4 = vld [vmem:[#allocation16 + $0x170] sm:$0xff] }
 0x4d3   :  { %9211 = vst [vmem:[#allocation169_spill] sm:$0xff] %v6843_v58  ;;  %2162 = vmatpush.msra.mxu0 %v6858_v4  ;;  %v6861_v58 = vld [vmem:[#allocation16 + $0x178] sm:$0xff] }
 0x4d4   :  { %9212 = vst [vmem:[#allocation170_spill] sm:$0xff] %v6846_v19  ;;  %2202 = vmatpush.msrb.mxu2 %v6861_v58  ;;  %v6864_v19 = vld [vmem:[#allocation16 + $0x150] sm:$0xff] }
 0x4d5   :  { %9213 = vst [vmem:[#allocation171_spill] sm:$0xff] %v6849_v1  ;;  %2163 = vmatpush.msra.mxu0 %v6864_v19  ;;  %v6867_v1 = vld [vmem:[#allocation16 + $0x158] sm:$0xff] }
 0x4d6   :  { %9214 = vst [vmem:[#allocation172_spill] sm:$0xff] %v6852_v45  ;;  %2203 = vmatpush.msrb.mxu2 %v6867_v1  ;;  %v6870_v45 = vld [vmem:[#allocation16 + $0x130] sm:$0xff] }
 0x4d7   :  { %9215 = vst [vmem:[#allocation173_spill] sm:$0xff] %v6855_v7  ;;  %2164 = vmatpush.msra.mxu0 %v6870_v45  ;;  %v6873_v7 = vld [vmem:[#allocation16 + $0x138] sm:$0xff] }
 0x4d8   :  { %9216 = vst [vmem:[#allocation174_spill] sm:$0xff] %v6858_v4  ;;  %2204 = vmatpush.msrb.mxu2 %v6873_v7  ;;  %v6876_v4 = vld [vmem:[#allocation16 + $0x110] sm:$0xff] }
 0x4d9   :  { %9217 = vst [vmem:[#allocation175_spill] sm:$0xff] %v6861_v58  ;;  %2165 = vmatpush.msra.mxu0 %v6876_v4  ;;  %v6879_v58 = vld [vmem:[#allocation16 + $0x118] sm:$0xff] }
 0x4da   :  { %9218 = vst [vmem:[#allocation176_spill] sm:$0xff] %v6864_v19  ;;  %2205 = vmatpush.msrb.mxu2 %v6879_v58  ;;  %v6882_v19 = vld [vmem:[#allocation16 + $0xf0] sm:$0xff] }
 0x4db   :  { %9219 = vst [vmem:[#allocation177_spill] sm:$0xff] %v6867_v1  ;;  %2166 = vmatpush.msra.mxu0 %v6882_v19  ;;  %v6885_v1 = vld [vmem:[#allocation16 + $0xf8] sm:$0xff] }
 0x4dc   :  { %9220 = vst [vmem:[#allocation178_spill] sm:$0xff] %v6870_v45  ;;  %2206 = vmatpush.msrb.mxu2 %v6885_v1  ;;  %v6888_v45 = vld [vmem:[#allocation16 + $0xd0] sm:$0xff] }
 0x4dd   :  { %9221 = vst [vmem:[#allocation179_spill] sm:$0xff] %v6873_v7  ;;  %2167 = vmatpush.msra.mxu0 %v6888_v45  ;;  %v6891_v7 = vld [vmem:[#allocation16 + $0xd8] sm:$0xff] }
 0x4de   :  { %9222 = vst [vmem:[#allocation180_spill] sm:$0xff] %v6876_v4  ;;  %2207 = vmatpush.msrb.mxu2 %v6891_v7  ;;  %v6894_v4 = vld [vmem:[#allocation16 + $0xb0] sm:$0xff] }
 0x4df   :  { %9223 = vst [vmem:[#allocation181_spill] sm:$0xff] %v6879_v58  ;;  %2168 = vmatpush.msra.mxu0 %v6894_v4  ;;  %v6897_v58 = vld [vmem:[#allocation16 + $0xb8] sm:$0xff] }
 0x4e0   :  { %9224 = vst [vmem:[#allocation182_spill] sm:$0xff] %v6882_v19  ;;  %2208 = vmatpush.msrb.mxu2 %v6897_v58  ;;  %v6900_v19 = vld [vmem:[#allocation16 + $0x90] sm:$0xff] }
 0x4e1   :  { %9225 = vst [vmem:[#allocation183_spill] sm:$0xff] %v6885_v1  ;;  %2169 = vmatpush.msra.mxu0 %v6900_v19  ;;  %v6903_v1 = vld [vmem:[#allocation16 + $0x98] sm:$0xff]  ;;  %v1850_v31 = vpop.f32.mrf.mxu2 }
 0x4e2   :  { %9226 = vst [vmem:[#allocation184_spill] sm:$0xff] %v6888_v45  ;;  %2209 = vmatpush.msrb.mxu2 %v6903_v1  ;;  %v6906_v45 = vld [vmem:[#allocation16 + $0x70] sm:$0xff]  ;;  %v1851_v40 = vadd.f32 %v1850_v31, %v9095_v15 }
 0x4e3   :  { %9227 = vst [vmem:[#allocation185_spill] sm:$0xff] %v6891_v7  ;;  %2170 = vmatpush.msra.mxu0 %v6906_v45  ;;  %v6909_v7 = vld [vmem:[#allocation16 + $0x78] sm:$0xff] }
 0x4e4   :  { %9228 = vst [vmem:[#allocation186_spill] sm:$0xff] %v6894_v4  ;;  %2210 = vmatpush.msrb.mxu2 %v6909_v7  ;;  %v6912_v4 = vld [vmem:[#allocation16 + $0x50] sm:$0xff] }
 0x4e5   :  { %9229 = vst [vmem:[#allocation187_spill] sm:$0xff] %v6897_v58  ;;  %2171 = vmatpush.msra.mxu0 %v6912_v4  ;;  %v6915_v58 = vld [vmem:[#allocation16 + $0x58] sm:$0xff] }
 0x4e6   :  { %9230 = vst [vmem:[#allocation188_spill] sm:$0xff] %v6900_v19  ;;  %2211 = vmatpush.msrb.mxu2 %v6915_v58  ;;  %v6918_v19 = vld [vmem:[#allocation16 + $0x30] sm:$0xff] }
 0x4e7   :  { %9231 = vst [vmem:[#allocation189_spill] sm:$0xff] %v6903_v1  ;;  %2172 = vmatpush.msra.mxu0 %v6918_v19  ;;  %v6921_v1 = vld [vmem:[#allocation16 + $0x38] sm:$0xff] }
 0x4e8   :  { %9232 = vst [vmem:[#allocation190_spill] sm:$0xff] %v6906_v45  ;;  %2212 = vmatpush.msrb.mxu2 %v6921_v1  ;;  %v6924_v45 = vld [vmem:[#allocation16 + $0x10] sm:$0xff] }
 0x4e9   :  { %9233 = vst [vmem:[#allocation191_spill] sm:$0xff] %v6909_v7  ;;  %2173 = vmatpush.msra.mxu0 %v6924_v45  ;;  %v6927_v7 = vld [vmem:[#allocation16 + $0x18] sm:$0xff]  ;;  %v1930_v25 = vpop.f32.mrf.mxu2 }
 0x4ea   :  { %9234 = vst [vmem:[#allocation192_spill] sm:$0xff] %v6912_v4  ;;  %2213 = vmatpush.msrb.mxu2 %v6927_v7  ;;  %v1810_v4 = vpop.f32.mrf.mxu0 }
 0x4eb   :  { %9235 = vst [vmem:[#allocation193_spill] sm:$0xff] %v6915_v58  ;;  %v1811_v58 = vadd.f32 %v1810_v4, %v9094_v27  ;;  %v1931_v4 = vadd.f32 %v1930_v25, %v5512_v26 }
 0x4ec   :  { %9236 = vst [vmem:[#allocation194_spill] sm:$0xff] %v6918_v19  ;;  %v1870_v19 = vpop.f32.mrf.mxu3 }
 0x4ed   :  { %9237 = vst [vmem:[#allocation195_spill] sm:$0xff] %v6921_v1  ;;  %v1831_v59 = vadd.f32 %v1830_v3, %v1811_v58  ;;  %v1871_v1 = vadd.f32 %v1870_v19, %v1851_v40 }
 0x4ee   :  { %9238 = vst [vmem:[#allocation196_spill] sm:$0xff] %v6924_v45  ;;  %v1910_v45 = vpop.f32.mrf.mxu1 }
 0x4ef   :  { %9239 = vst [vmem:[#allocation197_spill] sm:$0xff] %v6927_v7  ;;  %v1953_v32 = vmul.f32 0.5, %v1831_v59  ;;  %v1957_v2 = vmul.f32 0.5, %v1871_v1 }
 0x4f1   :  { %3397 = vtanh.f32 %v1953_v32 }
 0x4f2   :  { %v1890_v29 = vpop.f32.mrf.mxu0  ;;  %3399 = vtanh.f32 %v1957_v2 }
 0x4f3   :  { %v1891_v34 = vadd.f32 %v1890_v29, %v5508_v10  ;;  %v9240_v29 = vld [vmem:[#allocation131_spill] sm:$0xff] }
 0x4f4   :  { %v1950_v3 = vpop.f32.mrf.mxu3 }
 0x4f5   :  { %v1911_v61 = vadd.f32 %v1910_v45, %v1891_v34  ;;  %v1951_v58 = vadd.f32 %v1950_v3, %v1931_v4  ;;  %v499_v34 = vadd.f32 %v9240_v29, %v5225_v6  ;;  %v9241_v4 = vld [vmem:[#allocation130_spill] sm:$0xff] }
 0x4f6   :  { %v2013_v15 = vpop.f32.mrf.mxu1  ;;  %v458_v3 = vadd.f32 %v9241_v4, %v5223_v63 }
 0x4f7   :  { %v3398_v7 = vpop.eup %3397  ;;  %3401 = vtanh.f32 %v1911_v61  ;;  %v1962_v31 = vmul.f32 0.5, %v1951_v58  ;;  %v2057_v45 = vadd.f32 %v2013_v15, %v499_v34  ;;  %v9243_v15 = vld [vmem:[#allocation53_spill] sm:$0xff] }
 0x4f8   :  { %v1955_v59 = vadd.f32 1.0, %v3398_v7  ;;  %v3400_v27 = vpop.eup %3399 }
 0x4f9   :  { %v1959_v9 = vadd.f32 1.0, %v3400_v27  ;;  %3403 = vtanh.f32 %v1962_v31  ;;  %v2064_v7 = vmul.f32 0.5, %v2057_v45 }
 0x4fa   :  { %v1956_v40 = vmul.f32 0.5, %v1955_v59 }
 0x4fb   :  { %v1960_v19 = vmul.f32 0.5, %v1959_v9  ;;  %v1993_v59 = vpop.f32.mrf.mxu0 }
 0x4fc   :  { %v2056_v31 = vadd.f32 %v1993_v59, %v458_v3  ;;  %v9260_v3 = vld [vmem:[#allocation78_spill] sm:$0xff] }
 0x4fd   :  { %v3402_v32 = vpop.eup %3401  ;;  %v1966_v2 = vmul.f32 %v1960_v19, %v6357_v18  ;;  %v2053_v18 = vpop.f32.mrf.mxu3  ;;  %v9262_v59 = vld [vmem:[#allocation42_spill] sm:$0xff] }
 0x4fe   :  { %v1967_v61 = vmul.f32 %v3402_v32, %v1956_v40  ;;  %v581_v32 = vadd.f32 %v9243_v15, %v5261_v20  ;;  %v2060_v40 = vmul.f32 0.5, %v2056_v31  ;;  %v9263_v31 = vld [vmem:[#allocation84_spill] sm:$0xff]  ;;  %v9265_v15 = vld [vmem:[#allocation43_spill] sm:$0xff] }
 0x4ff   :  { %v3404_v25 = vpop.eup %3403 }
 0x500   :  { %v6937_v1 = vadd.f32 %v1967_v61, %v1966_v2  ;;  %v1964_v27 = vadd.f32 1.0, %v3404_v25  ;;  %v2059_v19 = vadd.f32 %v2053_v18, %v581_v32  ;;  %v9244_v2 = vld [vmem:[#allocation52_spill] sm:$0xff]  ;;  %v9264_v18 = vld [vmem:[#allocation87_spill] sm:$0xff]  ;;  %v7058_v32 = vld [vmem:[#allocation15 + $0x60] sm:$0xff] }
 0x501   :  { %v540_v61 = vadd.f32 %v9244_v2, %v5259_v14  ;;  %v7064_v2 = vld [vmem:[#allocation15 + $0x40] sm:$0xff] }
 0x502   :  { %3405 = vtanh.f32 %v6937_v1  ;;  %v1965_v9 = vmul.f32 0.5, %v1964_v27  ;;  %v2069_v27 = vmul.f32 0.5, %v2059_v19  ;;  %v9267_v19 = vld [vmem:[#allocation91_spill] sm:$0xff] }
 0x503   :  { %3407 = vtanh.f32 %v2064_v7 }
 0x504   :  { %3409 = vtanh.f32 %v2060_v40  ;;  %v2033_v45 = vpop.f32.mrf.mxu2  ;;  %v9266_v40 = vld [vmem:[#allocation88_spill] sm:$0xff] }
 0x505   :  { %v2058_v25 = vadd.f32 %v2033_v45, %v540_v61  ;;  %v9269_v61 = vld [vmem:[#allocation92_spill] sm:$0xff]  ;;  %v9270_v45 = vld [vmem:[#allocation95_spill] sm:$0xff] }
 0x507   :  { %3411 = vtanh.f32 %v2058_v25  ;;  %v9271_v25 = vld [vmem:[#allocation45_spill] sm:$0xff] }
 0x508   :  { %v3406_v58 = vpop.eup %3405  ;;  %3413 = vtanh.f32 %v2069_v27  ;;  %v9272_v27 = vld [vmem:[#allocation96_spill] sm:$0xff] }
 0x509   :  { %v6942_v29 = vmul.f32 %v3406_v58, %v1965_v9  ;;  %v3408_v34 = vpop.eup %3407  ;;  %v9261_v9 = vld [vmem:[#allocation83_spill] sm:$0xff]  ;;  %v7052_v58 = vld [vmem:[#allocation15 + $0x80] sm:$0xff] }
 0x50a   :  { %v2066_v7 = vadd.f32 1.0, %v3408_v34  ;;  %v9268_v34 = vld [vmem:[#allocation44_spill] sm:$0xff] }
 0x50b   :  { %9242 = vst [vmem:[#allocation198_spill] sm:$0xff] %v6942_v29  ;;  %2114 = vmatmul.f32.vlgmr.msrb.gmra.mxu1 %v6942_v29  ;;  %2154 = vmatmul.f32.vlgmr.msra.gmra.mxu3 %v6942_v29 }
 0x50c   :  { %2281 = vmatpush.msrb.mxu1 %v6370_v48  ;;  %2321 = vmatpush.msra.mxu3 %v6373_v50  ;;  %v3410_v48 = vpop.eup %3409 }
 0x50d   :  { %v2062_v50 = vadd.f32 1.0, %v3410_v48  ;;  %v9273_v48 = vld [vmem:[#allocation101_spill] sm:$0xff] }
 0x50e   :  { %2282 = vmatpush.msrb.mxu1 %v6376_v35  ;;  %2322 = vmatpush.msra.mxu3 %v6379_v36  ;;  %v2067_v35 = vmul.f32 0.5, %v2066_v7  ;;  %v7070_v7 = vld [vmem:[#allocation15 + $0x20] sm:$0xff] }
 0x50f   :  { %v2063_v36 = vmul.f32 0.5, %v2062_v50  ;;  %v9274_v50 = vld [vmem:[#allocation46_spill] sm:$0xff] }
 0x510   :  { %2283 = vmatpush.msrb.mxu1 %v6382_v49  ;;  %2323 = vmatpush.msra.mxu3 %v6385_v46  ;;  %v3412_v49 = vpop.eup %3411  ;;  %v2073_v46 = vmul.f32 %v2067_v35, %v6415_v47  ;;  %v6998_v47 = vld [vmem:[#allocation15 + $0x1a0] sm:$0xff] }
 0x511   :  { %v7076_v35 = vld [vmem:[#allocation15] sm:$0xff] }
 0x512   :  { %2284 = vmatpush.msrb.mxu1 %v6388_v17  ;;  %2324 = vmatpush.msra.mxu3 %v6391_v33  ;;  %v2074_v17 = vmul.f32 %v3412_v49, %v2063_v36  ;;  %v3414_v33 = vpop.eup %3413  ;;  %v9275_v36 = vld [vmem:[#allocation102_spill] sm:$0xff]  ;;  %v9276_v49 = vld [vmem:[#allocation105_spill] sm:$0xff] }
 0x513   :  { %2194 = vmatmul.f32.vlgmr.msra.gmra.mxu1 %v6942_v29  ;;  %2234 = vmatmul.f32.vlgmr.msrb.gmra.mxu3 %v6942_v29  ;;  %v7354_v29 = vld [vmem:[#allocation15 + $0x130] sm:$0xff] }
 0x514   :  { %2285 = vmatpush.msrb.mxu1 %v6396_v56  ;;  %2325 = vmatpush.msra.mxu3 %v6399_v16  ;;  %v6967_v4 = vadd.f32 %v2074_v17, %v2073_v46  ;;  %v2071_v56 = vadd.f32 1.0, %v3414_v33  ;;  %v9277_v46 = vld [vmem:[#allocation47_spill] sm:$0xff]  ;;  %v9278_v17 = vld [vmem:[#allocation106_spill] sm:$0xff]  ;;  %v9279_v33 = vld [vmem:[#allocation109_spill] sm:$0xff]  ;;  %9395 = vst [vmem:[#allocation131_spill] sm:$0xff] %v7354_v29 }
 0x516   :  { %2286 = vmatpush.msrb.mxu1 %v6402_v38  ;;  %2326 = vmatpush.msra.mxu3 %v6405_v51  ;;  %3415 = vtanh.f32 %v6967_v4  ;;  %v2072_v16 = vmul.f32 0.5, %v2071_v56  ;;  %v9280_v56 = vld [vmem:[#allocation48_spill] sm:$0xff] }
 0x518   :  { %2287 = vmatpush.msrb.mxu1 %v6409_v57  ;;  %2327 = vmatpush.msra.mxu3 %v6412_v24  ;;  %v6986_v57 = vld [vmem:[#allocation15 + $0x1e0] sm:$0xff] }
 0x519   :  { %v6992_v24 = vld [vmem:[#allocation15 + $0x1c0] sm:$0xff] }
 0x51a   :  { %2288 = vmatpush.msrb.mxu1 %v6417_v39  ;;  %2328 = vmatpush.msra.mxu3 %v6420_v13  ;;  %v7004_v39 = vld [vmem:[#allocation15 + $0x180] sm:$0xff] }
 0x51b   :  { %v7010_v13 = vld [vmem:[#allocation15 + $0x160] sm:$0xff] }
 0x51c   :  { %2289 = vmatpush.msrb.mxu1 %v6424_v43  ;;  %2329 = vmatpush.msra.mxu3 %v6427_v54  ;;  %v3416_v38 = vpop.eup %3415  ;;  %v7016_v43 = vld [vmem:[#allocation15 + $0x140] sm:$0xff] }
 0x51d   :  { %v6980_v51 = vmul.f32 %v3416_v38, %v2072_v16  ;;  %v9245_v54 = vld [vmem:[#allocation62_spill] sm:$0xff]  ;;  %v9282_v38 = vld [vmem:[#allocation113_spill] sm:$0xff] }
 0x51e   :  { %2290 = vmatpush.msrb.mxu1 %v6430_v62  ;;  %2330 = vmatpush.msra.mxu3 %v6433_v55  ;;  %v9246_v62 = vld [vmem:[#allocation36_spill] sm:$0xff]  ;;  %v9247_v55 = vld [vmem:[#allocation63_spill] sm:$0xff]  ;;  %v9281_v16 = vld [vmem:[#allocation110_spill] sm:$0xff] }
 0x51f   :  { %2094 = vmatmul.f32.vlgmr.msrb.gmra.mxu0 %v6980_v51  ;;  %2134 = vmatmul.f32.vlgmr.msra.gmra.mxu2 %v6980_v51 }
 0x520   :  { %2291 = vmatpush.msrb.mxu1 %v6436_v42  ;;  %2331 = vmatpush.msra.mxu3 %v6439_v37  ;;  %v7022_v42 = vld [vmem:[#allocation15 + $0x120] sm:$0xff]  ;;  %v9248_v37 = vld [vmem:[#allocation65_spill] sm:$0xff] }
 0x521   :  { %2261 = vmatpush.msrb.mxu0 %v6986_v57  ;;  %2301 = vmatpush.msra.mxu2 %v6453_v5  ;;  %v7028_v5 = vld [vmem:[#allocation15 + $0x100] sm:$0xff] }
 0x522   :  { %2292 = vmatpush.msrb.mxu1 %v6444_v60  ;;  %2332 = vmatpush.msra.mxu3 %v6447_v12  ;;  %v9249_v60 = vld [vmem:[#allocation37_spill] sm:$0xff]  ;;  %v9250_v12 = vld [vmem:[#allocation38_spill] sm:$0xff] }
 0x523   :  { %2262 = vmatpush.msrb.mxu0 %v6992_v24  ;;  %2302 = vmatpush.msra.mxu2 %v6463_v23  ;;  %v9253_v23 = vld [vmem:[#allocation39_spill] sm:$0xff] }
 0x524   :  { %2293 = vmatpush.msrb.mxu1 %v6456_v44  ;;  %2333 = vmatpush.msra.mxu3 %v6459_v53  ;;  %v9251_v44 = vld [vmem:[#allocation66_spill] sm:$0xff]  ;;  %v9252_v53 = vld [vmem:[#allocation69_spill] sm:$0xff] }
 0x525   :  { %2263 = vmatpush.msrb.mxu0 %v6998_v47  ;;  %2303 = vmatpush.msra.mxu2 %v6473_v8  ;;  %v9255_v8 = vld [vmem:[#allocation73_spill] sm:$0xff] }
 0x526   :  { %2294 = vmatpush.msrb.mxu1 %v6466_v41  ;;  %2334 = vmatpush.msra.mxu3 %v6469_v21  ;;  %v7034_v41 = vld [vmem:[#allocation15 + $0xe0] sm:$0xff] }
 0x527   :  { %2264 = vmatpush.msrb.mxu0 %v7004_v39  ;;  %2304 = vmatpush.msra.mxu2 %v6483_v0  ;;  %v9254_v21 = vld [vmem:[#allocation70_spill] sm:$0xff] }
 0x528   :  { %2295 = vmatpush.msrb.mxu1 %v6476_v22  ;;  %2335 = vmatpush.msra.mxu3 %v6479_v52  ;;  %v9256_v22 = vld [vmem:[#allocation40_spill] sm:$0xff]  ;;  %v7040_v52 = vld [vmem:[#allocation15 + $0xc0] sm:$0xff] }
 0x529   :  { %2174 = vmatmul.f32.vlgmr.msra.gmra.mxu0 %v6980_v51  ;;  %2214 = vmatmul.f32.vlgmr.msrb.gmra.mxu2 %v6980_v51  ;;  %v9257_v0 = vld [vmem:[#allocation74_spill] sm:$0xff] }
 0x52a   :  { %2296 = vmatpush.msrb.mxu1 %v6486_v11  ;;  %2336 = vmatpush.msra.mxu3 %v6489_v30  ;;  %v9258_v11 = vld [vmem:[#allocation77_spill] sm:$0xff] }
 0x52b   :  { %2265 = vmatpush.msrb.mxu0 %v7010_v13  ;;  %2297 = vmatmul.f32.vlgmr.msrb.gmra.mxu1 %v6980_v51  ;;  %v9259_v30 = vld [vmem:[#allocation41_spill] sm:$0xff] }
 0x52c   :  { %2305 = vmatpush.msra.mxu2 %v6496_v28  ;;  %2337 = vmatmul.f32.vlgmr.msra.gmra.mxu3 %v6980_v51  ;;  %v7046_v28 = vld [vmem:[#allocation15 + $0xa0] sm:$0xff] }
 0x52d   :  { %2266 = vmatpush.msrb.mxu0 %v7016_v43  ;;  %2383 = vmatpush.msra.mxu1 %v9245_v54  ;;  %v9283_v54 = vld [vmem:[#allocation49_spill] sm:$0xff] }
 0x52e   :  { %2306 = vmatpush.msra.mxu2 %v9246_v62  ;;  %2423 = vmatpush.msrb.mxu3 %v9247_v55  ;;  %v9284_v62 = vld [vmem:[#allocation61_spill] sm:$0xff]  ;;  %v9285_v55 = vld [vmem:[#allocation64_spill] sm:$0xff] }
 0x52f   :  { %2267 = vmatpush.msrb.mxu0 %v7022_v42  ;;  %2384 = vmatpush.msra.mxu1 %v9248_v37  ;;  %v9286_v37 = vld [vmem:[#allocation114_spill] sm:$0xff] }
 0x530   :  { %2307 = vmatpush.msra.mxu2 %v9249_v60  ;;  %2424 = vmatpush.msrb.mxu3 %v9250_v12  ;;  %v9288_v60 = vld [vmem:[#allocation119_spill] sm:$0xff]  ;;  %v9289_v12 = vld [vmem:[#allocation68_spill] sm:$0xff] }
 0x531   :  { %2268 = vmatpush.msrb.mxu0 %v7028_v5  ;;  %2385 = vmatpush.msra.mxu1 %v9251_v44  ;;  %v9290_v44 = vld [vmem:[#allocation120_spill] sm:$0xff] }
 0x532   :  { %2308 = vmatpush.msra.mxu2 %v9252_v53  ;;  %2425 = vmatpush.msrb.mxu3 %v9253_v23  ;;  %v9291_v53 = vld [vmem:[#allocation71_spill] sm:$0xff] }
 0x533   :  { %2269 = vmatpush.msrb.mxu0 %v7034_v41  ;;  %2386 = vmatpush.msra.mxu1 %v9254_v21  ;;  %v9292_v23 = vld [vmem:[#allocation123_spill] sm:$0xff]  ;;  %v9293_v21 = vld [vmem:[#allocation72_spill] sm:$0xff] }
 0x534   :  { %2309 = vmatpush.msra.mxu2 %v9255_v8  ;;  %2426 = vmatpush.msrb.mxu3 %v9256_v22  ;;  %v9294_v8 = vld [vmem:[#allocation124_spill] sm:$0xff]  ;;  %v9295_v22 = vld [vmem:[#allocation75_spill] sm:$0xff] }
 0x535   :  { %2270 = vmatpush.msrb.mxu0 %v7040_v52  ;;  %2387 = vmatpush.msra.mxu1 %v9257_v0  ;;  %v9296_v0 = vld [vmem:[#allocation76_spill] sm:$0xff] }
 0x536   :  { %2310 = vmatpush.msra.mxu2 %v9258_v11  ;;  %2427 = vmatpush.msrb.mxu3 %v9259_v30  ;;  %v9297_v11 = vld [vmem:[#allocation81_spill] sm:$0xff]  ;;  %v9298_v30 = vld [vmem:[#allocation82_spill] sm:$0xff] }
 0x537   :  { %2271 = vmatpush.msrb.mxu0 %v7046_v28  ;;  %2388 = vmatpush.msra.mxu1 %v9260_v3  ;;  %v9299_v3 = vld [vmem:[#allocation129_spill] sm:$0xff] }
 0x538   :  { %2311 = vmatpush.msra.mxu2 %v9261_v9  ;;  %2428 = vmatpush.msrb.mxu3 %v9262_v59  ;;  %v9300_v9 = vld [vmem:[#allocation85_spill] sm:$0xff]  ;;  %v9301_v59 = vld [vmem:[#allocation86_spill] sm:$0xff] }
 0x539   :  { %2272 = vmatpush.msrb.mxu0 %v7052_v58  ;;  %2389 = vmatpush.msra.mxu1 %v9263_v31  ;;  %v9302_v31 = vld [vmem:[#allocation89_spill] sm:$0xff] }
 0x53a   :  { %2312 = vmatpush.msra.mxu2 %v9264_v18  ;;  %2429 = vmatpush.msrb.mxu3 %v9265_v15  ;;  %v9303_v18 = vld [vmem:[#allocation90_spill] sm:$0xff]  ;;  %v9304_v15 = vld [vmem:[#allocation93_spill] sm:$0xff] }
 0x53b   :  { %2273 = vmatpush.msrb.mxu0 %v7058_v32  ;;  %2390 = vmatpush.msra.mxu1 %v9266_v40  ;;  %v9305_v40 = vld [vmem:[#allocation94_spill] sm:$0xff] }
 0x53c   :  { %2313 = vmatpush.msra.mxu2 %v9267_v19  ;;  %2430 = vmatpush.msrb.mxu3 %v9268_v34  ;;  %v9306_v19 = vld [vmem:[#allocation99_spill] sm:$0xff]  ;;  %v9307_v34 = vld [vmem:[#allocation100_spill] sm:$0xff] }
 0x53d   :  { %2274 = vmatpush.msrb.mxu0 %v7064_v2  ;;  %2391 = vmatpush.msra.mxu1 %v9269_v61  ;;  %v9308_v61 = vld [vmem:[#allocation103_spill] sm:$0xff] }
 0x53e   :  { %2314 = vmatpush.msra.mxu2 %v9270_v45  ;;  %2431 = vmatpush.msrb.mxu3 %v9271_v25  ;;  %v9309_v45 = vld [vmem:[#allocation104_spill] sm:$0xff]  ;;  %v9310_v25 = vld [vmem:[#allocation107_spill] sm:$0xff] }
 0x53f   :  { %2275 = vmatpush.msrb.mxu0 %v7070_v7  ;;  %2392 = vmatpush.msra.mxu1 %v9272_v27  ;;  %v9311_v27 = vld [vmem:[#allocation108_spill] sm:$0xff] }
 0x540   :  { %2315 = vmatpush.msra.mxu2 %v9273_v48  ;;  %2432 = vmatpush.msrb.mxu3 %v9274_v50  ;;  %v9312_v48 = vld [vmem:[#allocation111_spill] sm:$0xff]  ;;  %v9313_v50 = vld [vmem:[#allocation112_spill] sm:$0xff] }
 0x541   :  { %2276 = vmatpush.msrb.mxu0 %v7076_v35  ;;  %2393 = vmatpush.msra.mxu1 %v9275_v36  ;;  %v9314_v36 = vld [vmem:[#allocation117_spill] sm:$0xff] }
 0x542   :  { %2316 = vmatpush.msra.mxu2 %v9276_v49  ;;  %2277 = vmatmul.f32.vlgmr.msrb.gmra.mxu0 %v6980_v51  ;;  %v9315_v49 = vld [vmem:[#allocation118_spill] sm:$0xff] }
 0x543   :  { %2317 = vmatmul.f32.vlgmr.msra.gmra.mxu2 %v6980_v51  ;;  %2433 = vmatpush.msrb.mxu3 %v9277_v46  ;;  %v9287_v51 = vld [vmem:[#allocation67_spill] sm:$0xff]  ;;  %v9316_v46 = vld [vmem:[#allocation121_spill] sm:$0xff] }
 0x544   :  { %2394 = vmatpush.msra.mxu1 %v9278_v17  ;;  %2363 = vmatpush.msra.mxu0 %v9279_v33  ;;  %v9317_v17 = vld [vmem:[#allocation122_spill] sm:$0xff]  ;;  %v9318_v33 = vld [vmem:[#allocation125_spill] sm:$0xff] }
 0x545   :  { %2434 = vmatpush.msrb.mxu3 %v9280_v56  ;;  %2403 = vmatpush.msrb.mxu2 %v9281_v16  ;;  %v9319_v56 = vld [vmem:[#allocation126_spill] sm:$0xff]  ;;  %v9320_v16 = vld [vmem:[#allocation127_spill] sm:$0xff] }
 0x546   :  { %2395 = vmatpush.msra.mxu1 %v9282_v38  ;;  %2364 = vmatpush.msra.mxu0 %v9283_v54  ;;  %v9321_v38 = vld [vmem:[#allocation128_spill] sm:$0xff] }
 0x547   :  { %2435 = vmatpush.msrb.mxu3 %v9284_v62  ;;  %2404 = vmatpush.msrb.mxu2 %v9285_v55  ;;  %v9322_v54 = vld [vmem:[#allocation132_spill] sm:$0xff]  ;;  %v9323_v62 = vld [vmem:[#allocation133_spill] sm:$0xff]  ;;  %v9324_v55 = vld [vmem:[#allocation138_spill] sm:$0xff] }
 0x548   :  { %2396 = vmatpush.msra.mxu1 %v9286_v37  ;;  %2365 = vmatpush.msra.mxu0 %v9287_v51  ;;  %v9325_v37 = vld [vmem:[#allocation141_spill] sm:$0xff]  ;;  %v9326_v51 = vld [vmem:[#allocation142_spill] sm:$0xff] }
 0x549   :  { %2436 = vmatpush.msrb.mxu3 %v9288_v60  ;;  %2405 = vmatpush.msrb.mxu2 %v9289_v12  ;;  %v9327_v60 = vld [vmem:[#allocation143_spill] sm:$0xff]  ;;  %v9328_v12 = vld [vmem:[#allocation144_spill] sm:$0xff] }
 0x54a   :  { %2397 = vmatpush.msra.mxu1 %v9290_v44  ;;  %2366 = vmatpush.msra.mxu0 %v9291_v53  ;;  %v9329_v44 = vld [vmem:[#allocation80_spill] sm:$0xff]  ;;  %v9330_v53 = vld [vmem:[#allocation79_spill] sm:$0xff] }
 0x54b   :  { %2437 = vmatpush.msrb.mxu3 %v9292_v23  ;;  %2406 = vmatpush.msrb.mxu2 %v9293_v21  ;;  %v9331_v23 = vld [vmem:[#allocation145_spill] sm:$0xff]  ;;  %v9332_v21 = vld [vmem:[#allocation146_spill] sm:$0xff] }
 0x54c   :  { %2398 = vmatpush.msra.mxu1 %v9294_v8  ;;  %2367 = vmatpush.msra.mxu0 %v9295_v22  ;;  %v9333_v8 = vld [vmem:[#allocation147_spill] sm:$0xff]  ;;  %v9334_v22 = vld [vmem:[#allocation148_spill] sm:$0xff] }
 0x54d   :  { %2438 = vmatpush.msrb.mxu3 %v9296_v0  ;;  %2407 = vmatpush.msrb.mxu2 %v9297_v11  ;;  %v9335_v0 = vld [vmem:[#allocation149_spill] sm:$0xff]  ;;  %v9336_v11 = vld [vmem:[#allocation150_spill] sm:$0xff] }
 0x54e   :  { %2463 = vmatpush.msrb.mxu1 %v9298_v30  ;;  %2368 = vmatpush.msra.mxu0 %v9300_v9  ;;  %v9337_v30 = vld [vmem:[#allocation151_spill] sm:$0xff]  ;;  %v9339_v9 = vld [vmem:[#allocation153_spill] sm:$0xff] }
 0x54f   :  { %2503 = vmatpush.msra.mxu3 %v9299_v3  ;;  %2408 = vmatpush.msrb.mxu2 %v9301_v59  ;;  %v9338_v3 = vld [vmem:[#allocation152_spill] sm:$0xff]  ;;  %v9340_v59 = vld [vmem:[#allocation154_spill] sm:$0xff] }
 0x550   :  { %2464 = vmatpush.msrb.mxu1 %v9302_v31  ;;  %2369 = vmatpush.msra.mxu0 %v9304_v15  ;;  %v9341_v31 = vld [vmem:[#allocation155_spill] sm:$0xff]  ;;  %v9343_v15 = vld [vmem:[#allocation157_spill] sm:$0xff] }
 0x551   :  { %2504 = vmatpush.msra.mxu3 %v9303_v18  ;;  %2409 = vmatpush.msrb.mxu2 %v9305_v40  ;;  %v9342_v18 = vld [vmem:[#allocation156_spill] sm:$0xff]  ;;  %v9344_v40 = vld [vmem:[#allocation158_spill] sm:$0xff] }
 0x552   :  { %2465 = vmatpush.msrb.mxu1 %v9306_v19  ;;  %2370 = vmatpush.msra.mxu0 %v9308_v61  ;;  %v9345_v19 = vld [vmem:[#allocation159_spill] sm:$0xff]  ;;  %v9347_v61 = vld [vmem:[#allocation161_spill] sm:$0xff] }
 0x553   :  { %2505 = vmatpush.msra.mxu3 %v9307_v34  ;;  %2410 = vmatpush.msrb.mxu2 %v9309_v45  ;;  %v9346_v34 = vld [vmem:[#allocation160_spill] sm:$0xff]  ;;  %v9348_v45 = vld [vmem:[#allocation162_spill] sm:$0xff] }
 0x554   :  { %2466 = vmatpush.msrb.mxu1 %v9310_v25  ;;  %2371 = vmatpush.msra.mxu0 %v9312_v48  ;;  %v9349_v25 = vld [vmem:[#allocation163_spill] sm:$0xff]  ;;  %v9351_v48 = vld [vmem:[#allocation165_spill] sm:$0xff] }
 0x555   :  { %2506 = vmatpush.msra.mxu3 %v9311_v27  ;;  %2411 = vmatpush.msrb.mxu2 %v9313_v50  ;;  %v9350_v27 = vld [vmem:[#allocation164_spill] sm:$0xff]  ;;  %v9352_v50 = vld [vmem:[#allocation166_spill] sm:$0xff] }
 0x556   :  { %2467 = vmatpush.msrb.mxu1 %v9314_v36  ;;  %2372 = vmatpush.msra.mxu0 %v9316_v46  ;;  %v9353_v36 = vld [vmem:[#allocation167_spill] sm:$0xff]  ;;  %v9355_v46 = vld [vmem:[#allocation169_spill] sm:$0xff] }
 0x557   :  { %2507 = vmatpush.msra.mxu3 %v9315_v49  ;;  %2412 = vmatpush.msrb.mxu2 %v9317_v17  ;;  %v9354_v49 = vld [vmem:[#allocation168_spill] sm:$0xff]  ;;  %v9356_v17 = vld [vmem:[#allocation170_spill] sm:$0xff] }
 0x558   :  { %2468 = vmatpush.msrb.mxu1 %v9318_v33  ;;  %2373 = vmatpush.msra.mxu0 %v9320_v16  ;;  %v9357_v33 = vld [vmem:[#allocation171_spill] sm:$0xff]  ;;  %v9359_v16 = vld [vmem:[#allocation173_spill] sm:$0xff] }
 0x559   :  { %2508 = vmatpush.msra.mxu3 %v9319_v56  ;;  %2413 = vmatpush.msrb.mxu2 %v9321_v38  ;;  %v9358_v56 = vld [vmem:[#allocation172_spill] sm:$0xff]  ;;  %v9360_v38 = vld [vmem:[#allocation174_spill] sm:$0xff] }
 0x55a   :  { %2469 = vmatpush.msrb.mxu1 %v9322_v54  ;;  %2374 = vmatpush.msra.mxu0 %v9324_v55  ;;  %v9361_v54 = vld [vmem:[#allocation175_spill] sm:$0xff]  ;;  %v9363_v55 = vld [vmem:[#allocation177_spill] sm:$0xff] }
 0x55b   :  { %2509 = vmatpush.msra.mxu3 %v9323_v62  ;;  %2414 = vmatpush.msrb.mxu2 %v9325_v37  ;;  %v9362_v62 = vld [vmem:[#allocation176_spill] sm:$0xff]  ;;  %v9364_v37 = vld [vmem:[#allocation178_spill] sm:$0xff] }
 0x55c   :  { %2470 = vmatpush.msrb.mxu1 %v9326_v51  ;;  %2375 = vmatpush.msra.mxu0 %v9328_v12  ;;  %v9365_v51 = vld [vmem:[#allocation179_spill] sm:$0xff]  ;;  %v9367_v12 = vld [vmem:[#allocation181_spill] sm:$0xff] }
 0x55d   :  { %2510 = vmatpush.msra.mxu3 %v9327_v60  ;;  %2415 = vmatpush.msrb.mxu2 %v9329_v44  ;;  %v9366_v60 = vld [vmem:[#allocation180_spill] sm:$0xff]  ;;  %v9368_v44 = vld [vmem:[#allocation182_spill] sm:$0xff] }
 0x55e   :  { %2471 = vmatpush.msrb.mxu1 %v9330_v53  ;;  %2376 = vmatpush.msra.mxu0 %v9332_v21  ;;  %v9369_v53 = vld [vmem:[#allocation183_spill] sm:$0xff]  ;;  %v9371_v21 = vld [vmem:[#allocation185_spill] sm:$0xff] }
 0x55f   :  { %2511 = vmatpush.msra.mxu3 %v9331_v23  ;;  %2416 = vmatpush.msrb.mxu2 %v9333_v8  ;;  %v9370_v23 = vld [vmem:[#allocation184_spill] sm:$0xff]  ;;  %v9372_v8 = vld [vmem:[#allocation186_spill] sm:$0xff] }
 0x560   :  { %2472 = vmatpush.msrb.mxu1 %v9334_v22  ;;  %2377 = vmatpush.msra.mxu0 %v9336_v11  ;;  %v9373_v22 = vld [vmem:[#allocation187_spill] sm:$0xff]  ;;  %v9375_v11 = vld [vmem:[#allocation189_spill] sm:$0xff] }
 0x561   :  { %2512 = vmatpush.msra.mxu3 %v9335_v0  ;;  %2417 = vmatpush.msrb.mxu2 %v9337_v30  ;;  %v9374_v0 = vld [vmem:[#allocation188_spill] sm:$0xff]  ;;  %v9376_v30 = vld [vmem:[#allocation190_spill] sm:$0xff] }
 0x562   :  { %2473 = vmatpush.msrb.mxu1 %v9338_v3  ;;  %2378 = vmatpush.msra.mxu0 %v9340_v59  ;;  %v9377_v3 = vld [vmem:[#allocation191_spill] sm:$0xff]  ;;  %v9379_v59 = vld [vmem:[#allocation193_spill] sm:$0xff] }
 0x563   :  { %2513 = vmatpush.msra.mxu3 %v9339_v9  ;;  %2418 = vmatpush.msrb.mxu2 %v9341_v31  ;;  %v9378_v9 = vld [vmem:[#allocation192_spill] sm:$0xff]  ;;  %v9380_v31 = vld [vmem:[#allocation194_spill] sm:$0xff] }
 0x564   :  { %2474 = vmatpush.msrb.mxu1 %v9342_v18  ;;  %2443 = vmatpush.msrb.mxu0 %v9344_v40  ;;  %v9381_v18 = vld [vmem:[#allocation195_spill] sm:$0xff]  ;;  %v9383_v40 = vld [vmem:[#allocation197_spill] sm:$0xff] }
 0x565   :  { %2514 = vmatpush.msra.mxu3 %v9343_v15  ;;  %2483 = vmatpush.msra.mxu2 %v9345_v19  ;;  %v9382_v15 = vld [vmem:[#allocation196_spill] sm:$0xff] }
 0x566   :  { %2475 = vmatpush.msrb.mxu1 %v9346_v34  ;;  %2444 = vmatpush.msrb.mxu0 %v9348_v45 }
 0x567   :  { %2515 = vmatpush.msra.mxu3 %v9347_v61  ;;  %2484 = vmatpush.msra.mxu2 %v9349_v25  ;;  %v9384_v61 = vld [vmem:[#allocation59_spill] sm:$0xff] }
 0x568   :  { %2476 = vmatpush.msrb.mxu1 %v9350_v27  ;;  %2445 = vmatpush.msrb.mxu0 %v9352_v50 }
 0x569   :  { %2516 = vmatpush.msra.mxu3 %v9351_v48  ;;  %2485 = vmatpush.msra.mxu2 %v9353_v36  ;;  %v9385_v36 = vld [vmem:[#allocation35_spill] sm:$0xff] }
 0x56a   :  { %2477 = vmatpush.msrb.mxu1 %v9354_v49  ;;  %2446 = vmatpush.msrb.mxu0 %v9356_v17 }
 0x56b   :  { %2517 = vmatpush.msra.mxu3 %v9355_v46  ;;  %2486 = vmatpush.msra.mxu2 %v9357_v33 }
 0x56c   :  { %2478 = vmatpush.msrb.mxu1 %v9358_v56  ;;  %2447 = vmatpush.msrb.mxu0 %v9360_v38 }
 0x56d   :  { %2518 = vmatpush.msra.mxu3 %v9359_v16  ;;  %2487 = vmatpush.msra.mxu2 %v9361_v54 }
 0x56e   :  { %2448 = vmatpush.msrb.mxu0 %v9362_v62 }
 0x56f   :  { %2488 = vmatpush.msra.mxu2 %v9363_v55 }
 0x570   :  { %2449 = vmatpush.msrb.mxu0 %v9364_v37 }
 0x571   :  { %2489 = vmatpush.msra.mxu2 %v9365_v51 }
 0x572   :  { %2450 = vmatpush.msrb.mxu0 %v9366_v60 }
 0x573   :  { %2490 = vmatpush.msra.mxu2 %v9367_v12 }
 0x574   :  { %2451 = vmatpush.msrb.mxu0 %v9368_v44 }
 0x575   :  { %2491 = vmatpush.msra.mxu2 %v9369_v53 }
 0x576   :  { %2452 = vmatpush.msrb.mxu0 %v9370_v23 }
 0x577   :  { %2492 = vmatpush.msra.mxu2 %v9371_v21 }
 0x578   :  { %2453 = vmatpush.msrb.mxu0 %v9372_v8  ;;  %v9386_v8 = vld [vmem:[#allocation135_spill] sm:$0xff] }
 0x579   :  { %2493 = vmatpush.msra.mxu2 %v9373_v22  ;;  %v502_v22 = vadd.f32 %v9386_v8, %v5225_v6  ;;  %v7228_v8 = vld [vmem:[#allocation15 + $0x188] sm:$0xff] }
 0x57a   :  { %2454 = vmatpush.msrb.mxu0 %v9374_v0 }
 0x57b   :  { %2494 = vmatpush.msra.mxu2 %v9375_v11 }
 0x57c   :  { %2455 = vmatpush.msrb.mxu0 %v9376_v30 }
 0x57d   :  { %2495 = vmatpush.msra.mxu2 %v9377_v3 }
 0x57e   :  { %2456 = vmatpush.msrb.mxu0 %v9378_v9 }
 0x57f   :  { %2496 = vmatpush.msra.mxu2 %v9379_v59 }
 0x580   :  { %2457 = vmatpush.msrb.mxu0 %v9380_v31 }
 0x581   :  { %2497 = vmatpush.msra.mxu2 %v9381_v18 }
 0x582   :  { %2458 = vmatpush.msrb.mxu0 %v9382_v15 }
 0x583   :  { %2498 = vmatpush.msra.mxu2 %v9383_v40  ;;  %v9387_v40 = vld [vmem:[#allocation134_spill] sm:$0xff] }
 0x588   :  { %v2115_v19 = vpop.f32.mrf.mxu1 }
 0x58e   :  { %v2155_v48 = vpop.f32.mrf.mxu3 }
 0x590   :  { %v2195_v56 = vpop.f32.mrf.mxu1 }
 0x596   :  { %v2235_v37 = vpop.f32.mrf.mxu3 }
 0x59c   :  { %v2095_v34 = vpop.f32.mrf.mxu0 }
 0x59d   :  { %v2096_v45 = vadd.f32 %v2095_v34, %v9384_v61 }
 0x59f   :  { %v2116_v25 = vadd.f32 %v2115_v19, %v2096_v45  ;;  %v461_v19 = vadd.f32 %v9387_v40, %v5223_v63 }
 0x5a1   :  { %v2238_v27 = vmul.f32 0.5, %v2116_v25 }
 0x5a2   :  { %v2135_v50 = vpop.f32.mrf.mxu2 }
 0x5a3   :  { %v2136_v49 = vadd.f32 %v2135_v50, %v9385_v36  ;;  %3417 = vtanh.f32 %v2238_v27 }
 0x5a5   :  { %v2156_v17 = vadd.f32 %v2155_v48, %v2136_v49 }
 0x5a6   :  { %v2175_v46 = vpop.f32.mrf.mxu0 }
 0x5a7   :  { %v2176_v33 = vadd.f32 %v2175_v46, %v5508_v10  ;;  %v2242_v16 = vmul.f32 0.5, %v2156_v17 }
 0x5a8   :  { %v2298_v21 = vpop.f32.mrf.mxu1 }
 0x5a9   :  { %v2196_v38 = vadd.f32 %v2195_v56, %v2176_v33  ;;  %3419 = vtanh.f32 %v2242_v16  ;;  %v3418_v62 = vpop.eup %3417  ;;  %v2342_v9 = vadd.f32 %v2298_v21, %v502_v22  ;;  %v9390_v56 = vld [vmem:[#allocation54_spill] sm:$0xff]  ;;  %v7231_v22 = vld [vmem:[#allocation15 + $0x198] sm:$0xff] }
 0x5aa   :  { %v2240_v60 = vadd.f32 1.0, %v3418_v62  ;;  %v543_v16 = vadd.f32 %v9390_v56, %v5259_v14  ;;  %v7276_v56 = vld [vmem:[#allocation15 + $0xa8] sm:$0xff] }
 0x5ab   :  { %3421 = vtanh.f32 %v2196_v38  ;;  %v2349_v18 = vmul.f32 0.5, %v2342_v9  ;;  %v7210_v38 = vld [vmem:[#allocation15 + $0x1e8] sm:$0xff] }
 0x5ac   :  { %v2215_v54 = vpop.f32.mrf.mxu2  ;;  %v2241_v0 = vmul.f32 0.5, %v2240_v60 }
 0x5ad   :  { %v2216_v55 = vadd.f32 %v2215_v54, %v5512_v26  ;;  %v7213_v54 = vld [vmem:[#allocation15 + $0x1f8] sm:$0xff] }
 0x5af   :  { %v2236_v51 = vadd.f32 %v2235_v37, %v2216_v55  ;;  %v3420_v12 = vpop.eup %3419  ;;  %v2338_v48 = vpop.f32.mrf.mxu3  ;;  %v7216_v37 = vld [vmem:[#allocation15 + $0x1c8] sm:$0xff] }
 0x5b0   :  { %v2244_v53 = vadd.f32 1.0, %v3420_v12 }
 0x5b1   :  { %v2247_v44 = vmul.f32 0.5, %v2236_v51  ;;  %v3422_v23 = vpop.eup %3421  ;;  %v7219_v51 = vld [vmem:[#allocation15 + $0x1d8] sm:$0xff] }
 0x5b2   :  { %v2245_v11 = vmul.f32 0.5, %v2244_v53  ;;  %v2252_v3 = vmul.f32 %v3422_v23, %v2241_v0  ;;  %v7225_v53 = vld [vmem:[#allocation15 + $0x1b8] sm:$0xff] }
 0x5b3   :  { %3423 = vtanh.f32 %v2247_v44  ;;  %v7222_v44 = vld [vmem:[#allocation15 + $0x1a8] sm:$0xff] }
 0x5b4   :  { %v2251_v30 = vmul.f32 %v2245_v11, %v6937_v1  ;;  %v9388_v1 = vld [vmem:[#allocation55_spill] sm:$0xff] }
 0x5b5   :  { %v584_v50 = vadd.f32 %v9388_v1, %v5261_v20  ;;  %v7264_v1 = vld [vmem:[#allocation15 + $0xe8] sm:$0xff] }
 0x5b6   :  { %v7197_v59 = vadd.f32 %v2252_v3, %v2251_v30  ;;  %v7236_v30 = vld [vmem:[#allocation15 + $0x168] sm:$0xff]  ;;  %v7239_v3 = vld [vmem:[#allocation15 + $0x178] sm:$0xff] }
 0x5b7   :  { %v2344_v17 = vadd.f32 %v2338_v48, %v584_v50  ;;  %v7260_v48 = vld [vmem:[#allocation15 + $0x118] sm:$0xff] }
 0x5b8   :  { %3425 = vtanh.f32 %v7197_v59  ;;  %v7267_v50 = vld [vmem:[#allocation15 + $0xf8] sm:$0xff] }
 0x5b9   :  { %v3424_v31 = vpop.eup %3423  ;;  %3427 = vtanh.f32 %v2349_v18  ;;  %v2354_v12 = vmul.f32 0.5, %v2344_v17  ;;  %v7245_v18 = vld [vmem:[#allocation15 + $0x158] sm:$0xff] }
 0x5ba   :  { %v2249_v15 = vadd.f32 1.0, %v3424_v31  ;;  %v7242_v31 = vld [vmem:[#allocation15 + $0x148] sm:$0xff]  ;;  %v7273_v17 = vld [vmem:[#allocation15 + $0xd8] sm:$0xff] }
 0x5bc   :  { %v2250_v45 = vmul.f32 0.5, %v2249_v15 }
 0x5be   :  { %v3426_v27 = vpop.eup %3425 }
 0x5bf   :  { %v2278_v34 = vpop.f32.mrf.mxu0  ;;  %v7204_v49 = vmul.f32 %v3426_v27, %v2250_v45  ;;  %v3428_v33 = vpop.eup %3427  ;;  %v7257_v27 = vld [vmem:[#allocation15 + $0x108] sm:$0xff] }
 0x5c0   :  { %v2341_v25 = vadd.f32 %v2278_v34, %v461_v19  ;;  %v2351_v60 = vadd.f32 1.0, %v3428_v33  ;;  %v7249_v19 = vld [vmem:[#allocation15 + $0x128] sm:$0xff]  ;;  %v7252_v34 = vld [vmem:[#allocation15 + $0x138] sm:$0xff] }
 0x5c1   :  { %9389 = vst [vmem:[#allocation199_spill] sm:$0xff] %v7204_v49  ;;  %2399 = vmatmul.f32.vlgmr.msra.gmra.mxu1 %v7204_v49  ;;  %2439 = vmatmul.f32.vlgmr.msrb.gmra.mxu3 %v7204_v49 }
 0x5c2   :  { %v2345_v46 = vmul.f32 0.5, %v2341_v25  ;;  %2566 = vmatpush.msra.mxu1 %v7210_v38  ;;  %2606 = vmatpush.msrb.mxu3 %v7213_v54  ;;  %v2352_v0 = vmul.f32 0.5, %v2351_v60  ;;  %v7284_v60 = vld [vmem:[#allocation15 + $0x88] sm:$0xff] }
 0x5c4   :  { %3429 = vtanh.f32 %v2345_v46  ;;  %2567 = vmatpush.msra.mxu1 %v7216_v37  ;;  %2607 = vmatpush.msrb.mxu3 %v7219_v51  ;;  %v2358_v15 = vmul.f32 %v2352_v0, %v6967_v4  ;;  %v7270_v46 = vld [vmem:[#allocation15 + $0xc8] sm:$0xff]  ;;  %v7299_v0 = vld [vmem:[#allocation15 + $0x78] sm:$0xff] }
 0x5c6   :  { %v2318_v62 = vpop.f32.mrf.mxu2  ;;  %2568 = vmatpush.msra.mxu1 %v7222_v44  ;;  %2608 = vmatpush.msrb.mxu3 %v7225_v53 }
 0x5c7   :  { %v2343_v55 = vadd.f32 %v2318_v62, %v543_v16  ;;  %v7279_v16 = vld [vmem:[#allocation15 + $0xb8] sm:$0xff] }
 0x5c8   :  { %2569 = vmatpush.msra.mxu1 %v7228_v8  ;;  %2609 = vmatpush.msrb.mxu3 %v7231_v22 }
 0x5c9   :  { %3431 = vtanh.f32 %v2343_v55  ;;  %2479 = vmatmul.f32.vlgmr.msrb.gmra.mxu1 %v7204_v49  ;;  %2519 = vmatmul.f32.vlgmr.msra.gmra.mxu3 %v7204_v49  ;;  %v7347_v49 = vld [vmem:[#allocation16 + $0x3e8] sm:$0xff] }
 0x5ca   :  { %v3430_v23 = vpop.eup %3429  ;;  %3433 = vtanh.f32 %v2354_v12  ;;  %2570 = vmatpush.msra.mxu1 %v7236_v30  ;;  %2610 = vmatpush.msrb.mxu3 %v7239_v3  ;;  %v7287_v12 = vld [vmem:[#allocation15 + $0x98] sm:$0xff]  ;;  %9393 = vst [vmem:[#allocation51_spill] sm:$0xff] %v7347_v49 }
 0x5cb   :  { %v2347_v21 = vadd.f32 1.0, %v3430_v23  ;;  %v7293_v23 = vld [vmem:[#allocation15 + $0x1f0] sm:$0xff] }
 0x5cc   :  { %2571 = vmatpush.msra.mxu1 %v7242_v31  ;;  %2611 = vmatpush.msrb.mxu3 %v7245_v18 }
 0x5cd   :  { %v2348_v11 = vmul.f32 0.5, %v2347_v21  ;;  %v7296_v21 = vld [vmem:[#allocation15 + $0x68] sm:$0xff] }
 0x5ce   :  { %2572 = vmatpush.msra.mxu1 %v7249_v19  ;;  %2612 = vmatpush.msrb.mxu3 %v7252_v34 }
 0x5cf   :  { %v3432_v9 = vpop.eup %3431 }
 0x5d0   :  { %v2359_v40 = vmul.f32 %v3432_v9, %v2348_v11  ;;  %v3434_v45 = vpop.eup %3433  ;;  %2573 = vmatpush.msra.mxu1 %v7257_v27  ;;  %2613 = vmatpush.msrb.mxu3 %v7260_v48  ;;  %v7303_v11 = vld [vmem:[#allocation15 + $0x1d0] sm:$0xff]  ;;  %v7306_v9 = vld [vmem:[#allocation15 + $0x48] sm:$0xff] }
 0x5d1   :  { %v2356_v4 = vadd.f32 1.0, %v3434_v45  ;;  %v7323_v45 = vld [vmem:[#allocation15 + $0x190] sm:$0xff] }
 0x5d2   :  { %v7255_v25 = vadd.f32 %v2359_v40, %v2358_v15  ;;  %2574 = vmatpush.msra.mxu1 %v7264_v1  ;;  %2614 = vmatpush.msrb.mxu3 %v7267_v50  ;;  %v7313_v15 = vld [vmem:[#allocation15 + $0x1b0] sm:$0xff]  ;;  %v7316_v40 = vld [vmem:[#allocation15 + $0x28] sm:$0xff] }
 0x5d3   :  { %v2357_v33 = vmul.f32 0.5, %v2356_v4  ;;  %v7326_v4 = vld [vmem:[#allocation15 + $0x8] sm:$0xff] }
 0x5d4   :  { %3435 = vtanh.f32 %v7255_v25  ;;  %2575 = vmatpush.msra.mxu1 %v7270_v46  ;;  %2615 = vmatpush.msrb.mxu3 %v7273_v17 }
 0x5d6   :  { %2576 = vmatpush.msra.mxu1 %v7276_v56  ;;  %2616 = vmatpush.msrb.mxu3 %v7279_v16 }
 0x5d8   :  { %2577 = vmatpush.msra.mxu1 %v7284_v60  ;;  %2617 = vmatpush.msrb.mxu3 %v7287_v12 }
 0x5da   :  { %v3436_v62 = vpop.eup %3435  ;;  %2578 = vmatpush.msra.mxu1 %v7296_v21  ;;  %2618 = vmatpush.msrb.mxu3 %v7299_v0 }
 0x5db   :  { %v7282_v55 = vmul.f32 %v3436_v62, %v2357_v33  ;;  %v7341_v33 = vld [vmem:[#allocation16 + $0x3e0] sm:$0xff]  ;;  %v7344_v62 = vld [vmem:[#allocation15 + $0x150] sm:$0xff] }
 0x5dc   :  { %2579 = vmatpush.msra.mxu1 %v7306_v9  ;;  %9391 = vst [vmem:[#allocation116_spill] sm:$0xff] %v7341_v33 }
 0x5dd   :  { %2379 = vmatmul.f32.vlgmr.msra.gmra.mxu0 %v7282_v55  ;;  %2419 = vmatmul.f32.vlgmr.msrb.gmra.mxu2 %v7282_v55  ;;  %9392 = vst [vmem:[#allocation115_spill] sm:$0xff] %v7344_v62 }
 0x5de   :  { %2546 = vmatpush.msra.mxu0 %v6986_v57  ;;  %2586 = vmatpush.msrb.mxu2 %v7293_v23  ;;  %v7309_v57 = vld [vmem:[#allocation15 + $0x58] sm:$0xff] }
 0x5df   :  { %2619 = vmatpush.msrb.mxu3 %v7309_v57  ;;  %2580 = vmatpush.msra.mxu1 %v7316_v40 }
 0x5e0   :  { %2547 = vmatpush.msra.mxu0 %v6992_v24  ;;  %2587 = vmatpush.msrb.mxu2 %v7303_v11  ;;  %v7319_v24 = vld [vmem:[#allocation15 + $0x38] sm:$0xff] }
 0x5e1   :  { %2620 = vmatpush.msrb.mxu3 %v7319_v24  ;;  %2581 = vmatpush.msra.mxu1 %v7326_v4 }
 0x5e2   :  { %2548 = vmatpush.msra.mxu0 %v6998_v47  ;;  %2588 = vmatpush.msrb.mxu2 %v7313_v15  ;;  %v7329_v47 = vld [vmem:[#allocation15 + $0x18] sm:$0xff] }
 0x5e3   :  { %2621 = vmatpush.msrb.mxu3 %v7329_v47  ;;  %2582 = vmatmul.f32.vlgmr.msra.gmra.mxu1 %v7282_v55 }
 0x5e4   :  { %2549 = vmatpush.msra.mxu0 %v7004_v39  ;;  %2589 = vmatpush.msrb.mxu2 %v7323_v45  ;;  %v7336_v39 = vld [vmem:[#allocation15 + $0x170] sm:$0xff] }
 0x5e5   :  { %2459 = vmatmul.f32.vlgmr.msrb.gmra.mxu0 %v7282_v55  ;;  %2499 = vmatmul.f32.vlgmr.msra.gmra.mxu2 %v7282_v55 }
 0x5e6   :  { %2550 = vmatpush.msra.mxu0 %v7010_v13  ;;  %2590 = vmatpush.msrb.mxu2 %v7336_v39  ;;  %v7351_v13 = vld [vmem:[#allocation16 + $0x3c0] sm:$0xff] }
 0x5e7   :  { %2622 = vmatmul.f32.vlgmr.msrb.gmra.mxu3 %v7282_v55  ;;  %2668 = vmatpush.msrb.mxu1 %v7341_v33  ;;  %9394 = vst [vmem:[#allocation50_spill] sm:$0xff] %v7351_v13 }
 0x5e8   :  { %2551 = vmatpush.msra.mxu0 %v7016_v43  ;;  %2591 = vmatpush.msrb.mxu2 %v7344_v62  ;;  %v7357_v43 = vld [vmem:[#allocation16 + $0x3c8] sm:$0xff]  ;;  %v7361_v62 = vld [vmem:[#allocation16 + $0x3a0] sm:$0xff] }
 0x5e9   :  { %2708 = vmatpush.msra.mxu3 %v7347_v49  ;;  %2669 = vmatpush.msrb.mxu1 %v7351_v13  ;;  %9396 = vst [vmem:[#allocation130_spill] sm:$0xff] %v7357_v43  ;;  %v7364_v49 = vld [vmem:[#allocation15 + $0x110] sm:$0xff] }
 0x5ea   :  { %2552 = vmatpush.msra.mxu0 %v7022_v42  ;;  %2592 = vmatpush.msrb.mxu2 %v7354_v29  ;;  %9397 = vst [vmem:[#allocation53_spill] sm:$0xff] %v7361_v62  ;;  %v7367_v42 = vld [vmem:[#allocation16 + $0x3a8] sm:$0xff]  ;;  %v7371_v29 = vld [vmem:[#allocation16 + $0x380] sm:$0xff] }
 0x5eb   :  { %2709 = vmatpush.msra.mxu3 %v7357_v43  ;;  %2670 = vmatpush.msrb.mxu1 %v7361_v62  ;;  %9398 = vst [vmem:[#allocation52_spill] sm:$0xff] %v7364_v49  ;;  %v7374_v43 = vld [vmem:[#allocation15 + $0xf0] sm:$0xff] }
 0x5ec   :  { %2553 = vmatpush.msra.mxu0 %v7028_v5  ;;  %2593 = vmatpush.msrb.mxu2 %v7364_v49  ;;  %9399 = vst [vmem:[#allocation62_spill] sm:$0xff] %v7367_v42  ;;  %v7377_v5 = vld [vmem:[#allocation16 + $0x388] sm:$0xff]  ;;  %v7381_v49 = vld [vmem:[#allocation16 + $0x360] sm:$0xff] }
 0x5ed   :  { %2710 = vmatpush.msra.mxu3 %v7367_v42  ;;  %9400 = vst [vmem:[#allocation36_spill] sm:$0xff] %v7371_v29  ;;  %2671 = vmatpush.msrb.mxu1 %v7371_v29  ;;  %v7384_v42 = vld [vmem:[#allocation15 + $0xd0] sm:$0xff] }
 0x5ee   :  { %2554 = vmatpush.msra.mxu0 %v7034_v41  ;;  %9401 = vst [vmem:[#allocation63_spill] sm:$0xff] %v7374_v43  ;;  %2594 = vmatpush.msrb.mxu2 %v7374_v43  ;;  %v7387_v41 = vld [vmem:[#allocation16 + $0x368] sm:$0xff]  ;;  %v7391_v43 = vld [vmem:[#allocation16 + $0x340] sm:$0xff] }
 0x5ef   :  { %9402 = vst [vmem:[#allocation65_spill] sm:$0xff] %v7377_v5  ;;  %2711 = vmatpush.msra.mxu3 %v7377_v5  ;;  %2672 = vmatpush.msrb.mxu1 %v7381_v49  ;;  %v7394_v5 = vld [vmem:[#allocation15 + $0xb0] sm:$0xff] }
 0x5f0   :  { %2555 = vmatpush.msra.mxu0 %v7040_v52  ;;  %9403 = vst [vmem:[#allocation37_spill] sm:$0xff] %v7381_v49  ;;  %2595 = vmatpush.msrb.mxu2 %v7384_v42  ;;  %v7397_v52 = vld [vmem:[#allocation16 + $0x348] sm:$0xff] }
 0x5f1   :  { %9404 = vst [vmem:[#allocation38_spill] sm:$0xff] %v7384_v42  ;;  %2712 = vmatpush.msra.mxu3 %v7387_v41  ;;  %2673 = vmatpush.msrb.mxu1 %v7391_v43  ;;  %v7401_v42 = vld [vmem:[#allocation16 + $0x320] sm:$0xff] }
 0x5f2   :  { %9405 = vst [vmem:[#allocation66_spill] sm:$0xff] %v7387_v41  ;;  %2556 = vmatpush.msra.mxu0 %v7046_v28  ;;  %2596 = vmatpush.msrb.mxu2 %v7394_v5  ;;  %v7404_v41 = vld [vmem:[#allocation15 + $0x90] sm:$0xff]  ;;  %v7407_v28 = vld [vmem:[#allocation16 + $0x328] sm:$0xff] }
 0x5f3   :  { %9406 = vst [vmem:[#allocation69_spill] sm:$0xff] %v7391_v43  ;;  %2713 = vmatpush.msra.mxu3 %v7397_v52  ;;  %2674 = vmatpush.msrb.mxu1 %v7401_v42 }
 0x5f4   :  { %9407 = vst [vmem:[#allocation39_spill] sm:$0xff] %v7394_v5  ;;  %2557 = vmatpush.msra.mxu0 %v7052_v58  ;;  %2597 = vmatpush.msrb.mxu2 %v7404_v41  ;;  %v7411_v5 = vld [vmem:[#allocation16 + $0x300] sm:$0xff]  ;;  %v7417_v58 = vld [vmem:[#allocation16 + $0x308] sm:$0xff] }
 0x5f5   :  { %9408 = vst [vmem:[#allocation70_spill] sm:$0xff] %v7397_v52  ;;  %2714 = vmatpush.msra.mxu3 %v7407_v28  ;;  %2675 = vmatpush.msrb.mxu1 %v7411_v5  ;;  %v7414_v52 = vld [vmem:[#allocation15 + $0x70] sm:$0xff] }
 0x5f6   :  { %9409 = vst [vmem:[#allocation73_spill] sm:$0xff] %v7401_v42  ;;  %2558 = vmatpush.msra.mxu0 %v7058_v32  ;;  %2598 = vmatpush.msrb.mxu2 %v7414_v52  ;;  %v7427_v32 = vld [vmem:[#allocation16 + $0x2e8] sm:$0xff] }
 0x5f7   :  { %9410 = vst [vmem:[#allocation40_spill] sm:$0xff] %v7404_v41  ;;  %2715 = vmatpush.msra.mxu3 %v7417_v58  ;;  %v7421_v41 = vld [vmem:[#allocation16 + $0x2e0] sm:$0xff] }
 0x5f8   :  { %9411 = vst [vmem:[#allocation74_spill] sm:$0xff] %v7407_v28  ;;  %2559 = vmatpush.msra.mxu0 %v7064_v2  ;;  %2676 = vmatpush.msrb.mxu1 %v7421_v41  ;;  %v7424_v28 = vld [vmem:[#allocation15 + $0x50] sm:$0xff]  ;;  %v7437_v2 = vld [vmem:[#allocation16 + $0x2c8] sm:$0xff] }
 0x5f9   :  { %9412 = vst [vmem:[#allocation77_spill] sm:$0xff] %v7411_v5  ;;  %2599 = vmatpush.msrb.mxu2 %v7424_v28  ;;  %2716 = vmatpush.msra.mxu3 %v7427_v32 }
 0x5fa   :  { %9413 = vst [vmem:[#allocation41_spill] sm:$0xff] %v7414_v52  ;;  %2560 = vmatpush.msra.mxu0 %v7070_v7  ;;  %v7431_v52 = vld [vmem:[#allocation16 + $0x2c0] sm:$0xff]  ;;  %v7449_v7 = vld [vmem:[#allocation16 + $0x2a8] sm:$0xff] }
 0x5fb   :  { %9414 = vst [vmem:[#allocation78_spill] sm:$0xff] %v7417_v58  ;;  %2677 = vmatpush.msrb.mxu1 %v7431_v52  ;;  %v7434_v58 = vld [vmem:[#allocation15 + $0x30] sm:$0xff]  ;;  %2717 = vmatpush.msra.mxu3 %v7437_v2 }
 0x5fc   :  { %9415 = vst [vmem:[#allocation83_spill] sm:$0xff] %v7421_v41  ;;  %2600 = vmatpush.msrb.mxu2 %v7434_v58  ;;  %2561 = vmatpush.msra.mxu0 %v7076_v35  ;;  %v7455_v35 = vld [vmem:[#allocation16 + $0x1e0] sm:$0xff] }
 0x5fd   :  { %9416 = vst [vmem:[#allocation42_spill] sm:$0xff] %v7424_v28  ;;  %v7441_v28 = vld [vmem:[#allocation16 + $0x2a0] sm:$0xff]  ;;  %2562 = vmatmul.f32.vlgmr.msra.gmra.mxu0 %v7282_v55  ;;  %2718 = vmatpush.msra.mxu3 %v7449_v7 }
 0x5fe   :  { %9417 = vst [vmem:[#allocation84_spill] sm:$0xff] %v7427_v32  ;;  %2678 = vmatpush.msrb.mxu1 %v7441_v28  ;;  %v7444_v32 = vld [vmem:[#allocation15 + $0x10] sm:$0xff]  ;;  %2648 = vmatpush.msrb.mxu0 %v7455_v35 }
 0x5ff   :  { %9418 = vst [vmem:[#allocation87_spill] sm:$0xff] %v7431_v52  ;;  %2601 = vmatpush.msrb.mxu2 %v7444_v32 }
 0x600   :  { %9419 = vst [vmem:[#allocation43_spill] sm:$0xff] %v7434_v58  ;;  %2602 = vmatmul.f32.vlgmr.msrb.gmra.mxu2 %v7282_v55  ;;  %v7452_v58 = vld [vmem:[#allocation16 + $0x280] sm:$0xff] }
 0x601   :  { %9420 = vst [vmem:[#allocation88_spill] sm:$0xff] %v7437_v2  ;;  %2679 = vmatpush.msrb.mxu1 %v7452_v58  ;;  %v7464_v55 = vld [vmem:[#allocation16 + $0x260] sm:$0xff] }
 0x602   :  { %9421 = vst [vmem:[#allocation91_spill] sm:$0xff] %v7441_v28  ;;  %v7458_v28 = vld [vmem:[#allocation16 + $0x288] sm:$0xff] }
 0x603   :  { %9422 = vst [vmem:[#allocation44_spill] sm:$0xff] %v7444_v32  ;;  %2719 = vmatpush.msra.mxu3 %v7458_v28  ;;  %v7461_v32 = vld [vmem:[#allocation16 + $0x1e8] sm:$0xff]  ;;  %2680 = vmatpush.msrb.mxu1 %v7464_v55 }
 0x604   :  { %9423 = vst [vmem:[#allocation92_spill] sm:$0xff] %v7449_v7  ;;  %2688 = vmatpush.msra.mxu2 %v7461_v32  ;;  %v7467_v7 = vld [vmem:[#allocation16 + $0x1c0] sm:$0xff] }
 0x605   :  { %9424 = vst [vmem:[#allocation95_spill] sm:$0xff] %v7452_v58  ;;  %2649 = vmatpush.msrb.mxu0 %v7467_v7  ;;  %v7470_v58 = vld [vmem:[#allocation16 + $0x268] sm:$0xff] }
 0x606   :  { %9425 = vst [vmem:[#allocation45_spill] sm:$0xff] %v7455_v35  ;;  %2720 = vmatpush.msra.mxu3 %v7470_v58  ;;  %v7473_v35 = vld [vmem:[#allocation16 + $0x1c8] sm:$0xff] }
 0x607   :  { %9426 = vst [vmem:[#allocation96_spill] sm:$0xff] %v7458_v28  ;;  %2689 = vmatpush.msra.mxu2 %v7473_v35  ;;  %v7476_v28 = vld [vmem:[#allocation16 + $0x240] sm:$0xff] }
 0x608   :  { %9427 = vst [vmem:[#allocation101_spill] sm:$0xff] %v7461_v32  ;;  %2681 = vmatpush.msrb.mxu1 %v7476_v28  ;;  %v7479_v32 = vld [vmem:[#allocation16 + $0x1a0] sm:$0xff] }
 0x609   :  { %9428 = vst [vmem:[#allocation46_spill] sm:$0xff] %v7464_v55  ;;  %2650 = vmatpush.msrb.mxu0 %v7479_v32  ;;  %v7482_v55 = vld [vmem:[#allocation16 + $0x248] sm:$0xff] }
 0x60a   :  { %9429 = vst [vmem:[#allocation102_spill] sm:$0xff] %v7467_v7  ;;  %2721 = vmatpush.msra.mxu3 %v7482_v55  ;;  %v7485_v7 = vld [vmem:[#allocation16 + $0x1a8] sm:$0xff] }
 0x60b   :  { %9430 = vst [vmem:[#allocation105_spill] sm:$0xff] %v7470_v58  ;;  %2690 = vmatpush.msra.mxu2 %v7485_v7  ;;  %v7488_v58 = vld [vmem:[#allocation16 + $0x220] sm:$0xff] }
 0x60c   :  { %9431 = vst [vmem:[#allocation47_spill] sm:$0xff] %v7473_v35  ;;  %2682 = vmatpush.msrb.mxu1 %v7488_v58  ;;  %v7491_v35 = vld [vmem:[#allocation16 + $0x180] sm:$0xff] }
 0x60d   :  { %9432 = vst [vmem:[#allocation106_spill] sm:$0xff] %v7476_v28  ;;  %2651 = vmatpush.msrb.mxu0 %v7491_v35  ;;  %v7494_v28 = vld [vmem:[#allocation16 + $0x228] sm:$0xff] }
 0x60e   :  { %9433 = vst [vmem:[#allocation109_spill] sm:$0xff] %v7479_v32  ;;  %2722 = vmatpush.msra.mxu3 %v7494_v28  ;;  %v7497_v32 = vld [vmem:[#allocation16 + $0x188] sm:$0xff] }
 0x60f   :  { %9434 = vst [vmem:[#allocation48_spill] sm:$0xff] %v7482_v55  ;;  %2691 = vmatpush.msra.mxu2 %v7497_v32  ;;  %v7500_v55 = vld [vmem:[#allocation16 + $0x200] sm:$0xff] }
 0x610   :  { %9435 = vst [vmem:[#allocation110_spill] sm:$0xff] %v7485_v7  ;;  %2683 = vmatpush.msrb.mxu1 %v7500_v55  ;;  %v7503_v7 = vld [vmem:[#allocation16 + $0x160] sm:$0xff] }
 0x611   :  { %9436 = vst [vmem:[#allocation113_spill] sm:$0xff] %v7488_v58  ;;  %2652 = vmatpush.msrb.mxu0 %v7503_v7  ;;  %v7506_v58 = vld [vmem:[#allocation16 + $0x208] sm:$0xff] }
 0x612   :  { %9437 = vst [vmem:[#allocation49_spill] sm:$0xff] %v7491_v35  ;;  %2723 = vmatpush.msra.mxu3 %v7506_v58  ;;  %v7509_v35 = vld [vmem:[#allocation16 + $0x168] sm:$0xff] }
 0x613   :  { %9438 = vst [vmem:[#allocation61_spill] sm:$0xff] %v7494_v28  ;;  %2692 = vmatpush.msra.mxu2 %v7509_v35  ;;  %v7512_v28 = vld [vmem:[#allocation16 + $0x3f0] sm:$0xff] }
 0x614   :  { %9439 = vst [vmem:[#allocation64_spill] sm:$0xff] %v7497_v32  ;;  %2748 = vmatpush.msra.mxu1 %v7512_v28  ;;  %v7515_v32 = vld [vmem:[#allocation16 + $0x3f8] sm:$0xff] }
 0x615   :  { %9440 = vst [vmem:[#allocation114_spill] sm:$0xff] %v7500_v55  ;;  %2788 = vmatpush.msrb.mxu3 %v7515_v32  ;;  %v7518_v55 = vld [vmem:[#allocation16 + $0x140] sm:$0xff] }
 0x616   :  { %9441 = vst [vmem:[#allocation67_spill] sm:$0xff] %v7503_v7  ;;  %2653 = vmatpush.msrb.mxu0 %v7518_v55  ;;  %v7521_v7 = vld [vmem:[#allocation16 + $0x148] sm:$0xff] }
 0x617   :  { %9442 = vst [vmem:[#allocation119_spill] sm:$0xff] %v7506_v58  ;;  %2693 = vmatpush.msra.mxu2 %v7521_v7  ;;  %v7524_v58 = vld [vmem:[#allocation16 + $0x3d0] sm:$0xff] }
 0x618   :  { %9443 = vst [vmem:[#allocation68_spill] sm:$0xff] %v7509_v35  ;;  %2749 = vmatpush.msra.mxu1 %v7524_v58  ;;  %v7527_v35 = vld [vmem:[#allocation16 + $0x3d8] sm:$0xff] }
 0x619   :  { %9444 = vst [vmem:[#allocation120_spill] sm:$0xff] %v7512_v28  ;;  %2789 = vmatpush.msrb.mxu3 %v7527_v35  ;;  %v7530_v28 = vld [vmem:[#allocation16 + $0x120] sm:$0xff] }
 0x61a   :  { %9445 = vst [vmem:[#allocation71_spill] sm:$0xff] %v7515_v32  ;;  %2654 = vmatpush.msrb.mxu0 %v7530_v28  ;;  %v7533_v32 = vld [vmem:[#allocation16 + $0x128] sm:$0xff] }
 0x61b   :  { %9446 = vst [vmem:[#allocation123_spill] sm:$0xff] %v7518_v55  ;;  %2694 = vmatpush.msra.mxu2 %v7533_v32  ;;  %v7536_v55 = vld [vmem:[#allocation16 + $0x3b0] sm:$0xff] }
 0x61c   :  { %9447 = vst [vmem:[#allocation72_spill] sm:$0xff] %v7521_v7  ;;  %2750 = vmatpush.msra.mxu1 %v7536_v55  ;;  %v7539_v7 = vld [vmem:[#allocation16 + $0x3b8] sm:$0xff] }
 0x61d   :  { %9448 = vst [vmem:[#allocation124_spill] sm:$0xff] %v7524_v58  ;;  %2790 = vmatpush.msrb.mxu3 %v7539_v7  ;;  %v7542_v58 = vld [vmem:[#allocation16 + $0x100] sm:$0xff] }
 0x61e   :  { %9449 = vst [vmem:[#allocation75_spill] sm:$0xff] %v7527_v35  ;;  %2655 = vmatpush.msrb.mxu0 %v7542_v58  ;;  %v7545_v35 = vld [vmem:[#allocation16 + $0x108] sm:$0xff] }
 0x61f   :  { %9450 = vst [vmem:[#allocation76_spill] sm:$0xff] %v7530_v28  ;;  %2695 = vmatpush.msra.mxu2 %v7545_v35  ;;  %v7548_v28 = vld [vmem:[#allocation16 + $0x390] sm:$0xff] }
 0x620   :  { %9451 = vst [vmem:[#allocation81_spill] sm:$0xff] %v7533_v32  ;;  %2751 = vmatpush.msra.mxu1 %v7548_v28  ;;  %v7551_v32 = vld [vmem:[#allocation16 + $0x398] sm:$0xff] }
 0x621   :  { %9452 = vst [vmem:[#allocation82_spill] sm:$0xff] %v7536_v55  ;;  %2791 = vmatpush.msrb.mxu3 %v7551_v32  ;;  %v7554_v55 = vld [vmem:[#allocation16 + $0xe0] sm:$0xff] }
 0x622   :  { %9453 = vst [vmem:[#allocation129_spill] sm:$0xff] %v7539_v7  ;;  %2656 = vmatpush.msrb.mxu0 %v7554_v55  ;;  %v7557_v7 = vld [vmem:[#allocation16 + $0xe8] sm:$0xff] }
 0x623   :  { %9454 = vst [vmem:[#allocation85_spill] sm:$0xff] %v7542_v58  ;;  %2696 = vmatpush.msra.mxu2 %v7557_v7  ;;  %v7560_v58 = vld [vmem:[#allocation16 + $0x370] sm:$0xff] }
 0x624   :  { %9455 = vst [vmem:[#allocation86_spill] sm:$0xff] %v7545_v35  ;;  %2752 = vmatpush.msra.mxu1 %v7560_v58  ;;  %v7563_v35 = vld [vmem:[#allocation16 + $0x378] sm:$0xff] }
 0x625   :  { %9456 = vst [vmem:[#allocation89_spill] sm:$0xff] %v7548_v28  ;;  %2792 = vmatpush.msrb.mxu3 %v7563_v35  ;;  %v7566_v28 = vld [vmem:[#allocation16 + $0xc0] sm:$0xff] }
 0x626   :  { %9457 = vst [vmem:[#allocation90_spill] sm:$0xff] %v7551_v32  ;;  %2657 = vmatpush.msrb.mxu0 %v7566_v28  ;;  %v7569_v32 = vld [vmem:[#allocation16 + $0xc8] sm:$0xff] }
 0x627   :  { %9458 = vst [vmem:[#allocation93_spill] sm:$0xff] %v7554_v55  ;;  %2697 = vmatpush.msra.mxu2 %v7569_v32  ;;  %v7572_v55 = vld [vmem:[#allocation16 + $0x350] sm:$0xff] }
 0x628   :  { %9459 = vst [vmem:[#allocation94_spill] sm:$0xff] %v7557_v7  ;;  %2753 = vmatpush.msra.mxu1 %v7572_v55  ;;  %v7575_v7 = vld [vmem:[#allocation16 + $0x358] sm:$0xff] }
 0x629   :  { %9460 = vst [vmem:[#allocation99_spill] sm:$0xff] %v7560_v58  ;;  %2793 = vmatpush.msrb.mxu3 %v7575_v7  ;;  %v7578_v58 = vld [vmem:[#allocation16 + $0xa0] sm:$0xff] }
 0x62a   :  { %9461 = vst [vmem:[#allocation100_spill] sm:$0xff] %v7563_v35  ;;  %2658 = vmatpush.msrb.mxu0 %v7578_v58  ;;  %v7581_v35 = vld [vmem:[#allocation16 + $0xa8] sm:$0xff] }
 0x62b   :  { %9462 = vst [vmem:[#allocation103_spill] sm:$0xff] %v7566_v28  ;;  %2698 = vmatpush.msra.mxu2 %v7581_v35  ;;  %v7584_v28 = vld [vmem:[#allocation16 + $0x330] sm:$0xff] }
 0x62c   :  { %9463 = vst [vmem:[#allocation104_spill] sm:$0xff] %v7569_v32  ;;  %2754 = vmatpush.msra.mxu1 %v7584_v28  ;;  %v7587_v32 = vld [vmem:[#allocation16 + $0x338] sm:$0xff] }
 0x62d   :  { %9464 = vst [vmem:[#allocation107_spill] sm:$0xff] %v7572_v55  ;;  %2794 = vmatpush.msrb.mxu3 %v7587_v32  ;;  %v7590_v55 = vld [vmem:[#allocation16 + $0x80] sm:$0xff] }
 0x62e   :  { %9465 = vst [vmem:[#allocation108_spill] sm:$0xff] %v7575_v7  ;;  %2659 = vmatpush.msrb.mxu0 %v7590_v55  ;;  %v7593_v7 = vld [vmem:[#allocation16 + $0x88] sm:$0xff] }
 0x62f   :  { %9466 = vst [vmem:[#allocation111_spill] sm:$0xff] %v7578_v58  ;;  %2699 = vmatpush.msra.mxu2 %v7593_v7  ;;  %v7596_v58 = vld [vmem:[#allocation16 + $0x310] sm:$0xff] }
 0x630   :  { %9467 = vst [vmem:[#allocation112_spill] sm:$0xff] %v7581_v35  ;;  %2755 = vmatpush.msra.mxu1 %v7596_v58  ;;  %v7599_v35 = vld [vmem:[#allocation16 + $0x318] sm:$0xff] }
 0x631   :  { %9468 = vst [vmem:[#allocation117_spill] sm:$0xff] %v7584_v28  ;;  %2795 = vmatpush.msrb.mxu3 %v7599_v35  ;;  %v7602_v28 = vld [vmem:[#allocation16 + $0x60] sm:$0xff] }
 0x632   :  { %9469 = vst [vmem:[#allocation118_spill] sm:$0xff] %v7587_v32  ;;  %2660 = vmatpush.msrb.mxu0 %v7602_v28  ;;  %v7605_v32 = vld [vmem:[#allocation16 + $0x68] sm:$0xff] }
 0x633   :  { %9470 = vst [vmem:[#allocation121_spill] sm:$0xff] %v7590_v55  ;;  %2700 = vmatpush.msra.mxu2 %v7605_v32  ;;  %v7608_v55 = vld [vmem:[#allocation16 + $0x2f0] sm:$0xff] }
 0x634   :  { %9471 = vst [vmem:[#allocation122_spill] sm:$0xff] %v7593_v7  ;;  %2756 = vmatpush.msra.mxu1 %v7608_v55  ;;  %v7611_v7 = vld [vmem:[#allocation16 + $0x2f8] sm:$0xff] }
 0x635   :  { %9472 = vst [vmem:[#allocation125_spill] sm:$0xff] %v7596_v58  ;;  %2796 = vmatpush.msrb.mxu3 %v7611_v7  ;;  %v7614_v58 = vld [vmem:[#allocation16 + $0x40] sm:$0xff] }
 0x636   :  { %9473 = vst [vmem:[#allocation126_spill] sm:$0xff] %v7599_v35  ;;  %2661 = vmatpush.msrb.mxu0 %v7614_v58  ;;  %v7617_v35 = vld [vmem:[#allocation16 + $0x48] sm:$0xff] }
 0x637   :  { %9474 = vst [vmem:[#allocation127_spill] sm:$0xff] %v7602_v28  ;;  %2701 = vmatpush.msra.mxu2 %v7617_v35  ;;  %v7620_v28 = vld [vmem:[#allocation16 + $0x2d0] sm:$0xff] }
 0x638   :  { %9475 = vst [vmem:[#allocation128_spill] sm:$0xff] %v7605_v32  ;;  %2757 = vmatpush.msra.mxu1 %v7620_v28  ;;  %v7623_v32 = vld [vmem:[#allocation16 + $0x2d8] sm:$0xff] }
 0x639   :  { %9476 = vst [vmem:[#allocation132_spill] sm:$0xff] %v7608_v55  ;;  %2797 = vmatpush.msrb.mxu3 %v7623_v32  ;;  %v7626_v55 = vld [vmem:[#allocation16 + $0x20] sm:$0xff] }
 0x63a   :  { %9477 = vst [vmem:[#allocation133_spill] sm:$0xff] %v7611_v7  ;;  %2662 = vmatpush.msrb.mxu0 %v7626_v55  ;;  %v7629_v7 = vld [vmem:[#allocation16 + $0x28] sm:$0xff] }
 0x63b   :  { %9478 = vst [vmem:[#allocation138_spill] sm:$0xff] %v7614_v58  ;;  %2702 = vmatpush.msra.mxu2 %v7629_v7  ;;  %v7632_v58 = vld [vmem:[#allocation16 + $0x2b0] sm:$0xff] }
 0x63c   :  { %9479 = vst [vmem:[#allocation141_spill] sm:$0xff] %v7617_v35  ;;  %2758 = vmatpush.msra.mxu1 %v7632_v58  ;;  %v7635_v35 = vld [vmem:[#allocation16 + $0x2b8] sm:$0xff] }
 0x63d   :  { %9480 = vst [vmem:[#allocation142_spill] sm:$0xff] %v7620_v28  ;;  %2798 = vmatpush.msrb.mxu3 %v7635_v35  ;;  %v7638_v28 = vld [vmem:[#allocation16] sm:$0xff] }
 0x63e   :  { %9481 = vst [vmem:[#allocation143_spill] sm:$0xff] %v7623_v32  ;;  %2663 = vmatpush.msrb.mxu0 %v7638_v28  ;;  %v7641_v32 = vld [vmem:[#allocation16 + $0x8] sm:$0xff]  ;;  %v2400_v2 = vpop.f32.mrf.mxu1 }
 0x63f   :  { %9482 = vst [vmem:[#allocation144_spill] sm:$0xff] %v7626_v55  ;;  %2703 = vmatpush.msra.mxu2 %v7641_v32  ;;  %v7644_v55 = vld [vmem:[#allocation16 + $0x290] sm:$0xff] }
 0x640   :  { %9483 = vst [vmem:[#allocation80_spill] sm:$0xff] %v7629_v7  ;;  %2759 = vmatpush.msra.mxu1 %v7644_v55  ;;  %v7647_v7 = vld [vmem:[#allocation16 + $0x298] sm:$0xff] }
 0x641   :  { %9484 = vst [vmem:[#allocation79_spill] sm:$0xff] %v7632_v58  ;;  %2799 = vmatpush.msrb.mxu3 %v7647_v7  ;;  %v7650_v58 = vld [vmem:[#allocation16 + $0x1f0] sm:$0xff] }
 0x642   :  { %9485 = vst [vmem:[#allocation145_spill] sm:$0xff] %v7635_v35  ;;  %2728 = vmatpush.msra.mxu0 %v7650_v58  ;;  %v7653_v35 = vld [vmem:[#allocation16 + $0x1f8] sm:$0xff] }
 0x643   :  { %9486 = vst [vmem:[#allocation146_spill] sm:$0xff] %v7638_v28  ;;  %2768 = vmatpush.msrb.mxu2 %v7653_v35  ;;  %v7656_v28 = vld [vmem:[#allocation16 + $0x270] sm:$0xff] }
 0x644   :  { %9487 = vst [vmem:[#allocation147_spill] sm:$0xff] %v7641_v32  ;;  %2760 = vmatpush.msra.mxu1 %v7656_v28  ;;  %v7659_v32 = vld [vmem:[#allocation16 + $0x278] sm:$0xff] }
 0x645   :  { %9488 = vst [vmem:[#allocation148_spill] sm:$0xff] %v7644_v55  ;;  %2800 = vmatpush.msrb.mxu3 %v7659_v32  ;;  %v7662_v55 = vld [vmem:[#allocation16 + $0x1d0] sm:$0xff] }
 0x646   :  { %9489 = vst [vmem:[#allocation149_spill] sm:$0xff] %v7647_v7  ;;  %2729 = vmatpush.msra.mxu0 %v7662_v55  ;;  %v7665_v7 = vld [vmem:[#allocation16 + $0x1d8] sm:$0xff] }
 0x647   :  { %9490 = vst [vmem:[#allocation150_spill] sm:$0xff] %v7650_v58  ;;  %2769 = vmatpush.msrb.mxu2 %v7665_v7  ;;  %v7668_v58 = vld [vmem:[#allocation16 + $0x250] sm:$0xff] }
 0x648   :  { %9491 = vst [vmem:[#allocation151_spill] sm:$0xff] %v7653_v35  ;;  %2761 = vmatpush.msra.mxu1 %v7668_v58  ;;  %v7671_v35 = vld [vmem:[#allocation16 + $0x258] sm:$0xff] }
 0x649   :  { %9492 = vst [vmem:[#allocation152_spill] sm:$0xff] %v7656_v28  ;;  %2801 = vmatpush.msrb.mxu3 %v7671_v35  ;;  %v7674_v28 = vld [vmem:[#allocation16 + $0x1b0] sm:$0xff] }
 0x64a   :  { %9493 = vst [vmem:[#allocation153_spill] sm:$0xff] %v7659_v32  ;;  %2730 = vmatpush.msra.mxu0 %v7674_v28  ;;  %v7677_v32 = vld [vmem:[#allocation16 + $0x1b8] sm:$0xff] }
 0x64b   :  { %9494 = vst [vmem:[#allocation154_spill] sm:$0xff] %v7662_v55  ;;  %2770 = vmatpush.msrb.mxu2 %v7677_v32  ;;  %v7680_v55 = vld [vmem:[#allocation16 + $0x230] sm:$0xff] }
 0x64c   :  { %9495 = vst [vmem:[#allocation155_spill] sm:$0xff] %v7665_v7  ;;  %2762 = vmatpush.msra.mxu1 %v7680_v55  ;;  %v7683_v7 = vld [vmem:[#allocation16 + $0x238] sm:$0xff] }
 0x64d   :  { %9496 = vst [vmem:[#allocation156_spill] sm:$0xff] %v7668_v58  ;;  %2802 = vmatpush.msrb.mxu3 %v7683_v7  ;;  %v7686_v58 = vld [vmem:[#allocation16 + $0x190] sm:$0xff] }
 0x64e   :  { %9497 = vst [vmem:[#allocation157_spill] sm:$0xff] %v7671_v35  ;;  %2731 = vmatpush.msra.mxu0 %v7686_v58  ;;  %v7689_v35 = vld [vmem:[#allocation16 + $0x198] sm:$0xff] }
 0x64f   :  { %9498 = vst [vmem:[#allocation158_spill] sm:$0xff] %v7674_v28  ;;  %2771 = vmatpush.msrb.mxu2 %v7689_v35  ;;  %v7692_v28 = vld [vmem:[#allocation16 + $0x210] sm:$0xff] }
 0x650   :  { %9499 = vst [vmem:[#allocation159_spill] sm:$0xff] %v7677_v32  ;;  %2763 = vmatpush.msra.mxu1 %v7692_v28  ;;  %v7695_v32 = vld [vmem:[#allocation16 + $0x218] sm:$0xff] }
 0x651   :  { %9500 = vst [vmem:[#allocation160_spill] sm:$0xff] %v7680_v55  ;;  %2803 = vmatpush.msrb.mxu3 %v7695_v32  ;;  %v7698_v55 = vld [vmem:[#allocation16 + $0x170] sm:$0xff] }
 0x652   :  { %9501 = vst [vmem:[#allocation161_spill] sm:$0xff] %v7683_v7  ;;  %2732 = vmatpush.msra.mxu0 %v7698_v55  ;;  %v7701_v7 = vld [vmem:[#allocation16 + $0x178] sm:$0xff] }
 0x653   :  { %9502 = vst [vmem:[#allocation162_spill] sm:$0xff] %v7686_v58  ;;  %2772 = vmatpush.msrb.mxu2 %v7701_v7  ;;  %v7704_v58 = vld [vmem:[#allocation16 + $0x150] sm:$0xff] }
 0x654   :  { %9503 = vst [vmem:[#allocation163_spill] sm:$0xff] %v7689_v35  ;;  %2733 = vmatpush.msra.mxu0 %v7704_v58  ;;  %v7707_v35 = vld [vmem:[#allocation16 + $0x158] sm:$0xff] }
 0x655   :  { %9504 = vst [vmem:[#allocation164_spill] sm:$0xff] %v7692_v28  ;;  %2773 = vmatpush.msrb.mxu2 %v7707_v35  ;;  %v7710_v28 = vld [vmem:[#allocation16 + $0x130] sm:$0xff] }
 0x656   :  { %9505 = vst [vmem:[#allocation165_spill] sm:$0xff] %v7695_v32  ;;  %2734 = vmatpush.msra.mxu0 %v7710_v28  ;;  %v7713_v32 = vld [vmem:[#allocation16 + $0x138] sm:$0xff] }
 0x657   :  { %9506 = vst [vmem:[#allocation166_spill] sm:$0xff] %v7698_v55  ;;  %2774 = vmatpush.msrb.mxu2 %v7713_v32  ;;  %v7716_v55 = vld [vmem:[#allocation16 + $0x110] sm:$0xff] }
 0x658   :  { %9507 = vst [vmem:[#allocation167_spill] sm:$0xff] %v7701_v7  ;;  %2735 = vmatpush.msra.mxu0 %v7716_v55  ;;  %v7719_v7 = vld [vmem:[#allocation16 + $0x118] sm:$0xff] }
 0x659   :  { %9508 = vst [vmem:[#allocation168_spill] sm:$0xff] %v7704_v58  ;;  %2775 = vmatpush.msrb.mxu2 %v7719_v7  ;;  %v7722_v58 = vld [vmem:[#allocation16 + $0xf0] sm:$0xff] }
 0x65a   :  { %9509 = vst [vmem:[#allocation169_spill] sm:$0xff] %v7707_v35  ;;  %2736 = vmatpush.msra.mxu0 %v7722_v58  ;;  %v7725_v35 = vld [vmem:[#allocation16 + $0xf8] sm:$0xff] }
 0x65b   :  { %9510 = vst [vmem:[#allocation170_spill] sm:$0xff] %v7710_v28  ;;  %2776 = vmatpush.msrb.mxu2 %v7725_v35  ;;  %v7728_v28 = vld [vmem:[#allocation16 + $0xd0] sm:$0xff] }
 0x65c   :  { %9511 = vst [vmem:[#allocation171_spill] sm:$0xff] %v7713_v32  ;;  %2737 = vmatpush.msra.mxu0 %v7728_v28  ;;  %v7731_v32 = vld [vmem:[#allocation16 + $0xd8] sm:$0xff] }
 0x65d   :  { %9512 = vst [vmem:[#allocation172_spill] sm:$0xff] %v7716_v55  ;;  %2777 = vmatpush.msrb.mxu2 %v7731_v32  ;;  %v7734_v55 = vld [vmem:[#allocation16 + $0xb0] sm:$0xff] }
 0x65e   :  { %9513 = vst [vmem:[#allocation173_spill] sm:$0xff] %v7719_v7  ;;  %2738 = vmatpush.msra.mxu0 %v7734_v55  ;;  %v7737_v7 = vld [vmem:[#allocation16 + $0xb8] sm:$0xff] }
 0x65f   :  { %9514 = vst [vmem:[#allocation174_spill] sm:$0xff] %v7722_v58  ;;  %2778 = vmatpush.msrb.mxu2 %v7737_v7  ;;  %v7740_v58 = vld [vmem:[#allocation16 + $0x90] sm:$0xff] }
 0x660   :  { %9515 = vst [vmem:[#allocation175_spill] sm:$0xff] %v7725_v35  ;;  %2739 = vmatpush.msra.mxu0 %v7740_v58  ;;  %v7743_v35 = vld [vmem:[#allocation16 + $0x98] sm:$0xff]  ;;  %v2420_v5 = vpop.f32.mrf.mxu2 }
 0x661   :  { %9516 = vst [vmem:[#allocation176_spill] sm:$0xff] %v7728_v28  ;;  %2779 = vmatpush.msrb.mxu2 %v7743_v35  ;;  %v7746_v28 = vld [vmem:[#allocation16 + $0x70] sm:$0xff]  ;;  %v2421_v42 = vadd.f32 %v2420_v5, %v9385_v36 }
 0x662   :  { %9517 = vst [vmem:[#allocation177_spill] sm:$0xff] %v7731_v32  ;;  %2740 = vmatpush.msra.mxu0 %v7746_v28  ;;  %v7749_v32 = vld [vmem:[#allocation16 + $0x78] sm:$0xff] }
 0x663   :  { %9518 = vst [vmem:[#allocation178_spill] sm:$0xff] %v7734_v55  ;;  %2780 = vmatpush.msrb.mxu2 %v7749_v32  ;;  %v7752_v55 = vld [vmem:[#allocation16 + $0x50] sm:$0xff] }
 0x664   :  { %9519 = vst [vmem:[#allocation179_spill] sm:$0xff] %v7737_v7  ;;  %2741 = vmatpush.msra.mxu0 %v7752_v55  ;;  %v7755_v7 = vld [vmem:[#allocation16 + $0x58] sm:$0xff] }
 0x665   :  { %9520 = vst [vmem:[#allocation180_spill] sm:$0xff] %v7740_v58  ;;  %2781 = vmatpush.msrb.mxu2 %v7755_v7  ;;  %v7758_v58 = vld [vmem:[#allocation16 + $0x30] sm:$0xff] }
 0x666   :  { %9521 = vst [vmem:[#allocation181_spill] sm:$0xff] %v7743_v35  ;;  %2742 = vmatpush.msra.mxu0 %v7758_v58  ;;  %v7761_v35 = vld [vmem:[#allocation16 + $0x38] sm:$0xff] }
 0x667   :  { %9522 = vst [vmem:[#allocation182_spill] sm:$0xff] %v7746_v28  ;;  %2782 = vmatpush.msrb.mxu2 %v7761_v35  ;;  %v7764_v28 = vld [vmem:[#allocation16 + $0x10] sm:$0xff] }
 0x668   :  { %9523 = vst [vmem:[#allocation183_spill] sm:$0xff] %v7749_v32  ;;  %2743 = vmatpush.msra.mxu0 %v7764_v28  ;;  %v7767_v32 = vld [vmem:[#allocation16 + $0x18] sm:$0xff]  ;;  %v2500_v13 = vpop.f32.mrf.mxu2 }
 0x669   :  { %9524 = vst [vmem:[#allocation184_spill] sm:$0xff] %v7752_v55  ;;  %2783 = vmatpush.msrb.mxu2 %v7767_v32  ;;  %v2380_v55 = vpop.f32.mrf.mxu0 }
 0x66a   :  { %9525 = vst [vmem:[#allocation185_spill] sm:$0xff] %v7755_v7  ;;  %v2381_v7 = vadd.f32 %v2380_v55, %v9384_v61  ;;  %v2501_v55 = vadd.f32 %v2500_v13, %v5512_v26 }
 0x66b   :  { %9526 = vst [vmem:[#allocation186_spill] sm:$0xff] %v7758_v58  ;;  %v2440_v58 = vpop.f32.mrf.mxu3 }
 0x66c   :  { %9527 = vst [vmem:[#allocation187_spill] sm:$0xff] %v7761_v35  ;;  %v2401_v52 = vadd.f32 %v2400_v2, %v2381_v7  ;;  %v2441_v35 = vadd.f32 %v2440_v58, %v2421_v42 }
 0x66d   :  { %9528 = vst [vmem:[#allocation188_spill] sm:$0xff] %v7764_v28  ;;  %v2480_v28 = vpop.f32.mrf.mxu1 }
 0x66e   :  { %9529 = vst [vmem:[#allocation189_spill] sm:$0xff] %v7767_v32  ;;  %v2523_v41 = vmul.f32 0.5, %v2401_v52  ;;  %v2527_v29 = vmul.f32 0.5, %v2441_v35 }
 0x670   :  { %3437 = vtanh.f32 %v2523_v41 }
 0x671   :  { %v2460_v43 = vpop.f32.mrf.mxu0  ;;  %3439 = vtanh.f32 %v2527_v29 }
 0x672   :  { %v2461_v49 = vadd.f32 %v2460_v43, %v5508_v10  ;;  %v9530_v43 = vld [vmem:[#allocation137_spill] sm:$0xff] }
 0x673   :  { %v2520_v2 = vpop.f32.mrf.mxu3 }
 0x674   :  { %v2481_v62 = vadd.f32 %v2480_v28, %v2461_v49  ;;  %v2521_v7 = vadd.f32 %v2520_v2, %v2501_v55  ;;  %v505_v49 = vadd.f32 %v9530_v43, %v5225_v6  ;;  %v9531_v55 = vld [vmem:[#allocation136_spill] sm:$0xff] }
 0x675   :  { %v2583_v36 = vpop.f32.mrf.mxu1  ;;  %v464_v2 = vadd.f32 %v9531_v55, %v5223_v63 }
 0x676   :  { %v3438_v32 = vpop.eup %3437  ;;  %3441 = vtanh.f32 %v2481_v62  ;;  %v2532_v5 = vmul.f32 0.5, %v2521_v7  ;;  %v2627_v28 = vadd.f32 %v2583_v36, %v505_v49  ;;  %v9532_v36 = vld [vmem:[#allocation57_spill] sm:$0xff] }
 0x677   :  { %v2525_v52 = vadd.f32 1.0, %v3438_v32  ;;  %v3440_v61 = vpop.eup %3439 }
 0x678   :  { %v2529_v33 = vadd.f32 1.0, %v3440_v61  ;;  %3443 = vtanh.f32 %v2532_v5  ;;  %v2634_v32 = vmul.f32 0.5, %v2627_v28 }
 0x679   :  { %v2526_v42 = vmul.f32 0.5, %v2525_v52 }
 0x67a   :  { %v2530_v58 = vmul.f32 0.5, %v2529_v33  ;;  %v2563_v52 = vpop.f32.mrf.mxu0 }
 0x67b   :  { %v2626_v5 = vadd.f32 %v2563_v52, %v464_v2  ;;  %v9549_v2 = vld [vmem:[#allocation69_spill] sm:$0xff]  ;;  %v9551_v52 = vld [vmem:[#allocation70_spill] sm:$0xff] }
 0x67c   :  { %v3442_v41 = vpop.eup %3441  ;;  %v2536_v29 = vmul.f32 %v2530_v58, %v7197_v59  ;;  %v2623_v59 = vpop.f32.mrf.mxu3 }
 0x67d   :  { %v2537_v62 = vmul.f32 %v3442_v41, %v2526_v42  ;;  %v587_v41 = vadd.f32 %v9532_v36, %v5261_v20  ;;  %v2630_v42 = vmul.f32 0.5, %v2626_v5  ;;  %v9552_v5 = vld [vmem:[#allocation73_spill] sm:$0xff]  ;;  %v9554_v36 = vld [vmem:[#allocation74_spill] sm:$0xff] }
 0x67e   :  { %v3444_v13 = vpop.eup %3443 }
 0x67f   :  { %v7777_v35 = vadd.f32 %v2537_v62, %v2536_v29  ;;  %v2534_v61 = vadd.f32 1.0, %v3444_v13  ;;  %v2629_v58 = vadd.f32 %v2623_v59, %v587_v41  ;;  %v9533_v29 = vld [vmem:[#allocation56_spill] sm:$0xff]  ;;  %v4075_v41 = vld [vmem:[#allocation15 + $0x60] sm:$0xff] }
 0x680   :  { %v546_v62 = vadd.f32 %v9533_v29, %v5259_v14  ;;  %v9553_v59 = vld [vmem:[#allocation40_spill] sm:$0xff]  ;;  %v4076_v29 = vld [vmem:[#allocation15 + $0x40] sm:$0xff] }
 0x681   :  { %3445 = vtanh.f32 %v7777_v35  ;;  %v2535_v33 = vmul.f32 0.5, %v2534_v61  ;;  %v2639_v61 = vmul.f32 0.5, %v2629_v58  ;;  %v9556_v58 = vld [vmem:[#allocation41_spill] sm:$0xff] }
 0x682   :  { %3447 = vtanh.f32 %v2634_v32 }
 0x683   :  { %3449 = vtanh.f32 %v2630_v42  ;;  %v2603_v28 = vpop.f32.mrf.mxu2  ;;  %v9555_v42 = vld [vmem:[#allocation77_spill] sm:$0xff] }
 0x684   :  { %v2628_v13 = vadd.f32 %v2603_v28, %v546_v62  ;;  %v9558_v62 = vld [vmem:[#allocation83_spill] sm:$0xff]  ;;  %v9559_v28 = vld [vmem:[#allocation42_spill] sm:$0xff] }
 0x686   :  { %3451 = vtanh.f32 %v2628_v13  ;;  %v9560_v13 = vld [vmem:[#allocation84_spill] sm:$0xff] }
 0x687   :  { %v3446_v7 = vpop.eup %3445  ;;  %3453 = vtanh.f32 %v2639_v61  ;;  %v9561_v61 = vld [vmem:[#allocation87_spill] sm:$0xff] }
 0x688   :  { %v7782_v43 = vmul.f32 %v3446_v7, %v2535_v33  ;;  %v3448_v49 = vpop.eup %3447  ;;  %v9550_v33 = vld [vmem:[#allocation39_spill] sm:$0xff]  ;;  %v4074_v7 = vld [vmem:[#allocation15 + $0x80] sm:$0xff] }
 0x689   :  { %v2636_v32 = vadd.f32 1.0, %v3448_v49  ;;  %v9557_v49 = vld [vmem:[#allocation78_spill] sm:$0xff] }
 0x68a   :  { %2684 = vmatmul.f32.vlgmr.msrb.gmra.mxu1 %v7782_v43  ;;  %2724 = vmatmul.f32.vlgmr.msra.gmra.mxu3 %v7782_v43 }
 0x68b   :  { %2851 = vmatpush.msrb.mxu1 %v7210_v38  ;;  %2891 = vmatpush.msra.mxu3 %v7213_v54  ;;  %v3450_v38 = vpop.eup %3449 }
 0x68c   :  { %v2632_v54 = vadd.f32 1.0, %v3450_v38  ;;  %v9562_v38 = vld [vmem:[#allocation43_spill] sm:$0xff] }
 0x68d   :  { %2852 = vmatpush.msrb.mxu1 %v7216_v37  ;;  %2892 = vmatpush.msra.mxu3 %v7219_v51  ;;  %v2637_v37 = vmul.f32 0.5, %v2636_v32  ;;  %v4077_v32 = vld [vmem:[#allocation15 + $0x20] sm:$0xff] }
 0x68e   :  { %v2633_v51 = vmul.f32 0.5, %v2632_v54  ;;  %v9563_v54 = vld [vmem:[#allocation88_spill] sm:$0xff] }
 0x68f   :  { %2853 = vmatpush.msrb.mxu1 %v7222_v44  ;;  %2893 = vmatpush.msra.mxu3 %v7225_v53  ;;  %v3452_v44 = vpop.eup %3451  ;;  %v2643_v53 = vmul.f32 %v2637_v37, %v7255_v25  ;;  %v4065_v25 = vld [vmem:[#allocation15 + $0x1a0] sm:$0xff] }
 0x690   :  { %v4078_v37 = vld [vmem:[#allocation15] sm:$0xff] }
 0x691   :  { %2854 = vmatpush.msrb.mxu1 %v7228_v8  ;;  %2894 = vmatpush.msra.mxu3 %v7231_v22  ;;  %v2644_v8 = vmul.f32 %v3452_v44, %v2633_v51  ;;  %v3454_v22 = vpop.eup %3453  ;;  %v9564_v51 = vld [vmem:[#allocation91_spill] sm:$0xff]  ;;  %v9565_v44 = vld [vmem:[#allocation44_spill] sm:$0xff] }
 0x692   :  { %2764 = vmatmul.f32.vlgmr.msra.gmra.mxu1 %v7782_v43  ;;  %2804 = vmatmul.f32.vlgmr.msrb.gmra.mxu3 %v7782_v43 }
 0x693   :  { %2855 = vmatpush.msrb.mxu1 %v7236_v30  ;;  %2895 = vmatpush.msra.mxu3 %v7239_v3  ;;  %v7807_v55 = vadd.f32 %v2644_v8, %v2643_v53  ;;  %v2641_v30 = vadd.f32 1.0, %v3454_v22  ;;  %v9566_v53 = vld [vmem:[#allocation45_spill] sm:$0xff]  ;;  %v9567_v8 = vld [vmem:[#allocation92_spill] sm:$0xff]  ;;  %v9568_v22 = vld [vmem:[#allocation95_spill] sm:$0xff] }
 0x695   :  { %2856 = vmatpush.msrb.mxu1 %v7242_v31  ;;  %2896 = vmatpush.msra.mxu3 %v7245_v18  ;;  %3455 = vtanh.f32 %v7807_v55  ;;  %v2642_v3 = vmul.f32 0.5, %v2641_v30  ;;  %v9569_v30 = vld [vmem:[#allocation102_spill] sm:$0xff] }
 0x697   :  { %2857 = vmatpush.msrb.mxu1 %v7249_v19  ;;  %2897 = vmatpush.msra.mxu3 %v7252_v34  ;;  %v4063_v19 = vld [vmem:[#allocation15 + $0x1e0] sm:$0xff] }
 0x698   :  { %v4064_v34 = vld [vmem:[#allocation15 + $0x1c0] sm:$0xff] }
 0x699   :  { %2858 = vmatpush.msrb.mxu1 %v7257_v27  ;;  %2898 = vmatpush.msra.mxu3 %v7260_v48  ;;  %v4066_v27 = vld [vmem:[#allocation15 + $0x180] sm:$0xff] }
 0x69a   :  { %v4067_v48 = vld [vmem:[#allocation15 + $0x160] sm:$0xff] }
 0x69b   :  { %2859 = vmatpush.msrb.mxu1 %v7264_v1  ;;  %2899 = vmatpush.msra.mxu3 %v7267_v50  ;;  %v3456_v31 = vpop.eup %3455  ;;  %v4068_v1 = vld [vmem:[#allocation15 + $0x140] sm:$0xff]  ;;  %v9534_v50 = vld [vmem:[#allocation116_spill] sm:$0xff] }
 0x69c   :  { %v7820_v18 = vmul.f32 %v3456_v31, %v2642_v3  ;;  %v9570_v3 = vld [vmem:[#allocation101_spill] sm:$0xff]  ;;  %v9571_v31 = vld [vmem:[#allocation96_spill] sm:$0xff] }
 0x69d   :  { %2860 = vmatpush.msrb.mxu1 %v7270_v46  ;;  %2900 = vmatpush.msra.mxu3 %v7273_v17  ;;  %v9535_v46 = vld [vmem:[#allocation115_spill] sm:$0xff] }
 0x69e   :  { %2664 = vmatmul.f32.vlgmr.msrb.gmra.mxu0 %v7820_v18  ;;  %2704 = vmatmul.f32.vlgmr.msra.gmra.mxu2 %v7820_v18  ;;  %v9536_v17 = vld [vmem:[#allocation51_spill] sm:$0xff] }
 0x69f   :  { %2861 = vmatpush.msrb.mxu1 %v7276_v56  ;;  %2901 = vmatpush.msra.mxu3 %v7279_v16  ;;  %v4069_v56 = vld [vmem:[#allocation15 + $0x120] sm:$0xff] }
 0x6a0   :  { %2831 = vmatpush.msrb.mxu0 %v4063_v19  ;;  %2871 = vmatpush.msra.mxu2 %v7293_v23  ;;  %v9537_v16 = vld [vmem:[#allocation50_spill] sm:$0xff] }
 0x6a1   :  { %2862 = vmatpush.msrb.mxu1 %v7284_v60  ;;  %2902 = vmatpush.msra.mxu3 %v7287_v12  ;;  %v9538_v60 = vld [vmem:[#allocation131_spill] sm:$0xff]  ;;  %v9539_v12 = vld [vmem:[#allocation130_spill] sm:$0xff] }
 0x6a2   :  { %2832 = vmatpush.msrb.mxu0 %v4064_v34  ;;  %2872 = vmatpush.msra.mxu2 %v7303_v11  ;;  %v4070_v23 = vld [vmem:[#allocation15 + $0x100] sm:$0xff]  ;;  %v9573_v34 = vld [vmem:[#allocation109_spill] sm:$0xff] }
 0x6a3   :  { %2863 = vmatpush.msrb.mxu1 %v7296_v21  ;;  %2903 = vmatpush.msra.mxu3 %v7299_v0  ;;  %v9540_v21 = vld [vmem:[#allocation53_spill] sm:$0xff]  ;;  %v9541_v0 = vld [vmem:[#allocation52_spill] sm:$0xff]  ;;  %v9542_v11 = vld [vmem:[#allocation62_spill] sm:$0xff] }
 0x6a4   :  { %2833 = vmatpush.msrb.mxu0 %v4065_v25  ;;  %2873 = vmatpush.msra.mxu2 %v7313_v15  ;;  %v9544_v15 = vld [vmem:[#allocation63_spill] sm:$0xff]  ;;  %v9572_v19 = vld [vmem:[#allocation46_spill] sm:$0xff] }
 0x6a5   :  { %2864 = vmatpush.msrb.mxu1 %v7306_v9  ;;  %2904 = vmatpush.msra.mxu3 %v7309_v57  ;;  %v4071_v9 = vld [vmem:[#allocation15 + $0xe0] sm:$0xff]  ;;  %v9543_v57 = vld [vmem:[#allocation36_spill] sm:$0xff]  ;;  %v9574_v25 = vld [vmem:[#allocation47_spill] sm:$0xff] }
 0x6a6   :  { %2834 = vmatpush.msrb.mxu0 %v4066_v27  ;;  %2874 = vmatpush.msra.mxu2 %v7323_v45  ;;  %v9546_v45 = vld [vmem:[#allocation37_spill] sm:$0xff] }
 0x6a7   :  { %2865 = vmatpush.msrb.mxu1 %v7316_v40  ;;  %2905 = vmatpush.msra.mxu3 %v7319_v24  ;;  %v9545_v40 = vld [vmem:[#allocation65_spill] sm:$0xff]  ;;  %v4072_v24 = vld [vmem:[#allocation15 + $0xc0] sm:$0xff] }
 0x6a8   :  { %2744 = vmatmul.f32.vlgmr.msra.gmra.mxu0 %v7820_v18  ;;  %2784 = vmatmul.f32.vlgmr.msrb.gmra.mxu2 %v7820_v18  ;;  %v9575_v27 = vld [vmem:[#allocation105_spill] sm:$0xff] }
 0x6a9   :  { %2866 = vmatpush.msrb.mxu1 %v7326_v4  ;;  %2906 = vmatpush.msra.mxu3 %v7329_v47  ;;  %v9547_v4 = vld [vmem:[#allocation38_spill] sm:$0xff] }
 0x6aa   :  { %2835 = vmatpush.msrb.mxu0 %v4067_v48  ;;  %2867 = vmatmul.f32.vlgmr.msrb.gmra.mxu1 %v7820_v18  ;;  %v9548_v47 = vld [vmem:[#allocation66_spill] sm:$0xff]  ;;  %v9577_v48 = vld [vmem:[#allocation49_spill] sm:$0xff] }
 0x6ab   :  { %2875 = vmatpush.msra.mxu2 %v7336_v39  ;;  %2907 = vmatmul.f32.vlgmr.msra.gmra.mxu3 %v7820_v18  ;;  %v4073_v39 = vld [vmem:[#allocation15 + $0xa0] sm:$0xff] }
 0x6ac   :  { %2836 = vmatpush.msrb.mxu0 %v4068_v1  ;;  %2953 = vmatpush.msra.mxu1 %v9534_v50  ;;  %v9578_v1 = vld [vmem:[#allocation110_spill] sm:$0xff]  ;;  %v9579_v50 = vld [vmem:[#allocation48_spill] sm:$0xff] }
 0x6ad   :  { %2876 = vmatpush.msra.mxu2 %v9535_v46  ;;  %2993 = vmatpush.msrb.mxu3 %v9536_v17  ;;  %v9580_v46 = vld [vmem:[#allocation113_spill] sm:$0xff]  ;;  %v9581_v17 = vld [vmem:[#allocation67_spill] sm:$0xff] }
 0x6ae   :  { %2837 = vmatpush.msrb.mxu0 %v4069_v56  ;;  %2954 = vmatpush.msra.mxu1 %v9537_v16  ;;  %v9582_v56 = vld [vmem:[#allocation64_spill] sm:$0xff]  ;;  %v9583_v16 = vld [vmem:[#allocation61_spill] sm:$0xff] }
 0x6af   :  { %2877 = vmatpush.msra.mxu2 %v9538_v60  ;;  %2994 = vmatpush.msrb.mxu3 %v9539_v12  ;;  %v9584_v60 = vld [vmem:[#allocation114_spill] sm:$0xff]  ;;  %v9585_v12 = vld [vmem:[#allocation123_spill] sm:$0xff] }
 0x6b0   :  { %2838 = vmatpush.msrb.mxu0 %v4070_v23  ;;  %2955 = vmatpush.msra.mxu1 %v9540_v21  ;;  %v9586_v23 = vld [vmem:[#allocation68_spill] sm:$0xff]  ;;  %v9587_v21 = vld [vmem:[#allocation119_spill] sm:$0xff] }
 0x6b1   :  { %2878 = vmatpush.msra.mxu2 %v9541_v0  ;;  %2995 = vmatpush.msrb.mxu3 %v9542_v11  ;;  %v9588_v0 = vld [vmem:[#allocation120_spill] sm:$0xff] }
 0x6b2   :  { %2839 = vmatpush.msrb.mxu0 %v4071_v9  ;;  %2956 = vmatpush.msra.mxu1 %v9543_v57  ;;  %v9589_v11 = vld [vmem:[#allocation76_spill] sm:$0xff]  ;;  %v9590_v9 = vld [vmem:[#allocation71_spill] sm:$0xff] }
 0x6b3   :  { %2879 = vmatpush.msra.mxu2 %v9544_v15  ;;  %2996 = vmatpush.msrb.mxu3 %v9545_v40  ;;  %v9591_v57 = vld [vmem:[#allocation72_spill] sm:$0xff]  ;;  %v9593_v40 = vld [vmem:[#allocation85_spill] sm:$0xff] }
 0x6b4   :  { %2840 = vmatpush.msrb.mxu0 %v4072_v24  ;;  %2957 = vmatpush.msra.mxu1 %v9546_v45  ;;  %v9592_v15 = vld [vmem:[#allocation124_spill] sm:$0xff]  ;;  %v9594_v24 = vld [vmem:[#allocation75_spill] sm:$0xff]  ;;  %v9595_v45 = vld [vmem:[#allocation81_spill] sm:$0xff] }
 0x6b5   :  { %2880 = vmatpush.msra.mxu2 %v9547_v4  ;;  %2997 = vmatpush.msrb.mxu3 %v9548_v47  ;;  %v9596_v4 = vld [vmem:[#allocation82_spill] sm:$0xff]  ;;  %v9597_v47 = vld [vmem:[#allocation93_spill] sm:$0xff] }
 0x6b6   :  { %2841 = vmatpush.msrb.mxu0 %v4073_v39  ;;  %2958 = vmatpush.msra.mxu1 %v9549_v2  ;;  %v9598_v39 = vld [vmem:[#allocation129_spill] sm:$0xff]  ;;  %v9599_v2 = vld [vmem:[#allocation86_spill] sm:$0xff] }
 0x6b7   :  { %2881 = vmatpush.msra.mxu2 %v9550_v33  ;;  %2998 = vmatpush.msrb.mxu3 %v9551_v52  ;;  %v9600_v33 = vld [vmem:[#allocation89_spill] sm:$0xff]  ;;  %v9601_v52 = vld [vmem:[#allocation103_spill] sm:$0xff] }
 0x6b8   :  { %2842 = vmatpush.msrb.mxu0 %v4074_v7  ;;  %2959 = vmatpush.msra.mxu1 %v9552_v5  ;;  %v9602_v7 = vld [vmem:[#allocation90_spill] sm:$0xff] }
 0x6b9   :  { %2882 = vmatpush.msra.mxu2 %v9553_v59  ;;  %2999 = vmatpush.msrb.mxu3 %v9554_v36  ;;  %v9603_v5 = vld [vmem:[#allocation94_spill] sm:$0xff]  ;;  %v9604_v59 = vld [vmem:[#allocation99_spill] sm:$0xff] }
 0x6ba   :  { %2843 = vmatpush.msrb.mxu0 %v4075_v41  ;;  %2960 = vmatpush.msra.mxu1 %v9555_v42  ;;  %v9605_v36 = vld [vmem:[#allocation111_spill] sm:$0xff]  ;;  %v9606_v41 = vld [vmem:[#allocation100_spill] sm:$0xff] }
 0x6bb   :  { %2883 = vmatpush.msra.mxu2 %v9556_v58  ;;  %3000 = vmatpush.msrb.mxu3 %v9557_v49  ;;  %v9607_v42 = vld [vmem:[#allocation104_spill] sm:$0xff]  ;;  %v9608_v58 = vld [vmem:[#allocation107_spill] sm:$0xff]  ;;  %v9609_v49 = vld [vmem:[#allocation121_spill] sm:$0xff] }
 0x6bc   :  { %2844 = vmatpush.msrb.mxu0 %v4076_v29  ;;  %2961 = vmatpush.msra.mxu1 %v9558_v62  ;;  %v9610_v29 = vld [vmem:[#allocation108_spill] sm:$0xff] }
 0x6bd   :  { %2884 = vmatpush.msra.mxu2 %v9559_v28  ;;  %3001 = vmatpush.msrb.mxu3 %v9560_v13  ;;  %v9611_v62 = vld [vmem:[#allocation112_spill] sm:$0xff]  ;;  %v9612_v28 = vld [vmem:[#allocation117_spill] sm:$0xff]  ;;  %v9613_v13 = vld [vmem:[#allocation127_spill] sm:$0xff] }
 0x6be   :  { %2845 = vmatpush.msrb.mxu0 %v4077_v32  ;;  %2962 = vmatpush.msra.mxu1 %v9561_v61  ;;  %v9614_v32 = vld [vmem:[#allocation118_spill] sm:$0xff] }
 0x6bf   :  { %2885 = vmatpush.msra.mxu2 %v9562_v38  ;;  %3002 = vmatpush.msrb.mxu3 %v9563_v54  ;;  %v9615_v61 = vld [vmem:[#allocation122_spill] sm:$0xff]  ;;  %v9616_v38 = vld [vmem:[#allocation125_spill] sm:$0xff] }
 0x6c0   :  { %2846 = vmatpush.msrb.mxu0 %v4078_v37  ;;  %2963 = vmatpush.msra.mxu1 %v9564_v51  ;;  %v9617_v54 = vld [vmem:[#allocation138_spill] sm:$0xff]  ;;  %v9619_v51 = vld [vmem:[#allocation128_spill] sm:$0xff] }
 0x6c1   :  { %2886 = vmatpush.msra.mxu2 %v9565_v44  ;;  %2847 = vmatmul.f32.vlgmr.msrb.gmra.mxu0 %v7820_v18  ;;  %v9618_v37 = vld [vmem:[#allocation126_spill] sm:$0xff]  ;;  %v9620_v44 = vld [vmem:[#allocation132_spill] sm:$0xff] }
 0x6c2   :  { %2887 = vmatmul.f32.vlgmr.msra.gmra.mxu2 %v7820_v18  ;;  %2933 = vmatpush.msra.mxu0 %v9566_v53  ;;  %v9576_v18 = vld [vmem:[#allocation106_spill] sm:$0xff]  ;;  %v9621_v53 = vld [vmem:[#allocation144_spill] sm:$0xff] }
 0x6c3   :  { %3003 = vmatpush.msrb.mxu3 %v9567_v8  ;;  %2964 = vmatpush.msra.mxu1 %v9568_v22  ;;  %v9622_v8 = vld [vmem:[#allocation133_spill] sm:$0xff] }
 0x6c4   :  { %2934 = vmatpush.msra.mxu0 %v9569_v30  ;;  %2973 = vmatpush.msrb.mxu2 %v9570_v3  ;;  %v9623_v22 = vld [vmem:[#allocation141_spill] sm:$0xff]  ;;  %v9624_v30 = vld [vmem:[#allocation142_spill] sm:$0xff] }
 0x6c5   :  { %3004 = vmatpush.msrb.mxu3 %v9571_v31  ;;  %2965 = vmatpush.msra.mxu1 %v9572_v19  ;;  %v9625_v3 = vld [vmem:[#allocation146_spill] sm:$0xff]  ;;  %v9626_v31 = vld [vmem:[#allocation143_spill] sm:$0xff] }
 0x6c6   :  { %2935 = vmatpush.msra.mxu0 %v9573_v34  ;;  %2974 = vmatpush.msrb.mxu2 %v9574_v25  ;;  %v9627_v19 = vld [vmem:[#allocation150_spill] sm:$0xff]  ;;  %v9628_v34 = vld [vmem:[#allocation80_spill] sm:$0xff]  ;;  %v9629_v25 = vld [vmem:[#allocation79_spill] sm:$0xff] }
 0x6c7   :  { %3005 = vmatpush.msrb.mxu3 %v9575_v27  ;;  %2966 = vmatpush.msra.mxu1 %v9576_v18  ;;  %v9630_v27 = vld [vmem:[#allocation145_spill] sm:$0xff]  ;;  %v9631_v18 = vld [vmem:[#allocation154_spill] sm:$0xff] }
 0x6c8   :  { %2936 = vmatpush.msra.mxu0 %v9577_v48  ;;  %2975 = vmatpush.msrb.mxu2 %v9578_v1  ;;  %v9632_v48 = vld [vmem:[#allocation147_spill] sm:$0xff]  ;;  %v9633_v1 = vld [vmem:[#allocation148_spill] sm:$0xff] }
 0x6c9   :  { %3006 = vmatpush.msrb.mxu3 %v9579_v50  ;;  %2967 = vmatpush.msra.mxu1 %v9580_v46  ;;  %v9634_v50 = vld [vmem:[#allocation149_spill] sm:$0xff]  ;;  %v9635_v46 = vld [vmem:[#allocation158_spill] sm:$0xff] }
 0x6ca   :  { %2937 = vmatpush.msra.mxu0 %v9581_v17  ;;  %2976 = vmatpush.msrb.mxu2 %v9582_v56  ;;  %v9636_v17 = vld [vmem:[#allocation151_spill] sm:$0xff]  ;;  %v9637_v56 = vld [vmem:[#allocation152_spill] sm:$0xff] }
 0x6cb   :  { %3007 = vmatpush.msrb.mxu3 %v9583_v16  ;;  %2968 = vmatpush.msra.mxu1 %v9584_v60  ;;  %v9638_v16 = vld [vmem:[#allocation153_spill] sm:$0xff]  ;;  %v9639_v60 = vld [vmem:[#allocation162_spill] sm:$0xff] }
 0x6cc   :  { %2938 = vmatpush.msra.mxu0 %v9585_v12  ;;  %2977 = vmatpush.msrb.mxu2 %v9586_v23  ;;  %v9640_v12 = vld [vmem:[#allocation155_spill] sm:$0xff]  ;;  %v9641_v23 = vld [vmem:[#allocation156_spill] sm:$0xff] }
 0x6cd   :  { %3008 = vmatpush.msrb.mxu3 %v9587_v21  ;;  %3033 = vmatpush.msrb.mxu1 %v9588_v0  ;;  %v9642_v21 = vld [vmem:[#allocation157_spill] sm:$0xff]  ;;  %v9643_v0 = vld [vmem:[#allocation166_spill] sm:$0xff] }
 0x6ce   :  { %2939 = vmatpush.msra.mxu0 %v9589_v11  ;;  %2978 = vmatpush.msrb.mxu2 %v9591_v57  ;;  %v9644_v11 = vld [vmem:[#allocation159_spill] sm:$0xff]  ;;  %v9646_v57 = vld [vmem:[#allocation161_spill] sm:$0xff] }
 0x6cf   :  { %3073 = vmatpush.msra.mxu3 %v9590_v9  ;;  %3034 = vmatpush.msrb.mxu1 %v9592_v15  ;;  %v9645_v9 = vld [vmem:[#allocation160_spill] sm:$0xff] }
 0x6d0   :  { %2940 = vmatpush.msra.mxu0 %v9593_v40  ;;  %2979 = vmatpush.msrb.mxu2 %v9595_v45  ;;  %v9647_v15 = vld [vmem:[#allocation168_spill] sm:$0xff]  ;;  %v9648_v40 = vld [vmem:[#allocation163_spill] sm:$0xff]  ;;  %v9650_v45 = vld [vmem:[#allocation165_spill] sm:$0xff] }
 0x6d1   :  { %3074 = vmatpush.msra.mxu3 %v9594_v24  ;;  %3035 = vmatpush.msrb.mxu1 %v9596_v4  ;;  %v9649_v24 = vld [vmem:[#allocation164_spill] sm:$0xff]  ;;  %v9651_v4 = vld [vmem:[#allocation170_spill] sm:$0xff] }
 0x6d2   :  { %2941 = vmatpush.msra.mxu0 %v9597_v47  ;;  %2980 = vmatpush.msrb.mxu2 %v9599_v2  ;;  %v9652_v47 = vld [vmem:[#allocation167_spill] sm:$0xff]  ;;  %v9654_v2 = vld [vmem:[#allocation169_spill] sm:$0xff] }
 0x6d3   :  { %3075 = vmatpush.msra.mxu3 %v9598_v39  ;;  %3036 = vmatpush.msrb.mxu1 %v9600_v33  ;;  %v9653_v39 = vld [vmem:[#allocation172_spill] sm:$0xff]  ;;  %v9655_v33 = vld [vmem:[#allocation174_spill] sm:$0xff] }
 0x6d4   :  { %2942 = vmatpush.msra.mxu0 %v9601_v52  ;;  %2981 = vmatpush.msrb.mxu2 %v9603_v5  ;;  %v9656_v52 = vld [vmem:[#allocation171_spill] sm:$0xff]  ;;  %v9658_v5 = vld [vmem:[#allocation173_spill] sm:$0xff] }
 0x6d5   :  { %3076 = vmatpush.msra.mxu3 %v9602_v7  ;;  %3037 = vmatpush.msrb.mxu1 %v9604_v59  ;;  %v9657_v7 = vld [vmem:[#allocation176_spill] sm:$0xff]  ;;  %v9659_v59 = vld [vmem:[#allocation178_spill] sm:$0xff] }
 0x6d6   :  { %2943 = vmatpush.msra.mxu0 %v9605_v36  ;;  %2982 = vmatpush.msrb.mxu2 %v9607_v42  ;;  %v9660_v36 = vld [vmem:[#allocation175_spill] sm:$0xff]  ;;  %v9662_v42 = vld [vmem:[#allocation177_spill] sm:$0xff] }
 0x6d7   :  { %3077 = vmatpush.msra.mxu3 %v9606_v41  ;;  %3038 = vmatpush.msrb.mxu1 %v9608_v58  ;;  %v9661_v41 = vld [vmem:[#allocation180_spill] sm:$0xff]  ;;  %v9663_v58 = vld [vmem:[#allocation182_spill] sm:$0xff] }
 0x6d8   :  { %2944 = vmatpush.msra.mxu0 %v9609_v49  ;;  %2983 = vmatpush.msrb.mxu2 %v9611_v62  ;;  %v9664_v49 = vld [vmem:[#allocation179_spill] sm:$0xff]  ;;  %v9666_v62 = vld [vmem:[#allocation181_spill] sm:$0xff] }
 0x6d9   :  { %3078 = vmatpush.msra.mxu3 %v9610_v29  ;;  %3039 = vmatpush.msrb.mxu1 %v9612_v28  ;;  %v9665_v29 = vld [vmem:[#allocation184_spill] sm:$0xff]  ;;  %v9667_v28 = vld [vmem:[#allocation186_spill] sm:$0xff] }
 0x6da   :  { %2945 = vmatpush.msra.mxu0 %v9613_v13  ;;  %2984 = vmatpush.msrb.mxu2 %v9615_v61  ;;  %v9668_v13 = vld [vmem:[#allocation183_spill] sm:$0xff]  ;;  %v9670_v61 = vld [vmem:[#allocation185_spill] sm:$0xff] }
 0x6db   :  { %3079 = vmatpush.msra.mxu3 %v9614_v32  ;;  %3040 = vmatpush.msrb.mxu1 %v9616_v38  ;;  %v9669_v32 = vld [vmem:[#allocation188_spill] sm:$0xff]  ;;  %v9671_v38 = vld [vmem:[#allocation187_spill] sm:$0xff] }
 0x6dc   :  { %2946 = vmatpush.msra.mxu0 %v9617_v54  ;;  %2985 = vmatpush.msrb.mxu2 %v9619_v51  ;;  %v9672_v54 = vld [vmem:[#allocation189_spill] sm:$0xff] }
 0x6dd   :  { %3080 = vmatpush.msra.mxu3 %v9618_v37  ;;  %3041 = vmatpush.msrb.mxu1 %v9620_v44  ;;  %v9673_v44 = vld [vmem:[#allocation59_spill] sm:$0xff] }
 0x6de   :  { %2947 = vmatpush.msra.mxu0 %v9621_v53  ;;  %2986 = vmatpush.msrb.mxu2 %v9623_v22 }
 0x6df   :  { %3081 = vmatpush.msra.mxu3 %v9622_v8  ;;  %3042 = vmatpush.msrb.mxu1 %v9624_v30 }
 0x6e0   :  { %2948 = vmatpush.msra.mxu0 %v9625_v3  ;;  %2987 = vmatpush.msrb.mxu2 %v9628_v34 }
 0x6e1   :  { %3082 = vmatpush.msra.mxu3 %v9626_v31  ;;  %3043 = vmatpush.msrb.mxu1 %v9629_v25  ;;  %v9674_v31 = vld [vmem:[#allocation35_spill] sm:$0xff] }
 0x6e2   :  { %3013 = vmatpush.msrb.mxu0 %v9627_v19  ;;  %2988 = vmatpush.msrb.mxu2 %v9632_v48 }
 0x6e3   :  { %3083 = vmatpush.msra.mxu3 %v9630_v27  ;;  %3044 = vmatpush.msrb.mxu1 %v9633_v1 }
 0x6e4   :  { %3014 = vmatpush.msrb.mxu0 %v9631_v18  ;;  %3053 = vmatpush.msra.mxu2 %v9636_v17 }
 0x6e5   :  { %3084 = vmatpush.msra.mxu3 %v9634_v50  ;;  %3045 = vmatpush.msrb.mxu1 %v9637_v56 }
 0x6e6   :  { %3015 = vmatpush.msrb.mxu0 %v9635_v46  ;;  %3054 = vmatpush.msra.mxu2 %v9640_v12 }
 0x6e7   :  { %3085 = vmatpush.msra.mxu3 %v9638_v16  ;;  %3046 = vmatpush.msrb.mxu1 %v9641_v23 }
 0x6e8   :  { %3016 = vmatpush.msrb.mxu0 %v9639_v60  ;;  %3055 = vmatpush.msra.mxu2 %v9644_v11 }
 0x6e9   :  { %3086 = vmatpush.msra.mxu3 %v9642_v21  ;;  %3047 = vmatpush.msrb.mxu1 %v9645_v9  ;;  %v9675_v9 = vld [vmem:[#allocation140_spill] sm:$0xff] }
 0x6ea   :  { %3017 = vmatpush.msrb.mxu0 %v9643_v0  ;;  %3056 = vmatpush.msra.mxu2 %v9648_v40 }
 0x6eb   :  { %3087 = vmatpush.msra.mxu3 %v9646_v57  ;;  %3048 = vmatpush.msrb.mxu1 %v9649_v24  ;;  %v508_v57 = vadd.f32 %v9675_v9, %v5225_v6  ;;  %v9679_v9 = vld [vmem:[#allocation60_spill] sm:$0xff] }
 0x6ec   :  { %3018 = vmatpush.msrb.mxu0 %v9647_v15  ;;  %3057 = vmatpush.msra.mxu2 %v9652_v47 }
 0x6ed   :  { %3088 = vmatpush.msra.mxu3 %v9650_v45 }
 0x6ee   :  { %3019 = vmatpush.msrb.mxu0 %v9651_v4  ;;  %3058 = vmatpush.msra.mxu2 %v9654_v2 }
 0x6f0   :  { %3020 = vmatpush.msrb.mxu0 %v9653_v39  ;;  %3059 = vmatpush.msra.mxu2 %v9656_v52  ;;  %v9676_v52 = vld [vmem:[#allocation139_spill] sm:$0xff] }
 0x6f2   :  { %3021 = vmatpush.msrb.mxu0 %v9655_v33  ;;  %3060 = vmatpush.msra.mxu2 %v9658_v5 }
 0x6f4   :  { %3022 = vmatpush.msrb.mxu0 %v9657_v7  ;;  %3061 = vmatpush.msra.mxu2 %v9660_v36  ;;  %v467_v7 = vadd.f32 %v9676_v52, %v5223_v63  ;;  %v9678_v63 = vld [vmem:[#allocation58_spill] sm:$0xff] }
 0x6f6   :  { %3023 = vmatpush.msrb.mxu0 %v9659_v59  ;;  %3062 = vmatpush.msra.mxu2 %v9662_v42 }
 0x6f8   :  { %3024 = vmatpush.msrb.mxu0 %v9661_v41  ;;  %3063 = vmatpush.msra.mxu2 %v9664_v49 }
 0x6fa   :  { %3025 = vmatpush.msrb.mxu0 %v9663_v58  ;;  %3064 = vmatpush.msra.mxu2 %v9666_v62 }
 0x6fc   :  { %3026 = vmatpush.msrb.mxu0 %v9665_v29  ;;  %3065 = vmatpush.msra.mxu2 %v9668_v13 }
 0x6fe   :  { %3027 = vmatpush.msrb.mxu0 %v9667_v28  ;;  %3066 = vmatpush.msra.mxu2 %v9670_v61  ;;  %v549_v28 = vadd.f32 %v9678_v63, %v5259_v14 }
 0x700   :  { %3028 = vmatpush.msrb.mxu0 %v9669_v32  ;;  %3067 = vmatpush.msra.mxu2 %v9671_v38 }
 0x702   :  { %3068 = vmatpush.msra.mxu2 %v9672_v54 }
 0x707   :  { %v2685_v37 = vpop.f32.mrf.mxu1 }
 0x70d   :  { %v2725_v30 = vpop.f32.mrf.mxu3 }
 0x70f   :  { %v2765_v18 = vpop.f32.mrf.mxu1 }
 0x715   :  { %v2805_v56 = vpop.f32.mrf.mxu3 }
 0x71b   :  { %v2665_v51 = vpop.f32.mrf.mxu0 }
 0x71c   :  { %v2666_v53 = vadd.f32 %v2665_v51, %v9673_v44 }
 0x71e   :  { %v2686_v8 = vadd.f32 %v2685_v37, %v2666_v53 }
 0x720   :  { %v2808_v22 = vmul.f32 0.5, %v2686_v8 }
 0x721   :  { %v2705_v3 = vpop.f32.mrf.mxu2 }
 0x722   :  { %v2706_v19 = vadd.f32 %v2705_v3, %v9674_v31  ;;  %3457 = vtanh.f32 %v2808_v22 }
 0x724   :  { %v2726_v25 = vadd.f32 %v2725_v30, %v2706_v19 }
 0x725   :  { %v2745_v34 = vpop.f32.mrf.mxu0 }
 0x726   :  { %v2746_v27 = vadd.f32 %v2745_v34, %v5508_v10  ;;  %v2812_v48 = vmul.f32 0.5, %v2726_v25 }
 0x727   :  { %v2868_v11 = vpop.f32.mrf.mxu1 }
 0x728   :  { %v2766_v1 = vadd.f32 %v2765_v18, %v2746_v27  ;;  %3459 = vtanh.f32 %v2812_v48  ;;  %v3458_v46 = vpop.eup %3457  ;;  %v2912_v4 = vadd.f32 %v2868_v11, %v508_v57  ;;  %v3141_v27 = vld [vmem:[#allocation18 + $0x78] sm:$0xff]  ;;  %v3140_v18 = vld [vmem:[#allocation18 + $0x70] sm:$0xff]  ;;  %v3139_v48 = vld [vmem:[#allocation18 + $0x68] sm:$0xff] }
 0x729   :  { %v2810_v60 = vadd.f32 1.0, %v3458_v46  ;;  %v3135_v46 = vld [vmem:[#allocation18 + $0x48] sm:$0xff]  ;;  %v3126_v11 = vld [vmem:[#allocation18] sm:$0xff] }
 0x72a   :  { %3461 = vtanh.f32 %v2766_v1  ;;  %v2919_v2 = vmul.f32 0.5, %v2912_v4  ;;  %v3138_v1 = vld [vmem:[#allocation18 + $0x60] sm:$0xff] }
 0x72b   :  { %v2785_v50 = vpop.f32.mrf.mxu2  ;;  %v2811_v15 = vmul.f32 0.5, %v2810_v60  ;;  %v3131_v60 = vld [vmem:[#allocation18 + $0x28] sm:$0xff]  ;;  %v9680_v57 = vld [vmem:[#allocation98_spill] sm:$0xff] }
 0x72c   :  { %v2786_v17 = vadd.f32 %v2785_v50, %v5512_v26  ;;  %v3136_v50 = vld [vmem:[#allocation18 + $0x50] sm:$0xff] }
 0x72e   :  { %v2806_v16 = vadd.f32 %v2805_v56, %v2786_v17  ;;  %v3460_v12 = vpop.eup %3459  ;;  %v2908_v41 = vpop.f32.mrf.mxu3  ;;  %v3134_v17 = vld [vmem:[#allocation18 + $0x40] sm:$0xff]  ;;  %v3133_v56 = vld [vmem:[#allocation18 + $0x38] sm:$0xff] }
 0x72f   :  { %v2814_v21 = vadd.f32 1.0, %v3460_v12  ;;  %v3130_v12 = vld [vmem:[#allocation18 + $0x20] sm:$0xff] }
 0x730   :  { %v2817_v23 = vmul.f32 0.5, %v2806_v16  ;;  %v3462_v0 = vpop.eup %3461  ;;  %v3132_v16 = vld [vmem:[#allocation18 + $0x30] sm:$0xff] }
 0x731   :  { %v2815_v40 = vmul.f32 0.5, %v2814_v21  ;;  %v2822_v45 = vmul.f32 %v3462_v0, %v2811_v15  ;;  %v3128_v21 = vld [vmem:[#allocation18 + $0x10] sm:$0xff]  ;;  %v3127_v0 = vld [vmem:[#allocation18 + $0x8] sm:$0xff]  ;;  %v9681_v15 = vld [vmem:[#allocation97_spill] sm:$0xff] }
 0x732   :  { %3463 = vtanh.f32 %v2817_v23  ;;  %v3129_v23 = vld [vmem:[#allocation18 + $0x18] sm:$0xff] }
 0x733   :  { %v2821_v24 = vmul.f32 %v2815_v40, %v7777_v35  ;;  %v9677_v35 = vld [vmem:[#allocation34_spill] sm:$0xff] }
 0x734   :  { %v590_v42 = vadd.f32 %v9677_v35, %v5261_v20  ;;  %v9682_v40 = vld [vmem:[#allocation198_spill] sm:$0xff] }
 0x735   :  { %v7989_v47 = vadd.f32 %v2822_v45, %v2821_v24  ;;  %v9683_v24 = vld [vmem:[#allocation199_spill] sm:$0xff] }
 0x736   :  { %v2914_v29 = vadd.f32 %v2908_v41, %v590_v42 }
 0x737   :  { %3465 = vtanh.f32 %v7989_v47 }
 0x738   :  { %v3464_v39 = vpop.eup %3463  ;;  %3467 = vtanh.f32 %v2919_v2  ;;  %v2924_v38 = vmul.f32 0.5, %v2914_v29 }
 0x739   :  { %v2819_v33 = vadd.f32 1.0, %v3464_v39 }
 0x73b   :  { %v2820_v59 = vmul.f32 0.5, %v2819_v33 }
 0x73d   :  { %v3466_v36 = vpop.eup %3465 }
 0x73e   :  { %v2848_v5 = vpop.f32.mrf.mxu0  ;;  %v7996_v58 = vmul.f32 %v3466_v36, %v2820_v59  ;;  %v3468_v62 = vpop.eup %3467 }
 0x73f   :  { %v2911_v6 = vadd.f32 %v2848_v5, %v467_v7  ;;  %v2921_v61 = vadd.f32 1.0, %v3468_v62 }
 0x740   :  { %2969 = vmatmul.f32.vlgmr.msra.gmra.mxu1 %v7996_v58  ;;  %3009 = vmatmul.f32.vlgmr.msrb.gmra.mxu3 %v7996_v58 }
 0x741   :  { %v2915_v49 = vmul.f32 0.5, %v2911_v6  ;;  %v2922_v37 = vmul.f32 0.5, %v2921_v61 }
 0x743   :  { %3469 = vtanh.f32 %v2915_v49  ;;  %v2928_v8 = vmul.f32 %v2922_v37, %v7807_v55  ;;  %v3137_v55 = vld [vmem:[#allocation18 + $0x58] sm:$0xff] }
 0x745   :  { %v2888_v13 = vpop.f32.mrf.mxu2 }
 0x746   :  { %v2913_v32 = vadd.f32 %v2888_v13, %v549_v28 }
 0x748   :  { %3471 = vtanh.f32 %v2913_v32  ;;  %3049 = vmatmul.f32.vlgmr.msrb.gmra.mxu1 %v7996_v58  ;;  %3089 = vmatmul.f32.vlgmr.msra.gmra.mxu3 %v7996_v58 }
 0x749   :  { %v3470_v54 = vpop.eup %3469  ;;  %3473 = vtanh.f32 %v2924_v38 }
 0x74a   :  { %v2917_v20 = vadd.f32 1.0, %v3470_v54 }
 0x74c   :  { %v2918_v51 = vmul.f32 0.5, %v2917_v20 }
 0x74e   :  { %v3472_v53 = vpop.eup %3471 }
 0x74f   :  { %v2929_v22 = vmul.f32 %v3472_v53, %v2918_v51  ;;  %v3474_v30 = vpop.eup %3473 }
 0x750   :  { %v2926_v3 = vadd.f32 1.0, %v3474_v30 }
 0x751   :  { %v2930_v14 = vadd.f32 %v2929_v22, %v2928_v8 }
 0x752   :  { %v2927_v19 = vmul.f32 0.5, %v2926_v3 }
 0x753   :  { %3475 = vtanh.f32 %v2930_v14  ;;  %3113 = vst [vmem:[#allocation25] sm:$0xff] %v2930_v14 }
 0x759   :  { %v3476_v34 = vpop.eup %3475 }
 0x75a   :  { %v2932_v25 = vmul.f32 %v3476_v34, %v2927_v19 }
 0x75c   :  { %2949 = vmatmul.f32.vlgmr.msra.gmra.mxu0 %v2932_v25  ;;  %3112 = vst [vmem:[#allocation23] sm:$0xff] %v2932_v25  ;;  %2989 = vmatmul.f32.vlgmr.msrb.gmra.mxu2 %v2932_v25 }
 0x75d   :  { %3146 = vmatpush.msra.mxu0 %v3141_v27 }
 0x75f   :  { %3147 = vmatpush.msra.mxu0 %v3140_v18 }
 0x761   :  { %3148 = vmatpush.msra.mxu0 %v3139_v48 }
 0x763   :  { %3149 = vmatpush.msra.mxu0 %v3138_v1 }
 0x764   :  { %3029 = vmatmul.f32.vlgmr.msrb.gmra.mxu0 %v2932_v25  ;;  %3069 = vmatmul.f32.vlgmr.msra.gmra.mxu2 %v2932_v25 }
 0x765   :  { %3150 = vmatpush.msra.mxu0 %v3137_v55 }
 0x767   :  { %3151 = vmatpush.msra.mxu0 %v3136_v50 }
 0x769   :  { %3152 = vmatpush.msra.mxu0 %v3135_v46 }
 0x76b   :  { %3153 = vmatpush.msra.mxu0 %v3134_v17 }
 0x76d   :  { %3154 = vmatpush.msra.mxu0 %v3133_v56 }
 0x76f   :  { %3155 = vmatpush.msra.mxu0 %v3132_v16 }
 0x771   :  { %3156 = vmatpush.msra.mxu0 %v3131_v60 }
 0x773   :  { %3157 = vmatpush.msra.mxu0 %v3130_v12 }
 0x775   :  { %3158 = vmatpush.msra.mxu0 %v3129_v23 }
 0x777   :  { %3159 = vmatpush.msra.mxu0 %v3128_v21 }
 0x779   :  { %3160 = vmatpush.msra.mxu0 %v3127_v0 }
 0x77b   :  { %3161 = vmatpush.msra.mxu0 %v3126_v11 }
 0x77c   :  { %3162 = vmatmul.f32.vlgmr.msra.gmra.mxu0 %v9679_v9 }
 0x784   :  { %3165 = vmatmul.f32.gmra.mxu0 %v9680_v57 }
 0x78c   :  { %3168 = vmatmul.f32.gmra.mxu0 %v9681_v15 }
 0x794   :  { %3171 = vmatmul.f32.gmra.mxu0 %v9682_v40 }
 0x79c   :  { %3174 = vmatmul.f32.gmra.mxu0 %v9683_v24 }
 0x7a4   :  { %3177 = vmatmul.f32.gmra.mxu0 %v7782_v43 }
 0x7ac   :  { %3180 = vmatmul.f32.gmra.mxu0 %v7996_v58 }
 0x7bd   :  { %v2970_v45 = vpop.f32.mrf.mxu1 }
 0x7c3   :  { %v3010_v52 = vpop.f32.mrf.mxu3 }
 0x7c5   :  { %v3050_v41 = vpop.f32.mrf.mxu1 }
 0x7cb   :  { %v3090_v49 = vpop.f32.mrf.mxu3 }
 0x7d9   :  { %v2950_v4 = vpop.f32.mrf.mxu0 }
 0x7da   :  { %v2951_v39 = vadd.f32 %v2950_v4, %v9673_v44 }
 0x7dc   :  { %v2971_v2 = vadd.f32 %v2970_v45, %v2951_v39 }
 0x7de   :  { %v3093_v33 = vmul.f32 0.5, %v2971_v2 }
 0x7df   :  { %v2990_v7 = vpop.f32.mrf.mxu2 }
 0x7e0   :  { %v2991_v5 = vadd.f32 %v2990_v7, %v9674_v31  ;;  %3477 = vtanh.f32 %v3093_v33 }
 0x7e1   :  { %v3030_v59 = vpop.f32.mrf.mxu0 }
 0x7e2   :  { %v3011_v6 = vadd.f32 %v3010_v52, %v2991_v5  ;;  %v3031_v36 = vadd.f32 %v3030_v59, %v5508_v10 }
 0x7e4   :  { %v3097_v35 = vmul.f32 0.5, %v3011_v6  ;;  %v3051_v43 = vadd.f32 %v3050_v41, %v3031_v36 }
 0x7e6   :  { %3479 = vtanh.f32 %v3097_v35  ;;  %v3478_v58 = vpop.eup %3477 }
 0x7e7   :  { %v3070_v42 = vpop.f32.mrf.mxu2  ;;  %3481 = vtanh.f32 %v3051_v43  ;;  %v3095_v62 = vadd.f32 1.0, %v3478_v58 }
 0x7e8   :  { %v3071_v44 = vadd.f32 %v3070_v42, %v5512_v26  ;;  %v3326_v26 = vld [vmem:[%s8049_s11] ss:$0 sm:$0xff]  ;;  %s4447_s11 = smov [#allocation25]  }
 0x7e9   :  { %v3096_v32 = vmul.f32 0.5, %v3095_v62  ;;  %s3225_s3 = sshll.u32 %s4447_s11, 4  ;;  %s3226_s3 = int_to_ptr.vmem [resolvable:$true] %s3225_s3 }
 0x7ea   :  { %v3091_v29 = vadd.f32 %v3090_v49, %v3071_v44 }
 0x7ec   :  { %v3480_v63 = vpop.eup %3479  ;;  %v3102_v28 = vmul.f32 0.5, %v3091_v29 }
 0x7ed   :  { %v3099_v31 = vadd.f32 1.0, %v3480_v63  ;;  %v3482_v13 = vpop.eup %3481 }
 0x7ee   :  { %3483 = vtanh.f32 %v3102_v28  ;;  %v3107_v38 = vmul.f32 %v3482_v13, %v3096_v32 }
 0x7ef   :  { %v3100_v61 = vmul.f32 0.5, %v3099_v31 }
 0x7f1   :  { %v3106_v10 = vmul.f32 %v3100_v61, %v7989_v47 }
 0x7f3   :  { %v3108_v54 = vadd.f32 %v3107_v38, %v3106_v10 }
 0x7f4   :  { %v3484_v20 = vpop.eup %3483 }
 0x7f5   :  { %3117 = vst [vmem:[#allocation25 + $0x8] sm:$0xff] %v3108_v54  ;;  %3485 = vtanh.f32 %v3108_v54  ;;  %v3104_v37 = vadd.f32 1.0, %v3484_v20 }
 0x7f7   :  { %v3105_v53 = vmul.f32 0.5, %v3104_v37 }
 0x7f9   :  { %v3163_v51 = vpop.f32.mrf.mxu0 }
 0x7fa   :  { %v3164_v8 = vadd.f32 %v3326_v26, %v3163_v51 }
 0x7fb   :  { %v3486_v22 = vpop.eup %3485 }
 0x7fc   :  { %3187 = vst [vmem:[#allocation22] sm:$0xff] %v3164_v8  ;;  %v3110_v30 = vmul.f32 %v3486_v22, %v3105_v53 }
 0x7fe   :  { %3183 = vmatmul.f32.gmra.mxu0 %v3110_v30  ;;  %3115 = vst [vmem:[#allocation23 + $0x8] sm:$0xff] %v3110_v30 }
 0x7ff   :  { %3220 = dma.vmem_to_hbm [thread:$0]  %s3213_s8, 256, %s3215_s18, [#allocation24], %s4432_s29, %s4432_s29, %s4433_s30  }
 0x800   :  { %3233 = dma.vmem_to_hbm [thread:$0]  %s3226_s3, 256, %s3228_s19, [#allocation24], %s4432_s29, %s4432_s29, %s4433_s30  }
 0x801   :  { %v3166_v47 = vpop.f32.mrf.mxu0 }
 0x802   :  { %v3167_v14 = vadd.f32 %v3326_v26, %v3166_v47 }
 0x804   :  { %3188 = vst [vmem:[#allocation22 + $0x8] sm:$0xff] %v3167_v14 }
 0x809   :  { %v3169_v3 = vpop.f32.mrf.mxu0 }
 0x80a   :  { %v3170_v19 = vadd.f32 %v3326_v26, %v3169_v3 }
 0x80c   :  { %3189 = vst [vmem:[#allocation22 + $0x10] sm:$0xff] %v3170_v19 }
 0x811   :  { %v3172_v34 = vpop.f32.mrf.mxu0 }
 0x812   :  { %v3173_v25 = vadd.f32 %v3326_v26, %v3172_v34 }
 0x814   :  { %3190 = vst [vmem:[#allocation22 + $0x18] sm:$0xff] %v3173_v25 }
 0x819   :  { %v3175_v27 = vpop.f32.mrf.mxu0 }
 0x81a   :  { %v3176_v18 = vadd.f32 %v3326_v26, %v3175_v27 }
 0x81c   :  { %3191 = vst [vmem:[#allocation22 + $0x20] sm:$0xff] %v3176_v18 }
 0x821   :  { %v3178_v48 = vpop.f32.mrf.mxu0 }
 0x822   :  { %v3179_v1 = vadd.f32 %v3326_v26, %v3178_v48 }
 0x824   :  { %3192 = vst [vmem:[#allocation22 + $0x28] sm:$0xff] %v3179_v1 }
 0x829   :  { %v3181_v55 = vpop.f32.mrf.mxu0 }
 0x82a   :  { %v3182_v50 = vadd.f32 %v3326_v26, %v3181_v55 }
 0x82c   :  { %3193 = vst [vmem:[#allocation22 + $0x30] sm:$0xff] %v3182_v50 }
 0x87b   :  { %v3184_v46 = vpop.f32.mrf.mxu0 }
 0x87c   :  { %v3185_v17 = vadd.f32 %v3326_v26, %v3184_v46 }
 0x87e   :  { %3194 = vst [vmem:[#allocation22 + $0x38] sm:$0xff] %v3185_v17 }
 0x87f   :  { %3207 = dma.vmem_to_hbm [thread:$0]  %s3200_s16, 1024, %s3202_s4, [#allocation6], %s4432_s29, %s4432_s29, %s4433_s30  }
 0x880   :  { %4427 = dma.done.wait [#allocation6], 1024  }
 0x881   :  { %4428 = vsyncadd [#allocation6], 4294966272 }
 0x882   :  { %4429 = dma.done.wait [#allocation24], 512  }
 0x883   :  { %4430 = vsyncadd [#allocation24], 4294966784 }
 0x884   :  { %3246 = vsyncpa [#allocation5], 1 }
 0x885   :  { %3247 = vsyncpa [#allocation8], 1 }
 0x886   :  { %3248 = vsyncpa [#allocation11], 1 }
 0x887   :  { %3249 = vsyncpa [#allocation14], 1 }
 0x888   :  { %3250 = vsyncpa [#allocation17], 1 }
 0x889   :  { %3251 = vsyncpa [#allocation20], 1 }
 0x88a   :  { %3252 = vsyncpa [#allocation6], 1 }
 0x88b   :  { %3253 = vsyncpa [#allocation24], 1 }

</bundles_post_ra>
